<compile_context>
chip_gen: v5e
topology: v5e:2x2
jax: 0.10.0
libtpu: 0.0.40
codegen_flags: <defaults>
</compile_context>

<pallas_src>
import functools

import jax
import jax.numpy as jnp
from jax.experimental import pallas as pl
from jax.experimental.pallas import tpu as pltpu


def _default_vmem_limit():
    # Generation-aware scoped-VMEM budget: ~70% of physical per-core VMEM
    # (v5e/v6e: 128 MiB -> ~90 MiB; v7x: 64 MiB -> ~45 MiB).
    try:
        cap = int(pltpu.get_tpu_info().vmem_capacity_bytes)
    except Exception:
        cap = 64 * 1024 * 1024
    return max(32 * 1024 * 1024, min(int(cap * 0.7), 100 * 1024 * 1024))


_VMEM_LIMIT = _default_vmem_limit()


def _round_up(x, m):
    return (x + m - 1) // m * m


def _divisor_tile(size, cap):
    """Largest multiple of 128 <= cap that divides `size` (size is a multiple of 128)."""
    t = min(cap, size)
    while size % t:
        t -= 128
    return t


def _row_tile(m, cap):
    return min(cap, _round_up(m, 16))


# ------------------------------- GEMM kernel --------------------------------

def _gemm_kernel(x_ref, w_ref, b_ref, o_ref, acc_ref, *, slope, out_tanh):
    @pl.when(pl.program_id(2) == 0)
    def _init():
        acc_ref[...] = jnp.zeros_like(acc_ref)

    x = x_ref[...]
    if slope is not None:
        # Activation fused on the GEMM input.  Exactness w.r.t. the zero spatial
        # padding relies on act(0) == 0, true for ReLU / LeakyReLU.
        if slope == 0.0:
            x = jnp.maximum(x, 0)                    # single VALU op (v5e-friendly)
        else:
            x = jnp.where(x >= 0, x, x * slope)
    acc_ref[...] += jnp.dot(x, w_ref[...], preferred_element_type=jnp.float32)

    @pl.when(pl.program_id(2) == pl.num_programs(2) - 1)
    def _finalize():
        y = acc_ref[...] + b_ref[...]
        if out_tanh:
            y = jnp.tanh(y)
        o_ref[...] = y.astype(o_ref.dtype)


def pallas_gemm(x, w, b, n_true, *, slope=None, out_tanh=False, out_dtype=jnp.float32):
    """maybe_tanh(act(x) @ w + b)[:, :n_true].

    x: (M, K) bf16 activation slab (channel-minor im2col).
    w: (K, Np) bf16, zero-padded in N only, once at param-prep time.
    b: (1, Np) f32.
    """
    M, K = x.shape
    Kw, Np = w.shape
    assert K == Kw, (K, Kw)

    tm = _row_tile(M, cap=512)
    # K that is not a 128-multiple (tiny boundary layers) uses one full-K block
    # (full-dim blocks are exempt from the 128 rule) -> no padded copy of the slab.
    tk = _divisor_tile(K, 2048) if K % 128 == 0 else K
    tn = _divisor_tile(Np, 512)
    grid = (pl.cdiv(M, tm), Np // tn, K // tk)

    out = pl.pallas_call(
        functools.partial(_gemm_kernel, slope=slope, out_tanh=out_tanh),
        out_shape=jax.ShapeDtypeStruct((M, Np), out_dtype),
        grid=grid,
        in_specs=[
            pl.BlockSpec((tm, tk), lambda i, j, k: (i, k)),
            pl.BlockSpec((tk, tn), lambda i, j, k: (k, j)),
            pl.BlockSpec((1, tn), lambda i, j, k: (0, j)),
        ],
        out_specs=pl.BlockSpec((tm, tn), lambda i, j, k: (i, j)),
        scratch_shapes=[pltpu.VMEM((tm, tn), jnp.float32)],
        compiler_params=pltpu.CompilerParams(
            dimension_semantics=("parallel", "parallel", "arbitrary"),
            vmem_limit_bytes=_VMEM_LIMIT),
    )(x, w, b)
    return out if n_true == Np else out[:, :n_true]


# ----------------------------- BatchNorm kernels -----------------------------

def _fold_factor(M, C):
    """Lane-density fold: (M, C) -> (M/f, f*C) so the last dim reaches 128."""
    if C >= 128 or (128 % C) != 0:
        return 1
    f = 128 // C
    while f > 1 and M % f:
        f //= 2
    return f


def _bn_stats_kernel(x_ref, s_ref, q_ref, *, m_total, tm, nbh):
    @pl.when(pl.program_id(1) == 0)
    def _init():
        s_ref[...] = jnp.zeros_like(s_ref)
        q_ref[...] = jnp.zeros_like(q_ref)

    x = x_ref[...].astype(jnp.float32)      # f32 accumulation even for bf16 inputs
    if m_total % tm:                        # mask rows of the global partial edge tile
        blk = pl.program_id(0) * nbh + pl.program_id(1)
        row = blk * tm + jax.lax.broadcasted_iota(jnp.int32, x.shape, 0)
        x = jnp.where(row < m_total, x, 0.0)
    s_ref[...] += jnp.sum(x, axis=0, keepdims=True).reshape(s_ref.shape)
    q_ref[...] += jnp.sum(x * x, axis=0, keepdims=True).reshape(q_ref.shape)


def pallas_bn_stats(xf):
    """Per-column (sum, sumsq) over rows, tiled/pipelined.  A leading 'parallel'
    axis of size 2 produces per-core partials so the reduction shards across both
    TensorCores on v7x; partials are combined in the (tiny) affine step."""
    Mf, Cf = xf.shape
    tm = _row_tile(Mf, cap=1024)
    nb = pl.cdiv(Mf, tm)
    nsplit = 2 if nb % 2 == 0 else 1
    nbh = nb // nsplit
    return pl.pallas_call(
        functools.partial(_bn_stats_kernel, m_total=Mf, tm=tm, nbh=nbh),
        out_shape=(jax.ShapeDtypeStruct((nsplit, 1, Cf), jnp.float32),
                   jax.ShapeDtypeStruct((nsplit, 1, Cf), jnp.float32)),
        grid=(nsplit, nbh),
        in_specs=[pl.BlockSpec((tm, Cf), lambda i, j: (i * nbh + j, 0))],
        out_specs=(pl.BlockSpec((1, 1, Cf), lambda i, j: (i, 0, 0)),
                   pl.BlockSpec((1, 1, Cf), lambda i, j: (i, 0, 0))),
        compiler_params=pltpu.CompilerParams(
            dimension_semantics=("parallel", "arbitrary"),
            vmem_limit_bytes=_VMEM_LIMIT),
    )(xf)


def batchnorm_affine(x2d, gamma, beta, eps=1e-5):
    """Per-channel scale/shift equivalent to training-mode BatchNorm2d on x2d (M, C)."""
    M, C = x2d.shape
    f = _fold_factor(M, C)
    s, q = pallas_bn_stats(x2d.reshape(M // f, f * C))
    s = jnp.sum(s.reshape(-1, C), axis=0)
    q = jnp.sum(q.reshape(-1, C), axis=0)
    count = float(M)
    mean = s / count
    var = jnp.maximum(q / count - mean * mean, 0.0)  # clamp guards f32 cancellation
    scale = gamma * jax.lax.rsqrt(var + eps)
    shift = beta - mean * scale
    return scale, shift


def _bn_apply_kernel(x_ref, a_ref, b_ref, o_ref):
    y = x_ref[...].astype(jnp.float32) * a_ref[...] + b_ref[...]
    o_ref[...] = y.astype(o_ref.dtype)


def pallas_bn_apply(x2d, scale, shift, out_dtype=jnp.bfloat16):
    """Elementwise x*scale + shift per channel, lane-folded to keep stores dense."""
    M, C = x2d.shape
    f = _fold_factor(M, C)
    Mf, Cf = M // f, f * C
    xf = x2d.reshape(Mf, Cf)
    sc = jnp.tile(scale, f).reshape(1, Cf).astype(jnp.float32)
    sh = jnp.tile(shift, f).reshape(1, Cf).astype(jnp.float32)
    tm = _row_tile(Mf, cap=1024)
    out = pl.pallas_call(
        _bn_apply_kernel,
        out_shape=jax.ShapeDtypeStruct((Mf, Cf), out_dtype),
        grid=(pl.cdiv(Mf, tm),),
        in_specs=[pl.BlockSpec((tm, Cf), lambda i: (i, 0)),
                  pl.BlockSpec((1, Cf), lambda i: (0, 0)),
                  pl.BlockSpec((1, Cf), lambda i: (0, 0))],
        out_specs=pl.BlockSpec((tm, Cf), lambda i: (i, 0)),
        compiler_params=pltpu.CompilerParams(
            dimension_semantics=("parallel",), vmem_limit_bytes=_VMEM_LIMIT),
    )(xf, sc, sh)
    return out.reshape(M, C)


def _bn_apply_concat_kernel(u_ref, a_ref, b_ref, x_ref, o_ref):
    u = u_ref[...].astype(jnp.float32) * a_ref[...] + b_ref[...]
    o_ref[...] = jnp.concatenate(
        [u.astype(o_ref.dtype), x_ref[...].astype(o_ref.dtype)], axis=-1)


def pallas_bn_apply_concat(u2d, scale, shift, x2d, out_dtype=jnp.bfloat16):
    """Fused upnorm + skip: writes [u*scale + shift, x] channel concat, tiled over rows."""
    M, C = u2d.shape
    sc = scale.reshape(1, C).astype(jnp.float32)
    sh = shift.reshape(1, C).astype(jnp.float32)
    tm = _row_tile(M, cap=1024)
    return pl.pallas_call(
        _bn_apply_concat_kernel,
        out_shape=jax.ShapeDtypeStruct((M, 2 * C), out_dtype),
        grid=(pl.cdiv(M, tm),),
        in_specs=[pl.BlockSpec((tm, C), lambda i: (i, 0)),
                  pl.BlockSpec((1, C), lambda i: (0, 0)),
                  pl.BlockSpec((1, C), lambda i: (0, 0)),
                  pl.BlockSpec((tm, C), lambda i: (i, 0))],
        out_specs=pl.BlockSpec((tm, 2 * C), lambda i: (i, 0)),
        compiler_params=pltpu.CompilerParams(
            dimension_semantics=("parallel",), vmem_limit_bytes=_VMEM_LIMIT),
    )(u2d, sc, sh, x2d)


# --------------------------- conv glue (plain JAX) ---------------------------

def _im2col_concat(xp, k, stride):
    """xp already spatially padded (NHWC).  Channel-minor patch extraction: columns
    ordered (kh, kw, c) via a single last-axis concat (no stack/transpose relayout)."""
    N, H, W, C = xp.shape
    Ho = (H - k) // stride + 1
    Wo = (W - k) // stride + 1
    cols = [xp[:, kh:kh + stride * (Ho - 1) + 1:stride,
               kw:kw + stride * (Wo - 1) + 1:stride, :]
            for kh in range(k) for kw in range(k)]
    patches = jnp.concatenate(cols, axis=-1)             # (N, Ho, Wo, k*k*C)
    return patches.reshape(N * Ho * Wo, k * k * C), (N, Ho, Wo)


def conv2d_down(x_nhwc, wp, *, slope, out_dtype=jnp.float32):
    """PyTorch Conv2d(k=4, stride=2, padding=1), optional fused LeakyReLU on the input."""
    cout = wp['cout']
    xp = jnp.pad(x_nhwc.astype(jnp.bfloat16), ((0, 0), (1, 1), (1, 1), (0, 0)))
    X, (N, Ho, Wo) = _im2col_concat(xp, 4, 2)
    Y = pallas_gemm(X, wp['w'], wp['b'], cout, slope=slope, out_dtype=out_dtype)
    return Y.reshape(N, Ho, Wo, cout)


def conv_transpose2d_up(x_nhwc, wp, *, slope, out_tanh=False, out_dtype=jnp.float32):
    """PyTorch ConvTranspose2d(k=4, stride=2, padding=1) via the exact 4-phase
    (output-parity) decomposition: one GEMM over 2x2 input windows (K=4*Cin, N=4*Cout)."""
    cout = wp['cout']
    N, H, W, _ = x_nhwc.shape
    xp = jnp.pad(x_nhwc.astype(jnp.bfloat16), ((0, 0), (1, 1), (1, 1), (0, 0)))
    X, (_, Ho, Wo) = _im2col_concat(xp, 2, 1)             # Ho = H+1, Wo = W+1
    Y = pallas_gemm(X, wp['w'], wp['b'], 4 * cout, slope=slope,
                    out_tanh=out_tanh, out_dtype=out_dtype)
    Y = Y.reshape(N, Ho, Wo, 2, 2, cout)
    # out[n, 2i+r, 2j+c, :] = Y[n, i+r, j+c, r, c, :]
    # TODO(synk): replace this XLA phase interleave with a Pallas kernel fused into the
    # downstream BN+concat consumer to remove the remaining relayout passes.
    rows = []
    for r in range(2):
        cols = [Y[:, r:r + H, c:c + W, r, c, :] for c in range(2)]
        rows.append(jnp.stack(cols, axis=3))              # (N, H, W, 2, cout)
    out = jnp.stack(rows, axis=2)                         # (N, H, 2, W, 2, cout)
    return out.reshape(N, 2 * H, 2 * W, cout)


# -------------------- parameters (PyTorch layout) + prep ---------------------

def _normal(key, shape, std=0.02):
    return std * jax.random.normal(key, shape, dtype=jnp.float32)


def init_block(key, outer_nc, inner_nc, *, outermost=False, innermost=False, sub=None):
    ks = jax.random.split(key, 5)
    up_in = inner_nc if innermost else inner_nc * 2
    p = dict(outermost=outermost, innermost=innermost, sub=sub)
    # downconv: Conv2d(outer_nc, inner_nc, 4, 2, 1, bias=False)  [BatchNorm => no bias]
    p['down_w'] = _normal(ks[0], (inner_nc, outer_nc, 4, 4))
    p['down_b'] = jnp.zeros((inner_nc,), jnp.float32)
    # upconv: ConvTranspose2d(up_in, outer_nc, 4, 2, 1); bias only on the outermost block
    p['up_w'] = _normal(ks[1], (up_in, outer_nc, 4, 4))
    p['up_b'] = _normal(ks[2], (outer_nc,)) if outermost else jnp.zeros((outer_nc,), jnp.float32)
    if (not outermost) and (not innermost):
        p['dn_gamma'] = 1.0 + _normal(ks[3], (inner_nc,))
        p['dn_beta'] = jnp.zeros((inner_nc,), jnp.float32)
    if not outermost:
        p['up_gamma'] = 1.0 + _normal(ks[4], (outer_nc,))
        p['up_beta'] = jnp.zeros((outer_nc,), jnp.float32)
    return p


def init_unet(key, input_nc, output_nc, num_downs, ngf=64):
    assert input_nc == output_nc
    keys = jax.random.split(key, num_downs)
    blk = init_block(keys[0], ngf * 8, ngf * 8, innermost=True)
    ki = 1
    for _ in range(num_downs - 5):
        blk = init_block(keys[ki], ngf * 8, ngf * 8, sub=blk); ki += 1
    blk = init_block(keys[ki], ngf * 4, ngf * 8, sub=blk); ki += 1
    blk = init_block(keys[ki], ngf * 2, ngf * 4, sub=blk); ki += 1
    blk = init_block(keys[ki], ngf, ngf * 2, sub=blk); ki += 1
    blk = init_block(keys[ki], output_nc, ngf, outermost=True, sub=blk)
    return blk


def _prep_down(w, b):
    """PyTorch Conv2d weight (Cout, Cin, 4, 4) -> GEMM weight (16*Cin, Np) bf16 with
    rows ordered (kh, kw, cin) to match the channel-minor im2col.  N padded once."""
    cout, cin, k, _ = w.shape
    K, Nc = cin * k * k, cout
    Wm = jnp.transpose(w, (2, 3, 1, 0)).reshape(K, Nc)
    Np = _round_up(Nc, 128)
    return dict(cout=cout,
                w=jnp.pad(Wm, ((0, 0), (0, Np - Nc))).astype(jnp.bfloat16),
                b=jnp.pad(b.reshape(1, -1), ((0, 0), (0, Np - Nc))).astype(jnp.float32))


def _prep_up(w, b):
    """PyTorch ConvTranspose2d weight (Cin, Cout, 4, 4) -> 4-phase GEMM weight
    (4*Cin, 4*Cout pad) bf16; rows ordered (dy, dx, cin), columns (r, c, cout):
      Wm[(dy*2+dx)*Cin + ci, (r*2+c)*Cout + co] = w[ci, co, 3-r-2*dy, 3-c-2*dx]."""
    cin, cout = w.shape[0], w.shape[1]
    phase_cols = []
    for r in range(2):
        for cc in range(2):
            taps = [w[:, :, 3 - r - 2 * dy, 3 - cc - 2 * dx]
                    for dy in range(2) for dx in range(2)]      # 4 x (Cin, Cout)
            phase_cols.append(jnp.stack(taps, axis=0).reshape(4 * cin, cout))
    Wm = jnp.concatenate(phase_cols, axis=1)                    # (4*Cin, 4*Cout)
    Nc = 4 * cout
    Np = _round_up(Nc, 128)
    bb = jnp.tile(b, 4).reshape(1, -1)
    return dict(cout=cout,
                w=jnp.pad(Wm, ((0, 0), (0, Np - Nc))).astype(jnp.bfloat16),
                b=jnp.pad(bb, ((0, 0), (0, Np - Nc))).astype(jnp.float32))


def prepare_params(p):
    q = dict(outermost=p['outermost'], innermost=p['innermost'])
    q['down'] = _prep_down(p['down_w'], p['down_b'])
    q['up'] = _prep_up(p['up_w'], p['up_b'])
    if (not p['outermost']) and (not p['innermost']):
        q['dn_gamma'], q['dn_beta'] = p['dn_gamma'], p['dn_beta']
    if not p['outermost']:
        q['up_gamma'], q['up_beta'] = p['up_gamma'], p['up_beta']
    q['sub'] = prepare_params(p['sub']) if p['sub'] is not None else None
    return q


# ------------------------------ U-Net forward --------------------------------

def block_forward(p, x):
    """x is NHWC.  Non-outermost blocks return channel-concat([model(x), x])."""
    if p['outermost']:
        d = conv2d_down(x, p['down'], slope=None, out_dtype=jnp.bfloat16)   # downconv
        s = block_forward(p['sub'], d)                                      # submodule
        return conv_transpose2d_up(s, p['up'], slope=0.0, out_tanh=True)    # ReLU->upconv->Tanh

    N, H, W, C = x.shape
    if p['innermost']:
        d = conv2d_down(x, p['down'], slope=0.2, out_dtype=jnp.bfloat16)    # LeakyReLU->downconv
        u = conv_transpose2d_up(d, p['up'], slope=0.0,
                                out_dtype=jnp.bfloat16)                     # ReLU->upconv (pre-BN)
    else:
        d_raw = conv2d_down(x, p['down'], slope=0.2, out_dtype=jnp.bfloat16)  # pre-BN, bf16
        d2 = d_raw.reshape(-1, d_raw.shape[-1])
        sc, sh = batchnorm_affine(d2, p['dn_gamma'], p['dn_beta'])
        # TODO(synk): fuse this downnorm affine into the submodule's GEMM prologue and
        # concat skip path (needs BN-aware handling of the zero spatial padding).
        d = pallas_bn_apply(d2, sc, sh).reshape(d_raw.shape)                # downnorm (bf16)
        s = block_forward(p['sub'], d)                                      # submodule
        u = conv_transpose2d_up(s, p['up'], slope=0.0,
                                out_dtype=jnp.bfloat16)                     # ReLU->upconv (pre-BN)

    # upnorm fused with the skip concat: out = [BN(u), x]
    u2 = u.reshape(N * H * W, C)
    x2 = x.reshape(N * H * W, C)
    sc, sh = batchnorm_affine(u2, p['up_gamma'], p['up_beta'])
    out = pallas_bn_apply_concat(u2, sc, sh, x2)
    return out.reshape(N, H, W, 2 * C)


def unet_forward(prepped, x_nchw, learn_residual=False):
    x = jnp.transpose(x_nchw, (0, 2, 3, 1)).astype(jnp.float32)   # NCHW -> NHWC
    y = block_forward(prepped, x)
    y = jnp.transpose(y, (0, 3, 1, 2)).astype(jnp.float32)        # NHWC -> NCHW
    if learn_residual:
        y = jnp.clip(x_nchw + y, -1.0, 1.0)
    return y


# ----------------------------------- main ------------------------------------

if __name__ == "__main__":
    key = jax.random.PRNGKey(0)
    k_param, k_input = jax.random.split(key)

    input_nc = output_nc = 4
    num_downs = 5        # 32 -> 16 -> 8 -> 4 -> 2 -> 1 at the bottleneck
    ngf = 8
    batch, spatial = 2, 32

    params = init_unet(k_param, input_nc, output_nc, num_downs, ngf=ngf)
    prepped = prepare_params(params)
    x = jax.random.normal(k_input, (batch, input_nc, spatial, spatial), dtype=jnp.float32)

    fwd = jax.jit(lambda inp: unet_forward(prepped, inp, learn_residual=False))
    out = jax.block_until_ready(fwd(x))

    assert out.shape == (batch, output_nc, spatial, spatial), out.shape
    assert bool(jnp.all(jnp.isfinite(out)))
    # outermost block ends in Tanh -> outputs in [-1, 1]
    assert float(jnp.max(jnp.abs(out))) <= 1.0 + 1e-5

    print("KERNEL_OK")
</pallas_src>

<mosaic_0001>
module attributes {stable_mosaic.version = 11 : i64} {
  func.func @_gemm_kernel(%arg0: i32, %arg1: i32, %arg2: i32, %arg3: memref<512x64xbf16, #tpu.memory_space<vmem>>, %arg4: memref<64x128xbf16, #tpu.memory_space<vmem>>, %arg5: memref<1x128xf32, #tpu.memory_space<vmem>>, %arg6: memref<512x128xbf16, #tpu.memory_space<vmem>>, %arg7: memref<512x128xf32, #tpu.memory_space<vmem>>) attributes {dimension_semantics = [#tpu.dimension_semantics<parallel>, #tpu.dimension_semantics<parallel>, #tpu.dimension_semantics<arbitrary>], iteration_bounds = array<i64: 1, 1, 1>, scalar_prefetch = 0 : i64, scratch_operands = 1 : i64, tpu.core_type = #tpu.core_type<tc>, window_params = [{transform_indices = @transform_0, window_bounds = array<i64: 512, 64>}, {transform_indices = @transform_1, window_bounds = array<i64: 64, 128>}, {transform_indices = @transform_2, window_bounds = array<i64: 1, 128>}, {transform_indices = @transform_3, window_bounds = array<i64: 512, 128>}]} {
    %c0_i32 = arith.constant 0 : i32
    %0 = arith.cmpi eq, %arg2, %c0_i32 : i32
    %1 = arith.extui %0 : i1 to i32
    %c0_i32_0 = arith.constant 0 : i32
    %2 = arith.cmpi ne, %1, %c0_i32_0 : i32
    scf.if %2 {
      %cst_10 = arith.constant 0.000000e+00 : f32
      %12 = vector.broadcast %cst_10 : f32 to vector<512x128xf32>
      %c0_11 = arith.constant 0 : index
      %c0_12 = arith.constant 0 : index
      %13 = vector.load %arg7[%c0_11, %c0_12] : memref<512x128xf32, #tpu.memory_space<vmem>>, vector<512x128xf32>
      tpu.vector_store %arg7[%c0_11, %c0_12], %12 {strides = array<i32>} : memref<512x128xf32, #tpu.memory_space<vmem>>, vector<512x128xf32>,
    } else {
    }
    %c0 = arith.constant 0 : index
    %c0_1 = arith.constant 0 : index
    %3 = vector.load %arg3[%c0, %c0_1] : memref<512x64xbf16, #tpu.memory_space<vmem>>, vector<512x64xbf16>
    %c0_2 = arith.constant 0 : index
    %c0_3 = arith.constant 0 : index
    %4 = vector.load %arg7[%c0_2, %c0_3] : memref<512x128xf32, #tpu.memory_space<vmem>>, vector<512x128xf32>
    %c0_4 = arith.constant 0 : index
    %c0_5 = arith.constant 0 : index
    %5 = vector.load %arg4[%c0_4, %c0_5] : memref<64x128xbf16, #tpu.memory_space<vmem>>, vector<64x128xbf16>
    %cst = arith.constant dense<0.000000e+00> : vector<512x128xf32>
    %6 = tpu.matmul %3, %5, %cst {dimension_numbers = #tpu.dot_dimension_numbers<[1], [0], [0], [1], [0, 0, 1, 1], [], []>} : vector<512x64xbf16>, vector<64x128xbf16>, vector<512x128xf32> -> vector<512x128xf32>
    %7 = arith.addf %4, %6 : vector<512x128xf32>
    %c0_6 = arith.constant 0 : index
    %c0_7 = arith.constant 0 : index
    %8 = vector.load %arg7[%c0_6, %c0_7] : memref<512x128xf32, #tpu.memory_space<vmem>>, vector<512x128xf32>
    tpu.vector_store %arg7[%c0_6, %c0_7], %7 {strides = array<i32>} : memref<512x128xf32, #tpu.memory_space<vmem>>, vector<512x128xf32>,
    %c0_i32_8 = arith.constant 0 : i32
    %9 = arith.cmpi eq, %arg2, %c0_i32_8 : i32
    %10 = arith.extui %9 : i1 to i32
    %c0_i32_9 = arith.constant 0 : i32
    %11 = arith.cmpi ne, %10, %c0_i32_9 : i32
    scf.if %11 {
      %c0_10 = arith.constant 0 : index
      %c0_11 = arith.constant 0 : index
      %12 = vector.load %arg7[%c0_10, %c0_11] : memref<512x128xf32, #tpu.memory_space<vmem>>, vector<512x128xf32>
      %c0_12 = arith.constant 0 : index
      %c0_13 = arith.constant 0 : index
      %13 = vector.load %arg5[%c0_12, %c0_13] : memref<1x128xf32, #tpu.memory_space<vmem>>, vector<1x128xf32>
      %14 = vector.broadcast %13 : vector<1x128xf32> to vector<512x128xf32>
      %15 = arith.addf %12, %14 : vector<512x128xf32>
      %16 = arith.truncf %15 : vector<512x128xf32> to vector<512x128xbf16>
      %c0_14 = arith.constant 0 : index
      %c0_15 = arith.constant 0 : index
      %17 = vector.load %arg6[%c0_14, %c0_15] : memref<512x128xbf16, #tpu.memory_space<vmem>>, vector<512x128xbf16>
      tpu.vector_store %arg6[%c0_14, %c0_15], %16 {strides = array<i32>} : memref<512x128xbf16, #tpu.memory_space<vmem>>, vector<512x128xbf16>,
    } else {
    }
    return
  }
  func.func @transform_0(%arg0: i32, %arg1: i32, %arg2: i32) -> (i32, i32) {
    %c0_i32 = arith.constant 0 : i32
    return %arg0, %arg2 : i32, i32
  }
  func.func @transform_1(%arg0: i32, %arg1: i32, %arg2: i32) -> (i32, i32) {
    %c0_i32 = arith.constant 0 : i32
    return %arg2, %arg1 : i32, i32
  }
  func.func @transform_2(%arg0: i32, %arg1: i32, %arg2: i32) -> (i32, i32) {
    %c0_i32 = arith.constant 0 : i32
    %c0_i32_0 = arith.constant 0 : i32
    return %c0_i32, %arg1 : i32, i32
  }
  func.func @transform_3(%arg0: i32, %arg1: i32, %arg2: i32) -> (i32, i32) {
    %c0_i32 = arith.constant 0 : i32
    return %arg0, %arg1 : i32, i32
  }
}

module attributes {stable_mosaic.version = 11 : i64} {
  func.func @_gemm_kernel(%arg0: i32, %arg1: i32, %arg2: i32, %arg3: memref<128x128xbf16, #tpu.memory_space<vmem>>, %arg4: memref<128x128xbf16, #tpu.memory_space<vmem>>, %arg5: memref<1x128xf32, #tpu.memory_space<vmem>>, %arg6: memref<128x128xbf16, #tpu.memory_space<vmem>>, %arg7: memref<128x128xf32, #tpu.memory_space<vmem>>) attributes {dimension_semantics = [#tpu.dimension_semantics<parallel>, #tpu.dimension_semantics<parallel>, #tpu.dimension_semantics<arbitrary>], iteration_bounds = array<i64: 1, 1, 1>, scalar_prefetch = 0 : i64, scratch_operands = 1 : i64, tpu.core_type = #tpu.core_type<tc>, window_params = [{transform_indices = @transform_0, window_bounds = array<i64: 128, 128>}, {transform_indices = @transform_1, window_bounds = array<i64: 128, 128>}, {transform_indices = @transform_2, window_bounds = array<i64: 1, 128>}, {transform_indices = @transform_3, window_bounds = array<i64: 128, 128>}]} {
    %c0_i32 = arith.constant 0 : i32
    %0 = arith.cmpi eq, %arg2, %c0_i32 : i32
    %1 = arith.extui %0 : i1 to i32
    %c0_i32_0 = arith.constant 0 : i32
    %2 = arith.cmpi ne, %1, %c0_i32_0 : i32
    scf.if %2 {
      %cst_12 = arith.constant 0.000000e+00 : f32
      %17 = vector.broadcast %cst_12 : f32 to vector<128x128xf32>
      %c0_13 = arith.constant 0 : index
      %c0_14 = arith.constant 0 : index
      %18 = vector.load %arg7[%c0_13, %c0_14] : memref<128x128xf32, #tpu.memory_space<vmem>>, vector<128x128xf32>
      tpu.vector_store %arg7[%c0_13, %c0_14], %17 {strides = array<i32>} : memref<128x128xf32, #tpu.memory_space<vmem>>, vector<128x128xf32>,
    } else {
    }
    %c0 = arith.constant 0 : index
    %c0_1 = arith.constant 0 : index
    %3 = vector.load %arg3[%c0, %c0_1] : memref<128x128xbf16, #tpu.memory_space<vmem>>, vector<128x128xbf16>
    %cst = arith.constant 0.000000e+00 : bf16
    %4 = vector.broadcast %cst : bf16 to vector<128x128xbf16>
    %5 = arith.cmpf oge, %3, %4 : vector<128x128xbf16>
    %cst_2 = arith.constant 2.001950e-01 : bf16
    %6 = vector.broadcast %cst_2 : bf16 to vector<128x128xbf16>
    %7 = arith.mulf %3, %6 : vector<128x128xbf16>
    %8 = arith.select %5, %3, %7 : vector<128x128xi1>, vector<128x128xbf16>
    %c0_3 = arith.constant 0 : index
    %c0_4 = arith.constant 0 : index
    %9 = vector.load %arg7[%c0_3, %c0_4] : memref<128x128xf32, #tpu.memory_space<vmem>>, vector<128x128xf32>
    %c0_5 = arith.constant 0 : index
    %c0_6 = arith.constant 0 : index
    %10 = vector.load %arg4[%c0_5, %c0_6] : memref<128x128xbf16, #tpu.memory_space<vmem>>, vector<128x128xbf16>
    %cst_7 = arith.constant dense<0.000000e+00> : vector<128x128xf32>
    %11 = tpu.matmul %8, %10, %cst_7 {dimension_numbers = #tpu.dot_dimension_numbers<[1], [0], [0], [1], [0, 0, 1, 1], [], []>} : vector<128x128xbf16>, vector<128x128xbf16>, vector<128x128xf32> -> vector<128x128xf32>
    %12 = arith.addf %9, %11 : vector<128x128xf32>
    %c0_8 = arith.constant 0 : index
    %c0_9 = arith.constant 0 : index
    %13 = vector.load %arg7[%c0_8, %c0_9] : memref<128x128xf32, #tpu.memory_space<vmem>>, vector<128x128xf32>
    tpu.vector_store %arg7[%c0_8, %c0_9], %12 {strides = array<i32>} : memref<128x128xf32, #tpu.memory_space<vmem>>, vector<128x128xf32>,
    %c0_i32_10 = arith.constant 0 : i32
    %14 = arith.cmpi eq, %arg2, %c0_i32_10 : i32
    %15 = arith.extui %14 : i1 to i32
    %c0_i32_11 = arith.constant 0 : i32
    %16 = arith.cmpi ne, %15, %c0_i32_11 : i32
    scf.if %16 {
      %c0_12 = arith.constant 0 : index
      %c0_13 = arith.constant 0 : index
      %17 = vector.load %arg7[%c0_12, %c0_13] : memref<128x128xf32, #tpu.memory_space<vmem>>, vector<128x128xf32>
      %c0_14 = arith.constant 0 : index
      %c0_15 = arith.constant 0 : index
      %18 = vector.load %arg5[%c0_14, %c0_15] : memref<1x128xf32, #tpu.memory_space<vmem>>, vector<1x128xf32>
      %19 = vector.broadcast %18 : vector<1x128xf32> to vector<128x128xf32>
      %20 = arith.addf %17, %19 : vector<128x128xf32>
      %21 = arith.truncf %20 : vector<128x128xf32> to vector<128x128xbf16>
      %c0_16 = arith.constant 0 : index
      %c0_17 = arith.constant 0 : index
      %22 = vector.load %arg6[%c0_16, %c0_17] : memref<128x128xbf16, #tpu.memory_space<vmem>>, vector<128x128xbf16>
      tpu.vector_store %arg6[%c0_16, %c0_17], %21 {strides = array<i32>} : memref<128x128xbf16, #tpu.memory_space<vmem>>, vector<128x128xbf16>,
    } else {
    }
    return
  }
  func.func @transform_0(%arg0: i32, %arg1: i32, %arg2: i32) -> (i32, i32) {
    %c0_i32 = arith.constant 0 : i32
    return %arg0, %arg2 : i32, i32
  }
  func.func @transform_1(%arg0: i32, %arg1: i32, %arg2: i32) -> (i32, i32) {
    %c0_i32 = arith.constant 0 : i32
    return %arg2, %arg1 : i32, i32
  }
  func.func @transform_2(%arg0: i32, %arg1: i32, %arg2: i32) -> (i32, i32) {
    %c0_i32 = arith.constant 0 : i32
    %c0_i32_0 = arith.constant 0 : i32
    return %c0_i32, %arg1 : i32, i32
  }
  func.func @transform_3(%arg0: i32, %arg1: i32, %arg2: i32) -> (i32, i32) {
    %c0_i32 = arith.constant 0 : i32
    return %arg0, %arg1 : i32, i32
  }
}

module attributes {stable_mosaic.version = 11 : i64} {
  func.func @_bn_stats_kernel(%arg0: i32, %arg1: i32, %arg2: memref<16x128xbf16, #tpu.memory_space<vmem>>, %arg3: memref<1x1x128xf32, #tpu.memory_space<vmem>>, %arg4: memref<1x1x128xf32, #tpu.memory_space<vmem>>) attributes {dimension_semantics = [#tpu.dimension_semantics<parallel>, #tpu.dimension_semantics<arbitrary>], iteration_bounds = array<i64: 1, 1>, scalar_prefetch = 0 : i64, scratch_operands = 0 : i64, tpu.core_type = #tpu.core_type<tc>, window_params = [{transform_indices = @transform_0, window_bounds = array<i64: 16, 128>}, {transform_indices = @transform_1, window_bounds = array<i64: 1, 1, 128>}, {transform_indices = @transform_2, window_bounds = array<i64: 1, 1, 128>}]} {
    %c0_i32 = arith.constant 0 : i32
    %0 = arith.cmpi eq, %arg1, %c0_i32 : i32
    %1 = arith.extui %0 : i1 to i32
    %c0_i32_0 = arith.constant 0 : i32
    %2 = arith.cmpi ne, %1, %c0_i32_0 : i32
    scf.if %2 {
      %cst_15 = arith.constant 0.000000e+00 : f32
      %18 = vector.broadcast %cst_15 : f32 to vector<1x1x128xf32>
      %c0_16 = arith.constant 0 : index
      %c0_17 = arith.constant 0 : index
      %c0_18 = arith.constant 0 : index
      %19 = vector.load %arg3[%c0_16, %c0_17, %c0_18] : memref<1x1x128xf32, #tpu.memory_space<vmem>>, vector<1x1x128xf32>
      tpu.vector_store %arg3[%c0_16, %c0_17, %c0_18], %18 {strides = array<i32>} : memref<1x1x128xf32, #tpu.memory_space<vmem>>, vector<1x1x128xf32>,
      %cst_19 = arith.constant 0.000000e+00 : f32
      %20 = vector.broadcast %cst_19 : f32 to vector<1x1x128xf32>
      %c0_20 = arith.constant 0 : index
      %c0_21 = arith.constant 0 : index
      %c0_22 = arith.constant 0 : index
      %21 = vector.load %arg4[%c0_20, %c0_21, %c0_22] : memref<1x1x128xf32, #tpu.memory_space<vmem>>, vector<1x1x128xf32>
      tpu.vector_store %arg4[%c0_20, %c0_21, %c0_22], %20 {strides = array<i32>} : memref<1x1x128xf32, #tpu.memory_space<vmem>>, vector<1x1x128xf32>,
    } else {
    }
    %c0 = arith.constant 0 : index
    %c0_1 = arith.constant 0 : index
    %3 = vector.load %arg2[%c0, %c0_1] : memref<16x128xbf16, #tpu.memory_space<vmem>>, vector<16x128xbf16>
    %4 = arith.extf %3 : vector<16x128xbf16> to vector<16x128xf32>
    %c0_2 = arith.constant 0 : index
    %c0_3 = arith.constant 0 : index
    %c0_4 = arith.constant 0 : index
    %5 = vector.load %arg3[%c0_2, %c0_3, %c0_4] : memref<1x1x128xf32, #tpu.memory_space<vmem>>, vector<1x1x128xf32>
    %cst = arith.constant dense<0.000000e+00> : vector<128xf32>
    %6 = vector.multi_reduction <add>, %4, %cst [0] : vector<16x128xf32> to vector<128xf32>
    %7 = vector.shape_cast %6 : vector<128xf32> to vector<1x128xf32>
    %8 = vector.shape_cast %7 : vector<1x128xf32> to vector<1x1x128xf32>
    %9 = arith.addf %5, %8 : vector<1x1x128xf32>
    %c0_5 = arith.constant 0 : index
    %c0_6 = arith.constant 0 : index
    %c0_7 = arith.constant 0 : index
    %10 = vector.load %arg3[%c0_5, %c0_6, %c0_7] : memref<1x1x128xf32, #tpu.memory_space<vmem>>, vector<1x1x128xf32>
    tpu.vector_store %arg3[%c0_5, %c0_6, %c0_7], %9 {strides = array<i32>} : memref<1x1x128xf32, #tpu.memory_space<vmem>>, vector<1x1x128xf32>,
    %c0_8 = arith.constant 0 : index
    %c0_9 = arith.constant 0 : index
    %c0_10 = arith.constant 0 : index
    %11 = vector.load %arg4[%c0_8, %c0_9, %c0_10] : memref<1x1x128xf32, #tpu.memory_space<vmem>>, vector<1x1x128xf32>
    %12 = arith.mulf %4, %4 : vector<16x128xf32>
    %cst_11 = arith.constant dense<0.000000e+00> : vector<128xf32>
    %13 = vector.multi_reduction <add>, %12, %cst_11 [0] : vector<16x128xf32> to vector<128xf32>
    %14 = vector.shape_cast %13 : vector<128xf32> to vector<1x128xf32>
    %15 = vector.shape_cast %14 : vector<1x128xf32> to vector<1x1x128xf32>
    %16 = arith.addf %11, %15 : vector<1x1x128xf32>
    %c0_12 = arith.constant 0 : index
    %c0_13 = arith.constant 0 : index
    %c0_14 = arith.constant 0 : index
    %17 = vector.load %arg4[%c0_12, %c0_13, %c0_14] : memref<1x1x128xf32, #tpu.memory_space<vmem>>, vector<1x1x128xf32>
    tpu.vector_store %arg4[%c0_12, %c0_13, %c0_14], %16 {strides = array<i32>} : memref<1x1x128xf32, #tpu.memory_space<vmem>>, vector<1x1x128xf32>,
    return
  }
  func.func @transform_0(%arg0: i32, %arg1: i32) -> (i32, i32) {
    %c1_i32 = arith.constant 1 : i32
    %0 = arith.muli %arg0, %c1_i32 : i32
    %1 = arith.addi %0, %arg1 : i32
    %c0_i32 = arith.constant 0 : i32
    %c0_i32_0 = arith.constant 0 : i32
    return %1, %c0_i32 : i32, i32
  }
  func.func @transform_1(%arg0: i32, %arg1: i32) -> (i32, i32, i32) {
    %c0_i32 = arith.constant 0 : i32
    %c0_i32_0 = arith.constant 0 : i32
    %c0_i32_1 = arith.constant 0 : i32
    return %arg0, %c0_i32, %c0_i32_0 : i32, i32, i32
  }
  func.func @transform_2(%arg0: i32, %arg1: i32) -> (i32, i32, i32) {
    %c0_i32 = arith.constant 0 : i32
    %c0_i32_0 = arith.constant 0 : i32
    %c0_i32_1 = arith.constant 0 : i32
    return %arg0, %c0_i32, %c0_i32_0 : i32, i32, i32
  }
}

module attributes {stable_mosaic.version = 11 : i64} {
  func.func @_bn_apply_kernel(%arg0: i32, %arg1: memref<16x128xbf16, #tpu.memory_space<vmem>>, %arg2: memref<1x128xf32, #tpu.memory_space<vmem>>, %arg3: memref<1x128xf32, #tpu.memory_space<vmem>>, %arg4: memref<16x128xbf16, #tpu.memory_space<vmem>>) attributes {dimension_semantics = [#tpu.dimension_semantics<parallel>], iteration_bounds = array<i64: 1>, scalar_prefetch = 0 : i64, scratch_operands = 0 : i64, tpu.core_type = #tpu.core_type<tc>, window_params = [{transform_indices = @transform_0, window_bounds = array<i64: 16, 128>}, {pipeline_mode = #tpu.pipeline_mode<synchronous>, transform_indices = @transform_1, window_bounds = array<i64: 1, 128>}, {pipeline_mode = #tpu.pipeline_mode<synchronous>, transform_indices = @transform_2, window_bounds = array<i64: 1, 128>}, {transform_indices = @transform_3, window_bounds = array<i64: 16, 128>}]} {
    %c0 = arith.constant 0 : index
    %c0_0 = arith.constant 0 : index
    %0 = vector.load %arg1[%c0, %c0_0] : memref<16x128xbf16, #tpu.memory_space<vmem>>, vector<16x128xbf16>
    %1 = arith.extf %0 : vector<16x128xbf16> to vector<16x128xf32>
    %c0_1 = arith.constant 0 : index
    %c0_2 = arith.constant 0 : index
    %2 = vector.load %arg2[%c0_1, %c0_2] : memref<1x128xf32, #tpu.memory_space<vmem>>, vector<1x128xf32>
    %3 = vector.broadcast %2 : vector<1x128xf32> to vector<16x128xf32>
    %4 = arith.mulf %1, %3 : vector<16x128xf32>
    %c0_3 = arith.constant 0 : index
    %c0_4 = arith.constant 0 : index
    %5 = vector.load %arg3[%c0_3, %c0_4] : memref<1x128xf32, #tpu.memory_space<vmem>>, vector<1x128xf32>
    %6 = vector.broadcast %5 : vector<1x128xf32> to vector<16x128xf32>
    %7 = arith.addf %4, %6 : vector<16x128xf32>
    %8 = arith.truncf %7 : vector<16x128xf32> to vector<16x128xbf16>
    %c0_5 = arith.constant 0 : index
    %c0_6 = arith.constant 0 : index
    %9 = vector.load %arg4[%c0_5, %c0_6] : memref<16x128xbf16, #tpu.memory_space<vmem>>, vector<16x128xbf16>
    tpu.vector_store %arg4[%c0_5, %c0_6], %8 {strides = array<i32>} : memref<16x128xbf16, #tpu.memory_space<vmem>>, vector<16x128xbf16>,
    return
  }
  func.func @transform_0(%arg0: i32) -> (i32, i32) {
    %c0_i32 = arith.constant 0 : i32
    %c0_i32_0 = arith.constant 0 : i32
    return %arg0, %c0_i32 : i32, i32
  }
  func.func @transform_1(%arg0: i32) -> (i32, i32) {
    %c0_i32 = arith.constant 0 : i32
    %c0_i32_0 = arith.constant 0 : i32
    %c0_i32_1 = arith.constant 0 : i32
    return %c0_i32, %c0_i32_0 : i32, i32
  }
  func.func @transform_2(%arg0: i32) -> (i32, i32) {
    %c0_i32 = arith.constant 0 : i32
    %c0_i32_0 = arith.constant 0 : i32
    %c0_i32_1 = arith.constant 0 : i32
    return %c0_i32, %c0_i32_0 : i32, i32
  }
  func.func @transform_3(%arg0: i32) -> (i32, i32) {
    %c0_i32 = arith.constant 0 : i32
    %c0_i32_0 = arith.constant 0 : i32
    return %arg0, %c0_i32 : i32, i32
  }
}

module attributes {stable_mosaic.version = 11 : i64} {
  func.func @_bn_stats_kernel(%arg0: i32, %arg1: i32, %arg2: memref<16x128xbf16, #tpu.memory_space<vmem>>, %arg3: memref<1x1x128xf32, #tpu.memory_space<vmem>>, %arg4: memref<1x1x128xf32, #tpu.memory_space<vmem>>) attributes {dimension_semantics = [#tpu.dimension_semantics<parallel>, #tpu.dimension_semantics<arbitrary>], iteration_bounds = array<i64: 1, 1>, scalar_prefetch = 0 : i64, scratch_operands = 0 : i64, tpu.core_type = #tpu.core_type<tc>, window_params = [{transform_indices = @transform_0, window_bounds = array<i64: 16, 128>}, {transform_indices = @transform_1, window_bounds = array<i64: 1, 1, 128>}, {transform_indices = @transform_2, window_bounds = array<i64: 1, 1, 128>}]} {
    %c0_i32 = arith.constant 0 : i32
    %0 = arith.cmpi eq, %arg1, %c0_i32 : i32
    %1 = arith.extui %0 : i1 to i32
    %c0_i32_0 = arith.constant 0 : i32
    %2 = arith.cmpi ne, %1, %c0_i32_0 : i32
    scf.if %2 {
      %cst_16 = arith.constant 0.000000e+00 : f32
      %28 = vector.broadcast %cst_16 : f32 to vector<1x1x128xf32>
      %c0_17 = arith.constant 0 : index
      %c0_18 = arith.constant 0 : index
      %c0_19 = arith.constant 0 : index
      %29 = vector.load %arg3[%c0_17, %c0_18, %c0_19] : memref<1x1x128xf32, #tpu.memory_space<vmem>>, vector<1x1x128xf32>
      tpu.vector_store %arg3[%c0_17, %c0_18, %c0_19], %28 {strides = array<i32>} : memref<1x1x128xf32, #tpu.memory_space<vmem>>, vector<1x1x128xf32>,
      %cst_20 = arith.constant 0.000000e+00 : f32
      %30 = vector.broadcast %cst_20 : f32 to vector<1x1x128xf32>
      %c0_21 = arith.constant 0 : index
      %c0_22 = arith.constant 0 : index
      %c0_23 = arith.constant 0 : index
      %31 = vector.load %arg4[%c0_21, %c0_22, %c0_23] : memref<1x1x128xf32, #tpu.memory_space<vmem>>, vector<1x1x128xf32>
      tpu.vector_store %arg4[%c0_21, %c0_22, %c0_23], %30 {strides = array<i32>} : memref<1x1x128xf32, #tpu.memory_space<vmem>>, vector<1x1x128xf32>,
    } else {
    }
    %c0 = arith.constant 0 : index
    %c0_1 = arith.constant 0 : index
    %3 = vector.load %arg2[%c0, %c0_1] : memref<16x128xbf16, #tpu.memory_space<vmem>>, vector<16x128xbf16>
    %4 = arith.extf %3 : vector<16x128xbf16> to vector<16x128xf32>
    %c1_i32 = arith.constant 1 : i32
    %5 = arith.muli %arg0, %c1_i32 : i32
    %6 = arith.addi %5, %arg1 : i32
    %c16_i32 = arith.constant 16 : i32
    %7 = arith.muli %6, %c16_i32 : i32
    %8 = tpu.iota {dimensions = array<i32: 0>} : vector<16x128xi32>
    %9 = vector.broadcast %7 : i32 to vector<16x128xi32>
    %10 = arith.addi %9, %8 : vector<16x128xi32>
    %c8_i32 = arith.constant 8 : i32
    %11 = vector.broadcast %c8_i32 : i32 to vector<16x128xi32>
    %12 = arith.cmpi slt, %10, %11 : vector<16x128xi32>
    %cst = arith.constant 0.000000e+00 : f32
    %13 = vector.broadcast %cst : f32 to vector<16x128xf32>
    %14 = arith.select %12, %4, %13 : vector<16x128xi1>, vector<16x128xf32>
    %c0_2 = arith.constant 0 : index
    %c0_3 = arith.constant 0 : index
    %c0_4 = arith.constant 0 : index
    %15 = vector.load %arg3[%c0_2, %c0_3, %c0_4] : memref<1x1x128xf32, #tpu.memory_space<vmem>>, vector<1x1x128xf32>
    %cst_5 = arith.constant dense<0.000000e+00> : vector<128xf32>
    %16 = vector.multi_reduction <add>, %14, %cst_5 [0] : vector<16x128xf32> to vector<128xf32>
    %17 = vector.shape_cast %16 : vector<128xf32> to vector<1x128xf32>
    %18 = vector.shape_cast %17 : vector<1x128xf32> to vector<1x1x128xf32>
    %19 = arith.addf %15, %18 : vector<1x1x128xf32>
    %c0_6 = arith.constant 0 : index
    %c0_7 = arith.constant 0 : index
    %c0_8 = arith.constant 0 : index
    %20 = vector.load %arg3[%c0_6, %c0_7, %c0_8] : memref<1x1x128xf32, #tpu.memory_space<vmem>>, vector<1x1x128xf32>
    tpu.vector_store %arg3[%c0_6, %c0_7, %c0_8], %19 {strides = array<i32>} : memref<1x1x128xf32, #tpu.memory_space<vmem>>, vector<1x1x128xf32>,
    %c0_9 = arith.constant 0 : index
    %c0_10 = arith.constant 0 : index
    %c0_11 = arith.constant 0 : index
    %21 = vector.load %arg4[%c0_9, %c0_10, %c0_11] : memref<1x1x128xf32, #tpu.memory_space<vmem>>, vector<1x1x128xf32>
    %22 = arith.mulf %14, %14 : vector<16x128xf32>
    %cst_12 = arith.constant dense<0.000000e+00> : vector<128xf32>
    %23 = vector.multi_reduction <add>, %22, %cst_12 [0] : vector<16x128xf32> to vector<128xf32>
    %24 = vector.shape_cast %23 : vector<128xf32> to vector<1x128xf32>
    %25 = vector.shape_cast %24 : vector<1x128xf32> to vector<1x1x128xf32>
    %26 = arith.addf %21, %25 : vector<1x1x128xf32>
    %c0_13 = arith.constant 0 : index
    %c0_14 = arith.constant 0 : index
    %c0_15 = arith.constant 0 : index
    %27 = vector.load %arg4[%c0_13, %c0_14, %c0_15] : memref<1x1x128xf32, #tpu.memory_space<vmem>>, vector<1x1x128xf32>
    tpu.vector_store %arg4[%c0_13, %c0_14, %c0_15], %26 {strides = array<i32>} : memref<1x1x128xf32, #tpu.memory_space<vmem>>, vector<1x1x128xf32>,
    return
  }
  func.func @transform_0(%arg0: i32, %arg1: i32) -> (i32, i32) {
    %c1_i32 = arith.constant 1 : i32
    %0 = arith.muli %arg0, %c1_i32 : i32
    %1 = arith.addi %0, %arg1 : i32
    %c0_i32 = arith.constant 0 : i32
    %c0_i32_0 = arith.constant 0 : i32
    return %1, %c0_i32 : i32, i32
  }
  func.func @transform_1(%arg0: i32, %arg1: i32) -> (i32, i32, i32) {
    %c0_i32 = arith.constant 0 : i32
    %c0_i32_0 = arith.constant 0 : i32
    %c0_i32_1 = arith.constant 0 : i32
    return %arg0, %c0_i32, %c0_i32_0 : i32, i32, i32
  }
  func.func @transform_2(%arg0: i32, %arg1: i32) -> (i32, i32, i32) {
    %c0_i32 = arith.constant 0 : i32
    %c0_i32_0 = arith.constant 0 : i32
    %c0_i32_1 = arith.constant 0 : i32
    return %arg0, %c0_i32, %c0_i32_0 : i32, i32, i32
  }
}

module attributes {stable_mosaic.version = 11 : i64} {
  func.func @_gemm_kernel(%arg0: i32, %arg1: i32, %arg2: i32, %arg3: memref<32x256xbf16, #tpu.memory_space<vmem>>, %arg4: memref<256x128xbf16, #tpu.memory_space<vmem>>, %arg5: memref<1x128xf32, #tpu.memory_space<vmem>>, %arg6: memref<32x128xbf16, #tpu.memory_space<vmem>>, %arg7: memref<32x128xf32, #tpu.memory_space<vmem>>) attributes {dimension_semantics = [#tpu.dimension_semantics<parallel>, #tpu.dimension_semantics<parallel>, #tpu.dimension_semantics<arbitrary>], iteration_bounds = array<i64: 1, 1, 1>, scalar_prefetch = 0 : i64, scratch_operands = 1 : i64, tpu.core_type = #tpu.core_type<tc>, window_params = [{transform_indices = @transform_0, window_bounds = array<i64: 32, 256>}, {transform_indices = @transform_1, window_bounds = array<i64: 256, 128>}, {transform_indices = @transform_2, window_bounds = array<i64: 1, 128>}, {transform_indices = @transform_3, window_bounds = array<i64: 32, 128>}]} {
    %c0_i32 = arith.constant 0 : i32
    %0 = arith.cmpi eq, %arg2, %c0_i32 : i32
    %1 = arith.extui %0 : i1 to i32
    %c0_i32_0 = arith.constant 0 : i32
    %2 = arith.cmpi ne, %1, %c0_i32_0 : i32
    scf.if %2 {
      %cst_12 = arith.constant 0.000000e+00 : f32
      %17 = vector.broadcast %cst_12 : f32 to vector<32x128xf32>
      %c0_13 = arith.constant 0 : index
      %c0_14 = arith.constant 0 : index
      %18 = vector.load %arg7[%c0_13, %c0_14] : memref<32x128xf32, #tpu.memory_space<vmem>>, vector<32x128xf32>
      tpu.vector_store %arg7[%c0_13, %c0_14], %17 {strides = array<i32>} : memref<32x128xf32, #tpu.memory_space<vmem>>, vector<32x128xf32>,
    } else {
    }
    %c0 = arith.constant 0 : index
    %c0_1 = arith.constant 0 : index
    %3 = vector.load %arg3[%c0, %c0_1] : memref<32x256xbf16, #tpu.memory_space<vmem>>, vector<32x256xbf16>
    %cst = arith.constant 0.000000e+00 : bf16
    %4 = vector.broadcast %cst : bf16 to vector<32x256xbf16>
    %5 = arith.cmpf oge, %3, %4 : vector<32x256xbf16>
    %cst_2 = arith.constant 2.001950e-01 : bf16
    %6 = vector.broadcast %cst_2 : bf16 to vector<32x256xbf16>
    %7 = arith.mulf %3, %6 : vector<32x256xbf16>
    %8 = arith.select %5, %3, %7 : vector<32x256xi1>, vector<32x256xbf16>
    %c0_3 = arith.constant 0 : index
    %c0_4 = arith.constant 0 : index
    %9 = vector.load %arg7[%c0_3, %c0_4] : memref<32x128xf32, #tpu.memory_space<vmem>>, vector<32x128xf32>
    %c0_5 = arith.constant 0 : index
    %c0_6 = arith.constant 0 : index
    %10 = vector.load %arg4[%c0_5, %c0_6] : memref<256x128xbf16, #tpu.memory_space<vmem>>, vector<256x128xbf16>
    %cst_7 = arith.constant dense<0.000000e+00> : vector<32x128xf32>
    %11 = tpu.matmul %8, %10, %cst_7 {dimension_numbers = #tpu.dot_dimension_numbers<[1], [0], [0], [1], [0, 0, 1, 1], [], []>} : vector<32x256xbf16>, vector<256x128xbf16>, vector<32x128xf32> -> vector<32x128xf32>
    %12 = arith.addf %9, %11 : vector<32x128xf32>
    %c0_8 = arith.constant 0 : index
    %c0_9 = arith.constant 0 : index
    %13 = vector.load %arg7[%c0_8, %c0_9] : memref<32x128xf32, #tpu.memory_space<vmem>>, vector<32x128xf32>
    tpu.vector_store %arg7[%c0_8, %c0_9], %12 {strides = array<i32>} : memref<32x128xf32, #tpu.memory_space<vmem>>, vector<32x128xf32>,
    %c0_i32_10 = arith.constant 0 : i32
    %14 = arith.cmpi eq, %arg2, %c0_i32_10 : i32
    %15 = arith.extui %14 : i1 to i32
    %c0_i32_11 = arith.constant 0 : i32
    %16 = arith.cmpi ne, %15, %c0_i32_11 : i32
    scf.if %16 {
      %c0_12 = arith.constant 0 : index
      %c0_13 = arith.constant 0 : index
      %17 = vector.load %arg7[%c0_12, %c0_13] : memref<32x128xf32, #tpu.memory_space<vmem>>, vector<32x128xf32>
      %c0_14 = arith.constant 0 : index
      %c0_15 = arith.constant 0 : index
      %18 = vector.load %arg5[%c0_14, %c0_15] : memref<1x128xf32, #tpu.memory_space<vmem>>, vector<1x128xf32>
      %19 = vector.broadcast %18 : vector<1x128xf32> to vector<32x128xf32>
      %20 = arith.addf %17, %19 : vector<32x128xf32>
      %21 = arith.truncf %20 : vector<32x128xf32> to vector<32x128xbf16>
      %c0_16 = arith.constant 0 : index
      %c0_17 = arith.constant 0 : index
      %22 = vector.load %arg6[%c0_16, %c0_17] : memref<32x128xbf16, #tpu.memory_space<vmem>>, vector<32x128xbf16>
      tpu.vector_store %arg6[%c0_16, %c0_17], %21 {strides = array<i32>} : memref<32x128xbf16, #tpu.memory_space<vmem>>, vector<32x128xbf16>,
    } else {
    }
    return
  }
  func.func @transform_0(%arg0: i32, %arg1: i32, %arg2: i32) -> (i32, i32) {
    %c0_i32 = arith.constant 0 : i32
    return %arg0, %arg2 : i32, i32
  }
  func.func @transform_1(%arg0: i32, %arg1: i32, %arg2: i32) -> (i32, i32) {
    %c0_i32 = arith.constant 0 : i32
    return %arg2, %arg1 : i32, i32
  }
  func.func @transform_2(%arg0: i32, %arg1: i32, %arg2: i32) -> (i32, i32) {
    %c0_i32 = arith.constant 0 : i32
    %c0_i32_0 = arith.constant 0 : i32
    return %c0_i32, %arg1 : i32, i32
  }
  func.func @transform_3(%arg0: i32, %arg1: i32, %arg2: i32) -> (i32, i32) {
    %c0_i32 = arith.constant 0 : i32
    return %arg0, %arg1 : i32, i32
  }
}

module attributes {stable_mosaic.version = 11 : i64} {
  func.func @_bn_apply_kernel(%arg0: i32, %arg1: memref<16x128xbf16, #tpu.memory_space<vmem>>, %arg2: memref<1x128xf32, #tpu.memory_space<vmem>>, %arg3: memref<1x128xf32, #tpu.memory_space<vmem>>, %arg4: memref<16x128xbf16, #tpu.memory_space<vmem>>) attributes {dimension_semantics = [#tpu.dimension_semantics<parallel>], iteration_bounds = array<i64: 1>, scalar_prefetch = 0 : i64, scratch_operands = 0 : i64, tpu.core_type = #tpu.core_type<tc>, window_params = [{transform_indices = @transform_0, window_bounds = array<i64: 16, 128>}, {pipeline_mode = #tpu.pipeline_mode<synchronous>, transform_indices = @transform_1, window_bounds = array<i64: 1, 128>}, {pipeline_mode = #tpu.pipeline_mode<synchronous>, transform_indices = @transform_2, window_bounds = array<i64: 1, 128>}, {transform_indices = @transform_3, window_bounds = array<i64: 16, 128>}]} {
    %c0 = arith.constant 0 : index
    %c0_0 = arith.constant 0 : index
    %0 = vector.load %arg1[%c0, %c0_0] : memref<16x128xbf16, #tpu.memory_space<vmem>>, vector<16x128xbf16>
    %1 = arith.extf %0 : vector<16x128xbf16> to vector<16x128xf32>
    %c0_1 = arith.constant 0 : index
    %c0_2 = arith.constant 0 : index
    %2 = vector.load %arg2[%c0_1, %c0_2] : memref<1x128xf32, #tpu.memory_space<vmem>>, vector<1x128xf32>
    %3 = vector.broadcast %2 : vector<1x128xf32> to vector<16x128xf32>
    %4 = arith.mulf %1, %3 : vector<16x128xf32>
    %c0_3 = arith.constant 0 : index
    %c0_4 = arith.constant 0 : index
    %5 = vector.load %arg3[%c0_3, %c0_4] : memref<1x128xf32, #tpu.memory_space<vmem>>, vector<1x128xf32>
    %6 = vector.broadcast %5 : vector<1x128xf32> to vector<16x128xf32>
    %7 = arith.addf %4, %6 : vector<16x128xf32>
    %8 = arith.truncf %7 : vector<16x128xf32> to vector<16x128xbf16>
    %c0_5 = arith.constant 0 : index
    %c0_6 = arith.constant 0 : index
    %9 = vector.load %arg4[%c0_5, %c0_6] : memref<16x128xbf16, #tpu.memory_space<vmem>>, vector<16x128xbf16>
    tpu.vector_store %arg4[%c0_5, %c0_6], %8 {strides = array<i32>} : memref<16x128xbf16, #tpu.memory_space<vmem>>, vector<16x128xbf16>,
    return
  }
  func.func @transform_0(%arg0: i32) -> (i32, i32) {
    %c0_i32 = arith.constant 0 : i32
    %c0_i32_0 = arith.constant 0 : i32
    return %arg0, %c0_i32 : i32, i32
  }
  func.func @transform_1(%arg0: i32) -> (i32, i32) {
    %c0_i32 = arith.constant 0 : i32
    %c0_i32_0 = arith.constant 0 : i32
    %c0_i32_1 = arith.constant 0 : i32
    return %c0_i32, %c0_i32_0 : i32, i32
  }
  func.func @transform_2(%arg0: i32) -> (i32, i32) {
    %c0_i32 = arith.constant 0 : i32
    %c0_i32_0 = arith.constant 0 : i32
    %c0_i32_1 = arith.constant 0 : i32
    return %c0_i32, %c0_i32_0 : i32, i32
  }
  func.func @transform_3(%arg0: i32) -> (i32, i32) {
    %c0_i32 = arith.constant 0 : i32
    %c0_i32_0 = arith.constant 0 : i32
    return %arg0, %c0_i32 : i32, i32
  }
}

module attributes {stable_mosaic.version = 11 : i64} {
  func.func @_gemm_kernel(%arg0: i32, %arg1: i32, %arg2: i32, %arg3: memref<16x512xbf16, #tpu.memory_space<vmem>>, %arg4: memref<512x128xbf16, #tpu.memory_space<vmem>>, %arg5: memref<1x128xf32, #tpu.memory_space<vmem>>, %arg6: memref<16x128xbf16, #tpu.memory_space<vmem>>, %arg7: memref<16x128xf32, #tpu.memory_space<vmem>>) attributes {dimension_semantics = [#tpu.dimension_semantics<parallel>, #tpu.dimension_semantics<parallel>, #tpu.dimension_semantics<arbitrary>], iteration_bounds = array<i64: 1, 1, 1>, scalar_prefetch = 0 : i64, scratch_operands = 1 : i64, tpu.core_type = #tpu.core_type<tc>, window_params = [{transform_indices = @transform_0, window_bounds = array<i64: 16, 512>}, {transform_indices = @transform_1, window_bounds = array<i64: 512, 128>}, {transform_indices = @transform_2, window_bounds = array<i64: 1, 128>}, {transform_indices = @transform_3, window_bounds = array<i64: 16, 128>}]} {
    %c0_i32 = arith.constant 0 : i32
    %0 = arith.cmpi eq, %arg2, %c0_i32 : i32
    %1 = arith.extui %0 : i1 to i32
    %c0_i32_0 = arith.constant 0 : i32
    %2 = arith.cmpi ne, %1, %c0_i32_0 : i32
    scf.if %2 {
      %cst_12 = arith.constant 0.000000e+00 : f32
      %17 = vector.broadcast %cst_12 : f32 to vector<16x128xf32>
      %c0_13 = arith.constant 0 : index
      %c0_14 = arith.constant 0 : index
      %18 = vector.load %arg7[%c0_13, %c0_14] : memref<16x128xf32, #tpu.memory_space<vmem>>, vector<16x128xf32>
      tpu.vector_store %arg7[%c0_13, %c0_14], %17 {strides = array<i32>} : memref<16x128xf32, #tpu.memory_space<vmem>>, vector<16x128xf32>,
    } else {
    }
    %c0 = arith.constant 0 : index
    %c0_1 = arith.constant 0 : index
    %3 = vector.load %arg3[%c0, %c0_1] : memref<16x512xbf16, #tpu.memory_space<vmem>>, vector<16x512xbf16>
    %cst = arith.constant 0.000000e+00 : bf16
    %4 = vector.broadcast %cst : bf16 to vector<16x512xbf16>
    %5 = arith.cmpf oge, %3, %4 : vector<16x512xbf16>
    %cst_2 = arith.constant 2.001950e-01 : bf16
    %6 = vector.broadcast %cst_2 : bf16 to vector<16x512xbf16>
    %7 = arith.mulf %3, %6 : vector<16x512xbf16>
    %8 = arith.select %5, %3, %7 : vector<16x512xi1>, vector<16x512xbf16>
    %c0_3 = arith.constant 0 : index
    %c0_4 = arith.constant 0 : index
    %9 = vector.load %arg7[%c0_3, %c0_4] : memref<16x128xf32, #tpu.memory_space<vmem>>, vector<16x128xf32>
    %c0_5 = arith.constant 0 : index
    %c0_6 = arith.constant 0 : index
    %10 = vector.load %arg4[%c0_5, %c0_6] : memref<512x128xbf16, #tpu.memory_space<vmem>>, vector<512x128xbf16>
    %cst_7 = arith.constant dense<0.000000e+00> : vector<16x128xf32>
    %11 = tpu.matmul %8, %10, %cst_7 {dimension_numbers = #tpu.dot_dimension_numbers<[1], [0], [0], [1], [0, 0, 1, 1], [], []>} : vector<16x512xbf16>, vector<512x128xbf16>, vector<16x128xf32> -> vector<16x128xf32>
    %12 = arith.addf %9, %11 : vector<16x128xf32>
    %c0_8 = arith.constant 0 : index
    %c0_9 = arith.constant 0 : index
    %13 = vector.load %arg7[%c0_8, %c0_9] : memref<16x128xf32, #tpu.memory_space<vmem>>, vector<16x128xf32>
    tpu.vector_store %arg7[%c0_8, %c0_9], %12 {strides = array<i32>} : memref<16x128xf32, #tpu.memory_space<vmem>>, vector<16x128xf32>,
    %c0_i32_10 = arith.constant 0 : i32
    %14 = arith.cmpi eq, %arg2, %c0_i32_10 : i32
    %15 = arith.extui %14 : i1 to i32
    %c0_i32_11 = arith.constant 0 : i32
    %16 = arith.cmpi ne, %15, %c0_i32_11 : i32
    scf.if %16 {
      %c0_12 = arith.constant 0 : index
      %c0_13 = arith.constant 0 : index
      %17 = vector.load %arg7[%c0_12, %c0_13] : memref<16x128xf32, #tpu.memory_space<vmem>>, vector<16x128xf32>
      %c0_14 = arith.constant 0 : index
      %c0_15 = arith.constant 0 : index
      %18 = vector.load %arg5[%c0_14, %c0_15] : memref<1x128xf32, #tpu.memory_space<vmem>>, vector<1x128xf32>
      %19 = vector.broadcast %18 : vector<1x128xf32> to vector<16x128xf32>
      %20 = arith.addf %17, %19 : vector<16x128xf32>
      %21 = arith.truncf %20 : vector<16x128xf32> to vector<16x128xbf16>
      %c0_16 = arith.constant 0 : index
      %c0_17 = arith.constant 0 : index
      %22 = vector.load %arg6[%c0_16, %c0_17] : memref<16x128xbf16, #tpu.memory_space<vmem>>, vector<16x128xbf16>
      tpu.vector_store %arg6[%c0_16, %c0_17], %21 {strides = array<i32>} : memref<16x128xbf16, #tpu.memory_space<vmem>>, vector<16x128xbf16>,
    } else {
    }
    return
  }
  func.func @transform_0(%arg0: i32, %arg1: i32, %arg2: i32) -> (i32, i32) {
    %c0_i32 = arith.constant 0 : i32
    return %arg0, %arg2 : i32, i32
  }
  func.func @transform_1(%arg0: i32, %arg1: i32, %arg2: i32) -> (i32, i32) {
    %c0_i32 = arith.constant 0 : i32
    return %arg2, %arg1 : i32, i32
  }
  func.func @transform_2(%arg0: i32, %arg1: i32, %arg2: i32) -> (i32, i32) {
    %c0_i32 = arith.constant 0 : i32
    %c0_i32_0 = arith.constant 0 : i32
    return %c0_i32, %arg1 : i32, i32
  }
  func.func @transform_3(%arg0: i32, %arg1: i32, %arg2: i32) -> (i32, i32) {
    %c0_i32 = arith.constant 0 : i32
    return %arg0, %arg1 : i32, i32
  }
}

module attributes {stable_mosaic.version = 11 : i64} {
  func.func @_bn_stats_kernel(%arg0: i32, %arg1: i32, %arg2: memref<16x128xbf16, #tpu.memory_space<vmem>>, %arg3: memref<1x1x128xf32, #tpu.memory_space<vmem>>, %arg4: memref<1x1x128xf32, #tpu.memory_space<vmem>>) attributes {dimension_semantics = [#tpu.dimension_semantics<parallel>, #tpu.dimension_semantics<arbitrary>], iteration_bounds = array<i64: 1, 1>, scalar_prefetch = 0 : i64, scratch_operands = 0 : i64, tpu.core_type = #tpu.core_type<tc>, window_params = [{transform_indices = @transform_0, window_bounds = array<i64: 16, 128>}, {transform_indices = @transform_1, window_bounds = array<i64: 1, 1, 128>}, {transform_indices = @transform_2, window_bounds = array<i64: 1, 1, 128>}]} {
    %c0_i32 = arith.constant 0 : i32
    %0 = arith.cmpi eq, %arg1, %c0_i32 : i32
    %1 = arith.extui %0 : i1 to i32
    %c0_i32_0 = arith.constant 0 : i32
    %2 = arith.cmpi ne, %1, %c0_i32_0 : i32
    scf.if %2 {
      %cst_16 = arith.constant 0.000000e+00 : f32
      %28 = vector.broadcast %cst_16 : f32 to vector<1x1x128xf32>
      %c0_17 = arith.constant 0 : index
      %c0_18 = arith.constant 0 : index
      %c0_19 = arith.constant 0 : index
      %29 = vector.load %arg3[%c0_17, %c0_18, %c0_19] : memref<1x1x128xf32, #tpu.memory_space<vmem>>, vector<1x1x128xf32>
      tpu.vector_store %arg3[%c0_17, %c0_18, %c0_19], %28 {strides = array<i32>} : memref<1x1x128xf32, #tpu.memory_space<vmem>>, vector<1x1x128xf32>,
      %cst_20 = arith.constant 0.000000e+00 : f32
      %30 = vector.broadcast %cst_20 : f32 to vector<1x1x128xf32>
      %c0_21 = arith.constant 0 : index
      %c0_22 = arith.constant 0 : index
      %c0_23 = arith.constant 0 : index
      %31 = vector.load %arg4[%c0_21, %c0_22, %c0_23] : memref<1x1x128xf32, #tpu.memory_space<vmem>>, vector<1x1x128xf32>
      tpu.vector_store %arg4[%c0_21, %c0_22, %c0_23], %30 {strides = array<i32>} : memref<1x1x128xf32, #tpu.memory_space<vmem>>, vector<1x1x128xf32>,
    } else {
    }
    %c0 = arith.constant 0 : index
    %c0_1 = arith.constant 0 : index
    %3 = vector.load %arg2[%c0, %c0_1] : memref<16x128xbf16, #tpu.memory_space<vmem>>, vector<16x128xbf16>
    %4 = arith.extf %3 : vector<16x128xbf16> to vector<16x128xf32>
    %c1_i32 = arith.constant 1 : i32
    %5 = arith.muli %arg0, %c1_i32 : i32
    %6 = arith.addi %5, %arg1 : i32
    %c16_i32 = arith.constant 16 : i32
    %7 = arith.muli %6, %c16_i32 : i32
    %8 = tpu.iota {dimensions = array<i32: 0>} : vector<16x128xi32>
    %9 = vector.broadcast %7 : i32 to vector<16x128xi32>
    %10 = arith.addi %9, %8 : vector<16x128xi32>
    %c4_i32 = arith.constant 4 : i32
    %11 = vector.broadcast %c4_i32 : i32 to vector<16x128xi32>
    %12 = arith.cmpi slt, %10, %11 : vector<16x128xi32>
    %cst = arith.constant 0.000000e+00 : f32
    %13 = vector.broadcast %cst : f32 to vector<16x128xf32>
    %14 = arith.select %12, %4, %13 : vector<16x128xi1>, vector<16x128xf32>
    %c0_2 = arith.constant 0 : index
    %c0_3 = arith.constant 0 : index
    %c0_4 = arith.constant 0 : index
    %15 = vector.load %arg3[%c0_2, %c0_3, %c0_4] : memref<1x1x128xf32, #tpu.memory_space<vmem>>, vector<1x1x128xf32>
    %cst_5 = arith.constant dense<0.000000e+00> : vector<128xf32>
    %16 = vector.multi_reduction <add>, %14, %cst_5 [0] : vector<16x128xf32> to vector<128xf32>
    %17 = vector.shape_cast %16 : vector<128xf32> to vector<1x128xf32>
    %18 = vector.shape_cast %17 : vector<1x128xf32> to vector<1x1x128xf32>
    %19 = arith.addf %15, %18 : vector<1x1x128xf32>
    %c0_6 = arith.constant 0 : index
    %c0_7 = arith.constant 0 : index
    %c0_8 = arith.constant 0 : index
    %20 = vector.load %arg3[%c0_6, %c0_7, %c0_8] : memref<1x1x128xf32, #tpu.memory_space<vmem>>, vector<1x1x128xf32>
    tpu.vector_store %arg3[%c0_6, %c0_7, %c0_8], %19 {strides = array<i32>} : memref<1x1x128xf32, #tpu.memory_space<vmem>>, vector<1x1x128xf32>,
    %c0_9 = arith.constant 0 : index
    %c0_10 = arith.constant 0 : index
    %c0_11 = arith.constant 0 : index
    %21 = vector.load %arg4[%c0_9, %c0_10, %c0_11] : memref<1x1x128xf32, #tpu.memory_space<vmem>>, vector<1x1x128xf32>
    %22 = arith.mulf %14, %14 : vector<16x128xf32>
    %cst_12 = arith.constant dense<0.000000e+00> : vector<128xf32>
    %23 = vector.multi_reduction <add>, %22, %cst_12 [0] : vector<16x128xf32> to vector<128xf32>
    %24 = vector.shape_cast %23 : vector<128xf32> to vector<1x128xf32>
    %25 = vector.shape_cast %24 : vector<1x128xf32> to vector<1x1x128xf32>
    %26 = arith.addf %21, %25 : vector<1x1x128xf32>
    %c0_13 = arith.constant 0 : index
    %c0_14 = arith.constant 0 : index
    %c0_15 = arith.constant 0 : index
    %27 = vector.load %arg4[%c0_13, %c0_14, %c0_15] : memref<1x1x128xf32, #tpu.memory_space<vmem>>, vector<1x1x128xf32>
    tpu.vector_store %arg4[%c0_13, %c0_14, %c0_15], %26 {strides = array<i32>} : memref<1x1x128xf32, #tpu.memory_space<vmem>>, vector<1x1x128xf32>,
    return
  }
  func.func @transform_0(%arg0: i32, %arg1: i32) -> (i32, i32) {
    %c1_i32 = arith.constant 1 : i32
    %0 = arith.muli %arg0, %c1_i32 : i32
    %1 = arith.addi %0, %arg1 : i32
    %c0_i32 = arith.constant 0 : i32
    %c0_i32_0 = arith.constant 0 : i32
    return %1, %c0_i32 : i32, i32
  }
  func.func @transform_1(%arg0: i32, %arg1: i32) -> (i32, i32, i32) {
    %c0_i32 = arith.constant 0 : i32
    %c0_i32_0 = arith.constant 0 : i32
    %c0_i32_1 = arith.constant 0 : i32
    return %arg0, %c0_i32, %c0_i32_0 : i32, i32, i32
  }
  func.func @transform_2(%arg0: i32, %arg1: i32) -> (i32, i32, i32) {
    %c0_i32 = arith.constant 0 : i32
    %c0_i32_0 = arith.constant 0 : i32
    %c0_i32_1 = arith.constant 0 : i32
    return %arg0, %c0_i32, %c0_i32_0 : i32, i32, i32
  }
}

module attributes {stable_mosaic.version = 11 : i64} {
  func.func @_bn_apply_kernel(%arg0: i32, %arg1: memref<16x128xbf16, #tpu.memory_space<vmem>>, %arg2: memref<1x128xf32, #tpu.memory_space<vmem>>, %arg3: memref<1x128xf32, #tpu.memory_space<vmem>>, %arg4: memref<16x128xbf16, #tpu.memory_space<vmem>>) attributes {dimension_semantics = [#tpu.dimension_semantics<parallel>], iteration_bounds = array<i64: 1>, scalar_prefetch = 0 : i64, scratch_operands = 0 : i64, tpu.core_type = #tpu.core_type<tc>, window_params = [{transform_indices = @transform_0, window_bounds = array<i64: 16, 128>}, {pipeline_mode = #tpu.pipeline_mode<synchronous>, transform_indices = @transform_1, window_bounds = array<i64: 1, 128>}, {pipeline_mode = #tpu.pipeline_mode<synchronous>, transform_indices = @transform_2, window_bounds = array<i64: 1, 128>}, {transform_indices = @transform_3, window_bounds = array<i64: 16, 128>}]} {
    %c0 = arith.constant 0 : index
    %c0_0 = arith.constant 0 : index
    %0 = vector.load %arg1[%c0, %c0_0] : memref<16x128xbf16, #tpu.memory_space<vmem>>, vector<16x128xbf16>
    %1 = arith.extf %0 : vector<16x128xbf16> to vector<16x128xf32>
    %c0_1 = arith.constant 0 : index
    %c0_2 = arith.constant 0 : index
    %2 = vector.load %arg2[%c0_1, %c0_2] : memref<1x128xf32, #tpu.memory_space<vmem>>, vector<1x128xf32>
    %3 = vector.broadcast %2 : vector<1x128xf32> to vector<16x128xf32>
    %4 = arith.mulf %1, %3 : vector<16x128xf32>
    %c0_3 = arith.constant 0 : index
    %c0_4 = arith.constant 0 : index
    %5 = vector.load %arg3[%c0_3, %c0_4] : memref<1x128xf32, #tpu.memory_space<vmem>>, vector<1x128xf32>
    %6 = vector.broadcast %5 : vector<1x128xf32> to vector<16x128xf32>
    %7 = arith.addf %4, %6 : vector<16x128xf32>
    %8 = arith.truncf %7 : vector<16x128xf32> to vector<16x128xbf16>
    %c0_5 = arith.constant 0 : index
    %c0_6 = arith.constant 0 : index
    %9 = vector.load %arg4[%c0_5, %c0_6] : memref<16x128xbf16, #tpu.memory_space<vmem>>, vector<16x128xbf16>
    tpu.vector_store %arg4[%c0_5, %c0_6], %8 {strides = array<i32>} : memref<16x128xbf16, #tpu.memory_space<vmem>>, vector<16x128xbf16>,
    return
  }
  func.func @transform_0(%arg0: i32) -> (i32, i32) {
    %c0_i32 = arith.constant 0 : i32
    %c0_i32_0 = arith.constant 0 : i32
    return %arg0, %c0_i32 : i32, i32
  }
  func.func @transform_1(%arg0: i32) -> (i32, i32) {
    %c0_i32 = arith.constant 0 : i32
    %c0_i32_0 = arith.constant 0 : i32
    %c0_i32_1 = arith.constant 0 : i32
    return %c0_i32, %c0_i32_0 : i32, i32
  }
  func.func @transform_2(%arg0: i32) -> (i32, i32) {
    %c0_i32 = arith.constant 0 : i32
    %c0_i32_0 = arith.constant 0 : i32
    %c0_i32_1 = arith.constant 0 : i32
    return %c0_i32, %c0_i32_0 : i32, i32
  }
  func.func @transform_3(%arg0: i32) -> (i32, i32) {
    %c0_i32 = arith.constant 0 : i32
    %c0_i32_0 = arith.constant 0 : i32
    return %arg0, %c0_i32 : i32, i32
  }
}

module attributes {stable_mosaic.version = 11 : i64} {
  func.func @_gemm_kernel(%arg0: i32, %arg1: i32, %arg2: i32, %arg3: memref<16x1024xbf16, #tpu.memory_space<vmem>>, %arg4: memref<1024x128xbf16, #tpu.memory_space<vmem>>, %arg5: memref<1x128xf32, #tpu.memory_space<vmem>>, %arg6: memref<16x128xbf16, #tpu.memory_space<vmem>>, %arg7: memref<16x128xf32, #tpu.memory_space<vmem>>) attributes {dimension_semantics = [#tpu.dimension_semantics<parallel>, #tpu.dimension_semantics<parallel>, #tpu.dimension_semantics<arbitrary>], iteration_bounds = array<i64: 1, 1, 1>, scalar_prefetch = 0 : i64, scratch_operands = 1 : i64, tpu.core_type = #tpu.core_type<tc>, window_params = [{transform_indices = @transform_0, window_bounds = array<i64: 16, 1024>}, {transform_indices = @transform_1, window_bounds = array<i64: 1024, 128>}, {transform_indices = @transform_2, window_bounds = array<i64: 1, 128>}, {transform_indices = @transform_3, window_bounds = array<i64: 16, 128>}]} {
    %c0_i32 = arith.constant 0 : i32
    %0 = arith.cmpi eq, %arg2, %c0_i32 : i32
    %1 = arith.extui %0 : i1 to i32
    %c0_i32_0 = arith.constant 0 : i32
    %2 = arith.cmpi ne, %1, %c0_i32_0 : i32
    scf.if %2 {
      %cst_12 = arith.constant 0.000000e+00 : f32
      %17 = vector.broadcast %cst_12 : f32 to vector<16x128xf32>
      %c0_13 = arith.constant 0 : index
      %c0_14 = arith.constant 0 : index
      %18 = vector.load %arg7[%c0_13, %c0_14] : memref<16x128xf32, #tpu.memory_space<vmem>>, vector<16x128xf32>
      tpu.vector_store %arg7[%c0_13, %c0_14], %17 {strides = array<i32>} : memref<16x128xf32, #tpu.memory_space<vmem>>, vector<16x128xf32>,
    } else {
    }
    %c0 = arith.constant 0 : index
    %c0_1 = arith.constant 0 : index
    %3 = vector.load %arg3[%c0, %c0_1] : memref<16x1024xbf16, #tpu.memory_space<vmem>>, vector<16x1024xbf16>
    %cst = arith.constant 0.000000e+00 : bf16
    %4 = vector.broadcast %cst : bf16 to vector<16x1024xbf16>
    %5 = arith.cmpf oge, %3, %4 : vector<16x1024xbf16>
    %cst_2 = arith.constant 2.001950e-01 : bf16
    %6 = vector.broadcast %cst_2 : bf16 to vector<16x1024xbf16>
    %7 = arith.mulf %3, %6 : vector<16x1024xbf16>
    %8 = arith.select %5, %3, %7 : vector<16x1024xi1>, vector<16x1024xbf16>
    %c0_3 = arith.constant 0 : index
    %c0_4 = arith.constant 0 : index
    %9 = vector.load %arg7[%c0_3, %c0_4] : memref<16x128xf32, #tpu.memory_space<vmem>>, vector<16x128xf32>
    %c0_5 = arith.constant 0 : index
    %c0_6 = arith.constant 0 : index
    %10 = vector.load %arg4[%c0_5, %c0_6] : memref<1024x128xbf16, #tpu.memory_space<vmem>>, vector<1024x128xbf16>
    %cst_7 = arith.constant dense<0.000000e+00> : vector<16x128xf32>
    %11 = tpu.matmul %8, %10, %cst_7 {dimension_numbers = #tpu.dot_dimension_numbers<[1], [0], [0], [1], [0, 0, 1, 1], [], []>} : vector<16x1024xbf16>, vector<1024x128xbf16>, vector<16x128xf32> -> vector<16x128xf32>
    %12 = arith.addf %9, %11 : vector<16x128xf32>
    %c0_8 = arith.constant 0 : index
    %c0_9 = arith.constant 0 : index
    %13 = vector.load %arg7[%c0_8, %c0_9] : memref<16x128xf32, #tpu.memory_space<vmem>>, vector<16x128xf32>
    tpu.vector_store %arg7[%c0_8, %c0_9], %12 {strides = array<i32>} : memref<16x128xf32, #tpu.memory_space<vmem>>, vector<16x128xf32>,
    %c0_i32_10 = arith.constant 0 : i32
    %14 = arith.cmpi eq, %arg2, %c0_i32_10 : i32
    %15 = arith.extui %14 : i1 to i32
    %c0_i32_11 = arith.constant 0 : i32
    %16 = arith.cmpi ne, %15, %c0_i32_11 : i32
    scf.if %16 {
      %c0_12 = arith.constant 0 : index
      %c0_13 = arith.constant 0 : index
      %17 = vector.load %arg7[%c0_12, %c0_13] : memref<16x128xf32, #tpu.memory_space<vmem>>, vector<16x128xf32>
      %c0_14 = arith.constant 0 : index
      %c0_15 = arith.constant 0 : index
      %18 = vector.load %arg5[%c0_14, %c0_15] : memref<1x128xf32, #tpu.memory_space<vmem>>, vector<1x128xf32>
      %19 = vector.broadcast %18 : vector<1x128xf32> to vector<16x128xf32>
      %20 = arith.addf %17, %19 : vector<16x128xf32>
      %21 = arith.truncf %20 : vector<16x128xf32> to vector<16x128xbf16>
      %c0_16 = arith.constant 0 : index
      %c0_17 = arith.constant 0 : index
      %22 = vector.load %arg6[%c0_16, %c0_17] : memref<16x128xbf16, #tpu.memory_space<vmem>>, vector<16x128xbf16>
      tpu.vector_store %arg6[%c0_16, %c0_17], %21 {strides = array<i32>} : memref<16x128xbf16, #tpu.memory_space<vmem>>, vector<16x128xbf16>,
    } else {
    }
    return
  }
  func.func @transform_0(%arg0: i32, %arg1: i32, %arg2: i32) -> (i32, i32) {
    %c0_i32 = arith.constant 0 : i32
    return %arg0, %arg2 : i32, i32
  }
  func.func @transform_1(%arg0: i32, %arg1: i32, %arg2: i32) -> (i32, i32) {
    %c0_i32 = arith.constant 0 : i32
    return %arg2, %arg1 : i32, i32
  }
  func.func @transform_2(%arg0: i32, %arg1: i32, %arg2: i32) -> (i32, i32) {
    %c0_i32 = arith.constant 0 : i32
    %c0_i32_0 = arith.constant 0 : i32
    return %c0_i32, %arg1 : i32, i32
  }
  func.func @transform_3(%arg0: i32, %arg1: i32, %arg2: i32) -> (i32, i32) {
    %c0_i32 = arith.constant 0 : i32
    return %arg0, %arg1 : i32, i32
  }
}

module attributes {stable_mosaic.version = 11 : i64} {
  func.func @_gemm_kernel(%arg0: i32, %arg1: i32, %arg2: i32, %arg3: memref<16x256xbf16, #tpu.memory_space<vmem>>, %arg4: memref<256x256xbf16, #tpu.memory_space<vmem>>, %arg5: memref<1x256xf32, #tpu.memory_space<vmem>>, %arg6: memref<16x256xbf16, #tpu.memory_space<vmem>>, %arg7: memref<16x256xf32, #tpu.memory_space<vmem>>) attributes {dimension_semantics = [#tpu.dimension_semantics<parallel>, #tpu.dimension_semantics<parallel>, #tpu.dimension_semantics<arbitrary>], iteration_bounds = array<i64: 1, 1, 1>, scalar_prefetch = 0 : i64, scratch_operands = 1 : i64, tpu.core_type = #tpu.core_type<tc>, window_params = [{transform_indices = @transform_0, window_bounds = array<i64: 16, 256>}, {transform_indices = @transform_1, window_bounds = array<i64: 256, 256>}, {transform_indices = @transform_2, window_bounds = array<i64: 1, 256>}, {transform_indices = @transform_3, window_bounds = array<i64: 16, 256>}]} {
    %c0_i32 = arith.constant 0 : i32
    %0 = arith.cmpi eq, %arg2, %c0_i32 : i32
    %1 = arith.extui %0 : i1 to i32
    %c0_i32_0 = arith.constant 0 : i32
    %2 = arith.cmpi ne, %1, %c0_i32_0 : i32
    scf.if %2 {
      %cst_11 = arith.constant 0.000000e+00 : f32
      %14 = vector.broadcast %cst_11 : f32 to vector<16x256xf32>
      %c0_12 = arith.constant 0 : index
      %c0_13 = arith.constant 0 : index
      %15 = vector.load %arg7[%c0_12, %c0_13] : memref<16x256xf32, #tpu.memory_space<vmem>>, vector<16x256xf32>
      tpu.vector_store %arg7[%c0_12, %c0_13], %14 {strides = array<i32>} : memref<16x256xf32, #tpu.memory_space<vmem>>, vector<16x256xf32>,
    } else {
    }
    %c0 = arith.constant 0 : index
    %c0_1 = arith.constant 0 : index
    %3 = vector.load %arg3[%c0, %c0_1] : memref<16x256xbf16, #tpu.memory_space<vmem>>, vector<16x256xbf16>
    %cst = arith.constant 0.000000e+00 : bf16
    %4 = vector.broadcast %cst : bf16 to vector<16x256xbf16>
    %5 = arith.maximumf %3, %4 : vector<16x256xbf16>
    %c0_2 = arith.constant 0 : index
    %c0_3 = arith.constant 0 : index
    %6 = vector.load %arg7[%c0_2, %c0_3] : memref<16x256xf32, #tpu.memory_space<vmem>>, vector<16x256xf32>
    %c0_4 = arith.constant 0 : index
    %c0_5 = arith.constant 0 : index
    %7 = vector.load %arg4[%c0_4, %c0_5] : memref<256x256xbf16, #tpu.memory_space<vmem>>, vector<256x256xbf16>
    %cst_6 = arith.constant dense<0.000000e+00> : vector<16x256xf32>
    %8 = tpu.matmul %5, %7, %cst_6 {dimension_numbers = #tpu.dot_dimension_numbers<[1], [0], [0], [1], [0, 0, 1, 1], [], []>} : vector<16x256xbf16>, vector<256x256xbf16>, vector<16x256xf32> -> vector<16x256xf32>
    %9 = arith.addf %6, %8 : vector<16x256xf32>
    %c0_7 = arith.constant 0 : index
    %c0_8 = arith.constant 0 : index
    %10 = vector.load %arg7[%c0_7, %c0_8] : memref<16x256xf32, #tpu.memory_space<vmem>>, vector<16x256xf32>
    tpu.vector_store %arg7[%c0_7, %c0_8], %9 {strides = array<i32>} : memref<16x256xf32, #tpu.memory_space<vmem>>, vector<16x256xf32>,
    %c0_i32_9 = arith.constant 0 : i32
    %11 = arith.cmpi eq, %arg2, %c0_i32_9 : i32
    %12 = arith.extui %11 : i1 to i32
    %c0_i32_10 = arith.constant 0 : i32
    %13 = arith.cmpi ne, %12, %c0_i32_10 : i32
    scf.if %13 {
      %c0_11 = arith.constant 0 : index
      %c0_12 = arith.constant 0 : index
      %14 = vector.load %arg7[%c0_11, %c0_12] : memref<16x256xf32, #tpu.memory_space<vmem>>, vector<16x256xf32>
      %c0_13 = arith.constant 0 : index
      %c0_14 = arith.constant 0 : index
      %15 = vector.load %arg5[%c0_13, %c0_14] : memref<1x256xf32, #tpu.memory_space<vmem>>, vector<1x256xf32>
      %16 = vector.broadcast %15 : vector<1x256xf32> to vector<16x256xf32>
      %17 = arith.addf %14, %16 : vector<16x256xf32>
      %18 = arith.truncf %17 : vector<16x256xf32> to vector<16x256xbf16>
      %c0_15 = arith.constant 0 : index
      %c0_16 = arith.constant 0 : index
      %19 = vector.load %arg6[%c0_15, %c0_16] : memref<16x256xbf16, #tpu.memory_space<vmem>>, vector<16x256xbf16>
      tpu.vector_store %arg6[%c0_15, %c0_16], %18 {strides = array<i32>} : memref<16x256xbf16, #tpu.memory_space<vmem>>, vector<16x256xbf16>,
    } else {
    }
    return
  }
  func.func @transform_0(%arg0: i32, %arg1: i32, %arg2: i32) -> (i32, i32) {
    %c0_i32 = arith.constant 0 : i32
    return %arg0, %arg2 : i32, i32
  }
  func.func @transform_1(%arg0: i32, %arg1: i32, %arg2: i32) -> (i32, i32) {
    %c0_i32 = arith.constant 0 : i32
    return %arg2, %arg1 : i32, i32
  }
  func.func @transform_2(%arg0: i32, %arg1: i32, %arg2: i32) -> (i32, i32) {
    %c0_i32 = arith.constant 0 : i32
    %c0_i32_0 = arith.constant 0 : i32
    return %c0_i32, %arg1 : i32, i32
  }
  func.func @transform_3(%arg0: i32, %arg1: i32, %arg2: i32) -> (i32, i32) {
    %c0_i32 = arith.constant 0 : i32
    return %arg0, %arg1 : i32, i32
  }
}

module attributes {stable_mosaic.version = 11 : i64} {
  func.func @_bn_apply_concat_kernel(%arg0: i32, %arg1: memref<16x64xbf16, #tpu.memory_space<vmem>>, %arg2: memref<1x64xf32, #tpu.memory_space<vmem>>, %arg3: memref<1x64xf32, #tpu.memory_space<vmem>>, %arg4: memref<16x64xbf16, #tpu.memory_space<vmem>>, %arg5: memref<16x128xbf16, #tpu.memory_space<vmem>>) attributes {dimension_semantics = [#tpu.dimension_semantics<parallel>], iteration_bounds = array<i64: 1>, scalar_prefetch = 0 : i64, scratch_operands = 0 : i64, tpu.core_type = #tpu.core_type<tc>, window_params = [{transform_indices = @transform_0, window_bounds = array<i64: 16, 64>}, {pipeline_mode = #tpu.pipeline_mode<synchronous>, transform_indices = @transform_1, window_bounds = array<i64: 1, 64>}, {pipeline_mode = #tpu.pipeline_mode<synchronous>, transform_indices = @transform_2, window_bounds = array<i64: 1, 64>}, {transform_indices = @transform_3, window_bounds = array<i64: 16, 64>}, {transform_indices = @transform_4, window_bounds = array<i64: 16, 128>}]} {
    %c0 = arith.constant 0 : index
    %c0_0 = arith.constant 0 : index
    %0 = vector.load %arg1[%c0, %c0_0] : memref<16x64xbf16, #tpu.memory_space<vmem>>, vector<16x64xbf16>
    %1 = arith.extf %0 : vector<16x64xbf16> to vector<16x64xf32>
    %c0_1 = arith.constant 0 : index
    %c0_2 = arith.constant 0 : index
    %2 = vector.load %arg2[%c0_1, %c0_2] : memref<1x64xf32, #tpu.memory_space<vmem>>, vector<1x64xf32>
    %3 = vector.broadcast %2 : vector<1x64xf32> to vector<16x64xf32>
    %4 = arith.mulf %1, %3 : vector<16x64xf32>
    %c0_3 = arith.constant 0 : index
    %c0_4 = arith.constant 0 : index
    %5 = vector.load %arg3[%c0_3, %c0_4] : memref<1x64xf32, #tpu.memory_space<vmem>>, vector<1x64xf32>
    %6 = vector.broadcast %5 : vector<1x64xf32> to vector<16x64xf32>
    %7 = arith.addf %4, %6 : vector<16x64xf32>
    %8 = arith.truncf %7 : vector<16x64xf32> to vector<16x64xbf16>
    %c0_5 = arith.constant 0 : index
    %c0_6 = arith.constant 0 : index
    %9 = vector.load %arg4[%c0_5, %c0_6] : memref<16x64xbf16, #tpu.memory_space<vmem>>, vector<16x64xbf16>
    %10 = tpu.concatenate %8, %9 in 1 : vector<16x64xbf16>, vector<16x64xbf16> -> vector<16x128xbf16>
    %c0_7 = arith.constant 0 : index
    %c0_8 = arith.constant 0 : index
    %11 = vector.load %arg5[%c0_7, %c0_8] : memref<16x128xbf16, #tpu.memory_space<vmem>>, vector<16x128xbf16>
    tpu.vector_store %arg5[%c0_7, %c0_8], %10 {strides = array<i32>} : memref<16x128xbf16, #tpu.memory_space<vmem>>, vector<16x128xbf16>,
    return
  }
  func.func @transform_0(%arg0: i32) -> (i32, i32) {
    %c0_i32 = arith.constant 0 : i32
    %c0_i32_0 = arith.constant 0 : i32
    return %arg0, %c0_i32 : i32, i32
  }
  func.func @transform_1(%arg0: i32) -> (i32, i32) {
    %c0_i32 = arith.constant 0 : i32
    %c0_i32_0 = arith.constant 0 : i32
    %c0_i32_1 = arith.constant 0 : i32
    return %c0_i32, %c0_i32_0 : i32, i32
  }
  func.func @transform_2(%arg0: i32) -> (i32, i32) {
    %c0_i32 = arith.constant 0 : i32
    %c0_i32_0 = arith.constant 0 : i32
    %c0_i32_1 = arith.constant 0 : i32
    return %c0_i32, %c0_i32_0 : i32, i32
  }
  func.func @transform_3(%arg0: i32) -> (i32, i32) {
    %c0_i32 = arith.constant 0 : i32
    %c0_i32_0 = arith.constant 0 : i32
    return %arg0, %c0_i32 : i32, i32
  }
  func.func @transform_4(%arg0: i32) -> (i32, i32) {
    %c0_i32 = arith.constant 0 : i32
    %c0_i32_0 = arith.constant 0 : i32
    return %arg0, %c0_i32 : i32, i32
  }
}

module attributes {stable_mosaic.version = 11 : i64} {
  func.func @_gemm_kernel(%arg0: i32, %arg1: i32, %arg2: i32, %arg3: memref<32x512xbf16, #tpu.memory_space<vmem>>, %arg4: memref<512x128xbf16, #tpu.memory_space<vmem>>, %arg5: memref<1x128xf32, #tpu.memory_space<vmem>>, %arg6: memref<32x128xbf16, #tpu.memory_space<vmem>>, %arg7: memref<32x128xf32, #tpu.memory_space<vmem>>) attributes {dimension_semantics = [#tpu.dimension_semantics<parallel>, #tpu.dimension_semantics<parallel>, #tpu.dimension_semantics<arbitrary>], iteration_bounds = array<i64: 1, 1, 1>, scalar_prefetch = 0 : i64, scratch_operands = 1 : i64, tpu.core_type = #tpu.core_type<tc>, window_params = [{transform_indices = @transform_0, window_bounds = array<i64: 32, 512>}, {transform_indices = @transform_1, window_bounds = array<i64: 512, 128>}, {transform_indices = @transform_2, window_bounds = array<i64: 1, 128>}, {transform_indices = @transform_3, window_bounds = array<i64: 32, 128>}]} {
    %c0_i32 = arith.constant 0 : i32
    %0 = arith.cmpi eq, %arg2, %c0_i32 : i32
    %1 = arith.extui %0 : i1 to i32
    %c0_i32_0 = arith.constant 0 : i32
    %2 = arith.cmpi ne, %1, %c0_i32_0 : i32
    scf.if %2 {
      %cst_11 = arith.constant 0.000000e+00 : f32
      %14 = vector.broadcast %cst_11 : f32 to vector<32x128xf32>
      %c0_12 = arith.constant 0 : index
      %c0_13 = arith.constant 0 : index
      %15 = vector.load %arg7[%c0_12, %c0_13] : memref<32x128xf32, #tpu.memory_space<vmem>>, vector<32x128xf32>
      tpu.vector_store %arg7[%c0_12, %c0_13], %14 {strides = array<i32>} : memref<32x128xf32, #tpu.memory_space<vmem>>, vector<32x128xf32>,
    } else {
    }
    %c0 = arith.constant 0 : index
    %c0_1 = arith.constant 0 : index
    %3 = vector.load %arg3[%c0, %c0_1] : memref<32x512xbf16, #tpu.memory_space<vmem>>, vector<32x512xbf16>
    %cst = arith.constant 0.000000e+00 : bf16
    %4 = vector.broadcast %cst : bf16 to vector<32x512xbf16>
    %5 = arith.maximumf %3, %4 : vector<32x512xbf16>
    %c0_2 = arith.constant 0 : index
    %c0_3 = arith.constant 0 : index
    %6 = vector.load %arg7[%c0_2, %c0_3] : memref<32x128xf32, #tpu.memory_space<vmem>>, vector<32x128xf32>
    %c0_4 = arith.constant 0 : index
    %c0_5 = arith.constant 0 : index
    %7 = vector.load %arg4[%c0_4, %c0_5] : memref<512x128xbf16, #tpu.memory_space<vmem>>, vector<512x128xbf16>
    %cst_6 = arith.constant dense<0.000000e+00> : vector<32x128xf32>
    %8 = tpu.matmul %5, %7, %cst_6 {dimension_numbers = #tpu.dot_dimension_numbers<[1], [0], [0], [1], [0, 0, 1, 1], [], []>} : vector<32x512xbf16>, vector<512x128xbf16>, vector<32x128xf32> -> vector<32x128xf32>
    %9 = arith.addf %6, %8 : vector<32x128xf32>
    %c0_7 = arith.constant 0 : index
    %c0_8 = arith.constant 0 : index
    %10 = vector.load %arg7[%c0_7, %c0_8] : memref<32x128xf32, #tpu.memory_space<vmem>>, vector<32x128xf32>
    tpu.vector_store %arg7[%c0_7, %c0_8], %9 {strides = array<i32>} : memref<32x128xf32, #tpu.memory_space<vmem>>, vector<32x128xf32>,
    %c0_i32_9 = arith.constant 0 : i32
    %11 = arith.cmpi eq, %arg2, %c0_i32_9 : i32
    %12 = arith.extui %11 : i1 to i32
    %c0_i32_10 = arith.constant 0 : i32
    %13 = arith.cmpi ne, %12, %c0_i32_10 : i32
    scf.if %13 {
      %c0_11 = arith.constant 0 : index
      %c0_12 = arith.constant 0 : index
      %14 = vector.load %arg7[%c0_11, %c0_12] : memref<32x128xf32, #tpu.memory_space<vmem>>, vector<32x128xf32>
      %c0_13 = arith.constant 0 : index
      %c0_14 = arith.constant 0 : index
      %15 = vector.load %arg5[%c0_13, %c0_14] : memref<1x128xf32, #tpu.memory_space<vmem>>, vector<1x128xf32>
      %16 = vector.broadcast %15 : vector<1x128xf32> to vector<32x128xf32>
      %17 = arith.addf %14, %16 : vector<32x128xf32>
      %18 = arith.truncf %17 : vector<32x128xf32> to vector<32x128xbf16>
      %c0_15 = arith.constant 0 : index
      %c0_16 = arith.constant 0 : index
      %19 = vector.load %arg6[%c0_15, %c0_16] : memref<32x128xbf16, #tpu.memory_space<vmem>>, vector<32x128xbf16>
      tpu.vector_store %arg6[%c0_15, %c0_16], %18 {strides = array<i32>} : memref<32x128xbf16, #tpu.memory_space<vmem>>, vector<32x128xbf16>,
    } else {
    }
    return
  }
  func.func @transform_0(%arg0: i32, %arg1: i32, %arg2: i32) -> (i32, i32) {
    %c0_i32 = arith.constant 0 : i32
    return %arg0, %arg2 : i32, i32
  }
  func.func @transform_1(%arg0: i32, %arg1: i32, %arg2: i32) -> (i32, i32) {
    %c0_i32 = arith.constant 0 : i32
    return %arg2, %arg1 : i32, i32
  }
  func.func @transform_2(%arg0: i32, %arg1: i32, %arg2: i32) -> (i32, i32) {
    %c0_i32 = arith.constant 0 : i32
    %c0_i32_0 = arith.constant 0 : i32
    return %c0_i32, %arg1 : i32, i32
  }
  func.func @transform_3(%arg0: i32, %arg1: i32, %arg2: i32) -> (i32, i32) {
    %c0_i32 = arith.constant 0 : i32
    return %arg0, %arg1 : i32, i32
  }
}

module attributes {stable_mosaic.version = 11 : i64} {
  func.func @_bn_apply_concat_kernel(%arg0: i32, %arg1: memref<32x32xbf16, #tpu.memory_space<vmem>>, %arg2: memref<1x32xf32, #tpu.memory_space<vmem>>, %arg3: memref<1x32xf32, #tpu.memory_space<vmem>>, %arg4: memref<32x32xbf16, #tpu.memory_space<vmem>>, %arg5: memref<32x64xbf16, #tpu.memory_space<vmem>>) attributes {dimension_semantics = [#tpu.dimension_semantics<parallel>], iteration_bounds = array<i64: 1>, scalar_prefetch = 0 : i64, scratch_operands = 0 : i64, tpu.core_type = #tpu.core_type<tc>, window_params = [{transform_indices = @transform_0, window_bounds = array<i64: 32, 32>}, {pipeline_mode = #tpu.pipeline_mode<synchronous>, transform_indices = @transform_1, window_bounds = array<i64: 1, 32>}, {pipeline_mode = #tpu.pipeline_mode<synchronous>, transform_indices = @transform_2, window_bounds = array<i64: 1, 32>}, {transform_indices = @transform_3, window_bounds = array<i64: 32, 32>}, {transform_indices = @transform_4, window_bounds = array<i64: 32, 64>}]} {
    %c0 = arith.constant 0 : index
    %c0_0 = arith.constant 0 : index
    %0 = vector.load %arg1[%c0, %c0_0] : memref<32x32xbf16, #tpu.memory_space<vmem>>, vector<32x32xbf16>
    %1 = arith.extf %0 : vector<32x32xbf16> to vector<32x32xf32>
    %c0_1 = arith.constant 0 : index
    %c0_2 = arith.constant 0 : index
    %2 = vector.load %arg2[%c0_1, %c0_2] : memref<1x32xf32, #tpu.memory_space<vmem>>, vector<1x32xf32>
    %3 = vector.broadcast %2 : vector<1x32xf32> to vector<32x32xf32>
    %4 = arith.mulf %1, %3 : vector<32x32xf32>
    %c0_3 = arith.constant 0 : index
    %c0_4 = arith.constant 0 : index
    %5 = vector.load %arg3[%c0_3, %c0_4] : memref<1x32xf32, #tpu.memory_space<vmem>>, vector<1x32xf32>
    %6 = vector.broadcast %5 : vector<1x32xf32> to vector<32x32xf32>
    %7 = arith.addf %4, %6 : vector<32x32xf32>
    %8 = arith.truncf %7 : vector<32x32xf32> to vector<32x32xbf16>
    %c0_5 = arith.constant 0 : index
    %c0_6 = arith.constant 0 : index
    %9 = vector.load %arg4[%c0_5, %c0_6] : memref<32x32xbf16, #tpu.memory_space<vmem>>, vector<32x32xbf16>
    %10 = tpu.concatenate %8, %9 in 1 : vector<32x32xbf16>, vector<32x32xbf16> -> vector<32x64xbf16>
    %c0_7 = arith.constant 0 : index
    %c0_8 = arith.constant 0 : index
    %11 = vector.load %arg5[%c0_7, %c0_8] : memref<32x64xbf16, #tpu.memory_space<vmem>>, vector<32x64xbf16>
    tpu.vector_store %arg5[%c0_7, %c0_8], %10 {strides = array<i32>} : memref<32x64xbf16, #tpu.memory_space<vmem>>, vector<32x64xbf16>,
    return
  }
  func.func @transform_0(%arg0: i32) -> (i32, i32) {
    %c0_i32 = arith.constant 0 : i32
    %c0_i32_0 = arith.constant 0 : i32
    return %arg0, %c0_i32 : i32, i32
  }
  func.func @transform_1(%arg0: i32) -> (i32, i32) {
    %c0_i32 = arith.constant 0 : i32
    %c0_i32_0 = arith.constant 0 : i32
    %c0_i32_1 = arith.constant 0 : i32
    return %c0_i32, %c0_i32_0 : i32, i32
  }
  func.func @transform_2(%arg0: i32) -> (i32, i32) {
    %c0_i32 = arith.constant 0 : i32
    %c0_i32_0 = arith.constant 0 : i32
    %c0_i32_1 = arith.constant 0 : i32
    return %c0_i32, %c0_i32_0 : i32, i32
  }
  func.func @transform_3(%arg0: i32) -> (i32, i32) {
    %c0_i32 = arith.constant 0 : i32
    %c0_i32_0 = arith.constant 0 : i32
    return %arg0, %c0_i32 : i32, i32
  }
  func.func @transform_4(%arg0: i32) -> (i32, i32) {
    %c0_i32 = arith.constant 0 : i32
    %c0_i32_0 = arith.constant 0 : i32
    return %arg0, %c0_i32 : i32, i32
  }
}

module attributes {stable_mosaic.version = 11 : i64} {
  func.func @_gemm_kernel(%arg0: i32, %arg1: i32, %arg2: i32, %arg3: memref<64x256xbf16, #tpu.memory_space<vmem>>, %arg4: memref<256x128xbf16, #tpu.memory_space<vmem>>, %arg5: memref<1x128xf32, #tpu.memory_space<vmem>>, %arg6: memref<64x128xbf16, #tpu.memory_space<vmem>>, %arg7: memref<64x128xf32, #tpu.memory_space<vmem>>) attributes {dimension_semantics = [#tpu.dimension_semantics<parallel>, #tpu.dimension_semantics<parallel>, #tpu.dimension_semantics<arbitrary>], iteration_bounds = array<i64: 1, 1, 1>, scalar_prefetch = 0 : i64, scratch_operands = 1 : i64, tpu.core_type = #tpu.core_type<tc>, window_params = [{transform_indices = @transform_0, window_bounds = array<i64: 64, 256>}, {transform_indices = @transform_1, window_bounds = array<i64: 256, 128>}, {transform_indices = @transform_2, window_bounds = array<i64: 1, 128>}, {transform_indices = @transform_3, window_bounds = array<i64: 64, 128>}]} {
    %c0_i32 = arith.constant 0 : i32
    %0 = arith.cmpi eq, %arg2, %c0_i32 : i32
    %1 = arith.extui %0 : i1 to i32
    %c0_i32_0 = arith.constant 0 : i32
    %2 = arith.cmpi ne, %1, %c0_i32_0 : i32
    scf.if %2 {
      %cst_11 = arith.constant 0.000000e+00 : f32
      %14 = vector.broadcast %cst_11 : f32 to vector<64x128xf32>
      %c0_12 = arith.constant 0 : index
      %c0_13 = arith.constant 0 : index
      %15 = vector.load %arg7[%c0_12, %c0_13] : memref<64x128xf32, #tpu.memory_space<vmem>>, vector<64x128xf32>
      tpu.vector_store %arg7[%c0_12, %c0_13], %14 {strides = array<i32>} : memref<64x128xf32, #tpu.memory_space<vmem>>, vector<64x128xf32>,
    } else {
    }
    %c0 = arith.constant 0 : index
    %c0_1 = arith.constant 0 : index
    %3 = vector.load %arg3[%c0, %c0_1] : memref<64x256xbf16, #tpu.memory_space<vmem>>, vector<64x256xbf16>
    %cst = arith.constant 0.000000e+00 : bf16
    %4 = vector.broadcast %cst : bf16 to vector<64x256xbf16>
    %5 = arith.maximumf %3, %4 : vector<64x256xbf16>
    %c0_2 = arith.constant 0 : index
    %c0_3 = arith.constant 0 : index
    %6 = vector.load %arg7[%c0_2, %c0_3] : memref<64x128xf32, #tpu.memory_space<vmem>>, vector<64x128xf32>
    %c0_4 = arith.constant 0 : index
    %c0_5 = arith.constant 0 : index
    %7 = vector.load %arg4[%c0_4, %c0_5] : memref<256x128xbf16, #tpu.memory_space<vmem>>, vector<256x128xbf16>
    %cst_6 = arith.constant dense<0.000000e+00> : vector<64x128xf32>
    %8 = tpu.matmul %5, %7, %cst_6 {dimension_numbers = #tpu.dot_dimension_numbers<[1], [0], [0], [1], [0, 0, 1, 1], [], []>} : vector<64x256xbf16>, vector<256x128xbf16>, vector<64x128xf32> -> vector<64x128xf32>
    %9 = arith.addf %6, %8 : vector<64x128xf32>
    %c0_7 = arith.constant 0 : index
    %c0_8 = arith.constant 0 : index
    %10 = vector.load %arg7[%c0_7, %c0_8] : memref<64x128xf32, #tpu.memory_space<vmem>>, vector<64x128xf32>
    tpu.vector_store %arg7[%c0_7, %c0_8], %9 {strides = array<i32>} : memref<64x128xf32, #tpu.memory_space<vmem>>, vector<64x128xf32>,
    %c0_i32_9 = arith.constant 0 : i32
    %11 = arith.cmpi eq, %arg2, %c0_i32_9 : i32
    %12 = arith.extui %11 : i1 to i32
    %c0_i32_10 = arith.constant 0 : i32
    %13 = arith.cmpi ne, %12, %c0_i32_10 : i32
    scf.if %13 {
      %c0_11 = arith.constant 0 : index
      %c0_12 = arith.constant 0 : index
      %14 = vector.load %arg7[%c0_11, %c0_12] : memref<64x128xf32, #tpu.memory_space<vmem>>, vector<64x128xf32>
      %c0_13 = arith.constant 0 : index
      %c0_14 = arith.constant 0 : index
      %15 = vector.load %arg5[%c0_13, %c0_14] : memref<1x128xf32, #tpu.memory_space<vmem>>, vector<1x128xf32>
      %16 = vector.broadcast %15 : vector<1x128xf32> to vector<64x128xf32>
      %17 = arith.addf %14, %16 : vector<64x128xf32>
      %18 = arith.truncf %17 : vector<64x128xf32> to vector<64x128xbf16>
      %c0_15 = arith.constant 0 : index
      %c0_16 = arith.constant 0 : index
      %19 = vector.load %arg6[%c0_15, %c0_16] : memref<64x128xbf16, #tpu.memory_space<vmem>>, vector<64x128xbf16>
      tpu.vector_store %arg6[%c0_15, %c0_16], %18 {strides = array<i32>} : memref<64x128xbf16, #tpu.memory_space<vmem>>, vector<64x128xbf16>,
    } else {
    }
    return
  }
  func.func @transform_0(%arg0: i32, %arg1: i32, %arg2: i32) -> (i32, i32) {
    %c0_i32 = arith.constant 0 : i32
    return %arg0, %arg2 : i32, i32
  }
  func.func @transform_1(%arg0: i32, %arg1: i32, %arg2: i32) -> (i32, i32) {
    %c0_i32 = arith.constant 0 : i32
    return %arg2, %arg1 : i32, i32
  }
  func.func @transform_2(%arg0: i32, %arg1: i32, %arg2: i32) -> (i32, i32) {
    %c0_i32 = arith.constant 0 : i32
    %c0_i32_0 = arith.constant 0 : i32
    return %c0_i32, %arg1 : i32, i32
  }
  func.func @transform_3(%arg0: i32, %arg1: i32, %arg2: i32) -> (i32, i32) {
    %c0_i32 = arith.constant 0 : i32
    return %arg0, %arg1 : i32, i32
  }
}

module attributes {stable_mosaic.version = 11 : i64} {
  func.func @_bn_apply_concat_kernel(%arg0: i32, %arg1: memref<128x16xbf16, #tpu.memory_space<vmem>>, %arg2: memref<1x16xf32, #tpu.memory_space<vmem>>, %arg3: memref<1x16xf32, #tpu.memory_space<vmem>>, %arg4: memref<128x16xbf16, #tpu.memory_space<vmem>>, %arg5: memref<128x32xbf16, #tpu.memory_space<vmem>>) attributes {dimension_semantics = [#tpu.dimension_semantics<parallel>], iteration_bounds = array<i64: 1>, scalar_prefetch = 0 : i64, scratch_operands = 0 : i64, tpu.core_type = #tpu.core_type<tc>, window_params = [{transform_indices = @transform_0, window_bounds = array<i64: 128, 16>}, {pipeline_mode = #tpu.pipeline_mode<synchronous>, transform_indices = @transform_1, window_bounds = array<i64: 1, 16>}, {pipeline_mode = #tpu.pipeline_mode<synchronous>, transform_indices = @transform_2, window_bounds = array<i64: 1, 16>}, {transform_indices = @transform_3, window_bounds = array<i64: 128, 16>}, {transform_indices = @transform_4, window_bounds = array<i64: 128, 32>}]} {
    %c0 = arith.constant 0 : index
    %c0_0 = arith.constant 0 : index
    %0 = vector.load %arg1[%c0, %c0_0] : memref<128x16xbf16, #tpu.memory_space<vmem>>, vector<128x16xbf16>
    %1 = arith.extf %0 : vector<128x16xbf16> to vector<128x16xf32>
    %c0_1 = arith.constant 0 : index
    %c0_2 = arith.constant 0 : index
    %2 = vector.load %arg2[%c0_1, %c0_2] : memref<1x16xf32, #tpu.memory_space<vmem>>, vector<1x16xf32>
    %3 = vector.broadcast %2 : vector<1x16xf32> to vector<128x16xf32>
    %4 = arith.mulf %1, %3 : vector<128x16xf32>
    %c0_3 = arith.constant 0 : index
    %c0_4 = arith.constant 0 : index
    %5 = vector.load %arg3[%c0_3, %c0_4] : memref<1x16xf32, #tpu.memory_space<vmem>>, vector<1x16xf32>
    %6 = vector.broadcast %5 : vector<1x16xf32> to vector<128x16xf32>
    %7 = arith.addf %4, %6 : vector<128x16xf32>
    %8 = arith.truncf %7 : vector<128x16xf32> to vector<128x16xbf16>
    %c0_5 = arith.constant 0 : index
    %c0_6 = arith.constant 0 : index
    %9 = vector.load %arg4[%c0_5, %c0_6] : memref<128x16xbf16, #tpu.memory_space<vmem>>, vector<128x16xbf16>
    %10 = tpu.concatenate %8, %9 in 1 : vector<128x16xbf16>, vector<128x16xbf16> -> vector<128x32xbf16>
    %c0_7 = arith.constant 0 : index
    %c0_8 = arith.constant 0 : index
    %11 = vector.load %arg5[%c0_7, %c0_8] : memref<128x32xbf16, #tpu.memory_space<vmem>>, vector<128x32xbf16>
    tpu.vector_store %arg5[%c0_7, %c0_8], %10 {strides = array<i32>} : memref<128x32xbf16, #tpu.memory_space<vmem>>, vector<128x32xbf16>,
    return
  }
  func.func @transform_0(%arg0: i32) -> (i32, i32) {
    %c0_i32 = arith.constant 0 : i32
    %c0_i32_0 = arith.constant 0 : i32
    return %arg0, %c0_i32 : i32, i32
  }
  func.func @transform_1(%arg0: i32) -> (i32, i32) {
    %c0_i32 = arith.constant 0 : i32
    %c0_i32_0 = arith.constant 0 : i32
    %c0_i32_1 = arith.constant 0 : i32
    return %c0_i32, %c0_i32_0 : i32, i32
  }
  func.func @transform_2(%arg0: i32) -> (i32, i32) {
    %c0_i32 = arith.constant 0 : i32
    %c0_i32_0 = arith.constant 0 : i32
    %c0_i32_1 = arith.constant 0 : i32
    return %c0_i32, %c0_i32_0 : i32, i32
  }
  func.func @transform_3(%arg0: i32) -> (i32, i32) {
    %c0_i32 = arith.constant 0 : i32
    %c0_i32_0 = arith.constant 0 : i32
    return %arg0, %c0_i32 : i32, i32
  }
  func.func @transform_4(%arg0: i32) -> (i32, i32) {
    %c0_i32 = arith.constant 0 : i32
    %c0_i32_0 = arith.constant 0 : i32
    return %arg0, %c0_i32 : i32, i32
  }
}

module attributes {stable_mosaic.version = 11 : i64} {
  func.func @_gemm_kernel(%arg0: i32, %arg1: i32, %arg2: i32, %arg3: memref<176x128xbf16, #tpu.memory_space<vmem>>, %arg4: memref<128x128xbf16, #tpu.memory_space<vmem>>, %arg5: memref<1x128xf32, #tpu.memory_space<vmem>>, %arg6: memref<176x128xbf16, #tpu.memory_space<vmem>>, %arg7: memref<176x128xf32, #tpu.memory_space<vmem>>) attributes {dimension_semantics = [#tpu.dimension_semantics<parallel>, #tpu.dimension_semantics<parallel>, #tpu.dimension_semantics<arbitrary>], iteration_bounds = array<i64: 1, 1, 1>, scalar_prefetch = 0 : i64, scratch_operands = 1 : i64, tpu.core_type = #tpu.core_type<tc>, window_params = [{transform_indices = @transform_0, window_bounds = array<i64: 176, 128>}, {transform_indices = @transform_1, window_bounds = array<i64: 128, 128>}, {transform_indices = @transform_2, window_bounds = array<i64: 1, 128>}, {transform_indices = @transform_3, window_bounds = array<i64: 176, 128>}]} {
    %c0_i32 = arith.constant 0 : i32
    %0 = arith.cmpi eq, %arg2, %c0_i32 : i32
    %1 = arith.extui %0 : i1 to i32
    %c0_i32_0 = arith.constant 0 : i32
    %2 = arith.cmpi ne, %1, %c0_i32_0 : i32
    scf.if %2 {
      %cst_11 = arith.constant 0.000000e+00 : f32
      %14 = vector.broadcast %cst_11 : f32 to vector<176x128xf32>
      %c0_12 = arith.constant 0 : index
      %c0_13 = arith.constant 0 : index
      %15 = vector.load %arg7[%c0_12, %c0_13] : memref<176x128xf32, #tpu.memory_space<vmem>>, vector<176x128xf32>
      tpu.vector_store %arg7[%c0_12, %c0_13], %14 {strides = array<i32>} : memref<176x128xf32, #tpu.memory_space<vmem>>, vector<176x128xf32>,
    } else {
    }
    %c0 = arith.constant 0 : index
    %c0_1 = arith.constant 0 : index
    %3 = vector.load %arg3[%c0, %c0_1] : memref<176x128xbf16, #tpu.memory_space<vmem>>, vector<176x128xbf16>
    %cst = arith.constant 0.000000e+00 : bf16
    %4 = vector.broadcast %cst : bf16 to vector<176x128xbf16>
    %5 = arith.maximumf %3, %4 : vector<176x128xbf16>
    %c0_2 = arith.constant 0 : index
    %c0_3 = arith.constant 0 : index
    %6 = vector.load %arg7[%c0_2, %c0_3] : memref<176x128xf32, #tpu.memory_space<vmem>>, vector<176x128xf32>
    %c0_4 = arith.constant 0 : index
    %c0_5 = arith.constant 0 : index
    %7 = vector.load %arg4[%c0_4, %c0_5] : memref<128x128xbf16, #tpu.memory_space<vmem>>, vector<128x128xbf16>
    %cst_6 = arith.constant dense<0.000000e+00> : vector<176x128xf32>
    %8 = tpu.matmul %5, %7, %cst_6 {dimension_numbers = #tpu.dot_dimension_numbers<[1], [0], [0], [1], [0, 0, 1, 1], [], []>} : vector<176x128xbf16>, vector<128x128xbf16>, vector<176x128xf32> -> vector<176x128xf32>
    %9 = arith.addf %6, %8 : vector<176x128xf32>
    %c0_7 = arith.constant 0 : index
    %c0_8 = arith.constant 0 : index
    %10 = vector.load %arg7[%c0_7, %c0_8] : memref<176x128xf32, #tpu.memory_space<vmem>>, vector<176x128xf32>
    tpu.vector_store %arg7[%c0_7, %c0_8], %9 {strides = array<i32>} : memref<176x128xf32, #tpu.memory_space<vmem>>, vector<176x128xf32>,
    %c0_i32_9 = arith.constant 0 : i32
    %11 = arith.cmpi eq, %arg2, %c0_i32_9 : i32
    %12 = arith.extui %11 : i1 to i32
    %c0_i32_10 = arith.constant 0 : i32
    %13 = arith.cmpi ne, %12, %c0_i32_10 : i32
    scf.if %13 {
      %c0_11 = arith.constant 0 : index
      %c0_12 = arith.constant 0 : index
      %14 = vector.load %arg7[%c0_11, %c0_12] : memref<176x128xf32, #tpu.memory_space<vmem>>, vector<176x128xf32>
      %c0_13 = arith.constant 0 : index
      %c0_14 = arith.constant 0 : index
      %15 = vector.load %arg5[%c0_13, %c0_14] : memref<1x128xf32, #tpu.memory_space<vmem>>, vector<1x128xf32>
      %16 = vector.broadcast %15 : vector<1x128xf32> to vector<176x128xf32>
      %17 = arith.addf %14, %16 : vector<176x128xf32>
      %18 = arith.truncf %17 : vector<176x128xf32> to vector<176x128xbf16>
      %c0_15 = arith.constant 0 : index
      %c0_16 = arith.constant 0 : index
      %19 = vector.load %arg6[%c0_15, %c0_16] : memref<176x128xbf16, #tpu.memory_space<vmem>>, vector<176x128xbf16>
      tpu.vector_store %arg6[%c0_15, %c0_16], %18 {strides = array<i32>} : memref<176x128xbf16, #tpu.memory_space<vmem>>, vector<176x128xbf16>,
    } else {
    }
    return
  }
  func.func @transform_0(%arg0: i32, %arg1: i32, %arg2: i32) -> (i32, i32) {
    %c0_i32 = arith.constant 0 : i32
    return %arg0, %arg2 : i32, i32
  }
  func.func @transform_1(%arg0: i32, %arg1: i32, %arg2: i32) -> (i32, i32) {
    %c0_i32 = arith.constant 0 : i32
    return %arg2, %arg1 : i32, i32
  }
  func.func @transform_2(%arg0: i32, %arg1: i32, %arg2: i32) -> (i32, i32) {
    %c0_i32 = arith.constant 0 : i32
    %c0_i32_0 = arith.constant 0 : i32
    return %c0_i32, %arg1 : i32, i32
  }
  func.func @transform_3(%arg0: i32, %arg1: i32, %arg2: i32) -> (i32, i32) {
    %c0_i32 = arith.constant 0 : i32
    return %arg0, %arg1 : i32, i32
  }
}

module attributes {stable_mosaic.version = 11 : i64} {
  func.func @_bn_stats_kernel(%arg0: i32, %arg1: i32, %arg2: memref<32x128xbf16, #tpu.memory_space<vmem>>, %arg3: memref<1x1x128xf32, #tpu.memory_space<vmem>>, %arg4: memref<1x1x128xf32, #tpu.memory_space<vmem>>) attributes {dimension_semantics = [#tpu.dimension_semantics<parallel>, #tpu.dimension_semantics<arbitrary>], iteration_bounds = array<i64: 1, 1>, scalar_prefetch = 0 : i64, scratch_operands = 0 : i64, tpu.core_type = #tpu.core_type<tc>, window_params = [{transform_indices = @transform_0, window_bounds = array<i64: 32, 128>}, {transform_indices = @transform_1, window_bounds = array<i64: 1, 1, 128>}, {transform_indices = @transform_2, window_bounds = array<i64: 1, 1, 128>}]} {
    %c0_i32 = arith.constant 0 : i32
    %0 = arith.cmpi eq, %arg1, %c0_i32 : i32
    %1 = arith.extui %0 : i1 to i32
    %c0_i32_0 = arith.constant 0 : i32
    %2 = arith.cmpi ne, %1, %c0_i32_0 : i32
    scf.if %2 {
      %cst_15 = arith.constant 0.000000e+00 : f32
      %18 = vector.broadcast %cst_15 : f32 to vector<1x1x128xf32>
      %c0_16 = arith.constant 0 : index
      %c0_17 = arith.constant 0 : index
      %c0_18 = arith.constant 0 : index
      %19 = vector.load %arg3[%c0_16, %c0_17, %c0_18] : memref<1x1x128xf32, #tpu.memory_space<vmem>>, vector<1x1x128xf32>
      tpu.vector_store %arg3[%c0_16, %c0_17, %c0_18], %18 {strides = array<i32>} : memref<1x1x128xf32, #tpu.memory_space<vmem>>, vector<1x1x128xf32>,
      %cst_19 = arith.constant 0.000000e+00 : f32
      %20 = vector.broadcast %cst_19 : f32 to vector<1x1x128xf32>
      %c0_20 = arith.constant 0 : index
      %c0_21 = arith.constant 0 : index
      %c0_22 = arith.constant 0 : index
      %21 = vector.load %arg4[%c0_20, %c0_21, %c0_22] : memref<1x1x128xf32, #tpu.memory_space<vmem>>, vector<1x1x128xf32>
      tpu.vector_store %arg4[%c0_20, %c0_21, %c0_22], %20 {strides = array<i32>} : memref<1x1x128xf32, #tpu.memory_space<vmem>>, vector<1x1x128xf32>,
    } else {
    }
    %c0 = arith.constant 0 : index
    %c0_1 = arith.constant 0 : index
    %3 = vector.load %arg2[%c0, %c0_1] : memref<32x128xbf16, #tpu.memory_space<vmem>>, vector<32x128xbf16>
    %4 = arith.extf %3 : vector<32x128xbf16> to vector<32x128xf32>
    %c0_2 = arith.constant 0 : index
    %c0_3 = arith.constant 0 : index
    %c0_4 = arith.constant 0 : index
    %5 = vector.load %arg3[%c0_2, %c0_3, %c0_4] : memref<1x1x128xf32, #tpu.memory_space<vmem>>, vector<1x1x128xf32>
    %cst = arith.constant dense<0.000000e+00> : vector<128xf32>
    %6 = vector.multi_reduction <add>, %4, %cst [0] : vector<32x128xf32> to vector<128xf32>
    %7 = vector.shape_cast %6 : vector<128xf32> to vector<1x128xf32>
    %8 = vector.shape_cast %7 : vector<1x128xf32> to vector<1x1x128xf32>
    %9 = arith.addf %5, %8 : vector<1x1x128xf32>
    %c0_5 = arith.constant 0 : index
    %c0_6 = arith.constant 0 : index
    %c0_7 = arith.constant 0 : index
    %10 = vector.load %arg3[%c0_5, %c0_6, %c0_7] : memref<1x1x128xf32, #tpu.memory_space<vmem>>, vector<1x1x128xf32>
    tpu.vector_store %arg3[%c0_5, %c0_6, %c0_7], %9 {strides = array<i32>} : memref<1x1x128xf32, #tpu.memory_space<vmem>>, vector<1x1x128xf32>,
    %c0_8 = arith.constant 0 : index
    %c0_9 = arith.constant 0 : index
    %c0_10 = arith.constant 0 : index
    %11 = vector.load %arg4[%c0_8, %c0_9, %c0_10] : memref<1x1x128xf32, #tpu.memory_space<vmem>>, vector<1x1x128xf32>
    %12 = arith.mulf %4, %4 : vector<32x128xf32>
    %cst_11 = arith.constant dense<0.000000e+00> : vector<128xf32>
    %13 = vector.multi_reduction <add>, %12, %cst_11 [0] : vector<32x128xf32> to vector<128xf32>
    %14 = vector.shape_cast %13 : vector<128xf32> to vector<1x128xf32>
    %15 = vector.shape_cast %14 : vector<1x128xf32> to vector<1x1x128xf32>
    %16 = arith.addf %11, %15 : vector<1x1x128xf32>
    %c0_12 = arith.constant 0 : index
    %c0_13 = arith.constant 0 : index
    %c0_14 = arith.constant 0 : index
    %17 = vector.load %arg4[%c0_12, %c0_13, %c0_14] : memref<1x1x128xf32, #tpu.memory_space<vmem>>, vector<1x1x128xf32>
    tpu.vector_store %arg4[%c0_12, %c0_13, %c0_14], %16 {strides = array<i32>} : memref<1x1x128xf32, #tpu.memory_space<vmem>>, vector<1x1x128xf32>,
    return
  }
  func.func @transform_0(%arg0: i32, %arg1: i32) -> (i32, i32) {
    %c1_i32 = arith.constant 1 : i32
    %0 = arith.muli %arg0, %c1_i32 : i32
    %1 = arith.addi %0, %arg1 : i32
    %c0_i32 = arith.constant 0 : i32
    %c0_i32_0 = arith.constant 0 : i32
    return %1, %c0_i32 : i32, i32
  }
  func.func @transform_1(%arg0: i32, %arg1: i32) -> (i32, i32, i32) {
    %c0_i32 = arith.constant 0 : i32
    %c0_i32_0 = arith.constant 0 : i32
    %c0_i32_1 = arith.constant 0 : i32
    return %arg0, %c0_i32, %c0_i32_0 : i32, i32, i32
  }
  func.func @transform_2(%arg0: i32, %arg1: i32) -> (i32, i32, i32) {
    %c0_i32 = arith.constant 0 : i32
    %c0_i32_0 = arith.constant 0 : i32
    %c0_i32_1 = arith.constant 0 : i32
    return %arg0, %c0_i32, %c0_i32_0 : i32, i32, i32
  }
}

module attributes {stable_mosaic.version = 11 : i64} {
  func.func @_bn_apply_concat_kernel(%arg0: i32, %arg1: memref<512x8xbf16, #tpu.memory_space<vmem>>, %arg2: memref<1x8xf32, #tpu.memory_space<vmem>>, %arg3: memref<1x8xf32, #tpu.memory_space<vmem>>, %arg4: memref<512x8xbf16, #tpu.memory_space<vmem>>, %arg5: memref<512x16xbf16, #tpu.memory_space<vmem>>) attributes {dimension_semantics = [#tpu.dimension_semantics<parallel>], iteration_bounds = array<i64: 1>, scalar_prefetch = 0 : i64, scratch_operands = 0 : i64, tpu.core_type = #tpu.core_type<tc>, window_params = [{transform_indices = @transform_0, window_bounds = array<i64: 512, 8>}, {pipeline_mode = #tpu.pipeline_mode<synchronous>, transform_indices = @transform_1, window_bounds = array<i64: 1, 8>}, {pipeline_mode = #tpu.pipeline_mode<synchronous>, transform_indices = @transform_2, window_bounds = array<i64: 1, 8>}, {transform_indices = @transform_3, window_bounds = array<i64: 512, 8>}, {transform_indices = @transform_4, window_bounds = array<i64: 512, 16>}]} {
    %c0 = arith.constant 0 : index
    %c0_0 = arith.constant 0 : index
    %0 = vector.load %arg1[%c0, %c0_0] : memref<512x8xbf16, #tpu.memory_space<vmem>>, vector<512x8xbf16>
    %1 = arith.extf %0 : vector<512x8xbf16> to vector<512x8xf32>
    %c0_1 = arith.constant 0 : index
    %c0_2 = arith.constant 0 : index
    %2 = vector.load %arg2[%c0_1, %c0_2] : memref<1x8xf32, #tpu.memory_space<vmem>>, vector<1x8xf32>
    %3 = vector.broadcast %2 : vector<1x8xf32> to vector<512x8xf32>
    %4 = arith.mulf %1, %3 : vector<512x8xf32>
    %c0_3 = arith.constant 0 : index
    %c0_4 = arith.constant 0 : index
    %5 = vector.load %arg3[%c0_3, %c0_4] : memref<1x8xf32, #tpu.memory_space<vmem>>, vector<1x8xf32>
    %6 = vector.broadcast %5 : vector<1x8xf32> to vector<512x8xf32>
    %7 = arith.addf %4, %6 : vector<512x8xf32>
    %8 = arith.truncf %7 : vector<512x8xf32> to vector<512x8xbf16>
    %c0_5 = arith.constant 0 : index
    %c0_6 = arith.constant 0 : index
    %9 = vector.load %arg4[%c0_5, %c0_6] : memref<512x8xbf16, #tpu.memory_space<vmem>>, vector<512x8xbf16>
    %10 = tpu.concatenate %8, %9 in 1 : vector<512x8xbf16>, vector<512x8xbf16> -> vector<512x16xbf16>
    %c0_7 = arith.constant 0 : index
    %c0_8 = arith.constant 0 : index
    %11 = vector.load %arg5[%c0_7, %c0_8] : memref<512x16xbf16, #tpu.memory_space<vmem>>, vector<512x16xbf16>
    tpu.vector_store %arg5[%c0_7, %c0_8], %10 {strides = array<i32>} : memref<512x16xbf16, #tpu.memory_space<vmem>>, vector<512x16xbf16>,
    return
  }
  func.func @transform_0(%arg0: i32) -> (i32, i32) {
    %c0_i32 = arith.constant 0 : i32
    %c0_i32_0 = arith.constant 0 : i32
    return %arg0, %c0_i32 : i32, i32
  }
  func.func @transform_1(%arg0: i32) -> (i32, i32) {
    %c0_i32 = arith.constant 0 : i32
    %c0_i32_0 = arith.constant 0 : i32
    %c0_i32_1 = arith.constant 0 : i32
    return %c0_i32, %c0_i32_0 : i32, i32
  }
  func.func @transform_2(%arg0: i32) -> (i32, i32) {
    %c0_i32 = arith.constant 0 : i32
    %c0_i32_0 = arith.constant 0 : i32
    %c0_i32_1 = arith.constant 0 : i32
    return %c0_i32, %c0_i32_0 : i32, i32
  }
  func.func @transform_3(%arg0: i32) -> (i32, i32) {
    %c0_i32 = arith.constant 0 : i32
    %c0_i32_0 = arith.constant 0 : i32
    return %arg0, %c0_i32 : i32, i32
  }
  func.func @transform_4(%arg0: i32) -> (i32, i32) {
    %c0_i32 = arith.constant 0 : i32
    %c0_i32_0 = arith.constant 0 : i32
    return %arg0, %c0_i32 : i32, i32
  }
}

module attributes {stable_mosaic.version = 11 : i64} {
  func.func @_gemm_kernel(%arg0: i32, %arg1: i32, %arg2: i32, %arg3: memref<512x64xbf16, #tpu.memory_space<vmem>>, %arg4: memref<64x128xbf16, #tpu.memory_space<vmem>>, %arg5: memref<1x128xf32, #tpu.memory_space<vmem>>, %arg6: memref<512x128xf32, #tpu.memory_space<vmem>>, %arg7: memref<512x128xf32, #tpu.memory_space<vmem>>) attributes {dimension_semantics = [#tpu.dimension_semantics<parallel>, #tpu.dimension_semantics<parallel>, #tpu.dimension_semantics<arbitrary>], iteration_bounds = array<i64: 2, 1, 1>, scalar_prefetch = 0 : i64, scratch_operands = 1 : i64, tpu.core_type = #tpu.core_type<tc>, window_params = [{transform_indices = @transform_0, window_bounds = array<i64: 512, 64>}, {transform_indices = @transform_1, window_bounds = array<i64: 64, 128>}, {transform_indices = @transform_2, window_bounds = array<i64: 1, 128>}, {transform_indices = @transform_3, window_bounds = array<i64: 512, 128>}]} {
    %c0_i32 = arith.constant 0 : i32
    %0 = arith.cmpi eq, %arg2, %c0_i32 : i32
    %1 = arith.extui %0 : i1 to i32
    %c0_i32_0 = arith.constant 0 : i32
    %2 = arith.cmpi ne, %1, %c0_i32_0 : i32
    scf.if %2 {
      %cst_11 = arith.constant 0.000000e+00 : f32
      %14 = vector.broadcast %cst_11 : f32 to vector<512x128xf32>
      %c0_12 = arith.constant 0 : index
      %c0_13 = arith.constant 0 : index
      %15 = vector.load %arg7[%c0_12, %c0_13] : memref<512x128xf32, #tpu.memory_space<vmem>>, vector<512x128xf32>
      tpu.vector_store %arg7[%c0_12, %c0_13], %14 {strides = array<i32>} : memref<512x128xf32, #tpu.memory_space<vmem>>, vector<512x128xf32>,
    } else {
    }
    %c0 = arith.constant 0 : index
    %c0_1 = arith.constant 0 : index
    %3 = vector.load %arg3[%c0, %c0_1] : memref<512x64xbf16, #tpu.memory_space<vmem>>, vector<512x64xbf16>
    %cst = arith.constant 0.000000e+00 : bf16
    %4 = vector.broadcast %cst : bf16 to vector<512x64xbf16>
    %5 = arith.maximumf %3, %4 : vector<512x64xbf16>
    %c0_2 = arith.constant 0 : index
    %c0_3 = arith.constant 0 : index
    %6 = vector.load %arg7[%c0_2, %c0_3] : memref<512x128xf32, #tpu.memory_space<vmem>>, vector<512x128xf32>
    %c0_4 = arith.constant 0 : index
    %c0_5 = arith.constant 0 : index
    %7 = vector.load %arg4[%c0_4, %c0_5] : memref<64x128xbf16, #tpu.memory_space<vmem>>, vector<64x128xbf16>
    %cst_6 = arith.constant dense<0.000000e+00> : vector<512x128xf32>
    %8 = tpu.matmul %5, %7, %cst_6 {dimension_numbers = #tpu.dot_dimension_numbers<[1], [0], [0], [1], [0, 0, 1, 1], [], []>} : vector<512x64xbf16>, vector<64x128xbf16>, vector<512x128xf32> -> vector<512x128xf32>
    %9 = arith.addf %6, %8 : vector<512x128xf32>
    %c0_7 = arith.constant 0 : index
    %c0_8 = arith.constant 0 : index
    %10 = vector.load %arg7[%c0_7, %c0_8] : memref<512x128xf32, #tpu.memory_space<vmem>>, vector<512x128xf32>
    tpu.vector_store %arg7[%c0_7, %c0_8], %9 {strides = array<i32>} : memref<512x128xf32, #tpu.memory_space<vmem>>, vector<512x128xf32>,
    %c0_i32_9 = arith.constant 0 : i32
    %11 = arith.cmpi eq, %arg2, %c0_i32_9 : i32
    %12 = arith.extui %11 : i1 to i32
    %c0_i32_10 = arith.constant 0 : i32
    %13 = arith.cmpi ne, %12, %c0_i32_10 : i32
    scf.if %13 {
      %c0_11 = arith.constant 0 : index
      %c0_12 = arith.constant 0 : index
      %14 = vector.load %arg7[%c0_11, %c0_12] : memref<512x128xf32, #tpu.memory_space<vmem>>, vector<512x128xf32>
      %c0_13 = arith.constant 0 : index
      %c0_14 = arith.constant 0 : index
      %15 = vector.load %arg5[%c0_13, %c0_14] : memref<1x128xf32, #tpu.memory_space<vmem>>, vector<1x128xf32>
      %16 = vector.broadcast %15 : vector<1x128xf32> to vector<512x128xf32>
      %17 = arith.addf %14, %16 : vector<512x128xf32>
      %18 = math.tanh %17 : vector<512x128xf32>
      %c0_15 = arith.constant 0 : index
      %c0_16 = arith.constant 0 : index
      %19 = vector.load %arg6[%c0_15, %c0_16] : memref<512x128xf32, #tpu.memory_space<vmem>>, vector<512x128xf32>
      tpu.vector_store %arg6[%c0_15, %c0_16], %18 {strides = array<i32>} : memref<512x128xf32, #tpu.memory_space<vmem>>, vector<512x128xf32>,
    } else {
    }
    return
  }
  func.func @transform_0(%arg0: i32, %arg1: i32, %arg2: i32) -> (i32, i32) {
    %c0_i32 = arith.constant 0 : i32
    return %arg0, %arg2 : i32, i32
  }
  func.func @transform_1(%arg0: i32, %arg1: i32, %arg2: i32) -> (i32, i32) {
    %c0_i32 = arith.constant 0 : i32
    return %arg2, %arg1 : i32, i32
  }
  func.func @transform_2(%arg0: i32, %arg1: i32, %arg2: i32) -> (i32, i32) {
    %c0_i32 = arith.constant 0 : i32
    %c0_i32_0 = arith.constant 0 : i32
    return %c0_i32, %arg1 : i32, i32
  }
  func.func @transform_3(%arg0: i32, %arg1: i32, %arg2: i32) -> (i32, i32) {
    %c0_i32 = arith.constant 0 : i32
    return %arg0, %arg1 : i32, i32
  }
}

</mosaic_0001>

<bundles_post_ra>
// kernel: _lambda_.24
= control target key start
LH: loop header
LB: loop body
LE: loop exit
PB: predicated region body
PF: predicated region fallthrough
CT: control target
= control target key end

     0   :  { %vm403_vm0 = vcmask 523264   ;;  %s1805_s1 = inlined_call_operand.vmem [shape: bf16[64,128], index: 1, kind: input, shape index: {}]   ;;  %s1806_s2 = inlined_call_operand.vmem [shape: f32[1,128], index: 2, kind: input, shape index: {}]   ;;  %s1807_s0 = inlined_call_operand.vmem [shape: bf16[512,64], index: 0, kind: input, shape index: {}]   ;;  %s1808_s3 = inlined_call_operand.vmem [shape: bf16[512,128], index: 3, kind: output, shape index: {}]  }
   0x1   :  { %v1275_v0 = vld [vmem:[%s1805_s1 + $0x18] sm:$0xff]  ;;  %v1274_v1 = vld [vmem:[%s1805_s1 + $0x10] sm:$0xff]  ;;  %v1273_v2 = vld [vmem:[%s1805_s1 + $0x8] sm:$0xff] }
   0x2   :  { %504 = vmatpush.bf16.msra.mxu0 %v1275_v0  ;;  %1467 = vmatpush.bf16.msra.mxu1 %v1275_v0  ;;  %v1272_v3 = vld [vmem:[%s1805_s1] sm:$0xff]  ;;  %v1241_v8 = vld [vmem:[%s1807_s0 + $0x8] sm:$0xff]  ;;  %v1242_v12 = vld [vmem:[%s1807_s0 + $0x10] sm:$0xff] }
   0x3   :  { %1468 = vmatpush.bf16.msra.mxu2 %v1275_v0  ;;  %1469 = vmatpush.bf16.msra.mxu3 %v1275_v0  ;;  %v1240_v4 = vld [vmem:[%s1807_s0] sm:$0xff]  ;;  %v1249_v9 = vld [vmem:[%s1807_s0 + $0x48] sm:$0xff]  ;;  %v1250_v13 = vld [vmem:[%s1807_s0 + $0x50] sm:$0xff] }
   0x4   :  { %v1248_v5 = vld [vmem:[%s1807_s0 + $0x40] sm:$0xff]  ;;  %v1257_v10 = vld [vmem:[%s1807_s0 + $0x88] sm:$0xff]  ;;  %v1258_v14 = vld [vmem:[%s1807_s0 + $0x90] sm:$0xff] }
   0x5   :  { %v1256_v6 = vld [vmem:[%s1807_s0 + $0x80] sm:$0xff]  ;;  %v1265_v11 = vld [vmem:[%s1807_s0 + $0xc8] sm:$0xff]  ;;  %v1266_v15 = vld [vmem:[%s1807_s0 + $0xd0] sm:$0xff] }
   0x6   :  { %505 = vmatpush.bf16.msra.mxu0 %v1274_v1  ;;  %1470 = vmatpush.bf16.msra.mxu1 %v1274_v1  ;;  %v1264_v7 = vld [vmem:[%s1807_s0 + $0xc0] sm:$0xff]  ;;  %v1243_v16 = vld [vmem:[%s1807_s0 + $0x18] sm:$0xff]  ;;  %v1245_v24 = vld [vmem:[%s1807_s0 + $0x28] sm:$0xff] }
   0x7   :  { %1471 = vmatpush.bf16.msra.mxu2 %v1274_v1  ;;  %1472 = vmatpush.bf16.msra.mxu3 %v1274_v1  ;;  %v1251_v17 = vld [vmem:[%s1807_s0 + $0x58] sm:$0xff]  ;;  %v1244_v20 = vld [vmem:[%s1807_s0 + $0x20] sm:$0xff]  ;;  %v1253_v25 = vld [vmem:[%s1807_s0 + $0x68] sm:$0xff] }
   0x8   :  { %v1259_v18 = vld [vmem:[%s1807_s0 + $0x98] sm:$0xff]  ;;  %v1252_v21 = vld [vmem:[%s1807_s0 + $0x60] sm:$0xff]  ;;  %v1261_v26 = vld [vmem:[%s1807_s0 + $0xa8] sm:$0xff] }
   0x9   :  { %v1267_v19 = vld [vmem:[%s1807_s0 + $0xd8] sm:$0xff]  ;;  %v1260_v22 = vld [vmem:[%s1807_s0 + $0xa0] sm:$0xff]  ;;  %v1269_v27 = vld [vmem:[%s1807_s0 + $0xe8] sm:$0xff] }
   0xa   :  { %506 = vmatpush.bf16.msra.mxu0 %v1273_v2  ;;  %1473 = vmatpush.bf16.msra.mxu1 %v1273_v2  ;;  %v1268_v23 = vld [vmem:[%s1807_s0 + $0xe0] sm:$0xff]  ;;  %v1246_v28 = vld [vmem:[%s1807_s0 + $0x30] sm:$0xff]  ;;  %v1247_v32 = vld [vmem:[%s1807_s0 + $0x38] sm:$0xff] }
   0xb   :  { %1474 = vmatpush.bf16.msra.mxu2 %v1273_v2  ;;  %1475 = vmatpush.bf16.msra.mxu3 %v1273_v2  ;;  %v1254_v29 = vld [vmem:[%s1807_s0 + $0x70] sm:$0xff]  ;;  %v1255_v33 = vld [vmem:[%s1807_s0 + $0x78] sm:$0xff]  ;;  %v1643_v38 = vld [vmem:[%s1806_s2] ss:$0 sm:$0xff] }
   0xc   :  { %v1262_v30 = vld [vmem:[%s1807_s0 + $0xb0] sm:$0xff]  ;;  %v1263_v34 = vld [vmem:[%s1807_s0 + $0xb8] sm:$0xff] }
   0xd   :  { %v1270_v31 = vld [vmem:[%s1807_s0 + $0xf0] sm:$0xff]  ;;  %v1271_v35 = vld [vmem:[%s1807_s0 + $0xf8] sm:$0xff] }
   0xe   :  { %507 = vmatpush.bf16.msra.mxu0 %v1272_v3  ;;  %1476 = vmatpush.bf16.msra.mxu1 %v1272_v3 }
   0xf   :  { %1477 = vmatpush.bf16.msra.mxu2 %v1272_v3  ;;  %1478 = vmatpush.bf16.msra.mxu3 %v1272_v3 }
  0x11   :  { %1208 = vmatmul.msk.bf16.vlgmr.msra.gmra.mxu0 %vm403_vm0, %v1240_v4  ;;  %1216 = vmatmul.msk.bf16.vlgmr.msra.gmra.mxu1 %vm403_vm0, %v1248_v5 }
  0x12   :  { %1224 = vmatmul.msk.bf16.vlgmr.msra.gmra.mxu2 %vm403_vm0, %v1256_v6  ;;  %1232 = vmatmul.msk.bf16.vlgmr.msra.gmra.mxu3 %vm403_vm0, %v1264_v7 }
  0x21   :  { %1209 = vmatmul.msk.bf16.gmra.mxu0 %vm403_vm0, %v1241_v8  ;;  %1217 = vmatmul.msk.bf16.gmra.mxu1 %vm403_vm0, %v1249_v9 }
  0x22   :  { %1225 = vmatmul.msk.bf16.gmra.mxu2 %vm403_vm0, %v1257_v10  ;;  %1233 = vmatmul.msk.bf16.gmra.mxu3 %vm403_vm0, %v1265_v11 }
  0x31   :  { %1210 = vmatmul.msk.bf16.gmra.mxu0 %vm403_vm0, %v1242_v12  ;;  %1218 = vmatmul.msk.bf16.gmra.mxu1 %vm403_vm0, %v1250_v13 }
  0x32   :  { %1226 = vmatmul.msk.bf16.gmra.mxu2 %vm403_vm0, %v1258_v14  ;;  %1234 = vmatmul.msk.bf16.gmra.mxu3 %vm403_vm0, %v1266_v15 }
  0x41   :  { %1211 = vmatmul.msk.bf16.gmra.mxu0 %vm403_vm0, %v1243_v16  ;;  %1219 = vmatmul.msk.bf16.gmra.mxu1 %vm403_vm0, %v1251_v17 }
  0x42   :  { %1227 = vmatmul.msk.bf16.gmra.mxu2 %vm403_vm0, %v1259_v18  ;;  %1235 = vmatmul.msk.bf16.gmra.mxu3 %vm403_vm0, %v1267_v19 }
  0x51   :  { %1212 = vmatmul.msk.bf16.gmra.mxu0 %vm403_vm0, %v1244_v20  ;;  %1220 = vmatmul.msk.bf16.gmra.mxu1 %vm403_vm0, %v1252_v21 }
  0x52   :  { %1228 = vmatmul.msk.bf16.gmra.mxu2 %vm403_vm0, %v1260_v22  ;;  %1236 = vmatmul.msk.bf16.gmra.mxu3 %vm403_vm0, %v1268_v23 }
  0x61   :  { %1213 = vmatmul.msk.bf16.gmra.mxu0 %vm403_vm0, %v1245_v24  ;;  %1221 = vmatmul.msk.bf16.gmra.mxu1 %vm403_vm0, %v1253_v25 }
  0x62   :  { %1229 = vmatmul.msk.bf16.gmra.mxu2 %vm403_vm0, %v1261_v26  ;;  %1237 = vmatmul.msk.bf16.gmra.mxu3 %vm403_vm0, %v1269_v27 }
  0x71   :  { %1214 = vmatmul.msk.bf16.gmra.mxu0 %vm403_vm0, %v1246_v28  ;;  %1222 = vmatmul.msk.bf16.gmra.mxu1 %vm403_vm0, %v1254_v29 }
  0x72   :  { %1230 = vmatmul.msk.bf16.gmra.mxu2 %vm403_vm0, %v1262_v30  ;;  %1238 = vmatmul.msk.bf16.gmra.mxu3 %vm403_vm0, %v1270_v31 }
  0x81   :  { %1215 = vmatmul.msk.bf16.gmra.mxu0 %vm403_vm0, %v1247_v32  ;;  %1223 = vmatmul.msk.bf16.gmra.mxu1 %vm403_vm0, %v1255_v33 }
  0x82   :  { %1231 = vmatmul.msk.bf16.gmra.mxu2 %vm403_vm0, %v1263_v34  ;;  %1239 = vmatmul.msk.bf16.gmra.mxu3 %vm403_vm0, %v1271_v35 }
  0x8e   :  { %v509_v36 = vpop.f32.mrf.mxu0  ;;  %v549_v37 = vpop.f32.mrf.mxu1 }
  0x8f   :  { %v868_v43 = vadd.f32 %v1643_v38, %v509_v36  ;;  %v884_v44 = vadd.f32 %v1643_v38, %v549_v37 }
  0x95   :  { %v589_v39 = vpop.f32.mrf.mxu2  ;;  %v629_v40 = vpop.f32.mrf.mxu3 }
  0x96   :  { %v511_v41 = vpop.f32.mrf.mxu0  ;;  %v551_v42 = vpop.f32.mrf.mxu1  ;;  %v900_v51 = vadd.f32 %v1643_v38, %v589_v39  ;;  %v916_v52 = vadd.f32 %v1643_v38, %v629_v40 }
  0x97   :  { %v869_v45 = vadd.f32 %v1643_v38, %v511_v41  ;;  %v885_v46 = vadd.f32 %v1643_v38, %v551_v42 }
  0x99   :  { %v1279_v47 = vpack.c.bf16 %v869_v45, %v868_v43  ;;  %v1319_v48 = vpack.c.bf16 %v885_v46, %v884_v44 }
  0x9b   :  { %1280 = vst [vmem:[%s1808_s3] sm:$0xff] %v1279_v47  }
  0x9c   :  { %1443 = vst [vmem:[%s1808_s3 + $0x40] sm:$0xff] %v1319_v48  }
  0x9d   :  { %v591_v49 = vpop.f32.mrf.mxu2  ;;  %v631_v50 = vpop.f32.mrf.mxu3 }
  0x9e   :  { %v901_v53 = vadd.f32 %v1643_v38, %v591_v49  ;;  %v917_v54 = vadd.f32 %v1643_v38, %v631_v50  ;;  %v514_v55 = vpop.f32.mrf.mxu0  ;;  %v554_v56 = vpop.f32.mrf.mxu1 }
  0x9f   :  { %v870_v63 = vadd.f32 %v1643_v38, %v514_v55  ;;  %v886_v0 = vadd.f32 %v1643_v38, %v554_v56 }
  0xa0   :  { %v1359_v57 = vpack.c.bf16 %v901_v53, %v900_v51  ;;  %v1399_v58 = vpack.c.bf16 %v917_v54, %v916_v52 }
  0xa2   :  { %1451 = vst [vmem:[%s1808_s3 + $0x80] sm:$0xff] %v1359_v57  }
  0xa3   :  { %1459 = vst [vmem:[%s1808_s3 + $0xc0] sm:$0xff] %v1399_v58  }
  0xa5   :  { %v594_v59 = vpop.f32.mrf.mxu2  ;;  %v634_v60 = vpop.f32.mrf.mxu3 }
  0xa6   :  { %v516_v61 = vpop.f32.mrf.mxu0  ;;  %v556_v62 = vpop.f32.mrf.mxu1  ;;  %v902_v7 = vadd.f32 %v1643_v38, %v594_v59  ;;  %v918_v8 = vadd.f32 %v1643_v38, %v634_v60 }
  0xa7   :  { %v871_v1 = vadd.f32 %v1643_v38, %v516_v61  ;;  %v887_v2 = vadd.f32 %v1643_v38, %v556_v62 }
  0xa9   :  { %v1284_v3 = vpack.c.bf16 %v871_v1, %v870_v63  ;;  %v1324_v4 = vpack.c.bf16 %v887_v2, %v886_v0 }
  0xab   :  { %1436 = vst [vmem:[%s1808_s3 + $0x8] sm:$0xff] %v1284_v3  }
  0xac   :  { %1444 = vst [vmem:[%s1808_s3 + $0x48] sm:$0xff] %v1324_v4  }
  0xad   :  { %v596_v5 = vpop.f32.mrf.mxu2  ;;  %v636_v6 = vpop.f32.mrf.mxu3 }
  0xae   :  { %v903_v9 = vadd.f32 %v1643_v38, %v596_v5  ;;  %v919_v10 = vadd.f32 %v1643_v38, %v636_v6  ;;  %v519_v11 = vpop.f32.mrf.mxu0  ;;  %v559_v12 = vpop.f32.mrf.mxu1 }
  0xaf   :  { %v872_v19 = vadd.f32 %v1643_v38, %v519_v11  ;;  %v888_v20 = vadd.f32 %v1643_v38, %v559_v12 }
  0xb0   :  { %v1364_v13 = vpack.c.bf16 %v903_v9, %v902_v7  ;;  %v1404_v14 = vpack.c.bf16 %v919_v10, %v918_v8 }
  0xb2   :  { %1452 = vst [vmem:[%s1808_s3 + $0x88] sm:$0xff] %v1364_v13  }
  0xb3   :  { %1460 = vst [vmem:[%s1808_s3 + $0xc8] sm:$0xff] %v1404_v14  }
  0xb5   :  { %v599_v15 = vpop.f32.mrf.mxu2  ;;  %v639_v16 = vpop.f32.mrf.mxu3 }
  0xb6   :  { %v521_v17 = vpop.f32.mrf.mxu0  ;;  %v561_v18 = vpop.f32.mrf.mxu1  ;;  %v904_v27 = vadd.f32 %v1643_v38, %v599_v15  ;;  %v920_v28 = vadd.f32 %v1643_v38, %v639_v16 }
  0xb7   :  { %v873_v21 = vadd.f32 %v1643_v38, %v521_v17  ;;  %v889_v22 = vadd.f32 %v1643_v38, %v561_v18 }
  0xb9   :  { %v1289_v23 = vpack.c.bf16 %v873_v21, %v872_v19  ;;  %v1329_v24 = vpack.c.bf16 %v889_v22, %v888_v20 }
  0xbb   :  { %1437 = vst [vmem:[%s1808_s3 + $0x10] sm:$0xff] %v1289_v23  }
  0xbc   :  { %1445 = vst [vmem:[%s1808_s3 + $0x50] sm:$0xff] %v1329_v24  }
  0xbd   :  { %v601_v25 = vpop.f32.mrf.mxu2  ;;  %v641_v26 = vpop.f32.mrf.mxu3 }
  0xbe   :  { %v905_v29 = vadd.f32 %v1643_v38, %v601_v25  ;;  %v921_v30 = vadd.f32 %v1643_v38, %v641_v26  ;;  %v524_v31 = vpop.f32.mrf.mxu0  ;;  %v564_v32 = vpop.f32.mrf.mxu1 }
  0xbf   :  { %v874_v40 = vadd.f32 %v1643_v38, %v524_v31  ;;  %v890_v41 = vadd.f32 %v1643_v38, %v564_v32 }
  0xc0   :  { %v1369_v33 = vpack.c.bf16 %v905_v29, %v904_v27  ;;  %v1409_v34 = vpack.c.bf16 %v921_v30, %v920_v28 }
  0xc2   :  { %1453 = vst [vmem:[%s1808_s3 + $0x90] sm:$0xff] %v1369_v33  }
  0xc3   :  { %1461 = vst [vmem:[%s1808_s3 + $0xd0] sm:$0xff] %v1409_v34  }
  0xc5   :  { %v604_v35 = vpop.f32.mrf.mxu2  ;;  %v644_v36 = vpop.f32.mrf.mxu3 }
  0xc6   :  { %v526_v37 = vpop.f32.mrf.mxu0  ;;  %v566_v39 = vpop.f32.mrf.mxu1  ;;  %v906_v48 = vadd.f32 %v1643_v38, %v604_v35  ;;  %v922_v49 = vadd.f32 %v1643_v38, %v644_v36 }
  0xc7   :  { %v875_v42 = vadd.f32 %v1643_v38, %v526_v37  ;;  %v891_v43 = vadd.f32 %v1643_v38, %v566_v39 }
  0xc9   :  { %v1294_v44 = vpack.c.bf16 %v875_v42, %v874_v40  ;;  %v1334_v45 = vpack.c.bf16 %v891_v43, %v890_v41 }
  0xcb   :  { %1438 = vst [vmem:[%s1808_s3 + $0x18] sm:$0xff] %v1294_v44  }
  0xcc   :  { %1446 = vst [vmem:[%s1808_s3 + $0x58] sm:$0xff] %v1334_v45  }
  0xcd   :  { %v606_v46 = vpop.f32.mrf.mxu2  ;;  %v646_v47 = vpop.f32.mrf.mxu3 }
  0xce   :  { %v907_v50 = vadd.f32 %v1643_v38, %v606_v46  ;;  %v923_v51 = vadd.f32 %v1643_v38, %v646_v47  ;;  %v529_v52 = vpop.f32.mrf.mxu0  ;;  %v569_v53 = vpop.f32.mrf.mxu1 }
  0xcf   :  { %v876_v60 = vadd.f32 %v1643_v38, %v529_v52  ;;  %v892_v61 = vadd.f32 %v1643_v38, %v569_v53 }
  0xd0   :  { %v1374_v54 = vpack.c.bf16 %v907_v50, %v906_v48  ;;  %v1414_v55 = vpack.c.bf16 %v923_v51, %v922_v49 }
  0xd2   :  { %1454 = vst [vmem:[%s1808_s3 + $0x98] sm:$0xff] %v1374_v54  }
  0xd3   :  { %1462 = vst [vmem:[%s1808_s3 + $0xd8] sm:$0xff] %v1414_v55  }
  0xd5   :  { %v609_v56 = vpop.f32.mrf.mxu2  ;;  %v649_v57 = vpop.f32.mrf.mxu3 }
  0xd6   :  { %v531_v58 = vpop.f32.mrf.mxu0  ;;  %v571_v59 = vpop.f32.mrf.mxu1  ;;  %v908_v4 = vadd.f32 %v1643_v38, %v609_v56  ;;  %v924_v5 = vadd.f32 %v1643_v38, %v649_v57 }
  0xd7   :  { %v877_v62 = vadd.f32 %v1643_v38, %v531_v58  ;;  %v893_v63 = vadd.f32 %v1643_v38, %v571_v59 }
  0xd9   :  { %v1299_v0 = vpack.c.bf16 %v877_v62, %v876_v60  ;;  %v1339_v1 = vpack.c.bf16 %v893_v63, %v892_v61 }
  0xdb   :  { %1439 = vst [vmem:[%s1808_s3 + $0x20] sm:$0xff] %v1299_v0  }
  0xdc   :  { %1447 = vst [vmem:[%s1808_s3 + $0x60] sm:$0xff] %v1339_v1  }
  0xdd   :  { %v611_v2 = vpop.f32.mrf.mxu2  ;;  %v651_v3 = vpop.f32.mrf.mxu3 }
  0xde   :  { %v909_v6 = vadd.f32 %v1643_v38, %v611_v2  ;;  %v925_v7 = vadd.f32 %v1643_v38, %v651_v3  ;;  %v534_v8 = vpop.f32.mrf.mxu0  ;;  %v574_v9 = vpop.f32.mrf.mxu1 }
  0xdf   :  { %v878_v16 = vadd.f32 %v1643_v38, %v534_v8  ;;  %v894_v17 = vadd.f32 %v1643_v38, %v574_v9 }
  0xe0   :  { %v1379_v10 = vpack.c.bf16 %v909_v6, %v908_v4  ;;  %v1419_v11 = vpack.c.bf16 %v925_v7, %v924_v5 }
  0xe2   :  { %1455 = vst [vmem:[%s1808_s3 + $0xa0] sm:$0xff] %v1379_v10  }
  0xe3   :  { %1463 = vst [vmem:[%s1808_s3 + $0xe0] sm:$0xff] %v1419_v11  }
  0xe5   :  { %v614_v12 = vpop.f32.mrf.mxu2  ;;  %v654_v13 = vpop.f32.mrf.mxu3 }
  0xe6   :  { %v536_v14 = vpop.f32.mrf.mxu0  ;;  %v576_v15 = vpop.f32.mrf.mxu1  ;;  %v910_v24 = vadd.f32 %v1643_v38, %v614_v12  ;;  %v926_v25 = vadd.f32 %v1643_v38, %v654_v13 }
  0xe7   :  { %v879_v18 = vadd.f32 %v1643_v38, %v536_v14  ;;  %v895_v19 = vadd.f32 %v1643_v38, %v576_v15 }
  0xe9   :  { %v1304_v20 = vpack.c.bf16 %v879_v18, %v878_v16  ;;  %v1344_v21 = vpack.c.bf16 %v895_v19, %v894_v17 }
  0xeb   :  { %1440 = vst [vmem:[%s1808_s3 + $0x28] sm:$0xff] %v1304_v20  }
  0xec   :  { %1448 = vst [vmem:[%s1808_s3 + $0x68] sm:$0xff] %v1344_v21  }
  0xed   :  { %v616_v22 = vpop.f32.mrf.mxu2  ;;  %v656_v23 = vpop.f32.mrf.mxu3 }
  0xee   :  { %v911_v26 = vadd.f32 %v1643_v38, %v616_v22  ;;  %v927_v27 = vadd.f32 %v1643_v38, %v656_v23  ;;  %v539_v28 = vpop.f32.mrf.mxu0  ;;  %v579_v29 = vpop.f32.mrf.mxu1 }
  0xef   :  { %v880_v36 = vadd.f32 %v1643_v38, %v539_v28  ;;  %v896_v37 = vadd.f32 %v1643_v38, %v579_v29 }
  0xf0   :  { %v1384_v30 = vpack.c.bf16 %v911_v26, %v910_v24  ;;  %v1424_v31 = vpack.c.bf16 %v927_v27, %v926_v25 }
  0xf2   :  { %1456 = vst [vmem:[%s1808_s3 + $0xa8] sm:$0xff] %v1384_v30  }
  0xf3   :  { %1464 = vst [vmem:[%s1808_s3 + $0xe8] sm:$0xff] %v1424_v31  }
  0xf5   :  { %v619_v32 = vpop.f32.mrf.mxu2  ;;  %v659_v33 = vpop.f32.mrf.mxu3 }
  0xf6   :  { %v541_v34 = vpop.f32.mrf.mxu0  ;;  %v581_v35 = vpop.f32.mrf.mxu1  ;;  %v912_v45 = vadd.f32 %v1643_v38, %v619_v32  ;;  %v928_v46 = vadd.f32 %v1643_v38, %v659_v33 }
  0xf7   :  { %v881_v39 = vadd.f32 %v1643_v38, %v541_v34  ;;  %v897_v40 = vadd.f32 %v1643_v38, %v581_v35 }
  0xf9   :  { %v1309_v41 = vpack.c.bf16 %v881_v39, %v880_v36  ;;  %v1349_v42 = vpack.c.bf16 %v897_v40, %v896_v37 }
  0xfb   :  { %1441 = vst [vmem:[%s1808_s3 + $0x30] sm:$0xff] %v1309_v41  }
  0xfc   :  { %1449 = vst [vmem:[%s1808_s3 + $0x70] sm:$0xff] %v1349_v42  }
  0xfd   :  { %v621_v43 = vpop.f32.mrf.mxu2  ;;  %v661_v44 = vpop.f32.mrf.mxu3 }
  0xfe   :  { %v913_v47 = vadd.f32 %v1643_v38, %v621_v43  ;;  %v929_v48 = vadd.f32 %v1643_v38, %v661_v44  ;;  %v544_v49 = vpop.f32.mrf.mxu0  ;;  %v584_v50 = vpop.f32.mrf.mxu1 }
  0xff   :  { %v882_v57 = vadd.f32 %v1643_v38, %v544_v49  ;;  %v898_v58 = vadd.f32 %v1643_v38, %v584_v50 }
 0x100   :  { %v1389_v51 = vpack.c.bf16 %v913_v47, %v912_v45  ;;  %v1429_v52 = vpack.c.bf16 %v929_v48, %v928_v46 }
 0x102   :  { %1457 = vst [vmem:[%s1808_s3 + $0xb0] sm:$0xff] %v1389_v51  }
 0x103   :  { %1465 = vst [vmem:[%s1808_s3 + $0xf0] sm:$0xff] %v1429_v52  }
 0x105   :  { %v624_v53 = vpop.f32.mrf.mxu2  ;;  %v664_v54 = vpop.f32.mrf.mxu3 }
 0x106   :  { %v546_v55 = vpop.f32.mrf.mxu0  ;;  %v586_v56 = vpop.f32.mrf.mxu1  ;;  %v914_v1 = vadd.f32 %v1643_v38, %v624_v53  ;;  %v930_v2 = vadd.f32 %v1643_v38, %v664_v54 }
 0x107   :  { %v883_v59 = vadd.f32 %v1643_v38, %v546_v55  ;;  %v899_v60 = vadd.f32 %v1643_v38, %v586_v56 }
 0x109   :  { %v1314_v61 = vpack.c.bf16 %v883_v59, %v882_v57  ;;  %v1354_v62 = vpack.c.bf16 %v899_v60, %v898_v58 }
 0x10b   :  { %1442 = vst [vmem:[%s1808_s3 + $0x38] sm:$0xff] %v1314_v61  }
 0x10c   :  { %1450 = vst [vmem:[%s1808_s3 + $0x78] sm:$0xff] %v1354_v62  }
 0x10d   :  { %v626_v63 = vpop.f32.mrf.mxu2  ;;  %v666_v0 = vpop.f32.mrf.mxu3 }
 0x10e   :  { %v915_v3 = vadd.f32 %v1643_v38, %v626_v63  ;;  %v931_v4 = vadd.f32 %v1643_v38, %v666_v0 }
 0x110   :  { %v1394_v5 = vpack.c.bf16 %v915_v3, %v914_v1  ;;  %v1434_v6 = vpack.c.bf16 %v931_v4, %v930_v2 }
 0x112   :  { %1458 = vst [vmem:[%s1808_s3 + $0xb8] sm:$0xff] %v1394_v5  }
 0x113   :  { %1466 = vst [vmem:[%s1808_s3 + $0xf8] sm:$0xff] %v1434_v6  }

// kernel: _lambda_.25
= control target key start
LH: loop header
LB: loop body
LE: loop exit
PB: predicated region body
PF: predicated region fallthrough
CT: control target
= control target key end

     0   :  { %s897_s1 = inlined_call_operand.vmem [shape: bf16[128,128], index: 1, kind: input, shape index: {}]   ;;  %s898_s0 = inlined_call_operand.vmem [shape: bf16[128,128], index: 0, kind: input, shape index: {}]   ;;  %s899_s2 = inlined_call_operand.vmem [shape: f32[1,128], index: 2, kind: input, shape index: {}]   ;;  %s900_s3 = inlined_call_operand.vmem [shape: bf16[128,128], index: 3, kind: output, shape index: {}]  }
   0x1   :  { %v469_v0 = vld [vmem:[%s897_s1 + $0x38] sm:$0xff]  ;;  %v468_v1 = vld [vmem:[%s897_s1 + $0x30] sm:$0xff]  ;;  %v571_v2 = vld [vmem:[%s898_s0] sm:$0xf] }
   0x2   :  { %274 = vmatpush.bf16.msra.mxu0 %v469_v0  ;;  %517 = vmatpush.bf16.msra.mxu1 %v469_v0  ;;  %v467_v3 = vld [vmem:[%s897_s1 + $0x28] sm:$0xff]  ;;  %v579_v4 = vld [vmem:[%s898_s0 + $0x4] sm:$0xf]  ;;  %v584_v5 = vld [vmem:[%s898_s0 + $0x10] sm:$0xf]  ;;  %v50_v9 = vunpack.c.l.bf16 %v571_v2 }
   0x3   :  { %518 = vmatpush.bf16.msra.mxu2 %v469_v0  ;;  %519 = vmatpush.bf16.msra.mxu3 %v469_v0  ;;  %v589_v6 = vld [vmem:[%s898_s0 + $0x14] sm:$0xf]  ;;  %v594_v7 = vld [vmem:[%s898_s0 + $0x20] sm:$0xf]  ;;  %v599_v8 = vld [vmem:[%s898_s0 + $0x24] sm:$0xf]  ;;  %v51_v10 = vunpack.c.l.bf16 %v579_v4  ;;  %v54_v11 = vunpack.c.l.bf16 %v584_v5 }
   0x4   :  { %v607_v12 = vld [vmem:[%s898_s0 + $0x30] sm:$0xf]  ;;  %v612_v13 = vld [vmem:[%s898_s0 + $0x34] sm:$0xf]  ;;  %v55_v14 = vunpack.c.l.bf16 %v589_v6  ;;  %v58_v15 = vunpack.c.l.bf16 %v594_v7  ;;  %v59_v16 = vunpack.c.l.bf16 %v599_v8  ;;  %v466_v17 = vld [vmem:[%s897_s1 + $0x20] sm:$0xff]  ;;  %vm620_vm0 = vcmp.ge.f32.partialorder %v50_v9, 0.0 }
   0x5   :  { %vm624_vm1 = vcmp.ge.f32.partialorder %v51_v10, 0.0  ;;  %v82_v20 = vmul.f32 0.20019531, %v50_v9  ;;  %v62_v21 = vunpack.c.l.bf16 %v607_v12  ;;  %v63_v22 = vunpack.c.l.bf16 %v612_v13  ;;  %vm114_vm3 = vmpackc.low %vm620_vm0, %vm620_vm0  ;;  %v465_v30 = vld [vmem:[%s897_s1 + $0x18] sm:$0xff]  ;;  %v464_v43 = vld [vmem:[%s897_s1 + $0x10] sm:$0xff] }
   0x6   :  { %275 = vmatpush.bf16.msra.mxu0 %v468_v1  ;;  %520 = vmatpush.bf16.msra.mxu1 %v468_v1  ;;  %v83_v23 = vmul.f32 0.20019531, %v51_v10  ;;  %vm630_vm2 = vcmp.ge.f32.partialorder %v54_v11, 0.0  ;;  %v86_v25 = vmul.f32 0.20019531, %v54_v11  ;;  %vm637_vm4 = vcmp.ge.f32.partialorder %v55_v14, 0.0  ;;  %vm115_vm5 = vmpackc.low %vm624_vm1, %vm624_vm1  ;;  %v463_v49 = vld [vmem:[%s897_s1 + $0x8] sm:$0xff]  ;;  %v462_v9 = vld [vmem:[%s897_s1] sm:$0xff] }
   0x7   :  { %521 = vmatpush.bf16.msra.mxu2 %v468_v1  ;;  %522 = vmatpush.bf16.msra.mxu3 %v468_v1  ;;  %v87_v27 = vmul.f32 0.20019531, %v55_v14  ;;  %v90_v28 = vmul.f32 0.20019531, %v58_v15  ;;  %v91_v29 = vmul.f32 0.20019531, %v59_v16  ;;  %vm647_vm6 = vcmp.ge.f32.partialorder %v58_v15, 0.0  ;;  %vm118_vm7 = vmpackc.low %vm630_vm2, %vm630_vm2  ;;  %v721_v53 = vld [vmem:[%s898_s0 + $0x8] sm:$0xf] }
   0x8   :  { %v98_v32 = vpack.c.bf16 %v82_v20, %v82_v20  ;;  %vm654_vm8 = vcmp.ge.f32.partialorder %v59_v16, 0.0  ;;  %v94_v34 = vmul.f32 0.20019531, %v62_v21  ;;  %v95_v35 = vmul.f32 0.20019531, %v63_v22  ;;  %vm119_vm9 = vmpackc.low %vm637_vm4, %vm637_vm4  ;;  %v726_v55 = vld [vmem:[%s898_s0 + $0xc] sm:$0xf] }
   0x9   :  { %v99_v36 = vpack.c.bf16 %v83_v23, %v83_v23  ;;  %v102_v37 = vpack.c.bf16 %v86_v25, %v86_v25  ;;  %vm661_vm10 = vcmp.ge.f32.partialorder %v62_v21, 0.0  ;;  %v103_v39 = vpack.c.bf16 %v87_v27, %v87_v27  ;;  %vm122_vm11 = vmpackc.low %vm647_vm6, %vm647_vm6  ;;  %v731_v56 = vld [vmem:[%s898_s0 + $0x18] sm:$0xf]  ;;  %v736_v57 = vld [vmem:[%s898_s0 + $0x1c] sm:$0xf] }
   0xa   :  { %276 = vmatpush.bf16.msra.mxu0 %v467_v3  ;;  %523 = vmatpush.bf16.msra.mxu1 %v467_v3  ;;  %v106_v40 = vpack.c.bf16 %v90_v28, %v90_v28  ;;  %v107_v41 = vpack.c.bf16 %v91_v29, %v91_v29  ;;  %vm668_vm12 = vcmp.ge.f32.partialorder %v63_v22, 0.0  ;;  %vm123_vm13 = vmpackc.low %vm654_vm8, %vm654_vm8  ;;  %v130_v44 = vsel %vm114_vm3, %v571_v2, %v98_v32  ;;  %v753_v62 = vld [vmem:[%s898_s0 + $0x28] sm:$0xf] }
   0xb   :  { %524 = vmatpush.bf16.msra.mxu2 %v467_v3  ;;  %525 = vmatpush.bf16.msra.mxu3 %v467_v3  ;;  %v110_v45 = vpack.c.bf16 %v94_v34, %v94_v34  ;;  %v111_v46 = vpack.c.bf16 %v95_v35, %v95_v35  ;;  %vm126_vm14 = vmpackc.low %vm661_vm10, %vm661_vm10  ;;  %v131_v47 = vsel %vm115_vm5, %v579_v4, %v99_v36  ;;  %v194_v54 = vunpack.c.l.b16 %v130_v44  ;;  %v759_v3 = vld [vmem:[%s898_s0 + $0x2c] sm:$0xf]  ;;  %v764_v4 = vld [vmem:[%s898_s0 + $0x38] sm:$0xf] }
   0xc   :  { %v134_v48 = vsel %vm118_vm7, %v584_v5, %v102_v37  ;;  %vm127_vm15 = vmpackc.low %vm668_vm12, %vm668_vm12  ;;  %v135_v50 = vsel %vm119_vm9, %v589_v6, %v103_v39  ;;  %v138_v51 = vsel %vm122_vm11, %v594_v7, %v106_v40  ;;  %v139_v52 = vsel %vm123_vm13, %v599_v8, %v107_v41  ;;  %v769_v5 = vld [vmem:[%s898_s0 + $0x3c] sm:$0xf] }
   0xd   :  { %v195_v58 = vunpack.c.l.b16 %v131_v47  ;;  %v198_v59 = vunpack.c.l.b16 %v134_v48  ;;  %v142_v60 = vsel %vm126_vm14, %v607_v12, %v110_v45  ;;  %v143_v61 = vsel %vm127_vm15, %v612_v13, %v111_v46 }
   0xe   :  { %277 = vmatpush.bf16.msra.mxu0 %v466_v17  ;;  %526 = vmatpush.bf16.msra.mxu1 %v466_v17  ;;  %v199_v63 = vunpack.c.l.b16 %v135_v50  ;;  %v202_v0 = vunpack.c.l.b16 %v138_v51  ;;  %v203_v1 = vunpack.c.l.b16 %v139_v52  ;;  %v52_v2 = vunpack.c.l.bf16 %v721_v53 }
   0xf   :  { %527 = vmatpush.bf16.msra.mxu2 %v466_v17  ;;  %528 = vmatpush.bf16.msra.mxu3 %v466_v17  ;;  %v53_v6 = vunpack.c.l.bf16 %v726_v55  ;;  %v56_v7 = vunpack.c.l.bf16 %v731_v56  ;;  %v57_v8 = vunpack.c.l.bf16 %v736_v57  ;;  %v206_v10 = vunpack.c.l.b16 %v142_v60 }
  0x10   :  { %v207_v11 = vunpack.c.l.b16 %v143_v61  ;;  %vm777_vm0 = vcmp.ge.f32.partialorder %v52_v2, 0.0  ;;  %v60_v13 = vunpack.c.l.bf16 %v753_v62  ;;  %v61_v15 = vunpack.c.l.bf16 %v759_v3 }
  0x11   :  { %vm782_vm1 = vcmp.ge.f32.partialorder %v53_v6, 0.0  ;;  %v64_v16 = vunpack.c.l.bf16 %v764_v4  ;;  %v65_v17 = vunpack.c.l.bf16 %v769_v5  ;;  %v210_v18 = vpack.c.b16 %v195_v58, %v194_v54  ;;  %vm116_vm3 = vmpackc.low %vm777_vm0, %vm777_vm0 }
  0x12   :  { %278 = vmatpush.bf16.msra.mxu0 %v465_v30  ;;  %529 = vmatpush.bf16.msra.mxu1 %v465_v30  ;;  %v212_v19 = vpack.c.b16 %v199_v63, %v198_v59  ;;  %v214_v20 = vpack.c.b16 %v203_v1, %v202_v0  ;;  %vm789_vm2 = vcmp.ge.f32.partialorder %v56_v7, 0.0  ;;  %v84_v22 = vmul.f32 0.20019531, %v52_v2  ;;  %vm117_vm5 = vmpackc.low %vm782_vm1, %vm782_vm1  ;;  %v541_v2 = vld [vmem:[%s899_s2] ss:$0 sm:$0xff] }
  0x13   :  { %530 = vmatpush.bf16.msra.mxu2 %v465_v30  ;;  %531 = vmatpush.bf16.msra.mxu3 %v465_v30  ;;  %v85_v23 = vmul.f32 0.20019531, %v53_v6  ;;  %vm796_vm4 = vcmp.ge.f32.partialorder %v57_v8, 0.0  ;;  %v88_v25 = vmul.f32 0.20019531, %v56_v7  ;;  %v216_v26 = vpack.c.b16 %v207_v11, %v206_v10  ;;  %vm120_vm7 = vmpackc.low %vm789_vm2, %vm789_vm2 }
  0x14   :  { %v89_v27 = vmul.f32 0.20019531, %v57_v8  ;;  %vm803_vm6 = vcmp.ge.f32.partialorder %v60_v13, 0.0  ;;  %v92_v29 = vmul.f32 0.20019531, %v60_v13  ;;  %vm810_vm8 = vcmp.ge.f32.partialorder %v61_v15, 0.0  ;;  %vm121_vm9 = vmpackc.low %vm796_vm4, %vm796_vm4 }
  0x15   :  { %v93_v31 = vmul.f32 0.20019531, %v61_v15  ;;  %v96_v32 = vmul.f32 0.20019531, %v64_v16  ;;  %v97_v33 = vmul.f32 0.20019531, %v65_v17  ;;  %vm817_vm10 = vcmp.ge.f32.partialorder %v64_v16, 0.0  ;;  %vm124_vm11 = vmpackc.low %vm803_vm6, %vm803_vm6 }
  0x16   :  { %279 = vmatpush.bf16.msra.mxu0 %v464_v43  ;;  %532 = vmatpush.bf16.msra.mxu1 %v464_v43  ;;  %v100_v35 = vpack.c.bf16 %v84_v22, %v84_v22  ;;  %vm824_vm12 = vcmp.ge.f32.partialorder %v65_v17, 0.0  ;;  %v101_v37 = vpack.c.bf16 %v85_v23, %v85_v23  ;;  %v104_v38 = vpack.c.bf16 %v88_v25, %v88_v25  ;;  %vm125_vm13 = vmpackc.low %vm810_vm8, %vm810_vm8 }
  0x17   :  { %533 = vmatpush.bf16.msra.mxu2 %v464_v43  ;;  %534 = vmatpush.bf16.msra.mxu3 %v464_v43  ;;  %v105_v39 = vpack.c.bf16 %v89_v27, %v89_v27  ;;  %v108_v40 = vpack.c.bf16 %v92_v29, %v92_v29  ;;  %v109_v41 = vpack.c.bf16 %v93_v31, %v93_v31  ;;  %vm128_vm14 = vmpackc.low %vm817_vm10, %vm817_vm10 }
  0x18   :  { %v112_v42 = vpack.c.bf16 %v96_v32, %v96_v32  ;;  %v113_v43 = vpack.c.bf16 %v97_v33, %v97_v33  ;;  %vm129_vm15 = vmpackc.low %vm824_vm12, %vm824_vm12  ;;  %v132_v44 = vsel %vm116_vm3, %v721_v53, %v100_v35  ;;  %v133_v45 = vsel %vm117_vm5, %v726_v55, %v101_v37 }
  0x19   :  { %v136_v46 = vsel %vm120_vm7, %v731_v56, %v104_v38  ;;  %v137_v47 = vsel %vm121_vm9, %v736_v57, %v105_v39  ;;  %v140_v48 = vsel %vm124_vm11, %v753_v62, %v108_v40  ;;  %v196_v52 = vunpack.c.l.b16 %v132_v44 }
  0x1a   :  { %280 = vmatpush.bf16.msra.mxu0 %v463_v49  ;;  %535 = vmatpush.bf16.msra.mxu1 %v463_v49  ;;  %v144_v50 = vsel %vm128_vm14, %v764_v4, %v112_v42  ;;  %v145_v51 = vsel %vm129_vm15, %v769_v5, %v113_v43  ;;  %v197_v53 = vunpack.c.l.b16 %v133_v45  ;;  %v200_v54 = vunpack.c.l.b16 %v136_v46 }
  0x1b   :  { %536 = vmatpush.bf16.msra.mxu2 %v463_v49  ;;  %537 = vmatpush.bf16.msra.mxu3 %v463_v49  ;;  %v141_v49 = vsel %vm125_vm13, %v759_v3, %v109_v41  ;;  %v201_v55 = vunpack.c.l.b16 %v137_v47  ;;  %v204_v56 = vunpack.c.l.b16 %v140_v48  ;;  %v208_v57 = vunpack.c.l.b16 %v144_v50 }
  0x1c   :  { %v205_v58 = vunpack.c.l.b16 %v141_v49  ;;  %v209_v59 = vunpack.c.l.b16 %v145_v51  ;;  %v211_v60 = vpack.c.b16 %v197_v53, %v196_v52 }
  0x1d   :  { %v213_v61 = vpack.c.b16 %v201_v55, %v200_v54 }
  0x1e   :  { %281 = vmatpush.bf16.msra.mxu0 %v462_v9  ;;  %538 = vmatpush.bf16.msra.mxu1 %v462_v9  ;;  %v215_v63 = vpack.c.b16 %v205_v58, %v204_v56  ;;  %v217_v0 = vpack.c.b16 %v209_v59, %v208_v57 }
  0x1f   :  { %539 = vmatpush.bf16.msra.mxu2 %v462_v9  ;;  %540 = vmatpush.bf16.msra.mxu3 %v462_v9 }
  0x21   :  { %282 = vmatmul.bf16.vlgmr.msra.gmra.mxu0 %v210_v18  ;;  %292 = vmatmul.bf16.vlgmr.msra.gmra.mxu1 %v212_v19 }
  0x22   :  { %302 = vmatmul.bf16.vlgmr.msra.gmra.mxu2 %v214_v20  ;;  %312 = vmatmul.bf16.vlgmr.msra.gmra.mxu3 %v216_v26 }
  0x31   :  { %287 = vmatmul.bf16.gmra.mxu0 %v211_v60  ;;  %297 = vmatmul.bf16.gmra.mxu1 %v213_v61 }
  0x32   :  { %307 = vmatmul.bf16.gmra.mxu2 %v215_v63  ;;  %317 = vmatmul.bf16.gmra.mxu3 %v217_v0 }
  0x9e   :  { %v283_v62 = vpop.f32.mrf.mxu0  ;;  %v293_v1 = vpop.f32.mrf.mxu1 }
  0x9f   :  { %v378_v7 = vadd.f32 %v541_v2, %v283_v62  ;;  %v382_v8 = vadd.f32 %v541_v2, %v293_v1 }
  0xa5   :  { %v303_v3 = vpop.f32.mrf.mxu2  ;;  %v313_v4 = vpop.f32.mrf.mxu3 }
  0xa6   :  { %v285_v5 = vpop.f32.mrf.mxu0  ;;  %v295_v6 = vpop.f32.mrf.mxu1  ;;  %v386_v15 = vadd.f32 %v541_v2, %v303_v3  ;;  %v390_v16 = vadd.f32 %v541_v2, %v313_v4 }
  0xa7   :  { %v379_v9 = vadd.f32 %v541_v2, %v285_v5  ;;  %v383_v10 = vadd.f32 %v541_v2, %v295_v6 }
  0xa9   :  { %v473_v11 = vpack.c.bf16 %v379_v9, %v378_v7  ;;  %v483_v12 = vpack.c.bf16 %v383_v10, %v382_v8 }
  0xab   :  { %474 = vst [vmem:[%s900_s3] sm:$0xff] %v473_v11  }
  0xac   :  { %511 = vst [vmem:[%s900_s3 + $0x10] sm:$0xff] %v483_v12  }
  0xad   :  { %v305_v13 = vpop.f32.mrf.mxu2  ;;  %v315_v14 = vpop.f32.mrf.mxu3 }
  0xae   :  { %v387_v17 = vadd.f32 %v541_v2, %v305_v13  ;;  %v391_v18 = vadd.f32 %v541_v2, %v315_v14  ;;  %v288_v19 = vpop.f32.mrf.mxu0  ;;  %v298_v20 = vpop.f32.mrf.mxu1 }
  0xaf   :  { %v380_v27 = vadd.f32 %v541_v2, %v288_v19  ;;  %v384_v28 = vadd.f32 %v541_v2, %v298_v20 }
  0xb0   :  { %v493_v21 = vpack.c.bf16 %v387_v17, %v386_v15  ;;  %v503_v22 = vpack.c.bf16 %v391_v18, %v390_v16 }
  0xb2   :  { %513 = vst [vmem:[%s900_s3 + $0x20] sm:$0xff] %v493_v21  }
  0xb3   :  { %515 = vst [vmem:[%s900_s3 + $0x30] sm:$0xff] %v503_v22  }
  0xb5   :  { %v308_v23 = vpop.f32.mrf.mxu2  ;;  %v318_v24 = vpop.f32.mrf.mxu3 }
  0xb6   :  { %v290_v25 = vpop.f32.mrf.mxu0  ;;  %v300_v26 = vpop.f32.mrf.mxu1  ;;  %v388_v35 = vadd.f32 %v541_v2, %v308_v23  ;;  %v392_v36 = vadd.f32 %v541_v2, %v318_v24 }
  0xb7   :  { %v381_v29 = vadd.f32 %v541_v2, %v290_v25  ;;  %v385_v30 = vadd.f32 %v541_v2, %v300_v26 }
  0xb9   :  { %v478_v31 = vpack.c.bf16 %v381_v29, %v380_v27  ;;  %v488_v32 = vpack.c.bf16 %v385_v30, %v384_v28 }
  0xbb   :  { %510 = vst [vmem:[%s900_s3 + $0x8] sm:$0xff] %v478_v31  }
  0xbc   :  { %512 = vst [vmem:[%s900_s3 + $0x18] sm:$0xff] %v488_v32  }
  0xbd   :  { %v310_v33 = vpop.f32.mrf.mxu2  ;;  %v320_v34 = vpop.f32.mrf.mxu3 }
  0xbe   :  { %v389_v37 = vadd.f32 %v541_v2, %v310_v33  ;;  %v393_v38 = vadd.f32 %v541_v2, %v320_v34 }
  0xc0   :  { %v498_v39 = vpack.c.bf16 %v389_v37, %v388_v35  ;;  %v508_v40 = vpack.c.bf16 %v393_v38, %v392_v36 }
  0xc2   :  { %514 = vst [vmem:[%s900_s3 + $0x28] sm:$0xff] %v498_v39  }
  0xc3   :  { %516 = vst [vmem:[%s900_s3 + $0x38] sm:$0xff] %v508_v40  }

// kernel: tile.33
= control target key start
LH: loop header
LB: loop body
LE: loop exit
PB: predicated region body
PF: predicated region fallthrough
CT: control target
= control target key end

     0   :  { %s22_s0 = inlined_call_operand.vmem [shape: f32[16], index: 0, kind: input, shape index: {}]   ;;  %s23_s1 = inlined_call_operand.vmem [shape: f32[8,16], index: 1, kind: output, shape index: {}]  }
   0x1   :  { %v4_v0 = vld [vmem:[%s22_s0] ss:$0 sm:$0xff] }
   0x2   :  { %5 = vst [vmem:[%s23_s1] sm:$0xff] %v4_v0 }

// kernel: tile.34
= control target key start
LH: loop header
LB: loop body
LE: loop exit
PB: predicated region body
PF: predicated region fallthrough
CT: control target
= control target key end

     0   :  { %s67_s10 = smov 112   ;;  %s68_s11 = smov 80   ;;  %vm3_vm0 = vcmask 130048   ;;  %vm9_vm1 = vcmask 1048448   ;;  %vm15_vm2 = vcmask 917248   ;;  %vm21_vm3 = vcmask 786048   ;;  %s111_s0 = inlined_call_operand.vmem [shape: f32[8,16], index: 0, kind: input, shape index: {}]   ;;  %s112_s1 = inlined_call_operand.vmem [shape: f32[1,128], index: 1, kind: output, shape index: {}]  }
   0x1   :  { %v53_v0 = vld [vmem:[%s111_s0 + $0x7] sm:$0x1]   ;;  %v55_v1 = vld [vmem:[%s111_s0 + $0x5] sm:$0x1]   ;;  %v57_v2 = vld [vmem:[%s111_s0 + $0x3] sm:$0x1]  }
   0x2   :  { %7 = vrot.lane.b32.xlu0 %v53_v0, %s67_s10  ;;  %19 = vrot.lane.b32.xlu1 %v55_v1, %s68_s11  ;;  %s69_s14 = smov 48   ;;  %v54_v3 = vld [vmem:[%s111_s0 + $0x6] sm:$0x1]   ;;  %v56_v4 = vld [vmem:[%s111_s0 + $0x4] sm:$0x1]   ;;  %s70_s21 = smov 96  }
   0x3   :  { %31 = vrot.lane.b32.xlu2 %v57_v2, %s69_s14  ;;  %v58_v5 = vld [vmem:[%s111_s0 + $0x2] sm:$0x1]   ;;  %s71_s22 = smov 64   ;;  %s72_s23 = smov 32   ;;  %v59_v6 = vld [vmem:[%s111_s0 + $0x1] sm:$0x1]  }
   0x4   :  { %s73_s26 = smov 16   ;;  %v2_v7 = vld [vmem:[%s111_s0] sm:$0x1]   ;;  %vm27_vm4 = vcmask 654848   ;;  %vm33_vm5 = vcmask 523648   ;;  %vm39_vm6 = vcmask 392448  }
   0x5   :  { %4 = vst.msk [vmem:[#allocation0] sm:$0x1] %vm3_vm0, %v2_v7   ;;  %vm45_vm7 = vcmask 261248  }
   0xa   :  { %13 = vrot.lane.b32.xlu0 %v54_v3, %s70_s21  ;;  %25 = vrot.lane.b32.xlu1 %v56_v4, %s71_s22 }
   0xb   :  { %37 = vrot.lane.b32.xlu2 %v58_v5, %s72_s23 }
  0x12   :  { %43 = vrot.lane.b32.xlu0 %v59_v6, %s73_s26 }
  0x5d   :  { %v32_v8 = vpop.permute.xlu2 %31  }
  0x65   :  { %v38_v9 = vpop.permute.xlu2 %37  }
  0x74   :  { %v8_v10 = vpop.permute.xlu0 %7   ;;  %v20_v11 = vpop.permute.xlu1 %19  }
  0x75   :  { %10 = vst.msk [vmem:[#allocation0] sm:$0x1] %vm9_vm1, %v8_v10  }
  0x7c   :  { %v14_v12 = vpop.permute.xlu0 %13   ;;  %v26_v13 = vpop.permute.xlu1 %25  }
  0x7d   :  { %16 = vst.msk [vmem:[#allocation0] sm:$0x1] %vm15_vm2, %v14_v12  }
  0x7e   :  { %22 = vst.msk [vmem:[#allocation0] sm:$0x1] %vm21_vm3, %v20_v11  }
  0x7f   :  { %28 = vst.msk [vmem:[#allocation0] sm:$0x1] %vm27_vm4, %v26_v13  }
  0x80   :  { %34 = vst.msk [vmem:[#allocation0] sm:$0x1] %vm33_vm5, %v32_v8  }
  0x81   :  { %40 = vst.msk [vmem:[#allocation0] sm:$0x1] %vm39_vm6, %v38_v9  }
  0x84   :  { %v44_v14 = vpop.permute.xlu0 %43  }
  0x85   :  { %46 = vst.msk [vmem:[#allocation0] sm:$0x1] %vm45_vm7, %v44_v14  }
  0x8c   :  { %v49_v15 = vld [vmem:[#allocation0] sm:$0x1] }
  0x8d   :  { %52 = vst [vmem:[%s112_s1] sm:$0x1] %v49_v15 }

// kernel: _lambda_.26
= control target key start
LH: loop header
LB: loop body
LE: loop exit
PB: predicated region body
PF: predicated region fallthrough
CT: control target
= control target key end

     0   :  { %v83_v0 = vmov 0.0   ;;  %s120_s1 = inlined_call_operand.vmem [shape: f32[1,1,128], index: 1, kind: output, shape index: {0}]   ;;  %s121_s2 = inlined_call_operand.vmem [shape: f32[1,1,128], index: 2, kind: output, shape index: {1}]   ;;  %s122_s0 = inlined_call_operand.vmem [shape: bf16[16,128], index: 0, kind: input, shape index: {}]  }
   0x1   :  { %36 = vst [vmem:[%s120_s1] sm:$0x1] %v83_v0  ;;  %v79_v1 = vld [vmem:[%s122_s0] sm:$0xff]  }
   0x2   :  { %37 = vst [vmem:[%s121_s2] sm:$0x1] %v83_v0  ;;  %v80_v2 = vunpack.c.l.bf16 %v79_v1  ;;  %v81_v3 = vunpack.c.h.bf16 %v79_v1 }
   0x4   :  { %v43_v4 = vadd.f32 %v81_v3, %v80_v2  ;;  %v53_v5 = vmul.f32 %v80_v2, %v80_v2  ;;  %v54_v6 = vmul.f32 %v81_v3, %v81_v3 }
   0x6   :  { %v44_v7 = vrot.slane %v43_v4, 4  ;;  %v55_v8 = vadd.f32 %v54_v6, %v53_v5 }
   0x8   :  { %v45_v9 = vadd.f32 %v44_v7, %v43_v4  ;;  %v56_v10 = vrot.slane %v55_v8, 4  ;;  %v42_v17 = vld [vmem:[%s120_s1] sm:$0x1] }
   0x9   :  { %v52_v20 = vld [vmem:[%s121_s2] sm:$0x1] }
   0xa   :  { %v46_v11 = vrot.slane %v45_v9, 2  ;;  %v57_v12 = vadd.f32 %v56_v10, %v55_v8 }
   0xc   :  { %v47_v13 = vadd.f32 %v46_v11, %v45_v9  ;;  %v58_v14 = vrot.slane %v57_v12, 2 }
   0xe   :  { %v48_v15 = vrot.slane %v47_v13, 1  ;;  %v59_v16 = vadd.f32 %v58_v14, %v57_v12 }
  0x10   :  { %v49_v18 = vadd.f32 %v48_v15, %v47_v13  ;;  %v60_v19 = vrot.slane %v59_v16, 1 }
  0x12   :  { %v50_v21 = vadd.f32 %v49_v18, %v42_v17  ;;  %v61_v22 = vadd.f32 %v60_v19, %v59_v16 }
  0x14   :  { %51 = vst [vmem:[%s120_s1] sm:$0x1] %v50_v21  ;;  %v62_v23 = vadd.f32 %v61_v22, %v52_v20 }
  0x16   :  { %63 = vst [vmem:[%s121_s2] sm:$0x1] %v62_v23 }

// kernel: _lambda_.27
= control target key start
LH: loop header
LB: loop body
LE: loop exit
PB: predicated region body
PF: predicated region fallthrough
CT: control target
= control target key end

     0   :  { %s81_s0 = inlined_call_operand.vmem [shape: bf16[16,128], index: 0, kind: input, shape index: {}]   ;;  %s82_s1 = inlined_call_operand.vmem [shape: f32[1,128], index: 1, kind: input, shape index: {}]   ;;  %s83_s2 = inlined_call_operand.vmem [shape: f32[1,128], index: 2, kind: input, shape index: {}]   ;;  %s84_s3 = inlined_call_operand.vmem [shape: bf16[16,128], index: 3, kind: output, shape index: {}]  }
   0x1   :  { %v39_v0 = vld [vmem:[%s81_s0] sm:$0xff]  }
   0x2   :  { %v47_v1 = vld [vmem:[%s82_s1] ss:$0 sm:$0xff]  ;;  %v40_v2 = vunpack.c.l.bf16 %v39_v0  ;;  %v41_v3 = vunpack.c.h.bf16 %v39_v0 }
   0x3   :  { %v48_v4 = vld [vmem:[%s83_s2] ss:$0 sm:$0xff] }
   0x4   :  { %v22_v5 = vmul.f32 %v47_v1, %v40_v2  ;;  %v23_v6 = vmul.f32 %v47_v1, %v41_v3 }
   0x6   :  { %v28_v7 = vadd.f32 %v48_v4, %v22_v5  ;;  %v29_v8 = vadd.f32 %v48_v4, %v23_v6 }
   0x8   :  { %v45_v9 = vpack.c.bf16 %v29_v8, %v28_v7 }
   0xa   :  { %46 = vst [vmem:[%s84_s3] sm:$0xff] %v45_v9  }

// kernel: tile.43
= control target key start
LH: loop header
LB: loop body
LE: loop exit
PB: predicated region body
PF: predicated region fallthrough
CT: control target
= control target key end

     0   :  { %s22_s0 = inlined_call_operand.vmem [shape: f32[32], index: 0, kind: input, shape index: {}]   ;;  %s23_s1 = inlined_call_operand.vmem [shape: f32[4,32], index: 1, kind: output, shape index: {}]  }
   0x1   :  { %v4_v0 = vld [vmem:[%s22_s0] ss:$0 sm:$0xff] }
   0x2   :  { %5 = vst [vmem:[%s23_s1] sm:$0xf] %v4_v0 }

// kernel: tile.44
= control target key start
LH: loop header
LB: loop body
LE: loop exit
PB: predicated region body
PF: predicated region fallthrough
CT: control target
= control target key end

     0   :  { %s37_s8 = smov 32   ;;  %s38_s9 = smov 64   ;;  %vm7_vm0 = vcmask 261120   ;;  %vm13_vm1 = vcmask 1048320   ;;  %vm19_vm2 = vcmask 785920   ;;  %vm25_vm3 = vcmask 523520   ;;  %s55_s0 = inlined_call_operand.vmem [shape: f32[4,32], index: 0, kind: input, shape index: {}]   ;;  %s56_s1 = inlined_call_operand.vmem [shape: f32[1,128], index: 1, kind: output, shape index: {}]  }
   0x1   :  { %v4_v0 = vld [vmem:[%s55_s0] sm:$0xf]  ;;  %s36_s0 = smov 96  }
   0x2   :  { %5 = vst [vmem:[#allocation1] sm:$0xf] %v4_v0 }
   0x9   :  { %v10_v1 = vld [vmem:[#allocation1 + $0x3] sm:$0x1]   ;;  %v22_v2 = vld [vmem:[#allocation1 + $0x1] sm:$0x1]   ;;  %v16_v3 = vld [vmem:[#allocation1 + $0x2] sm:$0x1]  }
   0xa   :  { %11 = vrot.lane.b32.xlu0 %v10_v1, %s36_s0  ;;  %23 = vrot.lane.b32.xlu1 %v22_v2, %s37_s8  ;;  %v6_v4 = vld [vmem:[#allocation1] sm:$0x1]  }
   0xb   :  { %8 = vst.msk [vmem:[#allocation0] sm:$0x1] %vm7_vm0, %v6_v4  }
  0x12   :  { %17 = vrot.lane.b32.xlu0 %v16_v3, %s38_s9 }
  0x7c   :  { %v12_v5 = vpop.permute.xlu0 %11   ;;  %v24_v6 = vpop.permute.xlu1 %23  }
  0x7d   :  { %14 = vst.msk [vmem:[#allocation0] sm:$0x1] %vm13_vm1, %v12_v5  }
  0x84   :  { %v18_v7 = vpop.permute.xlu0 %17  }
  0x85   :  { %20 = vst.msk [vmem:[#allocation0] sm:$0x1] %vm19_vm2, %v18_v7  }
  0x86   :  { %26 = vst.msk [vmem:[#allocation0] sm:$0x1] %vm25_vm3, %v24_v6  }
  0x8d   :  { %v29_v8 = vld [vmem:[#allocation0] sm:$0x1] }
  0x8e   :  { %32 = vst [vmem:[%s56_s1] sm:$0x1] %v29_v8 }

// kernel: _lambda_.29
= control target key start
LH: loop header
LB: loop body
LE: loop exit
PB: predicated region body
PF: predicated region fallthrough
CT: control target
= control target key end

     0   :  { %v101_v0 = vmov 0.0   ;;  %s138_s1 = inlined_call_operand.vmem [shape: f32[1,1,128], index: 1, kind: output, shape index: {0}]   ;;  %s139_s2 = inlined_call_operand.vmem [shape: f32[1,1,128], index: 2, kind: output, shape index: {1}]   ;;  %s140_s0 = inlined_call_operand.vmem [shape: bf16[8,128], index: 0, kind: input, shape index: {}]  }
   0x1   :  { %46 = vst [vmem:[%s138_s1] sm:$0x1] %v101_v0  ;;  %v48_v1 = vld [vmem:[%s140_s0] sm:$0xf] }
   0x2   :  { %47 = vst [vmem:[%s139_s2] sm:$0x1] %v101_v0  ;;  %v50_v2 = vunpack.c.l.bf16 %v48_v1 }
   0x4   :  { %v66_v3 = vrot.slane %v50_v2, 4  ;;  %v75_v4 = vmul.f32 %v50_v2, %v50_v2 }
   0x6   :  { %v67_v5 = vadd.f32 %v66_v3, %v50_v2  ;;  %v78_v6 = vrot.slane %v75_v4, 4 }
   0x8   :  { %v68_v7 = vrot.slane %v67_v5, 2  ;;  %v79_v8 = vadd.f32 %v78_v6, %v75_v4  ;;  %v64_v13 = vld [vmem:[%s138_s1] sm:$0x1] }
   0x9   :  { %v74_v16 = vld [vmem:[%s139_s2] sm:$0x1] }
   0xa   :  { %v69_v9 = vadd.f32 %v68_v7, %v67_v5  ;;  %v80_v10 = vrot.slane %v79_v8, 2 }
   0xc   :  { %v70_v11 = vrot.slane %v69_v9, 1  ;;  %v81_v12 = vadd.f32 %v80_v10, %v79_v8 }
   0xe   :  { %v71_v14 = vadd.f32 %v70_v11, %v69_v9  ;;  %v82_v15 = vrot.slane %v81_v12, 1 }
  0x10   :  { %v72_v17 = vadd.f32 %v71_v14, %v64_v13  ;;  %v83_v18 = vadd.f32 %v82_v15, %v81_v12 }
  0x12   :  { %73 = vst [vmem:[%s138_s1] sm:$0x1] %v72_v17  ;;  %v84_v19 = vadd.f32 %v83_v18, %v74_v16 }
  0x14   :  { %85 = vst [vmem:[%s139_s2] sm:$0x1] %v84_v19 }

// kernel: _lambda_.28
= control target key start
LH: loop header
LB: loop body
LE: loop exit
PB: predicated region body
PF: predicated region fallthrough
CT: control target
= control target key end

     0   :  { %s542_s1 = inlined_call_operand.vmem [shape: bf16[256,128], index: 1, kind: input, shape index: {}]   ;;  %s543_s0 = inlined_call_operand.vmem [shape: bf16[32,256], index: 0, kind: input, shape index: {}]   ;;  %s544_s2 = inlined_call_operand.vmem [shape: f32[1,128], index: 2, kind: input, shape index: {}]   ;;  %s545_s3 = inlined_call_operand.vmem [shape: bf16[32,128], index: 3, kind: output, shape index: {}]  }
   0x1   :  { %v358_v0 = vld [vmem:[%s542_s1 + $0x38] sm:$0xff]  ;;  %v357_v2 = vld [vmem:[%s542_s1 + $0x30] sm:$0xff]  ;;  %v356_v4 = vld [vmem:[%s542_s1 + $0x28] sm:$0xff] }
   0x2   :  { %v366_v1 = vld [vmem:[%s542_s1 + $0x78] sm:$0xff]  ;;  %214 = vmatpush.bf16.msra.mxu0 %v358_v0  ;;  %378 = vmatpush.bf16.msra.mxu2 %v358_v0  ;;  %v365_v3 = vld [vmem:[%s542_s1 + $0x70] sm:$0xff]  ;;  %v22_v5 = vld [vmem:[%s543_s0] sm:$0xff] }
   0x3   :  { %233 = vmatpush.bf16.msra.mxu1 %v366_v1  ;;  %386 = vmatpush.bf16.msra.mxu3 %v366_v1  ;;  %v23_v6 = vld [vmem:[%s543_s0 + $0x8] sm:$0xff]  ;;  %v24_v8 = vld [vmem:[%s543_s0 + $0x10] sm:$0xff]  ;;  %v25_v9 = vld [vmem:[%s543_s0 + $0x18] sm:$0xff]  ;;  %v26_v10 = vunpack.c.l.bf16 %v22_v5  ;;  %v27_v11 = vunpack.c.h.bf16 %v22_v5 }
   0x4   :  { %v364_v7 = vld [vmem:[%s542_s1 + $0x68] sm:$0xff]  ;;  %v28_v12 = vunpack.c.l.bf16 %v23_v6  ;;  %v29_v13 = vunpack.c.h.bf16 %v23_v6  ;;  %v355_v14 = vld [vmem:[%s542_s1 + $0x20] sm:$0xff]  ;;  %v30_v15 = vunpack.c.l.bf16 %v24_v8  ;;  %v31_v16 = vunpack.c.h.bf16 %v24_v8  ;;  %v354_v28 = vld [vmem:[%s542_s1 + $0x18] sm:$0xff] }
   0x5   :  { %v32_v17 = vunpack.c.l.bf16 %v25_v9  ;;  %v33_v18 = vunpack.c.h.bf16 %v25_v9  ;;  %v363_v19 = vld [vmem:[%s542_s1 + $0x60] sm:$0xff]  ;;  %vm451_vm0 = vcmp.ge.f32.partialorder %v26_v10, 0.0  ;;  %vm455_vm1 = vcmp.ge.f32.partialorder %v27_v11, 0.0  ;;  %v362_v33 = vld [vmem:[%s542_s1 + $0x58] sm:$0xff]  ;;  %v353_v39 = vld [vmem:[%s542_s1 + $0x10] sm:$0xff] }
   0x6   :  { %215 = vmatpush.bf16.msra.mxu0 %v357_v2  ;;  %379 = vmatpush.bf16.msra.mxu2 %v357_v2  ;;  %vm459_vm2 = vcmp.ge.f32.partialorder %v28_v12, 0.0  ;;  %vm463_vm3 = vcmp.ge.f32.partialorder %v29_v13, 0.0  ;;  %v42_v24 = vmul.f32 0.20019531, %v26_v10  ;;  %v43_v25 = vmul.f32 0.20019531, %v27_v11  ;;  %vm54_vm6 = vmpackc.low %vm455_vm1, %vm451_vm0  ;;  %v361_v43 = vld [vmem:[%s542_s1 + $0x50] sm:$0xff]  ;;  %v352_v45 = vld [vmem:[%s542_s1 + $0x8] sm:$0xff] }
   0x7   :  { %234 = vmatpush.bf16.msra.mxu1 %v365_v3  ;;  %387 = vmatpush.bf16.msra.mxu3 %v365_v3  ;;  %v44_v26 = vmul.f32 0.20019531, %v28_v12  ;;  %v45_v27 = vmul.f32 0.20019531, %v29_v13  ;;  %v46_v29 = vmul.f32 0.20019531, %v30_v15  ;;  %v47_v30 = vmul.f32 0.20019531, %v31_v16  ;;  %vm55_vm9 = vmpackc.low %vm463_vm3, %vm459_vm2  ;;  %v360_v49 = vld [vmem:[%s542_s1 + $0x48] sm:$0xff]  ;;  %v351_v54 = vld [vmem:[%s542_s1] sm:$0xff] }
   0x8   :  { %v48_v31 = vmul.f32 0.20019531, %v32_v17  ;;  %v49_v32 = vmul.f32 0.20019531, %v33_v18  ;;  %vm473_vm4 = vcmp.ge.f32.partialorder %v30_v15, 0.0  ;;  %vm477_vm5 = vcmp.ge.f32.partialorder %v31_v16, 0.0  ;;  %v359_v59 = vld [vmem:[%s542_s1 + $0x40] sm:$0xff] }
   0x9   :  { %vm485_vm7 = vcmp.ge.f32.partialorder %v32_v17, 0.0  ;;  %vm489_vm8 = vcmp.ge.f32.partialorder %v33_v18, 0.0  ;;  %v50_v38 = vpack.c.bf16 %v43_v25, %v42_v24  ;;  %v51_v40 = vpack.c.bf16 %v45_v27, %v44_v26  ;;  %vm56_vm10 = vmpackc.low %vm477_vm5, %vm473_vm4 }
   0xa   :  { %216 = vmatpush.bf16.msra.mxu0 %v356_v4  ;;  %380 = vmatpush.bf16.msra.mxu2 %v356_v4  ;;  %v52_v41 = vpack.c.bf16 %v47_v30, %v46_v29  ;;  %v53_v42 = vpack.c.bf16 %v49_v32, %v48_v31  ;;  %vm57_vm11 = vmpackc.low %vm489_vm8, %vm485_vm7 }
   0xb   :  { %235 = vmatpush.bf16.msra.mxu1 %v364_v7  ;;  %388 = vmatpush.bf16.msra.mxu3 %v364_v7  ;;  %v58_v44 = vsel %vm54_vm6, %v22_v5, %v50_v38  ;;  %v59_v46 = vsel %vm55_vm9, %v23_v6, %v51_v40  ;;  %v394_v5 = vld [vmem:[%s544_s2] ss:$0 sm:$0xff] }
   0xc   :  { %v60_v47 = vsel %vm56_vm10, %v24_v8, %v52_v41  ;;  %v61_v48 = vsel %vm57_vm11, %v25_v9, %v53_v42  ;;  %v102_v50 = vunpack.c.l.b16 %v58_v44  ;;  %v104_v51 = vunpack.c.l.b16 %v59_v46 }
   0xd   :  { %v106_v52 = vunpack.c.l.b16 %v60_v47  ;;  %v108_v53 = vunpack.c.l.b16 %v61_v48  ;;  %v103_v55 = vunpack.c.h.b16 %v58_v44  ;;  %v105_v56 = vunpack.c.h.b16 %v59_v46 }
   0xe   :  { %217 = vmatpush.bf16.msra.mxu0 %v355_v14  ;;  %381 = vmatpush.bf16.msra.mxu2 %v355_v14  ;;  %v107_v57 = vunpack.c.h.b16 %v60_v47  ;;  %v109_v58 = vunpack.c.h.b16 %v61_v48  ;;  %v110_v60 = vpack.c.b16 %v104_v51, %v102_v50 }
   0xf   :  { %236 = vmatpush.bf16.msra.mxu1 %v363_v19  ;;  %389 = vmatpush.bf16.msra.mxu3 %v363_v19  ;;  %v112_v61 = vpack.c.b16 %v108_v53, %v106_v52  ;;  %v111_v62 = vpack.c.b16 %v105_v56, %v103_v55 }
  0x10   :  { %v113_v63 = vpack.c.b16 %v109_v58, %v107_v57 }
  0x12   :  { %218 = vmatpush.bf16.msra.mxu0 %v354_v28  ;;  %382 = vmatpush.bf16.msra.mxu2 %v354_v28 }
  0x13   :  { %237 = vmatpush.bf16.msra.mxu1 %v362_v33  ;;  %390 = vmatpush.bf16.msra.mxu3 %v362_v33 }
  0x16   :  { %219 = vmatpush.bf16.msra.mxu0 %v353_v39  ;;  %383 = vmatpush.bf16.msra.mxu2 %v353_v39 }
  0x17   :  { %238 = vmatpush.bf16.msra.mxu1 %v361_v43  ;;  %391 = vmatpush.bf16.msra.mxu3 %v361_v43 }
  0x1a   :  { %220 = vmatpush.bf16.msra.mxu0 %v352_v45  ;;  %384 = vmatpush.bf16.msra.mxu2 %v352_v45 }
  0x1b   :  { %239 = vmatpush.bf16.msra.mxu1 %v360_v49  ;;  %392 = vmatpush.bf16.msra.mxu3 %v360_v49 }
  0x1e   :  { %221 = vmatpush.bf16.msra.mxu0 %v351_v54  ;;  %385 = vmatpush.bf16.msra.mxu2 %v351_v54 }
  0x1f   :  { %240 = vmatpush.bf16.msra.mxu1 %v359_v59  ;;  %393 = vmatpush.bf16.msra.mxu3 %v359_v59 }
  0x21   :  { %222 = vmatmul.bf16.vlgmr.msra.gmra.mxu0 %v110_v60  ;;  %227 = vmatmul.bf16.vlgmr.msra.gmra.mxu2 %v112_v61 }
  0x22   :  { %241 = vmatmul.bf16.vlgmr.msra.gmra.mxu1 %v111_v62  ;;  %246 = vmatmul.bf16.vlgmr.msra.gmra.mxu3 %v113_v63 }
  0x9e   :  { %v223_v0 = vpop.f32.mrf.mxu0 }
  0x9f   :  { %v242_v1 = vpop.f32.mrf.mxu1 }
  0xa0   :  { %v243_v4 = vadd.f32 %v242_v1, %v223_v0 }
  0xa2   :  { %v271_v9 = vadd.f32 %v394_v5, %v243_v4 }
  0xa4   :  { %v228_v2 = vpop.f32.mrf.mxu2 }
  0xa5   :  { %v247_v3 = vpop.f32.mrf.mxu3 }
  0xa6   :  { %v225_v6 = vpop.f32.mrf.mxu0  ;;  %v248_v11 = vadd.f32 %v247_v3, %v228_v2 }
  0xa7   :  { %v244_v7 = vpop.f32.mrf.mxu1 }
  0xa8   :  { %v245_v8 = vadd.f32 %v244_v7, %v225_v6  ;;  %v273_v16 = vadd.f32 %v394_v5, %v248_v11 }
  0xaa   :  { %v272_v10 = vadd.f32 %v394_v5, %v245_v8 }
  0xac   :  { %v370_v12 = vpack.c.bf16 %v272_v10, %v271_v9  ;;  %v230_v13 = vpop.f32.mrf.mxu2 }
  0xad   :  { %v249_v14 = vpop.f32.mrf.mxu3 }
  0xae   :  { %371 = vst [vmem:[%s545_s3] sm:$0xff] %v370_v12   ;;  %v250_v15 = vadd.f32 %v249_v14, %v230_v13 }
  0xb0   :  { %v274_v17 = vadd.f32 %v394_v5, %v250_v15 }
  0xb2   :  { %v375_v18 = vpack.c.bf16 %v274_v17, %v273_v16 }
  0xb4   :  { %377 = vst [vmem:[%s545_s3 + $0x8] sm:$0xff] %v375_v18  }

// kernel: _lambda_.30
= control target key start
LH: loop header
LB: loop body
LE: loop exit
PB: predicated region body
PF: predicated region fallthrough
CT: control target
= control target key end

     0   :  { %s118_s0 = inlined_call_operand.vmem [shape: bf16[8,128], index: 0, kind: input, shape index: {}]   ;;  %s119_s1 = inlined_call_operand.vmem [shape: f32[1,128], index: 1, kind: input, shape index: {}]   ;;  %s120_s2 = inlined_call_operand.vmem [shape: f32[1,128], index: 2, kind: input, shape index: {}]   ;;  %s121_s3 = inlined_call_operand.vmem [shape: bf16[8,128], index: 3, kind: output, shape index: {}]  }
   0x1   :  { %v76_v0 = vld [vmem:[%s118_s0] sm:$0xff]  }
   0x2   :  { %v84_v1 = vld [vmem:[%s119_s1] ss:$0 sm:$0xff]  ;;  %v77_v2 = vunpack.c.l.bf16 %v76_v0  ;;  %v78_v3 = vunpack.c.h.bf16 %v76_v0 }
   0x3   :  { %v85_v4 = vld [vmem:[%s120_s2] ss:$0 sm:$0xff] }
   0x4   :  { %v22_v5 = vmul.f32 %v84_v1, %v77_v2  ;;  %v23_v6 = vmul.f32 %v84_v1, %v78_v3 }
   0x6   :  { %v28_v7 = vadd.f32 %v85_v4, %v22_v5  ;;  %v29_v8 = vadd.f32 %v85_v4, %v23_v6 }
   0x8   :  { %v82_v9 = vpack.c.bf16 %v29_v8, %v28_v7 }
   0xa   :  { %83 = vst [vmem:[#allocation2] sm:$0xff] %v82_v9  }
  0x11   :  { %v52_v10 = vld [vmem:[#allocation2] sm:$0xf] }
  0x12   :  { %53 = vst [vmem:[%s121_s3] sm:$0xf] %v52_v10 }

// kernel: tile.53
= control target key start
LH: loop header
LB: loop body
LE: loop exit
PB: predicated region body
PF: predicated region fallthrough
CT: control target
= control target key end

     0   :  { %s22_s0 = inlined_call_operand.vmem [shape: f32[64], index: 0, kind: input, shape index: {}]   ;;  %s23_s1 = inlined_call_operand.vmem [shape: f32[2,64], index: 1, kind: output, shape index: {}]  }
   0x1   :  { %v4_v0 = vld [vmem:[%s22_s0] ss:$0 sm:$0xff] }
   0x2   :  { %5 = vst [vmem:[%s23_s1] sm:$0x3] %v4_v0 }

// kernel: tile.54
= control target key start
LH: loop header
LB: loop body
LE: loop exit
PB: predicated region body
PF: predicated region fallthrough
CT: control target
= control target key end

     0   :  { %vm7_vm0 = vcmask 523264   ;;  %vm13_vm1 = vcmask 1048064   ;;  %s39_s0 = inlined_call_operand.vmem [shape: f32[2,64], index: 0, kind: input, shape index: {}]   ;;  %s40_s1 = inlined_call_operand.vmem [shape: f32[1,128], index: 1, kind: output, shape index: {}]  }
   0x1   :  { %v4_v0 = vld [vmem:[%s39_s0] sm:$0x3]  ;;  %s22_s0 = smov 64  }
   0x2   :  { %5 = vst [vmem:[#allocation1] sm:$0x3] %v4_v0 }
   0x9   :  { %v10_v1 = vld [vmem:[#allocation1 + $0x1] sm:$0x1]   ;;  %v6_v2 = vld [vmem:[#allocation1] sm:$0x1]  }
   0xa   :  { %11 = vrot.lane.b32.xlu0 %v10_v1, %s22_s0  ;;  %8 = vst.msk [vmem:[#allocation0] sm:$0x1] %vm7_vm0, %v6_v2  }
  0x7c   :  { %v12_v3 = vpop.permute.xlu0 %11  }
  0x7d   :  { %14 = vst.msk [vmem:[#allocation0] sm:$0x1] %vm13_vm1, %v12_v3  }
  0x84   :  { %v17_v4 = vld [vmem:[#allocation0] sm:$0x1] }
  0x85   :  { %20 = vst [vmem:[%s40_s1] sm:$0x1] %v17_v4 }

// kernel: _lambda_.32
= control target key start
LH: loop header
LB: loop body
LE: loop exit
PB: predicated region body
PF: predicated region fallthrough
CT: control target
= control target key end

     0   :  { %v120_v2 = vmov 0.0   ;;  %v58_v5 = vlaneseq  ;;  %s160_s0 = inlined_call_operand.vmem [shape: bf16[4,128], index: 0, kind: input, shape index: {}]   ;;  %s161_s1 = inlined_call_operand.vmem [shape: f32[1,1,128], index: 1, kind: output, shape index: {0}]   ;;  %s162_s2 = inlined_call_operand.vmem [shape: f32[1,1,128], index: 2, kind: output, shape index: {1}]  }
   0x1   :  { %v48_v0 = vld [vmem:[%s160_s0] sm:$0x3]  ;;  %v49_v1 = vld [vmem:[%s160_s0 + $0x2] sm:$0x3]  ;;  %46 = vst [vmem:[%s161_s1] sm:$0x1] %v120_v2 }
   0x2   :  { %v52_v3 = vunpack.c.l.bf16 %v48_v0  ;;  %v53_v4 = vunpack.c.l.bf16 %v49_v1  ;;  %47 = vst [vmem:[%s162_s2] sm:$0x1] %v120_v2  ;;  %v59_v6 = vshrl.u32 %v58_v5, 7 }
   0x4   :  { %70 = vst [vmem:[#allocation1] ss:$2 sm:$0xff] %v52_v3  ;;  %vm64_vm0 = vcmp.lt.s32.totalorder %v59_v6, 4 }
   0x5   :  { %72 = vst [vmem:[#allocation1 + $0x1] ss:$2 sm:$0xff] %v53_v4 }
   0x8   :  { %v83_v19 = vld [vmem:[%s161_s1] sm:$0x1] }
   0x9   :  { %v93_v22 = vld [vmem:[%s162_s2] sm:$0x1] }
   0xc   :  { %v77_v7 = vld.sshfl [vmem:[#allocation1] sm:$0xff pattern:$0x75316420] }
   0xd   :  { %v81_v8 = vsel %vm64_vm0, %v77_v7, 0.0 }
   0xe   :  { %v85_v9 = vrot.slane %v81_v8, 4  ;;  %v94_v10 = vmul.f32 %v81_v8, %v81_v8 }
  0x10   :  { %v86_v11 = vadd.f32 %v85_v9, %v81_v8  ;;  %v97_v12 = vrot.slane %v94_v10, 4 }
  0x12   :  { %v87_v13 = vrot.slane %v86_v11, 2  ;;  %v98_v14 = vadd.f32 %v97_v12, %v94_v10 }
  0x14   :  { %v88_v15 = vadd.f32 %v87_v13, %v86_v11  ;;  %v99_v16 = vrot.slane %v98_v14, 2 }
  0x16   :  { %v89_v17 = vrot.slane %v88_v15, 1  ;;  %v100_v18 = vadd.f32 %v99_v16, %v98_v14 }
  0x18   :  { %v90_v20 = vadd.f32 %v89_v17, %v88_v15  ;;  %v101_v21 = vrot.slane %v100_v18, 1 }
  0x1a   :  { %v91_v23 = vadd.f32 %v90_v20, %v83_v19  ;;  %v102_v24 = vadd.f32 %v101_v21, %v100_v18 }
  0x1c   :  { %92 = vst [vmem:[%s161_s1] sm:$0x1] %v91_v23  ;;  %v103_v25 = vadd.f32 %v102_v24, %v93_v22 }
  0x1e   :  { %104 = vst [vmem:[%s162_s2] sm:$0x1] %v103_v25 }

// kernel: _lambda_.33
= control target key start
LH: loop header
LB: loop body
LE: loop exit
PB: predicated region body
PF: predicated region fallthrough
CT: control target
= control target key end

     0   :  { %vm63_vm0 = vcmask 1041408   ;;  %s169_s0 = inlined_call_operand.vmem [shape: bf16[4,128], index: 0, kind: input, shape index: {}]   ;;  %s170_s1 = inlined_call_operand.vmem [shape: f32[1,128], index: 1, kind: input, shape index: {}]   ;;  %s171_s2 = inlined_call_operand.vmem [shape: f32[1,128], index: 2, kind: input, shape index: {}]   ;;  %s172_s3 = inlined_call_operand.vmem [shape: bf16[4,128], index: 3, kind: output, shape index: {}]  }
   0x1   :  { %v14_v0 = vld [vmem:[%s169_s0] sm:$0x3]  ;;  %v15_v4 = vld [vmem:[%s169_s0 + $0x2] sm:$0x3]  ;;  %v16_v7 = vld [vmem:[%s169_s0 + $0x4] sm:$0x3] }
   0x2   :  { %v126_v1 = vld [vmem:[%s170_s1] ss:$0 sm:$0xff]  ;;  %v18_v2 = vunpack.c.l.bf16 %v14_v0  ;;  %v19_v5 = vunpack.c.l.bf16 %v15_v4  ;;  %v17_v8 = vld [vmem:[%s169_s0 + $0x6] sm:$0x3]  ;;  %v20_v11 = vunpack.c.l.bf16 %v16_v7 }
   0x3   :  { %v127_v3 = vld [vmem:[%s171_s2] ss:$0 sm:$0xff]  ;;  %v26_v6 = vrot.slane %v126_v1, 4  ;;  %v21_v12 = vunpack.c.l.bf16 %v17_v8 }
   0x4   :  { %v28_v9 = vmul.f32 %v126_v1, %v18_v2  ;;  %v36_v10 = vrot.slane %v127_v3, 4  ;;  %v30_v15 = vmul.f32 %v126_v1, %v20_v11 }
   0x5   :  { %v29_v13 = vmul.f32 %v26_v6, %v19_v5  ;;  %v31_v16 = vmul.f32 %v26_v6, %v21_v12 }
   0x6   :  { %v38_v14 = vadd.f32 %v127_v3, %v28_v9  ;;  %v40_v18 = vadd.f32 %v127_v3, %v30_v15 }
   0x7   :  { %v39_v17 = vadd.f32 %v36_v10, %v29_v13  ;;  %v41_v19 = vadd.f32 %v36_v10, %v31_v16 }
   0x8   :  { %46 = vst [vmem:[#allocation1] ss:$2 sm:$0xff] %v38_v14 }
   0x9   :  { %48 = vst [vmem:[#allocation1 + $0x1] ss:$2 sm:$0xff] %v39_v17 }
   0xa   :  { %50 = vst [vmem:[#allocation1 + $0x10] ss:$2 sm:$0xff] %v40_v18 }
   0xb   :  { %52 = vst [vmem:[#allocation1 + $0x11] ss:$2 sm:$0xff] %v41_v19 }
  0x10   :  { %v53_v20 = vld.sshfl [vmem:[#allocation1] sm:$0xff pattern:$0x75316420] }
  0x11   :  { %v57_v21 = vpack.c.bf16 %v53_v20, %v53_v20 }
  0x13   :  { %v61_v22 = vrot.slane %v57_v21, 2 }
  0x15   :  { %v66_v23 = vsel %vm63_vm0, %v57_v21, %v61_v22 }
  0x16   :  { %81 = vst [vmem:[#allocation2] sm:$0x3] %v66_v23 }
  0x1d   :  { %v103_v24 = vld [vmem:[#allocation2] sm:$0x3] }
  0x1e   :  { %104 = vst [vmem:[%s172_s3] sm:$0x3] %v103_v24 }

// kernel: _lambda_.31
= control target key start
LH: loop header
LB: loop body
LE: loop exit
PB: predicated region body
PF: predicated region fallthrough
CT: control target
= control target key end

     0   :  { %s807_s0 = inlined_call_operand.vmem [shape: bf16[8,512], index: 0, kind: input, shape index: {}]   ;;  %s808_s1 = inlined_call_operand.vmem [shape: bf16[512,128], index: 1, kind: input, shape index: {}]   ;;  %s809_s2 = inlined_call_operand.vmem [shape: f32[1,128], index: 2, kind: input, shape index: {}]   ;;  %s810_s3 = inlined_call_operand.vmem [shape: bf16[8,128], index: 3, kind: output, shape index: {}]  }
   0x1   :  { %v589_v0 = vld [vmem:[%s808_s1 + $0x38] sm:$0xff]  ;;  %v588_v4 = vld [vmem:[%s808_s1 + $0x30] sm:$0xff]  ;;  %v587_v8 = vld [vmem:[%s808_s1 + $0x28] sm:$0xff] }
   0x2   :  { %v597_v1 = vld [vmem:[%s808_s1 + $0x78] sm:$0xff]  ;;  %338 = vmatpush.bf16.msra.mxu0 %v589_v0  ;;  %v596_v5 = vld [vmem:[%s808_s1 + $0x70] sm:$0xff]  ;;  %v595_v9 = vld [vmem:[%s808_s1 + $0x68] sm:$0xff] }
   0x3   :  { %v605_v2 = vld [vmem:[%s808_s1 + $0xb8] sm:$0xff]  ;;  %352 = vmatpush.bf16.msra.mxu1 %v597_v1  ;;  %v604_v6 = vld [vmem:[%s808_s1 + $0xb0] sm:$0xff]  ;;  %v603_v10 = vld [vmem:[%s808_s1 + $0xa8] sm:$0xff] }
   0x4   :  { %v613_v3 = vld [vmem:[%s808_s1 + $0xf8] sm:$0xff]  ;;  %366 = vmatpush.bf16.msra.mxu2 %v605_v2  ;;  %v612_v7 = vld [vmem:[%s808_s1 + $0xf0] sm:$0xff]  ;;  %v611_v11 = vld [vmem:[%s808_s1 + $0xe8] sm:$0xff] }
   0x5   :  { %380 = vmatpush.bf16.msra.mxu3 %v613_v3  ;;  %v586_v12 = vld [vmem:[%s808_s1 + $0x20] sm:$0xff]  ;;  %v22_v17 = vld [vmem:[%s807_s0 + $0x10] sm:$0xff]  ;;  %v21_v20 = vld [vmem:[%s807_s0 + $0x8] sm:$0xff] }
   0x6   :  { %339 = vmatpush.bf16.msra.mxu0 %v588_v4  ;;  %v594_v13 = vld [vmem:[%s808_s1 + $0x60] sm:$0xff]  ;;  %v28_v21 = vunpack.c.l.bf16 %v22_v17  ;;  %v29_v22 = vunpack.c.h.bf16 %v22_v17  ;;  %v23_v23 = vld [vmem:[%s807_s0 + $0x18] sm:$0xff]  ;;  %v26_v24 = vunpack.c.l.bf16 %v21_v20  ;;  %v27_v25 = vunpack.c.h.bf16 %v21_v20  ;;  %v584_v47 = vld [vmem:[%s808_s1 + $0x10] sm:$0xff] }
   0x7   :  { %353 = vmatpush.bf16.msra.mxu1 %v596_v5  ;;  %v602_v14 = vld [vmem:[%s808_s1 + $0xa0] sm:$0xff]  ;;  %v585_v28 = vld [vmem:[%s808_s1 + $0x18] sm:$0xff]  ;;  %v30_v38 = vunpack.c.l.bf16 %v23_v23  ;;  %v31_v39 = vunpack.c.h.bf16 %v23_v23  ;;  %v592_v48 = vld [vmem:[%s808_s1 + $0x50] sm:$0xff] }
   0x8   :  { %367 = vmatpush.bf16.msra.mxu2 %v604_v6  ;;  %v20_v15 = vld [vmem:[%s807_s0] sm:$0xff]  ;;  %v593_v29 = vld [vmem:[%s808_s1 + $0x58] sm:$0xff]  ;;  %v44_v32 = vmul.f32 0.20019531, %v28_v21  ;;  %v45_v33 = vmul.f32 0.20019531, %v29_v22  ;;  %vm720_vm2 = vcmp.ge.f32.partialorder %v28_v21, 0.0  ;;  %vm724_vm3 = vcmp.ge.f32.partialorder %v29_v22, 0.0 }
   0x9   :  { %381 = vmatpush.bf16.msra.mxu3 %v612_v7  ;;  %v610_v16 = vld [vmem:[%s808_s1 + $0xe0] sm:$0xff]  ;;  %v24_v18 = vunpack.c.l.bf16 %v20_v15  ;;  %v25_v19 = vunpack.c.h.bf16 %v20_v15  ;;  %v601_v34 = vld [vmem:[%s808_s1 + $0x98] sm:$0xff]  ;;  %vm728_vm4 = vcmp.ge.f32.partialorder %v26_v24, 0.0  ;;  %vm732_vm5 = vcmp.ge.f32.partialorder %v27_v25, 0.0  ;;  %vm54_vm9 = vmpackc.low %vm724_vm3, %vm720_vm2 }
   0xa   :  { %340 = vmatpush.bf16.msra.mxu0 %v587_v8  ;;  %v609_v35 = vld [vmem:[%s808_s1 + $0xd8] sm:$0xff]  ;;  %v42_v42 = vmul.f32 0.20019531, %v26_v24  ;;  %v43_v43 = vmul.f32 0.20019531, %v27_v25  ;;  %vm740_vm7 = vcmp.ge.f32.partialorder %v30_v38, 0.0  ;;  %vm744_vm8 = vcmp.ge.f32.partialorder %v31_v39, 0.0  ;;  %v600_v52 = vld [vmem:[%s808_s1 + $0x90] sm:$0xff]  ;;  %vm53_vm10 = vmpackc.low %vm732_vm5, %vm728_vm4 }
   0xb   :  { %354 = vmatpush.bf16.msra.mxu1 %v595_v9  ;;  %vm700_vm0 = vcmp.ge.f32.partialorder %v24_v18, 0.0  ;;  %vm704_vm1 = vcmp.ge.f32.partialorder %v25_v19, 0.0  ;;  %v40_v30 = vmul.f32 0.20019531, %v24_v18  ;;  %v41_v31 = vmul.f32 0.20019531, %v25_v19  ;;  %v608_v53 = vld [vmem:[%s808_s1 + $0xd0] sm:$0xff]  ;;  %vm55_vm11 = vmpackc.low %vm744_vm8, %vm740_vm7  ;;  %v583_v56 = vld [vmem:[%s808_s1 + $0x8] sm:$0xff] }
   0xc   :  { %368 = vmatpush.bf16.msra.mxu2 %v603_v10  ;;  %vm52_vm6 = vmpackc.low %vm704_vm1, %vm700_vm0  ;;  %v46_v46 = vmul.f32 0.20019531, %v30_v38  ;;  %v50_v50 = vpack.c.bf16 %v45_v33, %v44_v32  ;;  %v47_v51 = vmul.f32 0.20019531, %v31_v39  ;;  %v49_v54 = vpack.c.bf16 %v43_v43, %v42_v42  ;;  %v591_v57 = vld [vmem:[%s808_s1 + $0x48] sm:$0xff]  ;;  %v582_v4 = vld [vmem:[%s808_s1] sm:$0xff] }
   0xd   :  { %382 = vmatpush.bf16.msra.mxu3 %v611_v11  ;;  %v48_v49 = vpack.c.bf16 %v41_v31, %v40_v30  ;;  %v599_v60 = vld [vmem:[%s808_s1 + $0x88] sm:$0xff]  ;;  %v590_v5 = vld [vmem:[%s808_s1 + $0x40] sm:$0xff] }
   0xe   :  { %341 = vmatpush.bf16.msra.mxu0 %v586_v12  ;;  %v51_v55 = vpack.c.bf16 %v47_v51, %v46_v46  ;;  %v58_v59 = vsel %vm54_vm9, %v22_v17, %v50_v50  ;;  %v607_v61 = vld [vmem:[%s808_s1 + $0xc8] sm:$0xff]  ;;  %v57_v62 = vsel %vm53_vm10, %v21_v20, %v49_v54  ;;  %v598_v10 = vld [vmem:[%s808_s1 + $0x80] sm:$0xff] }
   0xf   :  { %355 = vmatpush.bf16.msra.mxu1 %v594_v13  ;;  %v56_v58 = vsel %vm52_vm6, %v20_v15, %v48_v49  ;;  %v134_v1 = vunpack.c.l.b16 %v58_v59  ;;  %v135_v3 = vunpack.c.h.b16 %v58_v59  ;;  %v132_v6 = vunpack.c.l.b16 %v57_v62  ;;  %v606_v11 = vld [vmem:[%s808_s1 + $0xc0] sm:$0xff] }
  0x10   :  { %369 = vmatpush.bf16.msra.mxu2 %v602_v14  ;;  %v59_v63 = vsel %vm55_vm11, %v23_v23, %v51_v55  ;;  %v130_v0 = vunpack.c.l.b16 %v56_v58  ;;  %v131_v2 = vunpack.c.h.b16 %v56_v58  ;;  %v133_v8 = vunpack.c.h.b16 %v57_v62  ;;  %v619_v27 = vld [vmem:[%s809_s2] ss:$0 sm:$0xff] }
  0x11   :  { %383 = vmatpush.bf16.msra.mxu3 %v610_v16  ;;  %v136_v7 = vunpack.c.l.b16 %v59_v63  ;;  %v137_v9 = vunpack.c.h.b16 %v59_v63 }
  0x12   :  { %342 = vmatpush.bf16.msra.mxu0 %v585_v28  ;;  %v138_v12 = vpack.c.b16 %v134_v1, %v130_v0  ;;  %v139_v13 = vpack.c.b16 %v135_v3, %v131_v2 }
  0x13   :  { %356 = vmatpush.bf16.msra.mxu1 %v593_v29  ;;  %v140_v14 = vpack.c.b16 %v136_v7, %v132_v6  ;;  %v141_v15 = vpack.c.b16 %v137_v9, %v133_v8 }
  0x14   :  { %370 = vmatpush.bf16.msra.mxu2 %v601_v34 }
  0x15   :  { %384 = vmatpush.bf16.msra.mxu3 %v609_v35 }
  0x16   :  { %343 = vmatpush.bf16.msra.mxu0 %v584_v47 }
  0x17   :  { %357 = vmatpush.bf16.msra.mxu1 %v592_v48 }
  0x18   :  { %371 = vmatpush.bf16.msra.mxu2 %v600_v52 }
  0x19   :  { %385 = vmatpush.bf16.msra.mxu3 %v608_v53 }
  0x1a   :  { %344 = vmatpush.bf16.msra.mxu0 %v583_v56 }
  0x1b   :  { %358 = vmatpush.bf16.msra.mxu1 %v591_v57 }
  0x1c   :  { %372 = vmatpush.bf16.msra.mxu2 %v599_v60 }
  0x1d   :  { %386 = vmatpush.bf16.msra.mxu3 %v607_v61 }
  0x1e   :  { %345 = vmatpush.bf16.msra.mxu0 %v582_v4 }
  0x1f   :  { %359 = vmatpush.bf16.msra.mxu1 %v590_v5 }
  0x20   :  { %373 = vmatpush.bf16.msra.mxu2 %v598_v10 }
  0x21   :  { %387 = vmatpush.bf16.msra.mxu3 %v606_v11  ;;  %346 = vmatmul.bf16.vlgmr.msra.gmra.mxu0 %v138_v12 }
  0x22   :  { %360 = vmatmul.bf16.vlgmr.msra.gmra.mxu1 %v139_v13 }
  0x23   :  { %374 = vmatmul.bf16.vlgmr.msra.gmra.mxu2 %v140_v14 }
  0x24   :  { %388 = vmatmul.bf16.vlgmr.msra.gmra.mxu3 %v141_v15 }
  0x9e   :  { %v347_v16 = vpop.f32.mrf.mxu0 }
  0x9f   :  { %v361_v17 = vpop.f32.mrf.mxu1 }
  0xa0   :  { %v362_v20 = vadd.f32 %v361_v17, %v347_v16 }
  0xa6   :  { %v375_v18 = vpop.f32.mrf.mxu2  ;;  %v349_v21 = vpop.f32.mrf.mxu0 }
  0xa7   :  { %v389_v19 = vpop.f32.mrf.mxu3  ;;  %v363_v22 = vpop.f32.mrf.mxu1  ;;  %v376_v23 = vadd.f32 %v375_v18, %v362_v20 }
  0xa8   :  { %v364_v24 = vadd.f32 %v363_v22, %v349_v21 }
  0xa9   :  { %v390_v26 = vadd.f32 %v389_v19, %v376_v23 }
  0xab   :  { %v407_v31 = vadd.f32 %v619_v27, %v390_v26 }
  0xae   :  { %v377_v25 = vpop.f32.mrf.mxu2 }
  0xaf   :  { %v378_v28 = vadd.f32 %v377_v25, %v364_v24  ;;  %v391_v29 = vpop.f32.mrf.mxu3 }
  0xb1   :  { %v392_v30 = vadd.f32 %v391_v29, %v378_v28 }
  0xb3   :  { %v408_v32 = vadd.f32 %v619_v27, %v392_v30 }
  0xb5   :  { %v617_v33 = vpack.c.bf16 %v408_v32, %v407_v31 }
  0xb7   :  { %618 = vst [vmem:[#allocation3] sm:$0xff] %v617_v33  }
  0xbe   :  { %v431_v34 = vld [vmem:[#allocation3] sm:$0xf] }
  0xbf   :  { %432 = vst [vmem:[%s810_s3] sm:$0xf] %v431_v34 }

// kernel: _lambda_.35
= control target key start
LH: loop header
LB: loop body
LE: loop exit
PB: predicated region body
PF: predicated region fallthrough
CT: control target
= control target key end

     0   :  { %s740_s0 = inlined_call_operand.vmem [shape: bf16[8,256], index: 0, kind: input, shape index: {}]   ;;  %s741_s1 = inlined_call_operand.vmem [shape: bf16[256,256], index: 1, kind: input, shape index: {}]   ;;  %s742_s2 = inlined_call_operand.vmem [shape: f32[1,256], index: 2, kind: input, shape index: {}]   ;;  %s743_s3 = inlined_call_operand.vmem [shape: bf16[8,256], index: 3, kind: output, shape index: {}]  }
   0x1   :  { %v414_v0 = vld [vmem:[%s741_s1 + $0x70] sm:$0xf]  ;;  %v499_v1 = vld [vmem:[%s741_s1 + $0x74] sm:$0xf0]  ;;  %v498_v5 = vld [vmem:[%s741_s1 + $0x74] sm:$0xf] }
   0x2   :  { %v478_v2 = vld [vmem:[%s741_s1 + $0xf0] sm:$0xf]  ;;  %v415_v3 = vor.u32 %v499_v1, %v414_v0  ;;  %v515_v4 = vld [vmem:[%s741_s1 + $0xf4] sm:$0xf0]  ;;  %v416_v6 = vld [vmem:[%s741_s1 + $0x78] sm:$0xf0] }
   0x3   :  { %v479_v7 = vor.u32 %v515_v4, %v478_v2  ;;  %v419_v8 = vor.u32 %v498_v5, %v416_v6  ;;  %v514_v9 = vld [vmem:[%s741_s1 + $0xf4] sm:$0xf]  ;;  %v480_v10 = vld [vmem:[%s741_s1 + $0xf8] sm:$0xf0]  ;;  %v406_v11 = vld [vmem:[%s741_s1 + $0x60] sm:$0xf] }
   0x4   :  { %230 = vmatpush.bf16.msra.mxu0 %v415_v3  ;;  %v483_v12 = vor.u32 %v514_v9, %v480_v10  ;;  %v497_v13 = vld [vmem:[%s741_s1 + $0x64] sm:$0xf0]  ;;  %v470_v14 = vld [vmem:[%s741_s1 + $0xe0] sm:$0xf]  ;;  %v496_v18 = vld [vmem:[%s741_s1 + $0x64] sm:$0xf] }
   0x5   :  { %v513_v15 = vld [vmem:[%s741_s1 + $0xe4] sm:$0xf0]  ;;  %244 = vmatpush.bf16.msra.mxu1 %v479_v7  ;;  %258 = vmatpush.bf16.msra.mxu2 %v419_v8  ;;  %v407_v16 = vor.u32 %v497_v13, %v406_v11  ;;  %v408_v19 = vld [vmem:[%s741_s1 + $0x68] sm:$0xf0]  ;;  %v512_v20 = vld [vmem:[%s741_s1 + $0xe4] sm:$0xf] }
   0x6   :  { %v471_v17 = vor.u32 %v513_v15, %v470_v14  ;;  %272 = vmatpush.bf16.msra.mxu3 %v483_v12  ;;  %v411_v21 = vor.u32 %v496_v18, %v408_v19  ;;  %v472_v22 = vld [vmem:[%s741_s1 + $0xe8] sm:$0xf0]  ;;  %v398_v23 = vld [vmem:[%s741_s1 + $0x50] sm:$0xf]  ;;  %v495_v24 = vld [vmem:[%s741_s1 + $0x54] sm:$0xf0] }
   0x7   :  { %v475_v25 = vor.u32 %v512_v20, %v472_v22  ;;  %v462_v26 = vld [vmem:[%s741_s1 + $0xd0] sm:$0xf]  ;;  %v511_v27 = vld [vmem:[%s741_s1 + $0xd4] sm:$0xf0]  ;;  %v494_v28 = vld [vmem:[%s741_s1 + $0x54] sm:$0xf]  ;;  %v399_v29 = vor.u32 %v495_v24, %v398_v23 }
   0x8   :  { %231 = vmatpush.bf16.msra.mxu0 %v407_v16  ;;  %v400_v30 = vld [vmem:[%s741_s1 + $0x58] sm:$0xf0]  ;;  %v510_v31 = vld [vmem:[%s741_s1 + $0xd4] sm:$0xf]  ;;  %v463_v33 = vor.u32 %v511_v27, %v462_v26  ;;  %v390_v35 = vld [vmem:[%s741_s1 + $0x40] sm:$0xf] }
   0x9   :  { %v464_v32 = vld [vmem:[%s741_s1 + $0xd8] sm:$0xf0]  ;;  %245 = vmatpush.bf16.msra.mxu1 %v471_v17  ;;  %259 = vmatpush.bf16.msra.mxu2 %v411_v21  ;;  %v403_v34 = vor.u32 %v494_v28, %v400_v30  ;;  %v493_v36 = vld [vmem:[%s741_s1 + $0x44] sm:$0xf0]  ;;  %v454_v37 = vld [vmem:[%s741_s1 + $0xc0] sm:$0xf] }
   0xa   :  { %273 = vmatpush.bf16.msra.mxu3 %v475_v25  ;;  %v467_v38 = vor.u32 %v510_v31, %v464_v32  ;;  %v509_v39 = vld [vmem:[%s741_s1 + $0xc4] sm:$0xf0]  ;;  %v492_v40 = vld [vmem:[%s741_s1 + $0x44] sm:$0xf]  ;;  %v392_v41 = vld [vmem:[%s741_s1 + $0x48] sm:$0xf0]  ;;  %v391_v44 = vor.u32 %v493_v36, %v390_v35 }
   0xb   :  { %v508_v42 = vld [vmem:[%s741_s1 + $0xc4] sm:$0xf]  ;;  %v456_v43 = vld [vmem:[%s741_s1 + $0xc8] sm:$0xf0]  ;;  %v455_v45 = vor.u32 %v509_v39, %v454_v37  ;;  %v395_v46 = vor.u32 %v492_v40, %v392_v41  ;;  %v382_v47 = vld [vmem:[%s741_s1 + $0x30] sm:$0xf] }
   0xc   :  { %232 = vmatpush.bf16.msra.mxu0 %v399_v29  ;;  %v491_v48 = vld [vmem:[%s741_s1 + $0x34] sm:$0xf0]  ;;  %v446_v49 = vld [vmem:[%s741_s1 + $0xb0] sm:$0xf]  ;;  %v459_v50 = vor.u32 %v508_v42, %v456_v43  ;;  %v490_v52 = vld [vmem:[%s741_s1 + $0x34] sm:$0xf] }
   0xd   :  { %246 = vmatpush.bf16.msra.mxu1 %v463_v33  ;;  %260 = vmatpush.bf16.msra.mxu2 %v403_v34  ;;  %v507_v51 = vld [vmem:[%s741_s1 + $0xb4] sm:$0xf0]  ;;  %v384_v53 = vld [vmem:[%s741_s1 + $0x38] sm:$0xf0]  ;;  %v506_v54 = vld [vmem:[%s741_s1 + $0xb4] sm:$0xf]  ;;  %v383_v56 = vor.u32 %v491_v48, %v382_v47 }
   0xe   :  { %274 = vmatpush.bf16.msra.mxu3 %v467_v38  ;;  %v448_v55 = vld [vmem:[%s741_s1 + $0xb8] sm:$0xf0]  ;;  %v447_v57 = vor.u32 %v507_v51, %v446_v49  ;;  %v387_v58 = vor.u32 %v490_v52, %v384_v53  ;;  %v374_v59 = vld [vmem:[%s741_s1 + $0x20] sm:$0xf]  ;;  %v489_v60 = vld [vmem:[%s741_s1 + $0x24] sm:$0xf0] }
   0xf   :  { %v438_v61 = vld [vmem:[%s741_s1 + $0xa0] sm:$0xf]  ;;  %v451_v62 = vor.u32 %v506_v54, %v448_v55  ;;  %v505_v63 = vld [vmem:[%s741_s1 + $0xa4] sm:$0xf0]  ;;  %v488_v0 = vld [vmem:[%s741_s1 + $0x24] sm:$0xf]  ;;  %v375_v4 = vor.u32 %v489_v60, %v374_v59 }
  0x10   :  { %233 = vmatpush.bf16.msra.mxu0 %v391_v44  ;;  %v376_v1 = vld [vmem:[%s741_s1 + $0x28] sm:$0xf0]  ;;  %v504_v2 = vld [vmem:[%s741_s1 + $0xa4] sm:$0xf]  ;;  %v366_v5 = vld [vmem:[%s741_s1 + $0x10] sm:$0xf]  ;;  %v439_v7 = vor.u32 %v505_v63, %v438_v61 }
  0x11   :  { %247 = vmatpush.bf16.msra.mxu1 %v455_v45  ;;  %261 = vmatpush.bf16.msra.mxu2 %v395_v46  ;;  %v440_v3 = vld [vmem:[%s741_s1 + $0xa8] sm:$0xf0]  ;;  %v487_v6 = vld [vmem:[%s741_s1 + $0x14] sm:$0xf0]  ;;  %v379_v8 = vor.u32 %v488_v0, %v376_v1  ;;  %v430_v9 = vld [vmem:[%s741_s1 + $0x90] sm:$0xf] }
  0x12   :  { %275 = vmatpush.bf16.msra.mxu3 %v459_v50  ;;  %v503_v10 = vld [vmem:[%s741_s1 + $0x94] sm:$0xf0]  ;;  %v486_v11 = vld [vmem:[%s741_s1 + $0x14] sm:$0xf]  ;;  %v443_v12 = vor.u32 %v504_v2, %v440_v3  ;;  %v368_v13 = vld [vmem:[%s741_s1 + $0x18] sm:$0xf0]  ;;  %v367_v20 = vor.u32 %v487_v6, %v366_v5 }
  0x13   :  { %v22_v14 = vld [vmem:[%s740_s0] sm:$0xff]  ;;  %v23_v15 = vld [vmem:[%s740_s0 + $0x8] sm:$0xff]  ;;  %v502_v16 = vld [vmem:[%s741_s1 + $0x94] sm:$0xf]  ;;  %v431_v23 = vor.u32 %v503_v10, %v430_v9  ;;  %v371_v24 = vor.u32 %v486_v11, %v368_v13 }
  0x14   :  { %234 = vmatpush.bf16.msra.mxu0 %v383_v56  ;;  %v432_v17 = vld [vmem:[%s741_s1 + $0x98] sm:$0xf0]  ;;  %v24_v18 = vunpack.c.l.bf16 %v22_v14  ;;  %v26_v19 = vunpack.c.l.bf16 %v23_v15  ;;  %v25_v21 = vunpack.c.h.bf16 %v22_v14  ;;  %v27_v22 = vunpack.c.h.bf16 %v23_v15  ;;  %v358_v25 = vld [vmem:[%s741_s1] sm:$0xf]  ;;  %v485_v26 = vld [vmem:[%s741_s1 + $0x4] sm:$0xf0] }
  0x15   :  { %248 = vmatpush.bf16.msra.mxu1 %v447_v57  ;;  %262 = vmatpush.bf16.msra.mxu2 %v387_v58  ;;  %v422_v27 = vld [vmem:[%s741_s1 + $0x80] sm:$0xf]  ;;  %v435_v28 = vor.u32 %v502_v16, %v432_v17  ;;  %v501_v29 = vld [vmem:[%s741_s1 + $0x84] sm:$0xf0]  ;;  %v484_v30 = vld [vmem:[%s741_s1 + $0x4] sm:$0xf]  ;;  %v359_v36 = vor.u32 %v485_v26, %v358_v25 }
  0x16   :  { %276 = vmatpush.bf16.msra.mxu3 %v451_v62  ;;  %v360_v31 = vld [vmem:[%s741_s1 + $0x8] sm:$0xf0]  ;;  %v500_v32 = vld [vmem:[%s741_s1 + $0x84] sm:$0xf]  ;;  %v28_v34 = vmax.f32 %v24_v18, 0.0  ;;  %v30_v35 = vmax.f32 %v26_v19, 0.0  ;;  %v423_v39 = vor.u32 %v501_v29, %v422_v27 }
  0x17   :  { %v424_v33 = vld [vmem:[%s741_s1 + $0x88] sm:$0xf0]  ;;  %v29_v37 = vmax.f32 %v25_v21, 0.0  ;;  %v31_v38 = vmax.f32 %v27_v22, 0.0  ;;  %v363_v40 = vor.u32 %v484_v30, %v360_v31  ;;  %v301_v46 = vld [vmem:[%s742_s2] sm:$0x3] }
  0x18   :  { %235 = vmatpush.bf16.msra.mxu0 %v375_v4  ;;  %v427_v41 = vor.u32 %v500_v32, %v424_v33  ;;  %v32_v42 = vpack.c.bf16 %v30_v35, %v28_v34  ;;  %v303_v48 = vperm.slane %v301_v46, 0  ;;  %v304_v50 = vperm.slane %v301_v46, 1 }
  0x19   :  { %249 = vmatpush.bf16.msra.mxu1 %v439_v7  ;;  %263 = vmatpush.bf16.msra.mxu2 %v379_v8  ;;  %v33_v43 = vpack.c.bf16 %v31_v38, %v29_v37 }
  0x1a   :  { %277 = vmatpush.bf16.msra.mxu3 %v443_v12 }
  0x1c   :  { %236 = vmatpush.bf16.msra.mxu0 %v367_v20 }
  0x1d   :  { %250 = vmatpush.bf16.msra.mxu1 %v431_v23  ;;  %264 = vmatpush.bf16.msra.mxu2 %v371_v24 }
  0x1e   :  { %278 = vmatpush.bf16.msra.mxu3 %v435_v28 }
  0x20   :  { %237 = vmatpush.bf16.msra.mxu0 %v359_v36 }
  0x21   :  { %251 = vmatpush.bf16.msra.mxu1 %v423_v39  ;;  %265 = vmatpush.bf16.msra.mxu2 %v363_v40 }
  0x22   :  { %279 = vmatpush.bf16.msra.mxu3 %v427_v41 }
  0x23   :  { %238 = vmatmul.bf16.vlgmr.msra.gmra.mxu0 %v32_v42 }
  0x24   :  { %252 = vmatmul.bf16.vlgmr.msra.gmra.mxu1 %v33_v43  ;;  %266 = vmatmul.bf16.vlgmr.msra.gmra.mxu2 %v32_v42 }
  0x25   :  { %280 = vmatmul.bf16.vlgmr.msra.gmra.mxu3 %v33_v43 }
  0xa0   :  { %v239_v44 = vpop.f32.mrf.mxu0 }
  0xa1   :  { %v253_v45 = vpop.f32.mrf.mxu1 }
  0xa2   :  { %v254_v47 = vadd.f32 %v253_v45, %v239_v44 }
  0xa4   :  { %v307_v53 = vadd.f32 %v303_v48, %v254_v47 }
  0xa7   :  { %v267_v49 = vpop.f32.mrf.mxu2 }
  0xa8   :  { %v281_v51 = vpop.f32.mrf.mxu3  ;;  %v241_v52 = vpop.f32.mrf.mxu0 }
  0xa9   :  { %v282_v54 = vadd.f32 %v281_v51, %v267_v49  ;;  %v255_v55 = vpop.f32.mrf.mxu1 }
  0xab   :  { %v308_v56 = vadd.f32 %v304_v50, %v282_v54 }
  0xad   :  { %v311_v57 = vpack.c.bf16 %v308_v56, %v307_v53 }
  0xaf   :  { %346 = vst [vmem:[%s743_s3] sm:$0xff] %v311_v57  ;;  %v269_v58 = vpop.f32.mrf.mxu2 }
  0xb0   :  { %v283_v59 = vpop.f32.mrf.mxu3 }

// kernel: _lambda_.37
= control target key start
LH: loop header
LB: loop body
LE: loop exit
PB: predicated region body
PF: predicated region fallthrough
CT: control target
= control target key end

     0   :  { %s115_s17 = smov 64   ;;  %vm49_vm0 = vcmask 523264   ;;  %s156_s0 = inlined_call_operand.vmem [shape: bf16[8,64], index: 0, kind: input, shape index: {}]   ;;  %s157_s1 = inlined_call_operand.vmem [shape: f32[1,64], index: 1, kind: input, shape index: {}]   ;;  %s158_s2 = inlined_call_operand.vmem [shape: f32[1,64], index: 2, kind: input, shape index: {}]   ;;  %s159_s3 = inlined_call_operand.vmem [shape: bf16[8,64], index: 3, kind: input, shape index: {}]   ;;  %s160_s4 = inlined_call_operand.vmem [shape: bf16[8,128], index: 4, kind: output, shape index: {}]  }
   0x1   :  { %v107_v0 = vld [vmem:[%s159_s3] sm:$0xff] }
   0x2   :  { %47 = vrot.lane.b32.xlu0 %v107_v0, %s115_s17  ;;  %v109_v1 = vld [vmem:[%s156_s0] sm:$0xff]  }
   0x3   :  { %v110_v2 = vunpack.c.l.bf16 %v109_v1  ;;  %v111_v3 = vunpack.c.h.bf16 %v109_v1  ;;  %v113_v4 = vld [vmem:[%s157_s1] ss:$0 sm:$0xff] }
   0x4   :  { %v114_v7 = vld [vmem:[%s158_s2] ss:$0 sm:$0xff] }
   0x5   :  { %v25_v5 = vmul.f32 %v113_v4, %v110_v2  ;;  %v26_v6 = vmul.f32 %v113_v4, %v111_v3 }
   0x7   :  { %v31_v8 = vadd.f32 %v114_v7, %v25_v5  ;;  %v32_v9 = vadd.f32 %v114_v7, %v26_v6 }
   0x9   :  { %v33_v10 = vpack.c.bf16 %v31_v8, %v31_v8  ;;  %v34_v11 = vpack.c.bf16 %v32_v9, %v32_v9 }
   0xb   :  { %v39_v12 = vunpack.c.l.b16 %v33_v10  ;;  %v40_v13 = vunpack.c.l.b16 %v34_v11 }
   0xd   :  { %v41_v14 = vpack.c.b16 %v40_v13, %v39_v12 }
  0x74   :  { %v48_v15 = vpop.permute.xlu0 %47 }
  0x75   :  { %v52_v16 = vsel %vm49_vm0, %v41_v14, %v48_v15 }
  0x76   :  { %v54_v17 = vunpack.c.l.b16 %v52_v16 }
  0x78   :  { %v56_v18 = vpack.c.b16 %v54_v17, %v54_v17 }
  0x7a   :  { %60 = vst [vmem:[#allocation2] sm:$0xf] %v56_v18 }
  0x81   :  { %v80_v19 = vld [vmem:[#allocation2] sm:$0xf] }
  0x82   :  { %81 = vst [vmem:[%s160_s4] sm:$0xf] %v80_v19 }

// kernel: _lambda_.34
= control target key start
LH: loop header
LB: loop body
LE: loop exit
PB: predicated region body
PF: predicated region fallthrough
CT: control target
= control target key end

     0   :  { %s2242_s0 = inlined_call_operand.vmem [shape: bf16[2,1024], index: 0, kind: input, shape index: {}]   ;;  %s2243_s1 = inlined_call_operand.vmem [shape: bf16[1024,128], index: 1, kind: input, shape index: {}]   ;;  %s2244_s2 = inlined_call_operand.vmem [shape: f32[1,128], index: 2, kind: input, shape index: {}]   ;;  %s2245_s3 = inlined_call_operand.vmem [shape: bf16[2,128], index: 3, kind: output, shape index: {}]  }
   0x1   :  { %v1424_v0 = vld [vmem:[%s2243_s1 + $0x38] sm:$0xff]  ;;  %v1423_v4 = vld [vmem:[%s2243_s1 + $0x30] sm:$0xff]  ;;  %v1422_v8 = vld [vmem:[%s2243_s1 + $0x28] sm:$0xff] }
   0x2   :  { %v1432_v1 = vld [vmem:[%s2243_s1 + $0x78] sm:$0xff]  ;;  %931 = vmatpush.bf16.msra.mxu0 %v1424_v0  ;;  %v1431_v5 = vld [vmem:[%s2243_s1 + $0x70] sm:$0xff]  ;;  %v1430_v9 = vld [vmem:[%s2243_s1 + $0x68] sm:$0xff] }
   0x3   :  { %v1440_v2 = vld [vmem:[%s2243_s1 + $0xb8] sm:$0xff]  ;;  %945 = vmatpush.bf16.msra.mxu1 %v1432_v1  ;;  %v1439_v6 = vld [vmem:[%s2243_s1 + $0xb0] sm:$0xff]  ;;  %v1438_v10 = vld [vmem:[%s2243_s1 + $0xa8] sm:$0xff] }
   0x4   :  { %v1448_v3 = vld [vmem:[%s2243_s1 + $0xf8] sm:$0xff]  ;;  %959 = vmatpush.bf16.msra.mxu2 %v1440_v2  ;;  %v1447_v7 = vld [vmem:[%s2243_s1 + $0xf0] sm:$0xff]  ;;  %v1446_v11 = vld [vmem:[%s2243_s1 + $0xe8] sm:$0xff] }
   0x5   :  { %973 = vmatpush.bf16.msra.mxu3 %v1448_v3  ;;  %v1421_v12 = vld [vmem:[%s2243_s1 + $0x20] sm:$0xff]  ;;  %v1420_v16 = vld [vmem:[%s2243_s1 + $0x18] sm:$0xff]  ;;  %v1572_v21 = vld [vmem:[%s2242_s0 + $0x8] sm:$0xff] }
   0x6   :  { %932 = vmatpush.bf16.msra.mxu0 %v1423_v4  ;;  %v1429_v13 = vld [vmem:[%s2243_s1 + $0x60] sm:$0xff]  ;;  %v1428_v17 = vld [vmem:[%s2243_s1 + $0x58] sm:$0xff]  ;;  %v1577_v22 = vld [vmem:[%s2242_s0 + $0x10] sm:$0xff]  ;;  %v31_v32 = vunpack.c.l.bf16 %v1572_v21  ;;  %v32_v33 = vunpack.c.h.bf16 %v1572_v21 }
   0x7   :  { %946 = vmatpush.bf16.msra.mxu1 %v1431_v5  ;;  %v1437_v14 = vld [vmem:[%s2243_s1 + $0xa0] sm:$0xff]  ;;  %v1436_v18 = vld [vmem:[%s2243_s1 + $0x98] sm:$0xff]  ;;  %v1592_v25 = vld [vmem:[%s2242_s0 + $0x28] sm:$0xff]  ;;  %v33_v34 = vunpack.c.l.bf16 %v1577_v22  ;;  %v34_v37 = vunpack.c.h.bf16 %v1577_v22 }
   0x8   :  { %960 = vmatpush.bf16.msra.mxu2 %v1439_v6  ;;  %v1445_v15 = vld [vmem:[%s2243_s1 + $0xe0] sm:$0xff]  ;;  %v1444_v20 = vld [vmem:[%s2243_s1 + $0xd8] sm:$0xff]  ;;  %v1597_v26 = vld [vmem:[%s2242_s0 + $0x30] sm:$0xff]  ;;  %v39_v42 = vunpack.c.l.bf16 %v1592_v25  ;;  %v40_v43 = vunpack.c.h.bf16 %v1592_v25  ;;  %vm1646_vm2 = vcmp.ge.f32.partialorder %v31_v32, 0.0  ;;  %v63_v54 = vmul.f32 0.20019531, %v31_v32 }
   0x9   :  { %974 = vmatpush.bf16.msra.mxu3 %v1447_v7  ;;  %v1564_v19 = vld [vmem:[%s2242_s0] sm:$0xff]  ;;  %v1582_v23 = vld [vmem:[%s2242_s0 + $0x18] sm:$0xff]  ;;  %v1419_v28 = vld [vmem:[%s2243_s1 + $0x10] sm:$0xff]  ;;  %v41_v44 = vunpack.c.l.bf16 %v1597_v26  ;;  %v42_v45 = vunpack.c.h.bf16 %v1597_v26  ;;  %vm1656_vm3 = vcmp.ge.f32.partialorder %v32_v33, 0.0  ;;  %vm1660_vm4 = vcmp.ge.f32.partialorder %v33_v34, 0.0 }
   0xa   :  { %933 = vmatpush.bf16.msra.mxu0 %v1422_v8  ;;  %v1587_v24 = vld [vmem:[%s2242_s0 + $0x20] sm:$0xff]  ;;  %v29_v27 = vunpack.c.l.bf16 %v1564_v19  ;;  %v1427_v29 = vld [vmem:[%s2243_s1 + $0x50] sm:$0xff]  ;;  %v1609_v30 = vld [vmem:[%s2242_s0 + $0x38] sm:$0xff]  ;;  %v30_v31 = vunpack.c.h.bf16 %v1564_v19  ;;  %v35_v38 = vunpack.c.l.bf16 %v1582_v23  ;;  %v36_v39 = vunpack.c.h.bf16 %v1582_v23  ;;  %95 = vst [vmem:[#allocation1 + $0x1] ss:$4 sm:$0xff] %v63_v54 }
   0xb   :  { %947 = vmatpush.bf16.msra.mxu1 %v1430_v9  ;;  %v1435_v35 = vld [vmem:[%s2243_s1 + $0x90] sm:$0xff]  ;;  %v37_v40 = vunpack.c.l.bf16 %v1587_v24  ;;  %v38_v41 = vunpack.c.h.bf16 %v1587_v24  ;;  %v43_v46 = vunpack.c.l.bf16 %v1609_v30  ;;  %v44_v47 = vunpack.c.h.bf16 %v1609_v30  ;;  %v1418_v49 = vld [vmem:[%s2243_s1 + $0x8] sm:$0xff]  ;;  %v1417_v61 = vld [vmem:[%s2243_s1] sm:$0xff] }
   0xc   :  { %961 = vmatpush.bf16.msra.mxu2 %v1438_v10  ;;  %v1443_v36 = vld [vmem:[%s2243_s1 + $0xd0] sm:$0xff]  ;;  %vm1632_vm0 = vcmp.ge.f32.partialorder %v29_v27, 0.0  ;;  %v1426_v50 = vld [vmem:[%s2243_s1 + $0x48] sm:$0xff]  ;;  %vm1642_vm1 = vcmp.ge.f32.partialorder %v30_v31, 0.0  ;;  %v61_v53 = vmul.f32 0.20019531, %v29_v27  ;;  %v65_v59 = vmul.f32 0.20019531, %v33_v34 }
   0xd   :  { %975 = vmatpush.bf16.msra.mxu3 %v1446_v11  ;;  %v1434_v55 = vld [vmem:[%s2243_s1 + $0x88] sm:$0xff]  ;;  %v67_v60 = vmul.f32 0.20019531, %v35_v38  ;;  %v1425_v62 = vld [vmem:[%s2243_s1 + $0x40] sm:$0xff]  ;;  %vm1670_vm5 = vcmp.ge.f32.partialorder %v34_v37, 0.0  ;;  %vm1674_vm6 = vcmp.ge.f32.partialorder %v35_v38, 0.0  ;;  %vm1678_vm7 = vcmp.ge.f32.partialorder %v36_v39, 0.0 }
   0xe   :  { %934 = vmatpush.bf16.msra.mxu0 %v1421_v12  ;;  %v1442_v56 = vld [vmem:[%s2243_s1 + $0xc8] sm:$0xff]  ;;  %v62_v2 = vmul.f32 0.20019531, %v30_v31  ;;  %93 = vst [vmem:[#allocation1] ss:$4 sm:$0xff] %v61_v53  ;;  %v1433_v3 = vld [vmem:[%s2243_s1 + $0x80] sm:$0xff]  ;;  %vm1688_vm8 = vcmp.ge.f32.partialorder %v37_v40, 0.0 }
   0xf   :  { %948 = vmatpush.bf16.msra.mxu1 %v1429_v13  ;;  %v1441_v4 = vld [vmem:[%s2243_s1 + $0xc0] sm:$0xff]  ;;  %vm1692_vm9 = vcmp.ge.f32.partialorder %v38_v41, 0.0  ;;  %vm1696_vm10 = vcmp.ge.f32.partialorder %v39_v42, 0.0  ;;  %v64_v8 = vmul.f32 0.20019531, %v32_v33  ;;  %v1456_v9 = vld [vmem:[%s2243_s1 + $0x138] sm:$0xff]  ;;  %vm1706_vm11 = vcmp.ge.f32.partialorder %v40_v43, 0.0 }
  0x10   :  { %962 = vmatpush.bf16.msra.mxu2 %v1437_v14  ;;  %v1464_v10 = vld [vmem:[%s2243_s1 + $0x178] sm:$0xff]  ;;  %vm1710_vm12 = vcmp.ge.f32.partialorder %v41_v44, 0.0  ;;  %vm1714_vm13 = vcmp.ge.f32.partialorder %v42_v45, 0.0  ;;  %v66_v14 = vmul.f32 0.20019531, %v34_v37  ;;  %97 = vst [vmem:[#allocation1 + $0x2] ss:$4 sm:$0xff] %v65_v59 }
  0x11   :  { %976 = vmatpush.bf16.msra.mxu3 %v1445_v15  ;;  %v1472_v15 = vld [vmem:[%s2243_s1 + $0x1b8] sm:$0xff]  ;;  %vm1724_vm14 = vcmp.ge.f32.partialorder %v43_v46, 0.0  ;;  %vm1728_vm15 = vcmp.ge.f32.partialorder %v44_v47, 0.0  ;;  %99 = vst [vmem:[#allocation1 + $0x3] ss:$4 sm:$0xff] %v67_v60  ;;  %v69_v27 = vmul.f32 0.20019531, %v37_v40 }
  0x12   :  { %935 = vmatpush.bf16.msra.mxu0 %v1420_v16  ;;  %v1480_v16 = vld [vmem:[%s2243_s1 + $0x1f8] sm:$0xff]  ;;  %v1734_v31 = vmul.f32 0.20019531, %v40_v43  ;;  %101 = vst [vmem:[#allocation1 + $0x20] ss:$4 sm:$0xff] %v62_v2  ;;  %v1736_v32 = vmul.f32 0.20019531, %v41_v44  ;;  %v1738_v33 = vmul.f32 0.20019531, %v42_v45 }
  0x13   :  { %949 = vmatpush.bf16.msra.mxu1 %v1428_v17  ;;  %v1740_v34 = vmul.f32 0.20019531, %v43_v46  ;;  %103 = vst [vmem:[#allocation1 + $0x21] ss:$4 sm:$0xff] %v64_v8  ;;  %v1455_v45 = vld [vmem:[%s2243_s1 + $0x130] sm:$0xff] }
  0x14   :  { %963 = vmatpush.bf16.msra.mxu2 %v1436_v18  ;;  %105 = vst [vmem:[#allocation1 + $0x22] ss:$4 sm:$0xff] %v66_v14  ;;  %v1463_v46 = vld [vmem:[%s2243_s1 + $0x170] sm:$0xff] }
  0x15   :  { %977 = vmatpush.bf16.msra.mxu3 %v1444_v20  ;;  %v68_v20 = vmul.f32 0.20019531, %v36_v39  ;;  %v1471_v51 = vld [vmem:[%s2243_s1 + $0x1b0] sm:$0xff] }
  0x16   :  { %936 = vmatpush.bf16.msra.mxu0 %v1419_v28  ;;  %v1732_v28 = vmul.f32 0.20019531, %v38_v41  ;;  %v1479_v52 = vld [vmem:[%s2243_s1 + $0x1f0] sm:$0xff] }
  0x17   :  { %950 = vmatpush.bf16.msra.mxu1 %v1427_v29  ;;  %v71_v29 = vmul.f32 0.20019531, %v39_v42  ;;  %107 = vst [vmem:[#allocation1 + $0x23] ss:$4 sm:$0xff] %v68_v20 }
  0x18   :  { %964 = vmatpush.bf16.msra.mxu2 %v1435_v35  ;;  %v1742_v35 = vmul.f32 0.20019531, %v44_v47  ;;  %v108_v57 = vld.sshfl [vmem:[#allocation1] sm:$0xff pattern:$0x73625140] }
  0x19   :  { %978 = vmatpush.bf16.msra.mxu3 %v1443_v36  ;;  %v1483_v36 = vmov 0   ;;  %v109_v58 = vld.sshfl [vmem:[#allocation1 + $0x8] sm:$0xff pattern:$0x73625140] }
  0x1a   :  { %937 = vmatpush.bf16.msra.mxu0 %v1418_v49  ;;  %v1746_v37 = vsel %vm1632_vm0, 1, %v1483_v36  ;;  %v1750_v38 = vsel %vm1642_vm1, 1, %v1483_v36  ;;  %v1754_v39 = vsel %vm1646_vm2, 1, %v1483_v36  ;;  %v1758_v40 = vsel %vm1656_vm3, 1, %v1483_v36 }
  0x1b   :  { %951 = vmatpush.bf16.msra.mxu1 %v1426_v50  ;;  %v1762_v41 = vsel %vm1660_vm4, 1, %v1483_v36  ;;  %v1766_v42 = vsel %vm1670_vm5, 1, %v1483_v36  ;;  %v1770_v43 = vsel %vm1674_vm6, 1, %v1483_v36  ;;  %v1774_v44 = vsel %vm1678_vm7, 1, %v1483_v36 }
  0x1c   :  { %965 = vmatpush.bf16.msra.mxu2 %v1434_v55  ;;  %v1784_v47 = vsel %vm1688_vm8, 1, %v1483_v36  ;;  %v1788_v48 = vsel %vm1692_vm9, 1, %v1483_v36  ;;  %v1792_v49 = vsel %vm1696_vm10, 1, %v1483_v36  ;;  %v1796_v50 = vsel %vm1706_vm11, 1, %v1483_v36 }
  0x1d   :  { %979 = vmatpush.bf16.msra.mxu3 %v1442_v56  ;;  %v1806_v53 = vsel %vm1710_vm12, 1, %v1483_v36  ;;  %v1810_v54 = vsel %vm1714_vm13, 1, %v1483_v36  ;;  %v1814_v55 = vsel %vm1724_vm14, 1, %v1483_v36  ;;  %v1818_v56 = vsel %vm1728_vm15, 1, %v1483_v36 }
  0x1e   :  { %938 = vmatpush.bf16.msra.mxu0 %v1417_v61  ;;  %vm2256_vm0 = vcmask 1040384   ;;  %vm2252_vm1 = vcmask 1041408   ;;  %vm2255_vm2 = vcmask 1042434   ;;  %v110_v59 = vld.sshfl [vmem:[#allocation1 + $0x10] sm:$0xff pattern:$0x73625140]  ;;  %v1145_v61 = vunpack.i.l.s16 %v1746_v37 }
  0x1f   :  { %952 = vmatpush.bf16.msra.mxu1 %v1425_v62  ;;  %v111_v60 = vld.sshfl [vmem:[#allocation1 + $0x18] sm:$0xff pattern:$0x73625140]  ;;  %v1146_v62 = vunpack.i.l.s16 %v1750_v38  ;;  %v1822_v63 = vunpack.c.l.b16 %v1483_v36  ;;  %v1824_v0 = vunpack.c.h.b16 %v1483_v36  ;;  %v1826_v1 = vpack.c.bf16 %v109_v58, %v108_v57 }
  0x20   :  { %966 = vmatpush.bf16.msra.mxu2 %v1433_v3  ;;  %116 = vst [vmem:[#allocation1] ss:$4 sm:$0xff] %v69_v27  ;;  %v149_v2 = vpack.c.bf16 %v111_v60, %v110_v59  ;;  %v1147_v3 = vunpack.i.l.s16 %v1754_v39  ;;  %v1149_v5 = vunpack.i.l.s16 %v1762_v41  ;;  %v1150_v6 = vunpack.i.l.s16 %v1766_v42 }
  0x21   :  { %980 = vmatpush.bf16.msra.mxu3 %v1441_v4  ;;  %v1148_v4 = vunpack.i.l.s16 %v1758_v40  ;;  %117 = vst [vmem:[#allocation1 + $0x1] ss:$4 sm:$0xff] %v71_v29  ;;  %v1151_v7 = vunpack.i.l.s16 %v1770_v43  ;;  %v1152_v8 = vunpack.i.l.s16 %v1774_v44  ;;  %v1153_v11 = vunpack.i.l.s16 %v1784_v47  ;;  %v1461_v43 = vld [vmem:[%s2243_s1 + $0x160] sm:$0xff] }
  0x22   :  { %987 = vmatpush.bf16.msrb.mxu0 %v1456_v9  ;;  %v112_v9 = vld.sshfl [vmem:[#allocation1 + $0x20] sm:$0xff pattern:$0x73625140]  ;;  %v1154_v12 = vunpack.i.l.s16 %v1788_v48  ;;  %v1155_v13 = vunpack.i.l.s16 %v1792_v49  ;;  %v1156_v14 = vunpack.i.l.s16 %v1796_v50  ;;  %v1157_v18 = vunpack.i.l.s16 %v1806_v53  ;;  %118 = vst [vmem:[#allocation1 + $0x2] ss:$4 sm:$0xff] %v1736_v32  ;;  %v1452_v48 = vld [vmem:[%s2243_s1 + $0x118] sm:$0xff] }
  0x23   :  { %1001 = vmatpush.bf16.msrb.mxu1 %v1464_v10  ;;  %v113_v10 = vld.sshfl [vmem:[#allocation1 + $0x28] sm:$0xff pattern:$0x73625140]  ;;  %v1158_v20 = vunpack.i.l.s16 %v1810_v54  ;;  %v1159_v27 = vunpack.i.l.s16 %v1814_v55  ;;  %v1160_v36 = vunpack.i.l.s16 %v1818_v56  ;;  %119 = vst [vmem:[#allocation1 + $0x3] ss:$4 sm:$0xff] %v1740_v34  ;;  %vm2254_vm3 = vcmask 1044484  }
  0x24   :  { %1015 = vmatpush.bf16.msrb.mxu2 %v1472_v15  ;;  %v114_v15 = vld.sshfl [vmem:[#allocation1 + $0x30] sm:$0xff pattern:$0x73625140]  ;;  %v150_v17 = vpack.c.bf16 %v113_v10, %v112_v9  ;;  %vm2250_vm4 = vcmask 1046534   ;;  %vm2247_vm5 = vcmask 1045508   ;;  %vm2246_vm6 = vcmask 1043456  }
  0x25   :  { %1029 = vmatpush.bf16.msrb.mxu3 %v1480_v16  ;;  %v115_v16 = vld.sshfl [vmem:[#allocation1 + $0x38] sm:$0xff pattern:$0x73625140]  ;;  %vm2264_vm7 = vcmask 1041409   ;;  %vm2253_vm8 = vcmask 1043459   ;;  %vm2249_vm9 = vcmask 1042433   ;;  %vm1898_vm12 = vcmp.ne.s32.totalorder %v1145_v61, %v1822_v63 }
  0x26   :  { %988 = vmatpush.bf16.msrb.mxu0 %v1455_v45  ;;  %v151_v29 = vpack.c.bf16 %v115_v16, %v114_v15  ;;  %v244_v45 = vrot.slane %v1826_v1, 3  ;;  %v1851_v57 = vrot.slane %v150_v17, 7  ;;  %120 = vst [vmem:[#allocation1 + $0x20] ss:$4 sm:$0xff] %v1732_v28  ;;  %v1462_v15 = vld [vmem:[%s2243_s1 + $0x168] sm:$0xff]  ;;  %vm2260_vm10 = vcmask 1045509  }
  0x27   :  { %1002 = vmatpush.bf16.msrb.mxu1 %v1463_v46  ;;  %v1844_v46 = vrot.slane %v149_v2, 6  ;;  %121 = vst [vmem:[#allocation1 + $0x21] ss:$4 sm:$0xff] %v1734_v31  ;;  %vm2261_vm11 = vcmask 1046528   ;;  %vm1905_vm13 = vcmp.ne.s32.totalorder %v1146_v62, %v1824_v0  ;;  %vm2248_vm14 = vcmask 1046533   ;;  %v1469_v44 = vld [vmem:[%s2243_s1 + $0x1a0] sm:$0xff] }
  0x28   :  { %1016 = vmatpush.bf16.msrb.mxu2 %v1471_v51  ;;  %v1847_v51 = vrot.slane %v149_v2, 1  ;;  %v1854_v58 = vrot.slane %v151_v29, 2  ;;  %v1856_v32 = vrot.slane %v151_v29, 5  ;;  %v261_v59 = vsel %vm2256_vm0, %v1826_v1, %v244_v45  ;;  %122 = vst [vmem:[#allocation1 + $0x22] ss:$4 sm:$0xff] %v1738_v33  ;;  %v1454_v33 = vld [vmem:[%s2243_s1 + $0x128] sm:$0xff] }
  0x29   :  { %1030 = vmatpush.bf16.msrb.mxu3 %v1479_v52  ;;  %v1849_v52 = vrot.slane %v150_v17, 4  ;;  %123 = vst [vmem:[#allocation1 + $0x23] ss:$4 sm:$0xff] %v1742_v35  ;;  %v281_v9 = vsel %vm2264_vm7, %v1826_v1, %v244_v45  ;;  %v1470_v35 = vld [vmem:[%s2243_s1 + $0x1a8] sm:$0xff]  ;;  %vm2251_vm15 = vcmask 1044481   ;;  %v308_v41 = vsel %vm2253_vm8, %v1826_v1, %v244_v45  ;;  %v1477_v47 = vld [vmem:[%s2243_s1 + $0x1e0] sm:$0xff] }
  0x2a   :  { %v265_v34 = vsel %vm2255_vm2, %v1844_v46, %v1847_v51  ;;  %v275_v2 = vsel %vm2250_vm4, %v1854_v58, %v1856_v32  ;;  %v283_v10 = vsel %vm2253_vm8, %v1844_v46, %v1847_v51  ;;  %v1478_v29 = vld [vmem:[%s2243_s1 + $0x1e8] sm:$0xff]  ;;  %989 = vmatpush.bf16.msrb.mxu0 %v1454_v33  ;;  %v124_v37 = vld.sshfl [vmem:[#allocation1] sm:$0xff pattern:$0x73625140]  ;;  %v297_v39 = vsel %vm2254_vm3, %v1844_v46, %v1847_v51  ;;  %v1468_v55 = vld [vmem:[%s2243_s1 + $0x198] sm:$0xff] }
  0x2b   :  { %v271_v60 = vsel %vm2254_vm3, %v1849_v52, %v1851_v57  ;;  %v267_v28 = vsel %vm2252_vm1, %v261_v59, %v265_v34  ;;  %v285_v17 = vsel %vm2249_vm9, %v281_v9, %v283_v10  ;;  %1003 = vmatpush.bf16.msrb.mxu1 %v1462_v15  ;;  %v125_v61 = vld.sshfl [vmem:[#allocation1 + $0x8] sm:$0xff pattern:$0x73625140]  ;;  %v126_v9 = vld.sshfl [vmem:[#allocation1 + $0x10] sm:$0xff pattern:$0x73625140]  ;;  %vm1950_vm9 = vcmp.ne.s32.totalorder %v1150_v6, %v1824_v0 }
  0x2c   :  { %v277_v31 = vsel %vm2247_vm5, %v271_v60, %v275_v2  ;;  %v287_v60 = vsel %vm2260_vm10, %v1849_v52, %v1851_v57  ;;  %vm1925_vm5 = vcmp.ne.s32.totalorder %v1148_v4, %v1824_v0  ;;  %1017 = vmatpush.bf16.msrb.mxu2 %v1470_v35  ;;  %v127_v40 = vld.sshfl [vmem:[#allocation1 + $0x18] sm:$0xff pattern:$0x73625140]  ;;  %v1938_v4 = vpack.c.bf16 %v125_v61, %v124_v37  ;;  %v1449_v59 = vld [vmem:[%s2243_s1 + $0x100] sm:$0xff] }
  0x2d   :  { %v1889_v16 = vsel %vm2246_vm6, %v267_v28, %v277_v31  ;;  %v289_v28 = vsel %vm2261_vm11, %v1856_v32, %v1854_v58  ;;  %vm1918_vm6 = vcmp.ne.s32.totalorder %v1147_v3, %v1822_v63  ;;  %v296_v31 = vsel %vm2255_vm2, %v1826_v1, %v244_v45  ;;  %1031 = vmatpush.bf16.msrb.mxu3 %v1478_v29  ;;  %v1453_v1 = vld [vmem:[%s2243_s1 + $0x120] sm:$0xff]  ;;  %v1476_v56 = vld [vmem:[%s2243_s1 + $0x1d8] sm:$0xff] }
  0x2e   :  { %v291_v2 = vsel %vm2248_vm14, %v287_v60, %v289_v28  ;;  %v300_v3 = vsel %vm2250_vm4, %v1849_v52, %v1851_v57  ;;  %vm1943_vm14 = vcmp.ne.s32.totalorder %v1149_v5, %v1822_v63  ;;  %v2314_v10 = vmov 0  ;;  %990 = vmatpush.bf16.msrb.mxu0 %v1453_v1 }
  0x2f   :  { %v2315_v10 = vsel %vm1943_vm14, 4294967295, %v2314_v10  ;;  %v1955_v15 = vsel %vm2251_vm15, %v285_v17, %v291_v2  ;;  %v301_v35 = vsel %vm2256_vm0, %v1854_v58, %v1856_v32  ;;  %v153_v5 = vpack.c.bf16 %v127_v40, %v126_v9  ;;  %1004 = vmatpush.bf16.msrb.mxu1 %v1461_v43 }
  0x30   :  { %vm1965_vm4 = vcmp.ne.s32.totalorder %v1151_v7, %v1822_v63  ;;  %vm1972_vm15 = vcmp.ne.s32.totalorder %v1152_v8, %v1824_v0  ;;  %v295_v17 = vrot.slane %v1955_v15, 1  ;;  %vm2257_vm1 = vcmask 1043458   ;;  %v129_v28 = vld.sshfl [vmem:[#allocation1 + $0x28] sm:$0xff pattern:$0x73625140]  ;;  %1018 = vmatpush.bf16.msrb.mxu2 %v1469_v44  ;;  %v1459_v44 = vld [vmem:[%s2243_s1 + $0x150] sm:$0xff] }
  0x31   :  { %vm2258_vm8 = vcmask 1045504   ;;  %vm1989_vm3 = vcmp.ne.s32.totalorder %v1153_v11, %v1822_v63  ;;  %vm1996_vm2 = vcmp.ne.s32.totalorder %v1154_v12, %v1824_v0  ;;  %v2324_v8 = vmov 0  ;;  %v1460_v11 = vld [vmem:[%s2243_s1 + $0x158] sm:$0xff]  ;;  %v128_v12 = vld.sshfl [vmem:[#allocation1 + $0x20] sm:$0xff pattern:$0x73625140]  ;;  %1032 = vmatpush.bf16.msrb.mxu3 %v1477_v47 }
  0x32   :  { %v2325_v8 = vsel %vm1996_vm2, 4294967295, %v2324_v8  ;;  %v2001_v45 = vrot.slane %v1938_v4, 3  ;;  %v299_v29 = vsel %vm2257_vm1, %v296_v31, %v297_v39  ;;  %v303_v60 = vsel %vm2258_vm8, %v301_v35, %v300_v3  ;;  %v130_v50 = vld.sshfl [vmem:[#allocation1 + $0x30] sm:$0xff pattern:$0x73625140]  ;;  %991 = vmatpush.bf16.msrb.mxu0 %v1452_v48 }
  0x33   :  { %vm2259_vm0 = vcmask 1045506   ;;  %vm2017_vm1 = vcmp.ne.s32.totalorder %v1155_v13, %v1822_v63  ;;  %v2326_v37 = vmov 0  ;;  %vm2024_vm8 = vcmp.ne.s32.totalorder %v1156_v14, %v1824_v0  ;;  %v131_v14 = vld.sshfl [vmem:[#allocation1 + $0x38] sm:$0xff pattern:$0x73625140]  ;;  %v1451_v35 = vld [vmem:[%s2243_s1 + $0x110] sm:$0xff]  ;;  %1005 = vmatpush.bf16.msrb.mxu1 %v1460_v11 }
  0x34   :  { %v2327_v37 = vsel %vm2017_vm1, 4294967295, %v2326_v37  ;;  %v2328_v61 = vmov 0  ;;  %v2029_v2 = vsel %vm2259_vm0, %v299_v29, %v303_v60  ;;  %v309_v31 = vsel %vm2260_vm10, %v1844_v46, %v1847_v51  ;;  %1019 = vmatpush.bf16.msrb.mxu2 %v1468_v55  ;;  %v1467_v48 = vld [vmem:[%s2243_s1 + $0x190] sm:$0xff] }
  0x35   :  { %v2329_v61 = vsel %vm2024_vm8, 4294967295, %v2328_v61  ;;  %v312_v49 = vsel %vm2261_vm11, %v1851_v57, %v1849_v52  ;;  %v313_v13 = vsel %vm2264_vm7, %v1854_v58, %v1856_v32  ;;  %v154_v39 = vpack.c.bf16 %v129_v28, %v128_v12  ;;  %1033 = vmatpush.bf16.msrb.mxu3 %v1476_v56 }
  0x36   :  { %vm2043_vm0 = vcmp.ne.s32.totalorder %v1157_v18, %v1822_v63  ;;  %v2330_v3 = vmov 0  ;;  %vm2050_vm10 = vcmp.ne.s32.totalorder %v1158_v20, %v1824_v0  ;;  %v2332_v46 = vmov 0  ;;  %992 = vmatpush.bf16.msrb.mxu0 %v1451_v35 }
  0x37   :  { %v2331_v3 = vsel %vm2043_vm0, 4294967295, %v2330_v3  ;;  %v2333_v46 = vsel %vm2050_vm10, 4294967295, %v2332_v46  ;;  %vm2334_vm11 = vcmask 1040384   ;;  %v335_v52 = vsel %vm2264_vm7, %v1938_v4, %v2001_v45  ;;  %1006 = vmatpush.bf16.msrb.mxu1 %v1459_v44 }
  0x38   :  { %v322_v51 = vsel %vm2334_vm11, %v1938_v4, %v2001_v45  ;;  %vm2335_vm8 = vcmask 1042434   ;;  %v155_v18 = vpack.c.bf16 %v131_v14, %v130_v50  ;;  %vm2066_vm0 = vcmp.ne.s32.totalorder %v1159_v27, %v1822_v63  ;;  %1020 = vmatpush.bf16.msrb.mxu2 %v1467_v48 }
  0x39   :  { %v344_v53 = vsel %vm2335_vm8, %v1938_v4, %v2001_v45  ;;  %v2336_v54 = vmov 0  ;;  %vm2073_vm11 = vcmp.ne.s32.totalorder %v1160_v36, %v1824_v0  ;;  %v2338_v20 = vmov 0 }
  0x3a   :  { %v2337_v54 = vsel %vm2066_vm0, 4294967295, %v2336_v54  ;;  %v2339_v20 = vsel %vm2073_vm11, 4294967295, %v2338_v20  ;;  %v252_v57 = vrot.slane %v153_v5, 6  ;;  %v253_v58 = vrot.slane %v153_v5, 1 }
  0x3b   :  { %v307_v32 = vrot.slane %v2029_v2, 2  ;;  %v254_v63 = vrot.slane %v154_v39, 4  ;;  %v255_v27 = vrot.slane %v154_v39, 7  ;;  %vm2270_vm8 = vcmask 1044483  }
  0x3c   :  { %vm2269_vm7 = vcmask 1046529   ;;  %v256_v0 = vrot.slane %v155_v18, 2  ;;  %v257_v36 = vrot.slane %v155_v18, 5  ;;  %v311_v9 = vsel %vm2270_vm8, %v308_v41, %v309_v31 }
  0x3d   :  { %v315_v40 = vsel %vm2269_vm7, %v313_v13, %v312_v49  ;;  %vm2272_vm11 = vcmask 1046531   ;;  %vm2340_vm0 = vcmask 1042434   ;;  %vm2341_vm10 = vcmask 1044484   ;;  %v1475_v49 = vld [vmem:[%s2243_s1 + $0x1d0] sm:$0xff] }
  0x3e   :  { %v325_v5 = vsel %vm2340_vm0, %v252_v57, %v253_v58  ;;  %v329_v1 = vsel %vm2341_vm10, %v254_v63, %v255_v27  ;;  %vm2342_vm1 = vcmask 1043459   ;;  %v317_v41 = vsel %vm2272_vm11, %v311_v9, %v315_v40  ;;  %1034 = vmatpush.bf16.msrb.mxu3 %v1475_v49 }
  0x3f   :  { %v336_v43 = vsel %vm2342_vm1, %v252_v57, %v253_v58  ;;  %vm2343_vm8 = vcmask 1041408   ;;  %vm2344_vm2 = vcmask 1046534   ;;  %vm2345_vm0 = vcmask 1042433  }
  0x40   :  { %v326_v29 = vsel %vm2343_vm8, %v322_v51, %v325_v5  ;;  %v332_v60 = vsel %vm2344_vm2, %v256_v0, %v257_v36  ;;  %v337_v47 = vsel %vm2345_vm0, %v335_v52, %v336_v43  ;;  %v319_v11 = vrot.slane %v317_v41, 3  ;;  %v1450_v51 = vld [vmem:[%s2243_s1 + $0x108] sm:$0xff] }
  0x41   :  { %vm2346_vm10 = vcmask 1045508   ;;  %vm2347_vm11 = vcmask 1045509   ;;  %vm2348_vm8 = vcmask 1046528   ;;  %vm2349_vm0 = vcmask 1043456   ;;  %993 = vmatpush.bf16.msrb.mxu0 %v1450_v51 }
  0x42   :  { %v333_v12 = vsel %vm2346_vm10, %v329_v1, %v332_v60  ;;  %v338_v28 = vsel %vm2347_vm11, %v254_v63, %v255_v27  ;;  %v339_v31 = vsel %vm2348_vm8, %v257_v36, %v256_v0  ;;  %vm2350_vm1 = vcmask 1046533   ;;  %vm2352_vm10 = vmmov %vm2344_vm2 }
  0x43   :  { %v334_v13 = vsel %vm2349_vm0, %v326_v29, %v333_v12  ;;  %v340_v50 = vsel %vm2350_vm1, %v338_v28, %v339_v31  ;;  %vm2351_vm7 = vcmask 1044484   ;;  %v347_v39 = vsel %vm2352_vm10, %v254_v63, %v255_v27  ;;  %v1482_v28 = vld [vmem:[%s2244_s2] ss:$0 sm:$0xff] }
  0x44   :  { %v345_v14 = vsel %vm2351_vm7, %v252_v57, %v253_v58  ;;  %vm2353_vm8 = vcmask 1044481   ;;  %vm2354_vm2 = vcmask 1043458   ;;  %vm2355_vm0 = vcmask 1040384  }
  0x45   :  { %v341_v52 = vsel %vm2353_vm8, %v337_v47, %v340_v50  ;;  %v346_v18 = vsel %vm2354_vm2, %v344_v53, %v345_v14  ;;  %v348_v55 = vsel %vm2355_vm0, %v256_v0, %v257_v36  ;;  %vm2356_vm7 = vcmask 1043459   ;;  %v1458_v53 = vld [vmem:[%s2243_s1 + $0x148] sm:$0xff]  ;;  %994 = vmatpush.bf16.msrb.mxu0 %v1449_v59 }
  0x46   :  { %v353_v56 = vsel %vm2356_vm7, %v1938_v4, %v2001_v45  ;;  %vm2357_vm1 = vnez %v2325_v8  ;;  %v343_v9 = vrot.slane %v341_v52, 1  ;;  %vm2358_vm14 = vcmask 1045504   ;;  %v1466_v4 = vld [vmem:[%s2243_s1 + $0x188] sm:$0xff]  ;;  %1007 = vmatpush.bf16.msrb.mxu1 %v1458_v53 }
  0x47   :  { %v349_v40 = vsel %vm2358_vm14, %v348_v55, %v347_v39  ;;  %v354_v35 = vsel %vm2347_vm11, %v252_v57, %v253_v58  ;;  %vm2359_vm8 = vcmask 1046528   ;;  %vm2360_vm2 = vnez %v2327_v37  ;;  %1021 = vmatpush.bf16.msrb.mxu2 %v1466_v4 }
  0x48   :  { %v356_v5 = vsel %vm2359_vm8, %v255_v27, %v254_v63  ;;  %vm2361_vm0 = vnez %v2329_v61  ;;  %vm2362_vm10 = vcmask 1045506   ;;  %vm2363_vm14 = vcmask 1044483   ;;  %vm2365_vm8 = vmpackc.low %vm1905_vm13, %vm1898_vm12  ;;  %v1474_v27 = vld [vmem:[%s2243_s1 + $0x1c8] sm:$0xff] }
  0x49   :  { %v350_v45 = vsel %vm2362_vm10, %v346_v18, %v349_v40  ;;  %v355_v57 = vsel %vm2363_vm14, %v353_v56, %v354_v35  ;;  %vm2364_vm11 = vcmask 1041409   ;;  %v370_v63 = vsel %vm2365_vm8, %v1564_v19, %v1889_v16  ;;  %vm2369_vm12 = vmpackc.low %vm1925_vm5, %vm1918_vm6  ;;  %1035 = vmatpush.bf16.msrb.mxu3 %v1474_v27 }
  0x4a   :  { %v357_v58 = vsel %vm2364_vm11, %v256_v0, %v257_v36  ;;  %vm2366_vm7 = vnez %v2331_v3  ;;  %vm2367_vm10 = vnez %v2333_v46  ;;  %v352_v1 = vrot.slane %v350_v45, 2  ;;  %509 = vst [vmem:[#allocation1] ss:$9 sm:$0xff] %v370_v63 }
  0x4b   :  { %vm228_vm14 = vmpackc.low %vm2367_vm10, %vm2366_vm7  ;;  %vm2368_vm11 = vcmask 1046529   ;;  %v371_v19 = vsel %vm2369_vm12, %v1572_v21, %v295_v17  ;;  %vm2370_vm13 = vnez %v2315_v10  ;;  %vm2373_vm5 = vnez %v2339_v20 }
  0x4c   :  { %v358_v0 = vsel %vm2368_vm11, %v357_v58, %v356_v5  ;;  %vm2371_vm8 = vmpackc.low %vm1950_vm9, %vm2370_vm13  ;;  %vm2372_vm11 = vnez %v2337_v54  ;;  %vm2374_vm12 = vcmask 1046531   ;;  %512 = vst [vmem:[#allocation1 + $0x1] ss:$9 sm:$0xff] %v371_v19  ;;  %v376_v10 = vsel %vm228_vm14, %v1597_v26, %v352_v1 }
  0x4d   :  { %v372_v16 = vsel %vm2371_vm8, %v1577_v22, %v307_v32  ;;  %vm235_vm6 = vmpackc.low %vm2373_vm5, %vm2372_vm11  ;;  %v359_v21 = vsel %vm2374_vm12, %v355_v57, %v358_v0  ;;  %527 = vst [vmem:[#allocation1 + $0x6] ss:$9 sm:$0xff] %v376_v10 }
  0x4e   :  { %vm2375_vm9 = vmpackc.low %vm1972_vm15, %vm1965_vm4  ;;  %v361_v38 = vrot.slane %v359_v21, 3  ;;  %515 = vst [vmem:[#allocation1 + $0x2] ss:$9 sm:$0xff] %v372_v16 }
  0x4f   :  { %v373_v22 = vsel %vm2375_vm9, %v1582_v23, %v319_v11  ;;  %vm2376_vm13 = vmpackc.low %vm2357_vm1, %vm1989_vm3  ;;  %v1457_v23 = vld [vmem:[%s2243_s1 + $0x140] sm:$0xff]  ;;  %vm2378_vm3 = vcmask 1040384  }
  0x50   :  { %v374_v34 = vsel %vm2376_vm13, %v1587_v24, %v334_v13  ;;  %vm2377_vm8 = vmpackc.low %vm2361_vm0, %vm2360_vm2  ;;  %v1465_v24 = vld [vmem:[%s2243_s1 + $0x180] sm:$0xff]  ;;  %518 = vst [vmem:[#allocation1 + $0x3] ss:$9 sm:$0xff] %v373_v22  ;;  %v377_v33 = vsel %vm235_vm6, %v1609_v30, %v361_v38  ;;  %1008 = vmatpush.bf16.msrb.mxu1 %v1457_v23 }
  0x51   :  { %v375_v62 = vsel %vm2377_vm8, %v1592_v25, %v343_v9  ;;  %v1473_v25 = vld [vmem:[%s2243_s1 + $0x1c0] sm:$0xff]  ;;  %521 = vst [vmem:[#allocation1 + $0x4] ss:$9 sm:$0xff] %v374_v34  ;;  %1022 = vmatpush.bf16.msrb.mxu2 %v1465_v24 }
  0x52   :  { %524 = vst [vmem:[#allocation1 + $0x5] ss:$9 sm:$0xff] %v375_v62  ;;  %1036 = vmatpush.bf16.msrb.mxu3 %v1473_v25 }
  0x53   :  { %530 = vst [vmem:[#allocation1 + $0x7] ss:$9 sm:$0xff] %v377_v33 }
  0x5a   :  { %v533_v26 = vld [vmem:[#allocation1 + $0x12] sm:$0xff]  ;;  %v531_v15 = vld [vmem:[#allocation1] sm:$0xff]  ;;  %v532_v42 = vld [vmem:[#allocation1 + $0x9] sm:$0xff] }
  0x5b   :  { %967 = vmatmul.bf16.vlgmr.msra.gmra.mxu2 %v533_v26  ;;  %939 = vmatmul.bf16.vlgmr.msra.gmra.mxu0 %v531_v15  ;;  %v534_v6 = vld [vmem:[#allocation1 + $0x1b] sm:$0xff]  ;;  %v535_v17 = vld [vmem:[#allocation1 + $0x24] sm:$0xff]  ;;  %v536_v8 = vld [vmem:[#allocation1 + $0x2d] sm:$0xff] }
  0x5c   :  { %953 = vmatmul.bf16.vlgmr.msra.gmra.mxu1 %v532_v42  ;;  %981 = vmatmul.bf16.vlgmr.msra.gmra.mxu3 %v534_v6  ;;  %v537_v7 = vld [vmem:[#allocation1 + $0x36] sm:$0xff]  ;;  %v538_v30 = vld [vmem:[#allocation1 + $0x3f] sm:$0xff] }
  0x6b   :  { %995 = vmatmul.bf16.vlgmr.msrb.gmra.mxu0 %v535_v17  ;;  %1023 = vmatmul.bf16.vlgmr.msrb.gmra.mxu2 %v537_v7 }
  0x6c   :  { %1009 = vmatmul.bf16.vlgmr.msrb.gmra.mxu1 %v536_v8  ;;  %1037 = vmatmul.bf16.vlgmr.msrb.gmra.mxu3 %v538_v30 }
  0xd8   :  { %v940_v37 = vpop.f32.mrf.mxu0 }
  0xd9   :  { %v954_v61 = vpop.f32.mrf.mxu1 }
  0xda   :  { %v955_v3 = vadd.f32 %v954_v61, %v940_v37 }
  0xde   :  { %v968_v2 = vpop.f32.mrf.mxu2 }
  0xdf   :  { %v982_v46 = vpop.f32.mrf.mxu3  ;;  %v969_v32 = vadd.f32 %v968_v2, %v955_v3 }
  0xe0   :  { %v942_v54 = vpop.f32.mrf.mxu0 }
  0xe1   :  { %v956_v20 = vpop.f32.mrf.mxu1  ;;  %v983_v43 = vadd.f32 %v982_v46, %v969_v32 }
  0xe6   :  { %v970_v36 = vpop.f32.mrf.mxu2 }
  0xe7   :  { %v984_v44 = vpop.f32.mrf.mxu3 }
  0xe8   :  { %v996_v41 = vpop.f32.mrf.mxu0 }
  0xe9   :  { %v997_v29 = vadd.f32 %v996_v41, %v983_v43  ;;  %v1010_v60 = vpop.f32.mrf.mxu1 }
  0xeb   :  { %v1011_v47 = vadd.f32 %v1010_v60, %v997_v29 }
  0xee   :  { %v1024_v48 = vpop.f32.mrf.mxu2 }
  0xef   :  { %v1025_v11 = vadd.f32 %v1024_v48, %v1011_v47  ;;  %v1038_v12 = vpop.f32.mrf.mxu3 }
  0xf0   :  { %v998_v31 = vpop.f32.mrf.mxu0 }
  0xf1   :  { %v1039_v49 = vadd.f32 %v1038_v12, %v1025_v11  ;;  %v1012_v50 = vpop.f32.mrf.mxu1 }
  0xf3   :  { %v1056_v13 = vadd.f32 %v1482_v28, %v1039_v49 }
  0xf5   :  { %v1058_v14 = vpack.c.bf16 %v1056_v13, %v1056_v13 }
  0xf6   :  { %v1026_v39 = vpop.f32.mrf.mxu2 }
  0xf7   :  { %v1062_v51 = vrot.slane %v1058_v14, 3  ;;  %v1040_v18 = vpop.f32.mrf.mxu3 }
  0xf9   :  { %v1066_v52 = vsel %vm2378_vm3, %v1058_v14, %v1062_v51 }
  0xfa   :  { %1096 = vst [vmem:[#allocation3] sm:$0x1] %v1066_v52 }
 0x101   :  { %v1122_v55 = vld [vmem:[#allocation3] sm:$0x1] }
 0x102   :  { %1123 = vst [vmem:[%s2245_s3] sm:$0x1] %v1122_v55 }

// kernel: _lambda_.38
= control target key start
LH: loop header
LB: loop body
LE: loop exit
PB: predicated region body
PF: predicated region fallthrough
CT: control target
= control target key end

     0   :  { %s815_s0 = inlined_call_operand.vmem [shape: bf16[18,512], index: 0, kind: input, shape index: {}]   ;;  %s816_s1 = inlined_call_operand.vmem [shape: bf16[512,128], index: 1, kind: input, shape index: {}]   ;;  %s817_s2 = inlined_call_operand.vmem [shape: f32[1,128], index: 2, kind: input, shape index: {}]   ;;  %s818_s3 = inlined_call_operand.vmem [shape: bf16[18,128], index: 3, kind: output, shape index: {}]  }
   0x1   :  { %v629_v0 = vld [vmem:[%s816_s1 + $0x38] sm:$0xff]  ;;  %v628_v4 = vld [vmem:[%s816_s1 + $0x30] sm:$0xff]  ;;  %v627_v8 = vld [vmem:[%s816_s1 + $0x28] sm:$0xff] }
   0x2   :  { %v637_v1 = vld [vmem:[%s816_s1 + $0x78] sm:$0xff]  ;;  %330 = vmatpush.bf16.msra.mxu0 %v629_v0  ;;  %v636_v5 = vld [vmem:[%s816_s1 + $0x70] sm:$0xff]  ;;  %v635_v9 = vld [vmem:[%s816_s1 + $0x68] sm:$0xff] }
   0x3   :  { %v645_v2 = vld [vmem:[%s816_s1 + $0xb8] sm:$0xff]  ;;  %349 = vmatpush.bf16.msra.mxu1 %v637_v1  ;;  %v644_v6 = vld [vmem:[%s816_s1 + $0xb0] sm:$0xff]  ;;  %v643_v10 = vld [vmem:[%s816_s1 + $0xa8] sm:$0xff] }
   0x4   :  { %v653_v3 = vld [vmem:[%s816_s1 + $0xf8] sm:$0xff]  ;;  %368 = vmatpush.bf16.msra.mxu2 %v645_v2  ;;  %v652_v7 = vld [vmem:[%s816_s1 + $0xf0] sm:$0xff]  ;;  %v651_v11 = vld [vmem:[%s816_s1 + $0xe8] sm:$0xff] }
   0x5   :  { %387 = vmatpush.bf16.msra.mxu3 %v653_v3  ;;  %v626_v12 = vld [vmem:[%s816_s1 + $0x20] sm:$0xff]  ;;  %v625_v16 = vld [vmem:[%s816_s1 + $0x18] sm:$0xff]  ;;  %v624_v20 = vld [vmem:[%s816_s1 + $0x10] sm:$0xff] }
   0x6   :  { %331 = vmatpush.bf16.msra.mxu0 %v628_v4  ;;  %v634_v13 = vld [vmem:[%s816_s1 + $0x60] sm:$0xff]  ;;  %v633_v17 = vld [vmem:[%s816_s1 + $0x58] sm:$0xff]  ;;  %v632_v21 = vld [vmem:[%s816_s1 + $0x50] sm:$0xff] }
   0x7   :  { %350 = vmatpush.bf16.msra.mxu1 %v636_v5  ;;  %v642_v14 = vld [vmem:[%s816_s1 + $0xa0] sm:$0xff]  ;;  %v641_v18 = vld [vmem:[%s816_s1 + $0x98] sm:$0xff]  ;;  %v640_v22 = vld [vmem:[%s816_s1 + $0x90] sm:$0xff] }
   0x8   :  { %369 = vmatpush.bf16.msra.mxu2 %v644_v6  ;;  %v650_v15 = vld [vmem:[%s816_s1 + $0xe0] sm:$0xff]  ;;  %v649_v19 = vld [vmem:[%s816_s1 + $0xd8] sm:$0xff]  ;;  %v24_v24 = vld [vmem:[%s815_s0 + $0x10] sm:$0xff] }
   0x9   :  { %388 = vmatpush.bf16.msra.mxu3 %v652_v7  ;;  %v22_v23 = vld [vmem:[%s815_s0] sm:$0xff]  ;;  %v648_v25 = vld [vmem:[%s816_s1 + $0xd0] sm:$0xff]  ;;  %v23_v26 = vld [vmem:[%s815_s0 + $0x8] sm:$0xff]  ;;  %v34_v29 = vunpack.c.l.bf16 %v24_v24  ;;  %v35_v31 = vunpack.c.h.bf16 %v24_v24 }
   0xa   :  { %332 = vmatpush.bf16.msra.mxu0 %v627_v8  ;;  %v25_v27 = vld [vmem:[%s815_s0 + $0x18] sm:$0xff]  ;;  %v30_v28 = vunpack.c.l.bf16 %v22_v23  ;;  %v31_v30 = vunpack.c.h.bf16 %v22_v23  ;;  %v623_v32 = vld [vmem:[%s816_s1 + $0x8] sm:$0xff]  ;;  %v32_v34 = vunpack.c.l.bf16 %v23_v26  ;;  %v33_v36 = vunpack.c.h.bf16 %v23_v26  ;;  %v622_v44 = vld [vmem:[%s816_s1] sm:$0xff] }
   0xb   :  { %351 = vmatpush.bf16.msra.mxu1 %v635_v9  ;;  %v631_v33 = vld [vmem:[%s816_s1 + $0x48] sm:$0xff]  ;;  %v36_v35 = vunpack.c.l.bf16 %v25_v27  ;;  %v37_v37 = vunpack.c.h.bf16 %v25_v27  ;;  %v50_v41 = vmax.f32 %v34_v29, 0.0  ;;  %v51_v43 = vmax.f32 %v35_v31, 0.0  ;;  %v630_v45 = vld [vmem:[%s816_s1 + $0x40] sm:$0xff]  ;;  %v28_v57 = vld [vmem:[%s815_s0 + $0x30] sm:$0xff] }
   0xc   :  { %370 = vmatpush.bf16.msra.mxu2 %v643_v10  ;;  %v639_v38 = vld [vmem:[%s816_s1 + $0x88] sm:$0xff]  ;;  %v46_v40 = vmax.f32 %v30_v28, 0.0  ;;  %v47_v42 = vmax.f32 %v31_v30, 0.0  ;;  %v48_v46 = vmax.f32 %v32_v34, 0.0  ;;  %v49_v48 = vmax.f32 %v33_v36, 0.0  ;;  %v638_v50 = vld [vmem:[%s816_s1 + $0x80] sm:$0xff] }
   0xd   :  { %389 = vmatpush.bf16.msra.mxu3 %v651_v11  ;;  %v647_v39 = vld [vmem:[%s816_s1 + $0xc8] sm:$0xff]  ;;  %v52_v47 = vmax.f32 %v36_v35, 0.0  ;;  %v53_v49 = vmax.f32 %v37_v37, 0.0  ;;  %v646_v51 = vld [vmem:[%s816_s1 + $0xc0] sm:$0xff]  ;;  %v29_v59 = vld [vmem:[%s815_s0 + $0x38] sm:$0xff]  ;;  %v42_v61 = vunpack.c.l.bf16 %v28_v57  ;;  %v43_v63 = vunpack.c.h.bf16 %v28_v57 }
   0xe   :  { %333 = vmatpush.bf16.msra.mxu0 %v626_v12  ;;  %v62_v52 = vpack.c.bf16 %v50_v41, %v46_v40  ;;  %v63_v53 = vpack.c.bf16 %v51_v43, %v47_v42  ;;  %v26_v56 = vld [vmem:[%s815_s0 + $0x20] sm:$0xff]  ;;  %v27_v58 = vld [vmem:[%s815_s0 + $0x28] sm:$0xff]  ;;  %v44_v1 = vunpack.c.l.bf16 %v29_v59  ;;  %v45_v3 = vunpack.c.h.bf16 %v29_v59 }
   0xf   :  { %352 = vmatpush.bf16.msra.mxu1 %v634_v13  ;;  %v64_v54 = vpack.c.bf16 %v52_v47, %v48_v46  ;;  %v65_v55 = vpack.c.bf16 %v53_v49, %v49_v48  ;;  %v38_v60 = vunpack.c.l.bf16 %v26_v56  ;;  %v39_v62 = vunpack.c.h.bf16 %v26_v56  ;;  %v665_v28 = vld [vmem:[%s817_s2] ss:$0 sm:$0xff] }
  0x10   :  { %371 = vmatpush.bf16.msra.mxu2 %v642_v14  ;;  %v40_v0 = vunpack.c.l.bf16 %v27_v58  ;;  %v41_v2 = vunpack.c.h.bf16 %v27_v58  ;;  %v58_v5 = vmax.f32 %v42_v61, 0.0  ;;  %v59_v7 = vmax.f32 %v43_v63, 0.0 }
  0x11   :  { %390 = vmatpush.bf16.msra.mxu3 %v650_v15  ;;  %v54_v4 = vmax.f32 %v38_v60, 0.0  ;;  %v55_v6 = vmax.f32 %v39_v62, 0.0  ;;  %v60_v9 = vmax.f32 %v44_v1, 0.0  ;;  %v61_v11 = vmax.f32 %v45_v3, 0.0 }
  0x12   :  { %334 = vmatpush.bf16.msra.mxu0 %v625_v16  ;;  %v56_v8 = vmax.f32 %v40_v0, 0.0  ;;  %v57_v10 = vmax.f32 %v41_v2, 0.0 }
  0x13   :  { %353 = vmatpush.bf16.msra.mxu1 %v633_v17  ;;  %v66_v12 = vpack.c.bf16 %v58_v5, %v54_v4  ;;  %v67_v13 = vpack.c.bf16 %v59_v7, %v55_v6 }
  0x14   :  { %372 = vmatpush.bf16.msra.mxu2 %v641_v18  ;;  %v68_v14 = vpack.c.bf16 %v60_v9, %v56_v8  ;;  %v69_v15 = vpack.c.bf16 %v61_v11, %v57_v10 }
  0x15   :  { %391 = vmatpush.bf16.msra.mxu3 %v649_v19 }
  0x16   :  { %335 = vmatpush.bf16.msra.mxu0 %v624_v20 }
  0x17   :  { %354 = vmatpush.bf16.msra.mxu1 %v632_v21 }
  0x18   :  { %373 = vmatpush.bf16.msra.mxu2 %v640_v22 }
  0x19   :  { %392 = vmatpush.bf16.msra.mxu3 %v648_v25 }
  0x1a   :  { %336 = vmatpush.bf16.msra.mxu0 %v623_v32 }
  0x1b   :  { %355 = vmatpush.bf16.msra.mxu1 %v631_v33 }
  0x1c   :  { %374 = vmatpush.bf16.msra.mxu2 %v639_v38 }
  0x1d   :  { %393 = vmatpush.bf16.msra.mxu3 %v647_v39 }
  0x1e   :  { %337 = vmatpush.bf16.msra.mxu0 %v622_v44 }
  0x1f   :  { %356 = vmatpush.bf16.msra.mxu1 %v630_v45 }
  0x20   :  { %375 = vmatpush.bf16.msra.mxu2 %v638_v50 }
  0x21   :  { %394 = vmatpush.bf16.msra.mxu3 %v646_v51  ;;  %338 = vmatmul.bf16.vlgmr.msra.gmra.mxu0 %v62_v52 }
  0x22   :  { %357 = vmatmul.bf16.vlgmr.msra.gmra.mxu1 %v63_v53 }
  0x23   :  { %376 = vmatmul.bf16.vlgmr.msra.gmra.mxu2 %v64_v54 }
  0x24   :  { %395 = vmatmul.bf16.vlgmr.msra.gmra.mxu3 %v65_v55 }
  0x31   :  { %343 = vmatmul.bf16.gmra.mxu0 %v66_v12 }
  0x32   :  { %362 = vmatmul.bf16.gmra.mxu1 %v67_v13 }
  0x33   :  { %381 = vmatmul.bf16.gmra.mxu2 %v68_v14 }
  0x34   :  { %400 = vmatmul.bf16.gmra.mxu3 %v69_v15 }
  0x9e   :  { %v339_v16 = vpop.f32.mrf.mxu0 }
  0x9f   :  { %v358_v17 = vpop.f32.mrf.mxu1 }
  0xa0   :  { %v359_v20 = vadd.f32 %v358_v17, %v339_v16 }
  0xa6   :  { %v377_v18 = vpop.f32.mrf.mxu2  ;;  %v341_v21 = vpop.f32.mrf.mxu0 }
  0xa7   :  { %v396_v19 = vpop.f32.mrf.mxu3  ;;  %v360_v22 = vpop.f32.mrf.mxu1  ;;  %v378_v23 = vadd.f32 %v377_v18, %v359_v20 }
  0xa8   :  { %v361_v24 = vadd.f32 %v360_v22, %v341_v21 }
  0xa9   :  { %v397_v27 = vadd.f32 %v396_v19, %v378_v23 }
  0xab   :  { %v425_v33 = vadd.f32 %v665_v28, %v397_v27 }
  0xae   :  { %v379_v25 = vpop.f32.mrf.mxu2  ;;  %v344_v30 = vpop.f32.mrf.mxu0 }
  0xaf   :  { %v398_v26 = vpop.f32.mrf.mxu3  ;;  %v380_v29 = vadd.f32 %v379_v25, %v361_v24  ;;  %v363_v31 = vpop.f32.mrf.mxu1 }
  0xb0   :  { %v364_v38 = vadd.f32 %v363_v31, %v344_v30 }
  0xb1   :  { %v399_v32 = vadd.f32 %v398_v26, %v380_v29 }
  0xb3   :  { %v426_v34 = vadd.f32 %v665_v28, %v399_v32 }
  0xb5   :  { %v657_v35 = vpack.c.bf16 %v426_v34, %v425_v33 }
  0xb6   :  { %v382_v36 = vpop.f32.mrf.mxu2  ;;  %v346_v39 = vpop.f32.mrf.mxu0 }
  0xb7   :  { %v401_v37 = vpop.f32.mrf.mxu3  ;;  %658 = vst [vmem:[#allocation3] sm:$0xff] %v657_v35   ;;  %v365_v40 = vpop.f32.mrf.mxu1  ;;  %v383_v41 = vadd.f32 %v382_v36, %v364_v38 }
  0xb8   :  { %v366_v42 = vadd.f32 %v365_v40, %v346_v39 }
  0xb9   :  { %v402_v45 = vadd.f32 %v401_v37, %v383_v41 }
  0xbb   :  { %v427_v49 = vadd.f32 %v665_v28, %v402_v45 }
  0xbe   :  { %v455_v43 = vld [vmem:[#allocation3] sm:$0xff]   ;;  %v384_v44 = vpop.f32.mrf.mxu2 }
  0xbf   :  { %456 = vst [vmem:[%s818_s3] sm:$0xff] %v455_v43   ;;  %v385_v46 = vadd.f32 %v384_v44, %v366_v42  ;;  %v403_v47 = vpop.f32.mrf.mxu3 }
  0xc1   :  { %v404_v48 = vadd.f32 %v403_v47, %v385_v46 }
  0xc3   :  { %v428_v50 = vadd.f32 %v665_v28, %v404_v48 }
  0xc5   :  { %v662_v51 = vpack.c.bf16 %v428_v50, %v427_v49 }
  0xc7   :  { %664 = vst [vmem:[#allocation3 + $0x8] sm:$0xff] %v662_v51  }
  0xce   :  { %v459_v52 = vld [vmem:[#allocation3 + $0x8] sm:$0xf] }
  0xcf   :  { %460 = vst [vmem:[%s818_s3 + $0x8] sm:$0xf] %v459_v52 }

// kernel: _lambda_.40
= control target key start
LH: loop header
LB: loop body
LE: loop exit
PB: predicated region body
PF: predicated region fallthrough
CT: control target
= control target key end

     0   :  { %s125_s17 = smov 32   ;;  %vm73_vm0 = vcmask 261120   ;;  %vm94_vm1 = vcmask 519168   ;;  %s181_s3 = inlined_call_operand.vmem [shape: bf16[32,32], index: 3, kind: input, shape index: {}]   ;;  %s182_s1 = inlined_call_operand.vmem [shape: f32[1,32], index: 1, kind: input, shape index: {}]   ;;  %s183_s2 = inlined_call_operand.vmem [shape: f32[1,32], index: 2, kind: input, shape index: {}]   ;;  %s184_s0 = inlined_call_operand.vmem [shape: bf16[32,32], index: 0, kind: input, shape index: {}]   ;;  %s185_s4 = inlined_call_operand.vmem [shape: bf16[32,64], index: 4, kind: output, shape index: {}]  }
   0x1   :  { %v111_v0 = vld [vmem:[%s181_s3] sm:$0xff]  ;;  %v112_v1 = vld [vmem:[%s181_s3 + $0x8] sm:$0xff] }
   0x2   :  { %69 = vrot.lane.b32.xlu0 %v111_v0, %s125_s17  ;;  %v114_v2 = vld [vmem:[%s184_s0] sm:$0xff]   ;;  %v121_v9 = vld [vmem:[%s184_s0 + $0x8] sm:$0xff]  }
   0x3   :  { %v115_v3 = vunpack.c.l.bf16 %v114_v2  ;;  %v116_v4 = vunpack.c.h.bf16 %v114_v2  ;;  %v123_v5 = vld [vmem:[%s182_s1] ss:$0 sm:$0xff]  ;;  %v119_v12 = vunpack.c.l.bf16 %v121_v9  ;;  %v120_v13 = vunpack.c.h.bf16 %v121_v9 }
   0x4   :  { %v124_v8 = vld [vmem:[%s183_s2] ss:$0 sm:$0xff] }
   0x5   :  { %v29_v6 = vmul.f32 %v123_v5, %v115_v3  ;;  %v30_v7 = vmul.f32 %v123_v5, %v116_v4  ;;  %v31_v16 = vmul.f32 %v123_v5, %v119_v12  ;;  %v32_v17 = vmul.f32 %v123_v5, %v120_v13 }
   0x7   :  { %v37_v10 = vadd.f32 %v124_v8, %v29_v6  ;;  %v38_v11 = vadd.f32 %v124_v8, %v30_v7  ;;  %v39_v20 = vadd.f32 %v124_v8, %v31_v16  ;;  %v40_v21 = vadd.f32 %v124_v8, %v32_v17 }
   0x9   :  { %v41_v14 = vpack.c.bf16 %v37_v10, %v37_v10  ;;  %v42_v15 = vpack.c.bf16 %v38_v11, %v38_v11  ;;  %v43_v23 = vpack.c.bf16 %v39_v20, %v39_v20  ;;  %v44_v24 = vpack.c.bf16 %v40_v21, %v40_v21 }
   0xa   :  { %71 = vrot.lane.b32.xlu0 %v112_v1, %s125_s17 }
   0xb   :  { %v53_v18 = vunpack.c.l.b16 %v41_v14  ;;  %v54_v19 = vunpack.c.l.b16 %v42_v15  ;;  %v55_v27 = vunpack.c.l.b16 %v43_v23  ;;  %v56_v28 = vunpack.c.l.b16 %v44_v24 }
   0xd   :  { %v57_v22 = vpack.c.b16 %v54_v19, %v53_v18  ;;  %v58_v33 = vpack.c.b16 %v56_v28, %v55_v27 }
  0x74   :  { %v70_v25 = vpop.permute.xlu0 %69 }
  0x75   :  { %v76_v26 = vsel %vm73_vm0, %v57_v22, %v70_v25 }
  0x76   :  { %v82_v29 = vunpack.c.l.b16 %v76_v26  ;;  %v83_v30 = vunpack.c.h.b16 %v76_v26 }
  0x78   :  { %v86_v31 = vpack.c.b16 %v82_v29, %v82_v29  ;;  %v87_v32 = vpack.c.b16 %v83_v30, %v83_v30 }
  0x7a   :  { %95 = vst.msk [vmem:[%s185_s4] sm:$0xf] %vm94_vm1, %v86_v31 }
  0x7b   :  { %96 = vst.msk [vmem:[%s185_s4 + $0x4] sm:$0xf] %vm94_vm1, %v87_v32 }
  0x7c   :  { %v72_v34 = vpop.permute.xlu0 %71 }
  0x7d   :  { %v79_v35 = vsel %vm73_vm0, %v58_v33, %v72_v34 }
  0x7e   :  { %v84_v36 = vunpack.c.l.b16 %v79_v35  ;;  %v85_v37 = vunpack.c.h.b16 %v79_v35 }
  0x80   :  { %v88_v38 = vpack.c.b16 %v84_v36, %v84_v36  ;;  %v89_v39 = vpack.c.b16 %v85_v37, %v85_v37 }
  0x82   :  { %97 = vst.msk [vmem:[%s185_s4 + $0x8] sm:$0xf] %vm94_vm1, %v88_v38 }
  0x83   :  { %98 = vst.msk [vmem:[%s185_s4 + $0xc] sm:$0xf] %vm94_vm1, %v89_v39 }

// kernel: _lambda_.41
= control target key start
LH: loop header
LB: loop body
LE: loop exit
PB: predicated region body
PF: predicated region fallthrough
CT: control target
= control target key end

     0   :  { %s623_s0 = inlined_call_operand.vmem [shape: bf16[50,256], index: 0, kind: input, shape index: {}]   ;;  %s624_s1 = inlined_call_operand.vmem [shape: bf16[256,128], index: 1, kind: input, shape index: {}]   ;;  %s625_s2 = inlined_call_operand.vmem [shape: f32[1,128], index: 2, kind: input, shape index: {}]   ;;  %s626_s3 = inlined_call_operand.vmem [shape: bf16[50,128], index: 3, kind: output, shape index: {}]  }
   0x1   :  { %v467_v0 = vld [vmem:[%s624_s1 + $0x38] sm:$0xff]  ;;  %v466_v2 = vld [vmem:[%s624_s1 + $0x30] sm:$0xff]  ;;  %v465_v4 = vld [vmem:[%s624_s1 + $0x28] sm:$0xff] }
   0x2   :  { %v475_v1 = vld [vmem:[%s624_s1 + $0x78] sm:$0xff]  ;;  %210 = vmatpush.bf16.msra.mxu0 %v467_v0  ;;  %499 = vmatpush.bf16.msra.mxu2 %v467_v0  ;;  %v474_v3 = vld [vmem:[%s624_s1 + $0x70] sm:$0xff]  ;;  %v473_v5 = vld [vmem:[%s624_s1 + $0x68] sm:$0xff] }
   0x3   :  { %239 = vmatpush.bf16.msra.mxu1 %v475_v1  ;;  %507 = vmatpush.bf16.msra.mxu3 %v475_v1  ;;  %v464_v6 = vld [vmem:[%s624_s1 + $0x20] sm:$0xff]  ;;  %v463_v8 = vld [vmem:[%s624_s1 + $0x18] sm:$0xff]  ;;  %v462_v10 = vld [vmem:[%s624_s1 + $0x10] sm:$0xff] }
   0x4   :  { %v472_v7 = vld [vmem:[%s624_s1 + $0x60] sm:$0xff]  ;;  %v471_v9 = vld [vmem:[%s624_s1 + $0x58] sm:$0xff]  ;;  %v27_v12 = vld [vmem:[%s623_s0 + $0x8] sm:$0xff] }
   0x5   :  { %v26_v11 = vld [vmem:[%s623_s0] sm:$0xff]  ;;  %v31_v14 = vld [vmem:[%s623_s0 + $0x28] sm:$0xff]  ;;  %v470_v15 = vld [vmem:[%s624_s1 + $0x50] sm:$0xff]  ;;  %v36_v17 = vunpack.c.l.bf16 %v27_v12  ;;  %v37_v22 = vunpack.c.h.bf16 %v27_v12 }
   0x6   :  { %211 = vmatpush.bf16.msra.mxu0 %v466_v2  ;;  %500 = vmatpush.bf16.msra.mxu2 %v466_v2  ;;  %v30_v13 = vld [vmem:[%s623_s0 + $0x20] sm:$0xff]  ;;  %v34_v16 = vunpack.c.l.bf16 %v26_v11  ;;  %v44_v19 = vunpack.c.l.bf16 %v31_v14  ;;  %v461_v20 = vld [vmem:[%s624_s1 + $0x8] sm:$0xff]  ;;  %v35_v21 = vunpack.c.h.bf16 %v26_v11  ;;  %v45_v24 = vunpack.c.h.bf16 %v31_v14  ;;  %v28_v40 = vld [vmem:[%s623_s0 + $0x10] sm:$0xff] }
   0x7   :  { %240 = vmatpush.bf16.msra.mxu1 %v474_v3  ;;  %508 = vmatpush.bf16.msra.mxu3 %v474_v3  ;;  %v42_v18 = vunpack.c.l.bf16 %v30_v13  ;;  %v43_v23 = vunpack.c.h.bf16 %v30_v13  ;;  %v469_v25 = vld [vmem:[%s624_s1 + $0x48] sm:$0xff]  ;;  %v52_v27 = vmax.f32 %v36_v17, 0.0  ;;  %v460_v30 = vld [vmem:[%s624_s1] sm:$0xff]  ;;  %v53_v32 = vmax.f32 %v37_v22, 0.0  ;;  %v29_v41 = vld [vmem:[%s623_s0 + $0x18] sm:$0xff] }
   0x8   :  { %v50_v26 = vmax.f32 %v34_v16, 0.0  ;;  %v60_v29 = vmax.f32 %v44_v19, 0.0  ;;  %v51_v31 = vmax.f32 %v35_v21, 0.0  ;;  %v61_v34 = vmax.f32 %v45_v24, 0.0  ;;  %v468_v35 = vld [vmem:[%s624_s1 + $0x40] sm:$0xff]  ;;  %v32_v42 = vld [vmem:[%s623_s0 + $0x30] sm:$0xff] }
   0x9   :  { %v58_v28 = vmax.f32 %v42_v18, 0.0  ;;  %v59_v33 = vmax.f32 %v43_v23, 0.0  ;;  %v33_v43 = vld [vmem:[%s623_s0 + $0x38] sm:$0xff]  ;;  %v38_v44 = vunpack.c.l.bf16 %v28_v40  ;;  %v40_v45 = vunpack.c.l.bf16 %v29_v41 }
   0xa   :  { %212 = vmatpush.bf16.msra.mxu0 %v465_v4  ;;  %501 = vmatpush.bf16.msra.mxu2 %v465_v4  ;;  %v66_v36 = vpack.c.bf16 %v52_v27, %v50_v26  ;;  %v67_v38 = vpack.c.bf16 %v53_v32, %v51_v31  ;;  %v46_v46 = vunpack.c.l.bf16 %v32_v42  ;;  %v48_v47 = vunpack.c.l.bf16 %v33_v43 }
   0xb   :  { %241 = vmatpush.bf16.msra.mxu1 %v473_v5  ;;  %509 = vmatpush.bf16.msra.mxu3 %v473_v5  ;;  %v70_v37 = vpack.c.bf16 %v60_v29, %v58_v28  ;;  %v71_v39 = vpack.c.bf16 %v61_v34, %v59_v33  ;;  %v39_v48 = vunpack.c.h.bf16 %v28_v40  ;;  %v41_v49 = vunpack.c.h.bf16 %v29_v41  ;;  %v515_v5 = vld [vmem:[%s625_s2] ss:$0 sm:$0xff] }
   0xc   :  { %v47_v50 = vunpack.c.h.bf16 %v32_v42  ;;  %v49_v51 = vunpack.c.h.bf16 %v33_v43  ;;  %v54_v52 = vmax.f32 %v38_v44, 0.0  ;;  %v56_v53 = vmax.f32 %v40_v45, 0.0 }
   0xd   :  { %v62_v54 = vmax.f32 %v46_v46, 0.0  ;;  %v64_v55 = vmax.f32 %v48_v47, 0.0  ;;  %v55_v56 = vmax.f32 %v39_v48, 0.0  ;;  %v57_v57 = vmax.f32 %v41_v49, 0.0 }
   0xe   :  { %213 = vmatpush.bf16.msra.mxu0 %v464_v6  ;;  %502 = vmatpush.bf16.msra.mxu2 %v464_v6  ;;  %v63_v58 = vmax.f32 %v47_v50, 0.0  ;;  %v65_v59 = vmax.f32 %v49_v51, 0.0  ;;  %v68_v60 = vpack.c.bf16 %v56_v53, %v54_v52 }
   0xf   :  { %242 = vmatpush.bf16.msra.mxu1 %v472_v7  ;;  %510 = vmatpush.bf16.msra.mxu3 %v472_v7  ;;  %v72_v61 = vpack.c.bf16 %v64_v55, %v62_v54  ;;  %v69_v62 = vpack.c.bf16 %v57_v57, %v55_v56 }
  0x10   :  { %v73_v63 = vpack.c.bf16 %v65_v59, %v63_v58 }
  0x12   :  { %214 = vmatpush.bf16.msra.mxu0 %v463_v8  ;;  %503 = vmatpush.bf16.msra.mxu2 %v463_v8 }
  0x13   :  { %243 = vmatpush.bf16.msra.mxu1 %v471_v9  ;;  %511 = vmatpush.bf16.msra.mxu3 %v471_v9 }
  0x16   :  { %215 = vmatpush.bf16.msra.mxu0 %v462_v10  ;;  %504 = vmatpush.bf16.msra.mxu2 %v462_v10 }
  0x17   :  { %244 = vmatpush.bf16.msra.mxu1 %v470_v15  ;;  %512 = vmatpush.bf16.msra.mxu3 %v470_v15 }
  0x1a   :  { %216 = vmatpush.bf16.msra.mxu0 %v461_v20  ;;  %505 = vmatpush.bf16.msra.mxu2 %v461_v20 }
  0x1b   :  { %245 = vmatpush.bf16.msra.mxu1 %v469_v25  ;;  %513 = vmatpush.bf16.msra.mxu3 %v469_v25 }
  0x1e   :  { %217 = vmatpush.bf16.msra.mxu0 %v460_v30  ;;  %506 = vmatpush.bf16.msra.mxu2 %v460_v30 }
  0x1f   :  { %246 = vmatpush.bf16.msra.mxu1 %v468_v35  ;;  %514 = vmatpush.bf16.msra.mxu3 %v468_v35 }
  0x21   :  { %218 = vmatmul.bf16.vlgmr.msra.gmra.mxu0 %v66_v36  ;;  %228 = vmatmul.bf16.vlgmr.msra.gmra.mxu2 %v70_v37 }
  0x22   :  { %247 = vmatmul.bf16.vlgmr.msra.gmra.mxu1 %v67_v38  ;;  %257 = vmatmul.bf16.vlgmr.msra.gmra.mxu3 %v71_v39 }
  0x31   :  { %223 = vmatmul.bf16.gmra.mxu0 %v68_v60  ;;  %233 = vmatmul.bf16.gmra.mxu2 %v72_v61 }
  0x32   :  { %252 = vmatmul.bf16.gmra.mxu1 %v69_v62  ;;  %262 = vmatmul.bf16.gmra.mxu3 %v73_v63 }
  0x9e   :  { %v219_v0 = vpop.f32.mrf.mxu0 }
  0x9f   :  { %v248_v1 = vpop.f32.mrf.mxu1 }
  0xa0   :  { %v249_v4 = vadd.f32 %v248_v1, %v219_v0 }
  0xa2   :  { %v299_v9 = vadd.f32 %v515_v5, %v249_v4 }
  0xa4   :  { %v229_v2 = vpop.f32.mrf.mxu2 }
  0xa5   :  { %v258_v3 = vpop.f32.mrf.mxu3 }
  0xa6   :  { %v221_v6 = vpop.f32.mrf.mxu0  ;;  %v259_v11 = vadd.f32 %v258_v3, %v229_v2 }
  0xa7   :  { %v250_v7 = vpop.f32.mrf.mxu1 }
  0xa8   :  { %v251_v8 = vadd.f32 %v250_v7, %v221_v6  ;;  %v303_v18 = vadd.f32 %v515_v5, %v259_v11 }
  0xaa   :  { %v300_v10 = vadd.f32 %v515_v5, %v251_v8 }
  0xac   :  { %v479_v12 = vpack.c.bf16 %v300_v10, %v299_v9  ;;  %v231_v13 = vpop.f32.mrf.mxu2 }
  0xad   :  { %v260_v14 = vpop.f32.mrf.mxu3 }
  0xae   :  { %480 = vst [vmem:[#allocation3] sm:$0xff] %v479_v12   ;;  %v261_v15 = vadd.f32 %v260_v14, %v231_v13  ;;  %v224_v16 = vpop.f32.mrf.mxu0 }
  0xaf   :  { %v253_v17 = vpop.f32.mrf.mxu1 }
  0xb0   :  { %v304_v19 = vadd.f32 %v515_v5, %v261_v15  ;;  %v254_v24 = vadd.f32 %v253_v17, %v224_v16 }
  0xb2   :  { %v489_v20 = vpack.c.bf16 %v304_v19, %v303_v18  ;;  %v301_v28 = vadd.f32 %v515_v5, %v254_v24 }
  0xb4   :  { %497 = vst [vmem:[#allocation3 + $0x10] sm:$0xff] %v489_v20   ;;  %v234_v21 = vpop.f32.mrf.mxu2 }
  0xb5   :  { %v341_v22 = vld [vmem:[#allocation3] sm:$0xff]   ;;  %v263_v23 = vpop.f32.mrf.mxu3 }
  0xb6   :  { %342 = vst [vmem:[%s626_s3] sm:$0xff] %v341_v22   ;;  %v226_v25 = vpop.f32.mrf.mxu0  ;;  %v264_v31 = vadd.f32 %v263_v23, %v234_v21 }
  0xb7   :  { %v255_v26 = vpop.f32.mrf.mxu1 }
  0xb8   :  { %v256_v27 = vadd.f32 %v255_v26, %v226_v25  ;;  %v305_v36 = vadd.f32 %v515_v5, %v264_v31 }
  0xba   :  { %v302_v29 = vadd.f32 %v515_v5, %v256_v27 }
  0xbb   :  { %v349_v30 = vld [vmem:[#allocation3 + $0x10] sm:$0xff]  }
  0xbc   :  { %350 = vst [vmem:[%s626_s3 + $0x10] sm:$0xff] %v349_v30   ;;  %v484_v32 = vpack.c.bf16 %v302_v29, %v301_v28  ;;  %v236_v33 = vpop.f32.mrf.mxu2 }
  0xbd   :  { %v265_v34 = vpop.f32.mrf.mxu3 }
  0xbe   :  { %496 = vst [vmem:[#allocation3 + $0x8] sm:$0xff] %v484_v32   ;;  %v266_v35 = vadd.f32 %v265_v34, %v236_v33 }
  0xc0   :  { %v306_v37 = vadd.f32 %v515_v5, %v266_v35 }
  0xc2   :  { %v494_v38 = vpack.c.bf16 %v306_v37, %v305_v36 }
  0xc4   :  { %498 = vst [vmem:[#allocation3 + $0x18] sm:$0xff] %v494_v38  }
  0xc5   :  { %v345_v39 = vld [vmem:[#allocation3 + $0x8] sm:$0xff]  }
  0xc6   :  { %346 = vst [vmem:[%s626_s3 + $0x8] sm:$0xff] %v345_v39  }
  0xcb   :  { %v353_v40 = vld [vmem:[#allocation3 + $0x18] sm:$0xf] }
  0xcc   :  { %354 = vst [vmem:[%s626_s3 + $0x18] sm:$0xf] %v353_v40 }

// kernel: _lambda_.43
= control target key start
LH: loop header
LB: loop body
LE: loop exit
PB: predicated region body
PF: predicated region fallthrough
CT: control target
= control target key end

     0   :  { %s401_s19 = smov 16   ;;  %vm217_vm0 = vcmask 130048   ;;  %vm298_vm1 = vcmask 257024   ;;  %s589_s3 = inlined_call_operand.vmem [shape: bf16[128,16], index: 3, kind: input, shape index: {}]   ;;  %s590_s1 = inlined_call_operand.vmem [shape: f32[1,16], index: 1, kind: input, shape index: {}]   ;;  %s591_s2 = inlined_call_operand.vmem [shape: f32[1,16], index: 2, kind: input, shape index: {}]   ;;  %s592_s0 = inlined_call_operand.vmem [shape: bf16[128,16], index: 0, kind: input, shape index: {}]   ;;  %s593_s4 = inlined_call_operand.vmem [shape: bf16[128,32], index: 4, kind: output, shape index: {}]  }
   0x1   :  { %v353_v0 = vld [vmem:[%s589_s3 + $0x10] sm:$0xff]  ;;  %v351_v1 = vld [vmem:[%s589_s3] sm:$0xff]  ;;  %v354_v3 = vld [vmem:[%s589_s3 + $0x18] sm:$0xff] }
   0x2   :  { %205 = vrot.lane.b32.xlu1 %v353_v0, %s401_s19  ;;  %201 = vrot.lane.b32.xlu0 %v351_v1, %s401_s19  ;;  %v355_v2 = vld [vmem:[%s589_s3 + $0x20] sm:$0xff]  ;;  %v352_v4 = vld [vmem:[%s589_s3 + $0x8] sm:$0xff] }
   0x3   :  { %209 = vrot.lane.b32.xlu2 %v355_v2, %s401_s19  ;;  %v356_v5 = vld [vmem:[%s589_s3 + $0x28] sm:$0xff]  ;;  %v358_v6 = vld [vmem:[%s589_s3 + $0x38] sm:$0xff]  ;;  %v357_v7 = vld [vmem:[%s589_s3 + $0x30] sm:$0xff] }
   0x4   :  { %v394_v8 = vld [vmem:[%s592_s0 + $0x20] sm:$0xff]   ;;  %v392_v12 = vld [vmem:[%s592_s0 + $0x10] sm:$0xff]   ;;  %v395_v24 = vld [vmem:[%s592_s0 + $0x28] sm:$0xff]  }
   0x5   :  { %v457_v9 = vld [vmem:[%s590_s1] ss:$0 sm:$0xff]  ;;  %v377_v10 = vunpack.c.l.bf16 %v394_v8  ;;  %v378_v11 = vunpack.c.h.bf16 %v394_v8  ;;  %v369_v19 = vunpack.c.l.bf16 %v392_v12  ;;  %v370_v20 = vunpack.c.h.bf16 %v392_v12  ;;  %v393_v35 = vld [vmem:[%s592_s0 + $0x18] sm:$0xff]   ;;  %v391_v40 = vld [vmem:[%s592_s0 + $0x8] sm:$0xff]  }
   0x6   :  { %v465_v13 = vld [vmem:[%s591_s2] ss:$0 sm:$0xff]  ;;  %v381_v28 = vunpack.c.l.bf16 %v395_v24  ;;  %v382_v30 = vunpack.c.h.bf16 %v395_v24  ;;  %v373_v47 = vunpack.c.l.bf16 %v393_v35  ;;  %v374_v48 = vunpack.c.h.bf16 %v393_v35  ;;  %v396_v12 = vld [vmem:[%s592_s0 + $0x30] sm:$0xff]  }
   0x7   :  { %v61_v14 = vmul.f32 %v457_v9, %v377_v10  ;;  %v62_v15 = vmul.f32 %v457_v9, %v378_v11  ;;  %v360_v16 = vld [vmem:[%s592_s0] sm:$0xff]   ;;  %v57_v29 = vmul.f32 %v457_v9, %v369_v19  ;;  %v58_v31 = vmul.f32 %v457_v9, %v370_v20 }
   0x8   :  { %v361_v23 = vunpack.c.l.bf16 %v360_v16  ;;  %v362_v25 = vunpack.c.h.bf16 %v360_v16  ;;  %v63_v34 = vmul.f32 %v457_v9, %v381_v28  ;;  %v64_v36 = vmul.f32 %v457_v9, %v382_v30 }
   0x9   :  { %v81_v17 = vadd.f32 %v465_v13, %v61_v14  ;;  %v82_v18 = vadd.f32 %v465_v13, %v62_v15  ;;  %v77_v42 = vadd.f32 %v465_v13, %v57_v29  ;;  %v78_v46 = vadd.f32 %v465_v13, %v58_v31 }
   0xa   :  { %207 = vrot.lane.b32.xlu1 %v354_v3, %s401_s19  ;;  %203 = vrot.lane.b32.xlu0 %v352_v4, %s401_s19  ;;  %v53_v37 = vmul.f32 %v457_v9, %v361_v23  ;;  %v54_v38 = vmul.f32 %v457_v9, %v362_v25  ;;  %v83_v41 = vadd.f32 %v465_v13, %v63_v34  ;;  %v365_v52 = vunpack.c.l.bf16 %v391_v40  ;;  %v397_v3 = vld [vmem:[%s592_s0 + $0x38] sm:$0xff]  }
   0xb   :  { %211 = vrot.lane.b32.xlu2 %v356_v5, %s401_s19  ;;  %v97_v21 = vpack.c.bf16 %v81_v17, %v81_v17  ;;  %v98_v22 = vpack.c.bf16 %v82_v18, %v82_v18  ;;  %v84_v45 = vadd.f32 %v465_v13, %v64_v36  ;;  %v366_v54 = vunpack.c.h.bf16 %v391_v40 }
   0xc   :  { %v99_v49 = vpack.c.bf16 %v83_v41, %v83_v41  ;;  %v73_v56 = vadd.f32 %v465_v13, %v53_v37  ;;  %v74_v57 = vadd.f32 %v465_v13, %v54_v38  ;;  %v93_v59 = vpack.c.bf16 %v77_v42, %v77_v42 }
   0xd   :  { %v145_v26 = vunpack.c.l.b16 %v97_v21  ;;  %v146_v27 = vunpack.c.l.b16 %v98_v22  ;;  %v100_v53 = vpack.c.bf16 %v84_v45, %v84_v45  ;;  %v94_v60 = vpack.c.bf16 %v78_v46, %v78_v46 }
   0xe   :  { %v147_v55 = vunpack.c.l.b16 %v99_v49  ;;  %v59_v62 = vmul.f32 %v457_v9, %v373_v47  ;;  %v60_v63 = vmul.f32 %v457_v9, %v374_v48  ;;  %v55_v0 = vmul.f32 %v457_v9, %v365_v52 }
   0xf   :  { %v157_v33 = vpack.c.b16 %v146_v27, %v145_v26  ;;  %v148_v58 = vunpack.c.l.b16 %v100_v53  ;;  %v56_v2 = vmul.f32 %v457_v9, %v366_v54  ;;  %v89_v4 = vpack.c.bf16 %v73_v56, %v73_v56 }
  0x10   :  { %v90_v5 = vpack.c.bf16 %v74_v57, %v74_v57  ;;  %v142_v8 = vunpack.c.l.b16 %v94_v60  ;;  %v79_v14 = vadd.f32 %v465_v13, %v59_v62  ;;  %v80_v15 = vadd.f32 %v465_v13, %v60_v63 }
  0x11   :  { %v158_v1 = vpack.c.b16 %v148_v58, %v147_v55  ;;  %v75_v16 = vadd.f32 %v465_v13, %v55_v0  ;;  %v389_v17 = vunpack.c.l.bf16 %v397_v3  ;;  %v76_v18 = vadd.f32 %v465_v13, %v56_v2 }
  0x12   :  { %215 = vrot.lane.b32.xlu1 %v358_v6, %s401_s19  ;;  %213 = vrot.lane.b32.xlu0 %v357_v7, %s401_s19  ;;  %v141_v7 = vunpack.c.l.b16 %v93_v59  ;;  %v390_v21 = vunpack.c.h.bf16 %v397_v3  ;;  %v137_v22 = vunpack.c.l.b16 %v89_v4  ;;  %v138_v23 = vunpack.c.l.b16 %v90_v5 }
  0x13   :  { %v385_v24 = vunpack.c.l.bf16 %v396_v12  ;;  %v386_v25 = vunpack.c.h.bf16 %v396_v12  ;;  %v95_v26 = vpack.c.bf16 %v79_v14, %v79_v14  ;;  %v96_v27 = vpack.c.bf16 %v80_v15, %v80_v15 }
  0x14   :  { %v67_v28 = vmul.f32 %v457_v9, %v389_v17  ;;  %v91_v29 = vpack.c.bf16 %v75_v16, %v75_v16  ;;  %v92_v30 = vpack.c.bf16 %v76_v18, %v76_v18  ;;  %v68_v31 = vmul.f32 %v457_v9, %v390_v21 }
  0x15   :  { %v65_v34 = vmul.f32 %v457_v9, %v385_v24  ;;  %v66_v35 = vmul.f32 %v457_v9, %v386_v25  ;;  %v143_v36 = vunpack.c.l.b16 %v95_v26  ;;  %v144_v37 = vunpack.c.l.b16 %v96_v27 }
  0x16   :  { %v87_v38 = vadd.f32 %v465_v13, %v67_v28  ;;  %v139_v41 = vunpack.c.l.b16 %v91_v29  ;;  %v140_v42 = vunpack.c.l.b16 %v92_v30 }
  0x17   :  { %v85_v46 = vadd.f32 %v465_v13, %v65_v34  ;;  %v86_v47 = vadd.f32 %v465_v13, %v66_v35 }
  0x18   :  { %v103_v52 = vpack.c.bf16 %v87_v38, %v87_v38  ;;  %v154_v58 = vpack.c.b16 %v140_v42, %v139_v41 }
  0x19   :  { %v101_v59 = vpack.c.bf16 %v85_v46, %v85_v46  ;;  %v102_v60 = vpack.c.bf16 %v86_v47, %v86_v47 }
  0x1a   :  { %v151_v62 = vunpack.c.l.b16 %v103_v52 }
  0x1b   :  { %v149_v2 = vunpack.c.l.b16 %v101_v59  ;;  %v150_v3 = vunpack.c.l.b16 %v102_v60 }
  0x1d   :  { %v159_v15 = vpack.c.b16 %v150_v3, %v149_v2 }
  0x5d   :  { %v210_v32 = vpop.permute.xlu2 %209 }
  0x5e   :  { %v232_v39 = vsel %vm217_vm0, %v157_v33, %v210_v32  ;;  %v155_v32 = vpack.c.b16 %v142_v8, %v141_v7  ;;  %v153_v33 = vpack.c.b16 %v138_v23, %v137_v22 }
  0x5f   :  { %v258_v43 = vunpack.c.l.b16 %v232_v39  ;;  %v259_v44 = vunpack.c.h.b16 %v232_v39 }
  0x61   :  { %v274_v50 = vpack.c.b16 %v258_v43, %v258_v43  ;;  %v275_v51 = vpack.c.b16 %v259_v44, %v259_v44  ;;  %v88_v43 = vadd.f32 %v465_v13, %v68_v31 }
  0x63   :  { %307 = vst.msk [vmem:[%s593_s4 + $0x20] sm:$0xf] %vm298_vm1, %v274_v50  ;;  %v104_v56 = vpack.c.bf16 %v88_v43, %v88_v43 }
  0x64   :  { %308 = vst.msk [vmem:[%s593_s4 + $0x24] sm:$0xf] %vm298_vm1, %v275_v51  ;;  %v156_v51 = vpack.c.b16 %v144_v37, %v143_v36 }
  0x65   :  { %v212_v61 = vpop.permute.xlu2 %211  ;;  %v152_v63 = vunpack.c.l.b16 %v104_v56 }
  0x66   :  { %v235_v6 = vsel %vm217_vm0, %v158_v1, %v212_v61 }
  0x67   :  { %v260_v10 = vunpack.c.l.b16 %v235_v6  ;;  %v261_v11 = vunpack.c.h.b16 %v235_v6  ;;  %v160_v14 = vpack.c.b16 %v152_v63, %v151_v62 }
  0x69   :  { %v276_v19 = vpack.c.b16 %v260_v10, %v260_v10  ;;  %v277_v20 = vpack.c.b16 %v261_v11, %v261_v11 }
  0x6b   :  { %309 = vst.msk [vmem:[%s593_s4 + $0x28] sm:$0xf] %vm298_vm1, %v276_v19 }
  0x6c   :  { %310 = vst.msk [vmem:[%s593_s4 + $0x2c] sm:$0xf] %vm298_vm1, %v277_v20 }
  0x74   :  { %v206_v39 = vpop.permute.xlu1 %205  ;;  %v202_v40 = vpop.permute.xlu0 %201 }
  0x75   :  { %v226_v44 = vsel %vm217_vm0, %v155_v32, %v206_v39  ;;  %v220_v45 = vsel %vm217_vm0, %v153_v33, %v202_v40 }
  0x76   :  { %v254_v48 = vunpack.c.l.b16 %v226_v44  ;;  %v255_v9 = vunpack.c.h.b16 %v226_v44  ;;  %v250_v49 = vunpack.c.l.b16 %v220_v45  ;;  %v251_v50 = vunpack.c.h.b16 %v220_v45 }
  0x78   :  { %v270_v53 = vpack.c.b16 %v254_v48, %v254_v48  ;;  %v271_v54 = vpack.c.b16 %v255_v9, %v255_v9  ;;  %v266_v55 = vpack.c.b16 %v250_v49, %v250_v49  ;;  %v267_v57 = vpack.c.b16 %v251_v50, %v251_v50 }
  0x7a   :  { %303 = vst.msk [vmem:[%s593_s4 + $0x10] sm:$0xf] %vm298_vm1, %v270_v53 }
  0x7b   :  { %304 = vst.msk [vmem:[%s593_s4 + $0x14] sm:$0xf] %vm298_vm1, %v271_v54 }
  0x7c   :  { %299 = vst.msk [vmem:[%s593_s4] sm:$0xf] %vm298_vm1, %v266_v55  ;;  %v208_v13 = vpop.permute.xlu1 %207  ;;  %v204_v61 = vpop.permute.xlu0 %203 }
  0x7d   :  { %300 = vst.msk [vmem:[%s593_s4 + $0x4] sm:$0xf] %vm298_vm1, %v267_v57  ;;  %v229_v0 = vsel %vm217_vm0, %v156_v51, %v208_v13  ;;  %v223_v1 = vsel %vm217_vm0, %v154_v58, %v204_v61 }
  0x7e   :  { %v256_v4 = vunpack.c.l.b16 %v229_v0  ;;  %v257_v5 = vunpack.c.h.b16 %v229_v0  ;;  %v252_v6 = vunpack.c.l.b16 %v223_v1  ;;  %v253_v7 = vunpack.c.h.b16 %v223_v1 }
  0x80   :  { %v272_v8 = vpack.c.b16 %v256_v4, %v256_v4  ;;  %v273_v10 = vpack.c.b16 %v257_v5, %v257_v5  ;;  %v268_v11 = vpack.c.b16 %v252_v6, %v252_v6  ;;  %v269_v12 = vpack.c.b16 %v253_v7, %v253_v7 }
  0x82   :  { %305 = vst.msk [vmem:[%s593_s4 + $0x18] sm:$0xf] %vm298_vm1, %v272_v8 }
  0x83   :  { %306 = vst.msk [vmem:[%s593_s4 + $0x1c] sm:$0xf] %vm298_vm1, %v273_v10 }
  0x84   :  { %301 = vst.msk [vmem:[%s593_s4 + $0x8] sm:$0xf] %vm298_vm1, %v268_v11  ;;  %v216_v16 = vpop.permute.xlu1 %215  ;;  %v214_v17 = vpop.permute.xlu0 %213 }
  0x85   :  { %302 = vst.msk [vmem:[%s593_s4 + $0xc] sm:$0xf] %vm298_vm1, %v269_v12  ;;  %v241_v18 = vsel %vm217_vm0, %v160_v14, %v216_v16  ;;  %v238_v19 = vsel %vm217_vm0, %v159_v15, %v214_v17 }
  0x86   :  { %v264_v20 = vunpack.c.l.b16 %v241_v18  ;;  %v265_v21 = vunpack.c.h.b16 %v241_v18  ;;  %v262_v22 = vunpack.c.l.b16 %v238_v19  ;;  %v263_v23 = vunpack.c.h.b16 %v238_v19 }
  0x88   :  { %v280_v24 = vpack.c.b16 %v264_v20, %v264_v20  ;;  %v281_v25 = vpack.c.b16 %v265_v21, %v265_v21  ;;  %v278_v26 = vpack.c.b16 %v262_v22, %v262_v22  ;;  %v279_v27 = vpack.c.b16 %v263_v23, %v263_v23 }
  0x8a   :  { %313 = vst.msk [vmem:[%s593_s4 + $0x38] sm:$0xf] %vm298_vm1, %v280_v24 }
  0x8b   :  { %314 = vst.msk [vmem:[%s593_s4 + $0x3c] sm:$0xf] %vm298_vm1, %v281_v25 }
  0x8c   :  { %311 = vst.msk [vmem:[%s593_s4 + $0x30] sm:$0xf] %vm298_vm1, %v278_v26 }
  0x8d   :  { %312 = vst.msk [vmem:[%s593_s4 + $0x34] sm:$0xf] %vm298_vm1, %v279_v27 }

// kernel: _lambda_.44
= control target key start
LH: loop header
LB: loop body
LE: loop exit
PB: predicated region body
PF: predicated region fallthrough
CT: control target
= control target key end

     0   :  { %s856_s0 = inlined_call_operand.vmem [shape: bf16[162,128], index: 0, kind: input, shape index: {}]   ;;  %s857_s1 = inlined_call_operand.vmem [shape: bf16[128,128], index: 1, kind: input, shape index: {}]   ;;  %s858_s2 = inlined_call_operand.vmem [shape: f32[1,128], index: 2, kind: input, shape index: {}]   ;;  %s859_s3 = inlined_call_operand.vmem [shape: bf16[162,128], index: 3, kind: output, shape index: {}]  }
   0x1   :  { %v574_v0 = vld [vmem:[%s857_s1 + $0x38] sm:$0xff]  ;;  %v573_v1 = vld [vmem:[%s857_s1 + $0x30] sm:$0xff]  ;;  %v572_v2 = vld [vmem:[%s857_s1 + $0x28] sm:$0xff] }
   0x2   :  { %694 = vmatpush.bf16.msra.mxu1 %v574_v0  ;;  %695 = vmatpush.bf16.msra.mxu2 %v574_v0  ;;  %v571_v3 = vld [vmem:[%s857_s1 + $0x20] sm:$0xff]  ;;  %v570_v4 = vld [vmem:[%s857_s1 + $0x18] sm:$0xff]  ;;  %v569_v5 = vld [vmem:[%s857_s1 + $0x10] sm:$0xff] }
   0x3   :  { %696 = vmatpush.bf16.msra.mxu3 %v574_v0  ;;  %203 = vmatpush.bf16.msra.mxu0 %v574_v0  ;;  %v675_v6 = vld [vmem:[%s856_s0 + $0x10] sm:$0xff]   ;;  %v678_v7 = vld [vmem:[%s856_s0 + $0x28] sm:$0xff]   ;;  %v681_v8 = vld [vmem:[%s856_s0 + $0x40] sm:$0xff]  }
   0x4   :  { %v576_v9 = vld [vmem:[%s856_s0] sm:$0xff]   ;;  %v585_v10 = vunpack.c.l.bf16 %v675_v6  ;;  %v586_v11 = vunpack.c.h.bf16 %v675_v6  ;;  %v597_v12 = vunpack.c.l.bf16 %v678_v7  ;;  %v598_v13 = vunpack.c.h.bf16 %v678_v7  ;;  %v568_v14 = vld [vmem:[%s857_s1 + $0x8] sm:$0xff]  ;;  %v676_v32 = vld [vmem:[%s856_s0 + $0x18] sm:$0xff]  }
   0x5   :  { %v609_v15 = vunpack.c.l.bf16 %v681_v8  ;;  %v610_v16 = vunpack.c.h.bf16 %v681_v8  ;;  %v577_v17 = vunpack.c.l.bf16 %v576_v9  ;;  %v578_v18 = vunpack.c.h.bf16 %v576_v9  ;;  %v567_v23 = vld [vmem:[%s857_s1] sm:$0xff]  ;;  %v679_v33 = vld [vmem:[%s856_s0 + $0x30] sm:$0xff]   ;;  %v682_v34 = vld [vmem:[%s856_s0 + $0x48] sm:$0xff]  }
   0x6   :  { %697 = vmatpush.bf16.msra.mxu1 %v573_v1  ;;  %698 = vmatpush.bf16.msra.mxu2 %v573_v1  ;;  %v88_v19 = vmax.f32 %v585_v10, 0.0  ;;  %v89_v20 = vmax.f32 %v586_v11, 0.0  ;;  %v94_v21 = vmax.f32 %v597_v12, 0.0  ;;  %v95_v22 = vmax.f32 %v598_v13, 0.0  ;;  %v674_v35 = vld [vmem:[%s856_s0 + $0x8] sm:$0xff]   ;;  %v677_v56 = vld [vmem:[%s856_s0 + $0x20] sm:$0xff]  }
   0x7   :  { %699 = vmatpush.bf16.msra.mxu3 %v573_v1  ;;  %204 = vmatpush.bf16.msra.mxu0 %v573_v1  ;;  %v100_v24 = vmax.f32 %v609_v15, 0.0  ;;  %v101_v25 = vmax.f32 %v610_v16, 0.0  ;;  %v84_v26 = vmax.f32 %v577_v17, 0.0  ;;  %v85_v27 = vmax.f32 %v578_v18, 0.0  ;;  %v680_v57 = vld [vmem:[%s856_s0 + $0x38] sm:$0xff]   ;;  %v683_v58 = vld [vmem:[%s856_s0 + $0x50] sm:$0xff]  }
   0x8   :  { %v108_v28 = vpack.c.bf16 %v89_v20, %v88_v19  ;;  %v111_v29 = vpack.c.bf16 %v95_v22, %v94_v21  ;;  %v589_v36 = vunpack.c.l.bf16 %v676_v32  ;;  %v590_v37 = vunpack.c.h.bf16 %v676_v32  ;;  %v799_v12 = vld [vmem:[%s858_s2] ss:$0 sm:$0xff] }
   0x9   :  { %v114_v30 = vpack.c.bf16 %v101_v25, %v100_v24  ;;  %v106_v31 = vpack.c.bf16 %v85_v27, %v84_v26  ;;  %v601_v38 = vunpack.c.l.bf16 %v679_v33  ;;  %v602_v39 = vunpack.c.h.bf16 %v679_v33 }
   0xa   :  { %700 = vmatpush.bf16.msra.mxu1 %v572_v2  ;;  %701 = vmatpush.bf16.msra.mxu2 %v572_v2  ;;  %v613_v40 = vunpack.c.l.bf16 %v682_v34  ;;  %v614_v41 = vunpack.c.h.bf16 %v682_v34  ;;  %v581_v42 = vunpack.c.l.bf16 %v674_v35  ;;  %v582_v43 = vunpack.c.h.bf16 %v674_v35 }
   0xb   :  { %702 = vmatpush.bf16.msra.mxu3 %v572_v2  ;;  %205 = vmatpush.bf16.msra.mxu0 %v572_v2  ;;  %v90_v44 = vmax.f32 %v589_v36, 0.0  ;;  %v91_v45 = vmax.f32 %v590_v37, 0.0  ;;  %v96_v46 = vmax.f32 %v601_v38, 0.0  ;;  %v97_v47 = vmax.f32 %v602_v39, 0.0 }
   0xc   :  { %v102_v48 = vmax.f32 %v613_v40, 0.0  ;;  %v103_v49 = vmax.f32 %v614_v41, 0.0  ;;  %v86_v50 = vmax.f32 %v581_v42, 0.0  ;;  %v87_v51 = vmax.f32 %v582_v43, 0.0 }
   0xd   :  { %v109_v52 = vpack.c.bf16 %v91_v45, %v90_v44  ;;  %v112_v53 = vpack.c.bf16 %v97_v47, %v96_v46  ;;  %v593_v59 = vunpack.c.l.bf16 %v677_v56  ;;  %v594_v60 = vunpack.c.h.bf16 %v677_v56 }
   0xe   :  { %703 = vmatpush.bf16.msra.mxu1 %v571_v3  ;;  %704 = vmatpush.bf16.msra.mxu2 %v571_v3  ;;  %v115_v54 = vpack.c.bf16 %v103_v49, %v102_v48  ;;  %v107_v55 = vpack.c.bf16 %v87_v51, %v86_v50  ;;  %v605_v61 = vunpack.c.l.bf16 %v680_v57  ;;  %v606_v62 = vunpack.c.h.bf16 %v680_v57 }
   0xf   :  { %705 = vmatpush.bf16.msra.mxu3 %v571_v3  ;;  %206 = vmatpush.bf16.msra.mxu0 %v571_v3  ;;  %v617_v63 = vunpack.c.l.bf16 %v683_v58  ;;  %v618_v0 = vunpack.c.h.bf16 %v683_v58  ;;  %v92_v1 = vmax.f32 %v593_v59, 0.0  ;;  %v93_v2 = vmax.f32 %v594_v60, 0.0 }
  0x10   :  { %v98_v3 = vmax.f32 %v605_v61, 0.0 }
  0x11   :  { %v105_v6 = vmax.f32 %v618_v0, 0.0  ;;  %v110_v7 = vpack.c.bf16 %v93_v2, %v92_v1 }
  0x12   :  { %706 = vmatpush.bf16.msra.mxu1 %v570_v4  ;;  %707 = vmatpush.bf16.msra.mxu2 %v570_v4 }
  0x13   :  { %708 = vmatpush.bf16.msra.mxu3 %v570_v4  ;;  %207 = vmatpush.bf16.msra.mxu0 %v570_v4  ;;  %v99_v4 = vmax.f32 %v606_v62, 0.0 }
  0x15   :  { %v113_v8 = vpack.c.bf16 %v99_v4, %v98_v3 }
  0x16   :  { %709 = vmatpush.bf16.msra.mxu1 %v569_v5  ;;  %710 = vmatpush.bf16.msra.mxu2 %v569_v5 }
  0x17   :  { %711 = vmatpush.bf16.msra.mxu3 %v569_v5  ;;  %208 = vmatpush.bf16.msra.mxu0 %v569_v5  ;;  %v104_v5 = vmax.f32 %v617_v63, 0.0 }
  0x19   :  { %v116_v9 = vpack.c.bf16 %v105_v6, %v104_v5 }
  0x1a   :  { %712 = vmatpush.bf16.msra.mxu1 %v568_v14  ;;  %713 = vmatpush.bf16.msra.mxu2 %v568_v14 }
  0x1b   :  { %714 = vmatpush.bf16.msra.mxu3 %v568_v14  ;;  %209 = vmatpush.bf16.msra.mxu0 %v568_v14 }
  0x1e   :  { %715 = vmatpush.bf16.msra.mxu1 %v567_v23  ;;  %716 = vmatpush.bf16.msra.mxu2 %v567_v23 }
  0x1f   :  { %717 = vmatpush.bf16.msra.mxu3 %v567_v23  ;;  %210 = vmatpush.bf16.msra.mxu0 %v567_v23 }
  0x21   :  { %221 = vmatmul.bf16.vlgmr.msra.gmra.mxu1 %v108_v28  ;;  %236 = vmatmul.bf16.vlgmr.msra.gmra.mxu2 %v111_v29 }
  0x22   :  { %251 = vmatmul.bf16.vlgmr.msra.gmra.mxu3 %v114_v30  ;;  %211 = vmatmul.bf16.vlgmr.msra.gmra.mxu0 %v106_v31 }
  0x31   :  { %226 = vmatmul.bf16.gmra.mxu1 %v109_v52  ;;  %241 = vmatmul.bf16.gmra.mxu2 %v112_v53 }
  0x32   :  { %256 = vmatmul.bf16.gmra.mxu3 %v115_v54  ;;  %216 = vmatmul.bf16.gmra.mxu0 %v107_v55 }
  0x41   :  { %231 = vmatmul.bf16.gmra.mxu1 %v110_v7  ;;  %246 = vmatmul.bf16.gmra.mxu2 %v113_v8 }
  0x42   :  { %261 = vmatmul.bf16.gmra.mxu3 %v116_v9 }
  0x9e   :  { %v222_v10 = vpop.f32.mrf.mxu1 }
  0x9f   :  { %v212_v11 = vpop.f32.mrf.mxu0  ;;  %v344_v17 = vadd.f32 %v799_v12, %v222_v10 }
  0xa0   :  { %v340_v16 = vadd.f32 %v799_v12, %v212_v11 }
  0xa4   :  { %v237_v13 = vpop.f32.mrf.mxu2 }
  0xa5   :  { %v252_v14 = vpop.f32.mrf.mxu3  ;;  %v350_v24 = vadd.f32 %v799_v12, %v237_v13 }
  0xa6   :  { %v224_v15 = vpop.f32.mrf.mxu1  ;;  %v356_v27 = vadd.f32 %v799_v12, %v252_v14 }
  0xa7   :  { %v345_v18 = vadd.f32 %v799_v12, %v224_v15  ;;  %v214_v19 = vpop.f32.mrf.mxu0 }
  0xa8   :  { %v341_v20 = vadd.f32 %v799_v12, %v214_v19 }
  0xa9   :  { %v632_v21 = vpack.c.bf16 %v345_v18, %v344_v17 }
  0xaa   :  { %v622_v22 = vpack.c.bf16 %v341_v20, %v340_v16 }
  0xab   :  { %685 = vst [vmem:[#allocation3 + $0x10] sm:$0xff] %v632_v21  }
  0xac   :  { %v239_v23 = vpop.f32.mrf.mxu2  ;;  %623 = vst [vmem:[#allocation3] sm:$0xff] %v622_v22  }
  0xad   :  { %v351_v25 = vadd.f32 %v799_v12, %v239_v23  ;;  %v254_v26 = vpop.f32.mrf.mxu3 }
  0xae   :  { %v357_v28 = vadd.f32 %v799_v12, %v254_v26  ;;  %v227_v29 = vpop.f32.mrf.mxu1 }
  0xaf   :  { %v647_v30 = vpack.c.bf16 %v351_v25, %v350_v24  ;;  %v217_v31 = vpop.f32.mrf.mxu0  ;;  %v346_v39 = vadd.f32 %v799_v12, %v227_v29 }
  0xb0   :  { %v662_v32 = vpack.c.bf16 %v357_v28, %v356_v27  ;;  %v342_v38 = vadd.f32 %v799_v12, %v217_v31 }
  0xb1   :  { %688 = vst [vmem:[#allocation3 + $0x28] sm:$0xff] %v647_v30  }
  0xb2   :  { %v432_v33 = vld [vmem:[#allocation3 + $0x10] sm:$0xff]   ;;  %691 = vst [vmem:[#allocation3 + $0x40] sm:$0xff] %v662_v32  }
  0xb3   :  { %433 = vst [vmem:[%s859_s3 + $0x10] sm:$0xff] %v432_v33   ;;  %v424_v34 = vld [vmem:[#allocation3] sm:$0xff]  }
  0xb4   :  { %425 = vst [vmem:[%s859_s3] sm:$0xff] %v424_v34   ;;  %v242_v35 = vpop.f32.mrf.mxu2 }
  0xb5   :  { %v257_v36 = vpop.f32.mrf.mxu3  ;;  %v352_v48 = vadd.f32 %v799_v12, %v242_v35 }
  0xb6   :  { %v229_v37 = vpop.f32.mrf.mxu1  ;;  %v358_v51 = vadd.f32 %v799_v12, %v257_v36 }
  0xb7   :  { %v347_v40 = vadd.f32 %v799_v12, %v229_v37  ;;  %v219_v41 = vpop.f32.mrf.mxu0 }
  0xb8   :  { %v444_v42 = vld [vmem:[#allocation3 + $0x28] sm:$0xff]   ;;  %v343_v43 = vadd.f32 %v799_v12, %v219_v41 }
  0xb9   :  { %445 = vst [vmem:[%s859_s3 + $0x28] sm:$0xff] %v444_v42   ;;  %v456_v44 = vld [vmem:[#allocation3 + $0x40] sm:$0xff]   ;;  %v637_v45 = vpack.c.bf16 %v347_v40, %v346_v39 }
  0xba   :  { %457 = vst [vmem:[%s859_s3 + $0x40] sm:$0xff] %v456_v44   ;;  %v627_v46 = vpack.c.bf16 %v343_v43, %v342_v38 }
  0xbb   :  { %686 = vst [vmem:[#allocation3 + $0x18] sm:$0xff] %v637_v45  }
  0xbc   :  { %v244_v47 = vpop.f32.mrf.mxu2  ;;  %684 = vst [vmem:[#allocation3 + $0x8] sm:$0xff] %v627_v46  }
  0xbd   :  { %v353_v49 = vadd.f32 %v799_v12, %v244_v47  ;;  %v259_v50 = vpop.f32.mrf.mxu3 }
  0xbe   :  { %v359_v52 = vadd.f32 %v799_v12, %v259_v50  ;;  %v232_v53 = vpop.f32.mrf.mxu1 }
  0xbf   :  { %v652_v54 = vpack.c.bf16 %v353_v49, %v352_v48  ;;  %v348_v61 = vadd.f32 %v799_v12, %v232_v53 }
  0xc0   :  { %v667_v55 = vpack.c.bf16 %v359_v52, %v358_v51 }
  0xc1   :  { %689 = vst [vmem:[#allocation3 + $0x30] sm:$0xff] %v652_v54  }
  0xc2   :  { %v436_v56 = vld [vmem:[#allocation3 + $0x18] sm:$0xff]   ;;  %692 = vst [vmem:[#allocation3 + $0x48] sm:$0xff] %v667_v55  }
  0xc3   :  { %437 = vst [vmem:[%s859_s3 + $0x18] sm:$0xff] %v436_v56   ;;  %v428_v57 = vld [vmem:[#allocation3 + $0x8] sm:$0xff]  }
  0xc4   :  { %429 = vst [vmem:[%s859_s3 + $0x8] sm:$0xff] %v428_v57   ;;  %v247_v58 = vpop.f32.mrf.mxu2 }
  0xc5   :  { %v262_v59 = vpop.f32.mrf.mxu3  ;;  %v354_v3 = vadd.f32 %v799_v12, %v247_v58 }
  0xc6   :  { %v234_v60 = vpop.f32.mrf.mxu1  ;;  %v360_v6 = vadd.f32 %v799_v12, %v262_v59 }
  0xc7   :  { %v349_v62 = vadd.f32 %v799_v12, %v234_v60 }
  0xc8   :  { %v448_v63 = vld [vmem:[#allocation3 + $0x30] sm:$0xff]  }
  0xc9   :  { %449 = vst [vmem:[%s859_s3 + $0x30] sm:$0xff] %v448_v63   ;;  %v460_v0 = vld [vmem:[#allocation3 + $0x48] sm:$0xff]   ;;  %v642_v1 = vpack.c.bf16 %v349_v62, %v348_v61 }
  0xca   :  { %461 = vst [vmem:[%s859_s3 + $0x48] sm:$0xff] %v460_v0  }
  0xcb   :  { %687 = vst [vmem:[#allocation3 + $0x20] sm:$0xff] %v642_v1  }
  0xcc   :  { %v249_v2 = vpop.f32.mrf.mxu2 }
  0xcd   :  { %v355_v4 = vadd.f32 %v799_v12, %v249_v2  ;;  %v264_v5 = vpop.f32.mrf.mxu3 }
  0xce   :  { %v361_v7 = vadd.f32 %v799_v12, %v264_v5 }
  0xcf   :  { %v657_v8 = vpack.c.bf16 %v355_v4, %v354_v3 }
  0xd0   :  { %v672_v9 = vpack.c.bf16 %v361_v7, %v360_v6 }
  0xd1   :  { %690 = vst [vmem:[#allocation3 + $0x38] sm:$0xff] %v657_v8  }
  0xd2   :  { %v440_v10 = vld [vmem:[#allocation3 + $0x20] sm:$0xff]   ;;  %693 = vst [vmem:[#allocation3 + $0x50] sm:$0xff] %v672_v9  }
  0xd3   :  { %441 = vst [vmem:[%s859_s3 + $0x20] sm:$0xff] %v440_v10  }
  0xd8   :  { %v452_v11 = vld [vmem:[#allocation3 + $0x38] sm:$0xff]  }
  0xd9   :  { %453 = vst [vmem:[%s859_s3 + $0x38] sm:$0xff] %v452_v11   ;;  %v464_v13 = vld [vmem:[#allocation3 + $0x50] sm:$0xf] }
  0xda   :  { %465 = vst [vmem:[%s859_s3 + $0x50] sm:$0xf] %v464_v13 }

// kernel: _lambda_.45
= control target key start
LH: loop header
LB: loop body
LE: loop exit
PB: predicated region body
PF: predicated region fallthrough
CT: control target
= control target key end

     0   :  { %v98_v0 = vmov 0.0   ;;  %s138_s1 = inlined_call_operand.vmem [shape: f32[1,1,128], index: 1, kind: output, shape index: {0}]   ;;  %s139_s2 = inlined_call_operand.vmem [shape: f32[1,1,128], index: 2, kind: output, shape index: {1}]   ;;  %s140_s0 = inlined_call_operand.vmem [shape: bf16[32,128], index: 0, kind: input, shape index: {}]  }
   0x1   :  { %36 = vst [vmem:[%s138_s1] sm:$0x1] %v98_v0  ;;  %v89_v1 = vld [vmem:[%s140_s0] sm:$0xff]   ;;  %v96_v2 = vld [vmem:[%s140_s0 + $0x8] sm:$0xff]  }
   0x2   :  { %37 = vst [vmem:[%s139_s2] sm:$0x1] %v98_v0  ;;  %v90_v3 = vunpack.c.l.bf16 %v89_v1  ;;  %v91_v4 = vunpack.c.h.bf16 %v89_v1  ;;  %v94_v5 = vunpack.c.l.bf16 %v96_v2  ;;  %v95_v6 = vunpack.c.h.bf16 %v96_v2 }
   0x4   :  { %v47_v7 = vadd.f32 %v91_v4, %v90_v3  ;;  %v59_v8 = vmul.f32 %v90_v3, %v90_v3  ;;  %v60_v9 = vmul.f32 %v91_v4, %v91_v4  ;;  %v61_v10 = vmul.f32 %v94_v5, %v94_v5 }
   0x5   :  { %v62_v12 = vmul.f32 %v95_v6, %v95_v6 }
   0x6   :  { %v48_v11 = vadd.f32 %v94_v5, %v47_v7  ;;  %v63_v13 = vadd.f32 %v60_v9, %v59_v8 }
   0x8   :  { %v49_v14 = vadd.f32 %v95_v6, %v48_v11  ;;  %v64_v15 = vadd.f32 %v63_v13, %v61_v10  ;;  %v46_v26 = vld [vmem:[%s138_s1] sm:$0x1] }
   0x9   :  { %v58_v29 = vld [vmem:[%s139_s2] sm:$0x1] }
   0xa   :  { %v50_v16 = vrot.slane %v49_v14, 4  ;;  %v65_v17 = vadd.f32 %v64_v15, %v62_v12 }
   0xc   :  { %v51_v18 = vadd.f32 %v50_v16, %v49_v14  ;;  %v66_v19 = vrot.slane %v65_v17, 4 }
   0xe   :  { %v52_v20 = vrot.slane %v51_v18, 2  ;;  %v67_v21 = vadd.f32 %v66_v19, %v65_v17 }
  0x10   :  { %v53_v22 = vadd.f32 %v52_v20, %v51_v18  ;;  %v68_v23 = vrot.slane %v67_v21, 2 }
  0x12   :  { %v54_v24 = vrot.slane %v53_v22, 1  ;;  %v69_v25 = vadd.f32 %v68_v23, %v67_v21 }
  0x14   :  { %v55_v27 = vadd.f32 %v54_v24, %v53_v22  ;;  %v70_v28 = vrot.slane %v69_v25, 1 }
  0x16   :  { %v56_v30 = vadd.f32 %v55_v27, %v46_v26  ;;  %v71_v31 = vadd.f32 %v70_v28, %v69_v25 }
  0x18   :  { %57 = vst [vmem:[%s138_s1] sm:$0x1] %v56_v30  ;;  %v72_v32 = vadd.f32 %v71_v31, %v58_v29 }
  0x1a   :  { %73 = vst [vmem:[%s139_s2] sm:$0x1] %v72_v32 }

// kernel: _lambda_.46
= control target key start
LH: loop header
LB: loop body
LE: loop exit
PB: predicated region body
PF: predicated region fallthrough
CT: control target
= control target key end

     0   :  { %s1507_s19 = smov 8   ;;  %vm793_vm0 = vcmask 64512   ;;  %vm1114_vm1 = vcmask 125952   ;;  %s2315_s3 = inlined_call_operand.vmem [shape: bf16[512,8], index: 3, kind: input, shape index: {}]   ;;  %s2316_s1 = inlined_call_operand.vmem [shape: f32[1,8], index: 1, kind: input, shape index: {}]   ;;  %s2317_s2 = inlined_call_operand.vmem [shape: f32[1,8], index: 2, kind: input, shape index: {}]   ;;  %s2318_s0 = inlined_call_operand.vmem [shape: bf16[512,8], index: 0, kind: input, shape index: {}]   ;;  %s2319_s4 = inlined_call_operand.vmem [shape: bf16[512,16], index: 4, kind: output, shape index: {}]  }
   0x1   :  { %v1313_v0 = vld [vmem:[%s2315_s3 + $0x10] sm:$0xff]  ;;  %v1311_v1 = vld [vmem:[%s2315_s3] sm:$0xff]  ;;  %v1314_v3 = vld [vmem:[%s2315_s3 + $0x18] sm:$0xff] }
   0x2   :  { %733 = vrot.lane.b32.xlu1 %v1313_v0, %s1507_s19  ;;  %729 = vrot.lane.b32.xlu0 %v1311_v1, %s1507_s19  ;;  %v1315_v2 = vld [vmem:[%s2315_s3 + $0x20] sm:$0xff]  ;;  %v1312_v4 = vld [vmem:[%s2315_s3 + $0x8] sm:$0xff] }
   0x3   :  { %737 = vrot.lane.b32.xlu2 %v1315_v2, %s1507_s19  ;;  %v1316_v5 = vld [vmem:[%s2315_s3 + $0x28] sm:$0xff]  ;;  %v1318_v6 = vld [vmem:[%s2315_s3 + $0x38] sm:$0xff]  ;;  %v1317_v7 = vld [vmem:[%s2315_s3 + $0x30] sm:$0xff] }
   0x4   :  { %v1319_v8 = vld [vmem:[%s2315_s3 + $0x40] sm:$0xff]  ;;  %v1321_v9 = vld [vmem:[%s2315_s3 + $0x50] sm:$0xff]  ;;  %v1320_v10 = vld [vmem:[%s2315_s3 + $0x48] sm:$0xff] }
   0x5   :  { %v1322_v11 = vld [vmem:[%s2315_s3 + $0x58] sm:$0xff]  ;;  %v1324_v12 = vld [vmem:[%s2315_s3 + $0x68] sm:$0xff]  ;;  %v1323_v13 = vld [vmem:[%s2315_s3 + $0x60] sm:$0xff] }
   0x6   :  { %v1325_v14 = vld [vmem:[%s2315_s3 + $0x70] sm:$0xff]  ;;  %v1327_v15 = vld [vmem:[%s2315_s3 + $0x80] sm:$0xff]  ;;  %v1326_v16 = vld [vmem:[%s2315_s3 + $0x78] sm:$0xff] }
   0x7   :  { %v1328_v17 = vld [vmem:[%s2315_s3 + $0x88] sm:$0xff]  ;;  %v1330_v18 = vld [vmem:[%s2315_s3 + $0x98] sm:$0xff]  ;;  %v1329_v19 = vld [vmem:[%s2315_s3 + $0x90] sm:$0xff] }
   0x8   :  { %v1331_v20 = vld [vmem:[%s2315_s3 + $0xa0] sm:$0xff]  ;;  %v1333_v21 = vld [vmem:[%s2315_s3 + $0xb0] sm:$0xff]  ;;  %v1332_v22 = vld [vmem:[%s2315_s3 + $0xa8] sm:$0xff] }
   0x9   :  { %v1334_v23 = vld [vmem:[%s2315_s3 + $0xb8] sm:$0xff]  ;;  %v1336_v24 = vld [vmem:[%s2315_s3 + $0xc8] sm:$0xff]  ;;  %v1335_v25 = vld [vmem:[%s2315_s3 + $0xc0] sm:$0xff] }
   0xa   :  { %735 = vrot.lane.b32.xlu1 %v1314_v3, %s1507_s19  ;;  %731 = vrot.lane.b32.xlu0 %v1312_v4, %s1507_s19  ;;  %v1337_v26 = vld [vmem:[%s2315_s3 + $0xd0] sm:$0xff]  ;;  %v1339_v27 = vld [vmem:[%s2315_s3 + $0xe0] sm:$0xff] }
   0xb   :  { %739 = vrot.lane.b32.xlu2 %v1316_v5, %s1507_s19  ;;  %v1338_v28 = vld [vmem:[%s2315_s3 + $0xd8] sm:$0xff]  ;;  %v1472_v29 = vld [vmem:[%s2318_s0 + $0x10] sm:$0xff]   ;;  %v1340_v30 = vld [vmem:[%s2315_s3 + $0xe8] sm:$0xff] }
   0xc   :  { %v1353_v31 = vunpack.c.l.bf16 %v1472_v29  ;;  %v1354_v32 = vunpack.c.h.bf16 %v1472_v29  ;;  %v1656_v33 = vld [vmem:[%s2316_s1] ss:$0 sm:$0xff]  ;;  %v1342_v44 = vld [vmem:[%s2315_s3 + $0xf8] sm:$0xff]  ;;  %v1341_v45 = vld [vmem:[%s2315_s3 + $0xf0] sm:$0xff] }
   0xd   :  { %v1344_v34 = vld [vmem:[%s2318_s0] sm:$0xff]   ;;  %v1473_v53 = vld [vmem:[%s2318_s0 + $0x18] sm:$0xff]   ;;  %v1471_v54 = vld [vmem:[%s2318_s0 + $0x8] sm:$0xff]  }
   0xe   :  { %v1345_v35 = vunpack.c.l.bf16 %v1344_v34  ;;  %v1346_v36 = vunpack.c.h.bf16 %v1344_v34  ;;  %v153_v37 = vmul.f32 %v1656_v33, %v1353_v31  ;;  %v154_v38 = vmul.f32 %v1656_v33, %v1354_v32  ;;  %v1668_v39 = vld [vmem:[%s2317_s2] ss:$0 sm:$0xff] }
   0xf   :  { %v1474_v52 = vld [vmem:[%s2318_s0 + $0x20] sm:$0xff]   ;;  %v1357_v58 = vunpack.c.l.bf16 %v1473_v53  ;;  %v1358_v60 = vunpack.c.h.bf16 %v1473_v53  ;;  %v1349_v61 = vunpack.c.l.bf16 %v1471_v54  ;;  %v1350_v62 = vunpack.c.h.bf16 %v1471_v54 }
  0x10   :  { %v149_v40 = vmul.f32 %v1656_v33, %v1345_v35  ;;  %v150_v41 = vmul.f32 %v1656_v33, %v1346_v36  ;;  %v221_v42 = vadd.f32 %v1668_v39, %v153_v37  ;;  %v222_v43 = vadd.f32 %v1668_v39, %v154_v38 }
  0x11   :  { %v1361_v56 = vunpack.c.l.bf16 %v1474_v52  ;;  %v1362_v57 = vunpack.c.h.bf16 %v1474_v52  ;;  %v155_v2 = vmul.f32 %v1656_v33, %v1357_v58  ;;  %v156_v4 = vmul.f32 %v1656_v33, %v1358_v60 }
  0x12   :  { %743 = vrot.lane.b32.xlu1 %v1318_v6, %s1507_s19  ;;  %741 = vrot.lane.b32.xlu0 %v1317_v7, %s1507_s19  ;;  %v217_v46 = vadd.f32 %v1668_v39, %v149_v40  ;;  %v218_v47 = vadd.f32 %v1668_v39, %v150_v41  ;;  %v285_v48 = vpack.c.bf16 %v221_v42, %v221_v42 }
  0x13   :  { %745 = vrot.lane.b32.xlu2 %v1319_v8, %s1507_s19  ;;  %v286_v49 = vpack.c.bf16 %v222_v43, %v222_v43  ;;  %v157_v0 = vmul.f32 %v1656_v33, %v1361_v56  ;;  %v158_v1 = vmul.f32 %v1656_v33, %v1362_v57  ;;  %v151_v5 = vmul.f32 %v1656_v33, %v1349_v61  ;;  %v1478_v61 = vld [vmem:[%s2318_s0 + $0x40] sm:$0xff]  }
  0x14   :  { %v281_v50 = vpack.c.bf16 %v217_v46, %v217_v46  ;;  %v282_v51 = vpack.c.bf16 %v218_v47, %v218_v47  ;;  %v1694_v55 = vunpack.c.l.b16 %v285_v48  ;;  %v152_v6 = vmul.f32 %v1656_v33, %v1350_v62  ;;  %v1480_v62 = vld [vmem:[%s2318_s0 + $0x50] sm:$0xff]  }
  0x15   :  { %v1696_v59 = vunpack.c.l.b16 %v286_v49  ;;  %v225_v7 = vadd.f32 %v1668_v39, %v157_v0  ;;  %v226_v8 = vadd.f32 %v1668_v39, %v158_v1 }
  0x16   :  { %v1698_v63 = vunpack.c.l.b16 %v281_v50  ;;  %v1703_v3 = vunpack.c.l.b16 %v282_v51 }
  0x1a   :  { %749 = vrot.lane.b32.xlu1 %v1321_v9, %s1507_s19  ;;  %747 = vrot.lane.b32.xlu0 %v1320_v10, %s1507_s19  ;;  %v223_v9 = vadd.f32 %v1668_v39, %v155_v2  ;;  %v224_v10 = vadd.f32 %v1668_v39, %v156_v4 }
  0x1b   :  { %751 = vrot.lane.b32.xlu2 %v1322_v11, %s1507_s19  ;;  %v219_v11 = vadd.f32 %v1668_v39, %v151_v5 }
  0x22   :  { %755 = vrot.lane.b32.xlu1 %v1324_v12, %s1507_s19  ;;  %753 = vrot.lane.b32.xlu0 %v1323_v13, %s1507_s19  ;;  %v220_v12 = vadd.f32 %v1668_v39, %v152_v6  ;;  %v539_v13 = vpack.c.b16 %v1696_v59, %v1694_v55  ;;  %v1482_v55 = vld [vmem:[%s2318_s0 + $0x60] sm:$0xff]  }
  0x23   :  { %757 = vrot.lane.b32.xlu2 %v1325_v14, %s1507_s19  ;;  %v289_v14 = vpack.c.bf16 %v225_v7, %v225_v7  ;;  %v1377_v7 = vunpack.c.l.bf16 %v1478_v61 }
  0x2a   :  { %761 = vrot.lane.b32.xlu1 %v1327_v15, %s1507_s19  ;;  %759 = vrot.lane.b32.xlu0 %v1326_v16, %s1507_s19  ;;  %v290_v15 = vpack.c.bf16 %v226_v8, %v226_v8  ;;  %v287_v16 = vpack.c.bf16 %v223_v9, %v223_v9  ;;  %v1378_v8 = vunpack.c.h.bf16 %v1478_v61 }
  0x2b   :  { %763 = vrot.lane.b32.xlu2 %v1328_v17, %s1507_s19  ;;  %v537_v17 = vpack.c.b16 %v1703_v3, %v1698_v63 }
  0x32   :  { %767 = vrot.lane.b32.xlu1 %v1330_v18, %s1507_s19  ;;  %765 = vrot.lane.b32.xlu0 %v1329_v19, %s1507_s19  ;;  %v288_v18 = vpack.c.bf16 %v224_v10, %v224_v10  ;;  %v283_v19 = vpack.c.bf16 %v219_v11, %v219_v11 }
  0x33   :  { %769 = vrot.lane.b32.xlu2 %v1331_v20, %s1507_s19  ;;  %v284_v20 = vpack.c.bf16 %v220_v12, %v220_v12  ;;  %v1385_v12 = vunpack.c.l.bf16 %v1480_v62 }
  0x34   :  { %v1731_v29 = vunpack.c.l.b16 %v283_v19  ;;  %v166_v19 = vmul.f32 %v1656_v33, %v1378_v8 }
  0x3a   :  { %773 = vrot.lane.b32.xlu1 %v1333_v21, %s1507_s19  ;;  %771 = vrot.lane.b32.xlu0 %v1332_v22, %s1507_s19  ;;  %v1475_v21 = vld [vmem:[%s2318_s0 + $0x28] sm:$0xff]   ;;  %v1477_v22 = vld [vmem:[%s2318_s0 + $0x38] sm:$0xff]  }
  0x3b   :  { %775 = vrot.lane.b32.xlu2 %v1334_v23, %s1507_s19  ;;  %v481_v23 = vunpack.c.l.b16 %v289_v14  ;;  %v1366_v31 = vunpack.c.h.bf16 %v1475_v21  ;;  %v1373_v35 = vunpack.c.l.bf16 %v1477_v22  ;;  %v1374_v36 = vunpack.c.h.bf16 %v1477_v22 }
  0x3c   :  { %v1386_v22 = vunpack.c.h.bf16 %v1480_v62 }
  0x3d   :  { %v160_v41 = vmul.f32 %v1656_v33, %v1366_v31  ;;  %v164_v46 = vmul.f32 %v1656_v33, %v1374_v36 }
  0x3e   :  { %v170_v36 = vmul.f32 %v1656_v33, %v1386_v22 }
  0x3f   :  { %v228_v49 = vadd.f32 %v1668_v39, %v160_v41  ;;  %v232_v53 = vadd.f32 %v1668_v39, %v164_v46 }
  0x41   :  { %v292_v58 = vpack.c.bf16 %v228_v49, %v228_v49  ;;  %v296_v2 = vpack.c.bf16 %v232_v53, %v232_v53 }
  0x42   :  { %779 = vrot.lane.b32.xlu1 %v1336_v24, %s1507_s19  ;;  %777 = vrot.lane.b32.xlu0 %v1335_v25, %s1507_s19  ;;  %v482_v24 = vunpack.c.l.b16 %v290_v15  ;;  %v1724_v25 = vunpack.c.l.b16 %v287_v16 }
  0x43   :  { %781 = vrot.lane.b32.xlu2 %v1337_v26, %s1507_s19  ;;  %v1365_v26 = vunpack.c.l.bf16 %v1475_v21  ;;  %v484_v5 = vunpack.c.l.b16 %v292_v58  ;;  %v1768_v10 = vunpack.c.l.b16 %v296_v2 }
  0x44   :  { %v541_v32 = vpack.c.b16 %v482_v24, %v481_v23  ;;  %v169_v23 = vmul.f32 %v1656_v33, %v1385_v12  ;;  %v1479_v24 = vld [vmem:[%s2318_s0 + $0x48] sm:$0xff]  }
  0x45   :  { %v159_v34 = vmul.f32 %v1656_v33, %v1365_v26  ;;  %v1382_v53 = vunpack.c.h.bf16 %v1479_v24 }
  0x4a   :  { %785 = vrot.lane.b32.xlu1 %v1339_v27, %s1507_s19  ;;  %783 = vrot.lane.b32.xlu0 %v1338_v28, %s1507_s19  ;;  %v1476_v27 = vld [vmem:[%s2318_s0 + $0x30] sm:$0xff]   ;;  %v1729_v28 = vunpack.c.l.b16 %v288_v18  ;;  %v165_v18 = vmul.f32 %v1656_v33, %v1377_v7 }
  0x4b   :  { %787 = vrot.lane.b32.xlu2 %v1340_v30, %s1507_s19  ;;  %v1733_v30 = vunpack.c.l.b16 %v284_v20  ;;  %v1369_v42 = vunpack.c.l.bf16 %v1476_v27  ;;  %v1370_v50 = vunpack.c.h.bf16 %v1476_v27 }
  0x4c   :  { %v540_v38 = vpack.c.b16 %v1729_v28, %v1724_v25  ;;  %v233_v31 = vadd.f32 %v1668_v39, %v165_v18 }
  0x4d   :  { %v538_v40 = vpack.c.b16 %v1733_v30, %v1731_v29  ;;  %v161_v54 = vmul.f32 %v1656_v33, %v1369_v42  ;;  %v162_v60 = vmul.f32 %v1656_v33, %v1370_v50  ;;  %v1483_v50 = vld [vmem:[%s2318_s0 + $0x68] sm:$0xff]   ;;  %v1485_v29 = vld [vmem:[%s2318_s0 + $0x78] sm:$0xff]  }
  0x4e   :  { %v297_v42 = vpack.c.bf16 %v233_v31, %v233_v31  ;;  %v1397_v2 = vunpack.c.l.bf16 %v1483_v50  ;;  %v1398_v7 = vunpack.c.h.bf16 %v1483_v50  ;;  %v1854_v50 = vld [vmem:[%s2318_s0 + $0x80] sm:$0xff]  }
  0x4f   :  { %v229_v4 = vadd.f32 %v1668_v39, %v161_v54  ;;  %v230_v6 = vadd.f32 %v1668_v39, %v162_v60 }
  0x51   :  { %v293_v11 = vpack.c.bf16 %v229_v4, %v229_v4  ;;  %v294_v16 = vpack.c.bf16 %v230_v6, %v230_v6 }
  0x52   :  { %791 = vrot.lane.b32.xlu1 %v1342_v44, %s1507_s19  ;;  %789 = vrot.lane.b32.xlu0 %v1341_v45, %s1507_s19  ;;  %v227_v44 = vadd.f32 %v1668_v39, %v159_v34  ;;  %v163_v45 = vmul.f32 %v1656_v33, %v1373_v35 }
  0x53   :  { %v1774_v21 = vunpack.c.l.b16 %v293_v11  ;;  %v1781_v27 = vunpack.c.l.b16 %v294_v16 }
  0x54   :  { %v291_v51 = vpack.c.bf16 %v227_v44, %v227_v44  ;;  %v231_v52 = vadd.f32 %v1668_v39, %v163_v45  ;;  %v1381_v44 = vunpack.c.l.bf16 %v1479_v24  ;;  %v1481_v45 = vld [vmem:[%s2318_s0 + $0x58] sm:$0xff]  }
  0x55   :  { %v543_v41 = vpack.c.b16 %v1781_v27, %v1774_v21  ;;  %v1389_v58 = vunpack.c.l.bf16 %v1481_v45  ;;  %v1390_v60 = vunpack.c.h.bf16 %v1481_v45  ;;  %v1489_v27 = vld [vmem:[%s2318_s0 + $0x98] sm:$0xff]  }
  0x56   :  { %v483_v0 = vunpack.c.l.b16 %v291_v51  ;;  %v295_v1 = vpack.c.bf16 %v231_v52, %v231_v52  ;;  %v489_v51 = vunpack.c.l.b16 %v297_v42  ;;  %v167_v54 = vmul.f32 %v1656_v33, %v1381_v44 }
  0x57   :  { %v172_v6 = vmul.f32 %v1656_v33, %v1390_v60 }
  0x58   :  { %v1766_v9 = vunpack.c.l.b16 %v295_v1  ;;  %v542_v15 = vpack.c.b16 %v484_v5, %v483_v0  ;;  %v168_v0 = vmul.f32 %v1656_v33, %v1382_v53  ;;  %v235_v1 = vadd.f32 %v1668_v39, %v167_v54 }
  0x59   :  { %v171_v5 = vmul.f32 %v1656_v33, %v1389_v58  ;;  %v240_v24 = vadd.f32 %v1668_v39, %v172_v6 }
  0x5a   :  { %v544_v20 = vpack.c.b16 %v1768_v10, %v1766_v9  ;;  %v236_v11 = vadd.f32 %v1668_v39, %v168_v0  ;;  %v299_v12 = vpack.c.bf16 %v235_v1, %v235_v1  ;;  %v1394_v0 = vunpack.c.h.bf16 %v1482_v55 }
  0x5b   :  { %v304_v45 = vpack.c.bf16 %v240_v24, %v240_v24 }
  0x5c   :  { %v300_v22 = vpack.c.bf16 %v236_v11, %v236_v11 }
  0x5d   :  { %v738_v37 = vpop.permute.xlu2 %737  ;;  %v496_v3 = vunpack.c.l.b16 %v304_v45 }
  0x5e   :  { %v808_v43 = vsel %vm793_vm0, %v541_v32, %v738_v37  ;;  %v234_v32 = vadd.f32 %v1668_v39, %v166_v19  ;;  %v237_v37 = vadd.f32 %v1668_v39, %v169_v23  ;;  %v239_v19 = vadd.f32 %v1668_v39, %v171_v5 }
  0x5f   :  { %v930_v47 = vunpack.c.l.b16 %v808_v43  ;;  %v931_v48 = vunpack.c.h.b16 %v808_v43  ;;  %v1819_v23 = vunpack.c.l.b16 %v299_v12  ;;  %v1832_v44 = vunpack.c.l.b16 %v300_v22 }
  0x60   :  { %v298_v43 = vpack.c.bf16 %v234_v32, %v234_v32  ;;  %v301_v49 = vpack.c.bf16 %v237_v37, %v237_v37  ;;  %v1409_v5 = vunpack.c.l.bf16 %v1854_v50 }
  0x61   :  { %v994_v56 = vpack.c.b16 %v930_v47, %v930_v47  ;;  %v995_v57 = vpack.c.b16 %v931_v48, %v931_v48  ;;  %v238_v48 = vadd.f32 %v1668_v39, %v170_v36  ;;  %v303_v36 = vpack.c.bf16 %v239_v19, %v239_v19 }
  0x62   :  { %v490_v52 = vunpack.c.l.b16 %v298_v43  ;;  %v546_v59 = vpack.c.b16 %v1832_v44, %v1819_v23  ;;  %v174_v19 = vmul.f32 %v1656_v33, %v1394_v0 }
  0x63   :  { %1123 = vst.msk [vmem:[%s2319_s4 + $0x20] sm:$0xf] %vm1114_vm1, %v994_v56  ;;  %v302_v56 = vpack.c.bf16 %v238_v48, %v238_v48  ;;  %v495_v63 = vunpack.c.l.b16 %v303_v36 }
  0x64   :  { %1124 = vst.msk [vmem:[%s2319_s4 + $0x24] sm:$0xf] %vm1114_vm1, %v995_v57  ;;  %v1801_v57 = vunpack.c.l.b16 %v301_v49  ;;  %v545_v62 = vpack.c.b16 %v490_v52, %v489_v51  ;;  %v242_v25 = vadd.f32 %v1668_v39, %v174_v19 }
  0x65   :  { %v740_v14 = vpop.permute.xlu2 %739  ;;  %v1809_v4 = vunpack.c.l.b16 %v302_v56  ;;  %v548_v58 = vpack.c.b16 %v496_v3, %v495_v63  ;;  %v1410_v63 = vunpack.c.h.bf16 %v1854_v50  ;;  %v181_v3 = vmul.f32 %v1656_v33, %v1409_v5 }
  0x66   :  { %v811_v26 = vsel %vm793_vm0, %v542_v15, %v740_v14  ;;  %v175_v14 = vmul.f32 %v1656_v33, %v1397_v2 }
  0x67   :  { %v932_v34 = vunpack.c.l.b16 %v811_v26  ;;  %v933_v35 = vunpack.c.h.b16 %v811_v26  ;;  %v547_v18 = vpack.c.b16 %v1809_v4, %v1801_v57  ;;  %v176_v26 = vmul.f32 %v1656_v33, %v1398_v7  ;;  %v1488_v4 = vld [vmem:[%s2318_s0 + $0x90] sm:$0xff]  }
  0x68   :  { %v243_v37 = vadd.f32 %v1668_v39, %v175_v14 }
  0x69   :  { %v996_v46 = vpack.c.b16 %v932_v34, %v932_v34  ;;  %v997_v47 = vpack.c.b16 %v933_v35, %v933_v35 }
  0x6a   :  { %v307_v60 = vpack.c.bf16 %v243_v37, %v243_v37 }
  0x6b   :  { %1125 = vst.msk [vmem:[%s2319_s4 + $0x28] sm:$0xf] %vm1114_vm1, %v996_v46 }
  0x6c   :  { %1126 = vst.msk [vmem:[%s2319_s4 + $0x2c] sm:$0xf] %vm1114_vm1, %v997_v47  ;;  %v1866_v7 = vunpack.c.l.b16 %v307_v60  ;;  %v249_v60 = vadd.f32 %v1668_v39, %v181_v3 }
  0x6d   :  { %v746_v61 = vpop.permute.xlu2 %745 }
  0x6e   :  { %v820_v8 = vsel %vm793_vm0, %v545_v62, %v746_v61  ;;  %v1393_v62 = vunpack.c.l.bf16 %v1482_v55  ;;  %v313_v21 = vpack.c.bf16 %v249_v60, %v249_v60 }
  0x6f   :  { %v938_v15 = vunpack.c.l.b16 %v820_v8  ;;  %v939_v16 = vunpack.c.h.b16 %v820_v8 }
  0x70   :  { %v173_v11 = vmul.f32 %v1656_v33, %v1393_v62 }
  0x71   :  { %v1002_v34 = vpack.c.b16 %v938_v15, %v938_v15  ;;  %v1003_v35 = vpack.c.b16 %v939_v16, %v939_v16 }
  0x73   :  { %1131 = vst.msk [vmem:[%s2319_s4 + $0x40] sm:$0xf] %vm1114_vm1, %v1002_v34 }
  0x74   :  { %v734_v31 = vpop.permute.xlu1 %733  ;;  %v730_v32 = vpop.permute.xlu0 %729  ;;  %1132 = vst.msk [vmem:[%s2319_s4 + $0x44] sm:$0xf] %vm1114_vm1, %v1003_v35 }
  0x75   :  { %v802_v42 = vsel %vm793_vm0, %v539_v13, %v734_v31  ;;  %v796_v43 = vsel %vm793_vm0, %v537_v17, %v730_v32  ;;  %v244_v13 = vadd.f32 %v1668_v39, %v176_v26  ;;  %v1484_v17 = vld [vmem:[%s2318_s0 + $0x70] sm:$0xff]   ;;  %v752_v56 = vpop.permute.xlu2 %751  ;;  %v241_v32 = vadd.f32 %v1668_v39, %v173_v11 }
  0x76   :  { %v926_v46 = vunpack.c.l.b16 %v802_v42  ;;  %v927_v47 = vunpack.c.h.b16 %v802_v42  ;;  %v922_v48 = vunpack.c.l.b16 %v796_v43  ;;  %v923_v49 = vunpack.c.h.b16 %v796_v43 }
  0x77   :  { %v308_v61 = vpack.c.bf16 %v244_v13, %v244_v13  ;;  %v1401_v1 = vunpack.c.l.bf16 %v1484_v17  ;;  %v1402_v2 = vunpack.c.h.bf16 %v1484_v17  ;;  %v829_v6 = vsel %vm793_vm0, %v548_v58, %v752_v56 }
  0x78   :  { %v990_v51 = vpack.c.b16 %v926_v46, %v926_v46  ;;  %v991_v52 = vpack.c.b16 %v927_v47, %v927_v47  ;;  %v986_v53 = vpack.c.b16 %v922_v48, %v922_v48  ;;  %v987_v54 = vpack.c.b16 %v923_v49, %v923_v49  ;;  %v1899_v46 = vld [vmem:[%s2318_s0 + $0x88] sm:$0xff]  }
  0x79   :  { %v1868_v8 = vunpack.c.l.b16 %v308_v61  ;;  %v944_v15 = vunpack.c.l.b16 %v829_v6  ;;  %v945_v16 = vunpack.c.h.b16 %v829_v6  ;;  %v177_v22 = vmul.f32 %v1656_v33, %v1401_v1 }
  0x7a   :  { %1119 = vst.msk [vmem:[%s2319_s4 + $0x10] sm:$0xf] %vm1114_vm1, %v990_v51  ;;  %v305_v28 = vpack.c.bf16 %v241_v32, %v241_v32  ;;  %v306_v47 = vpack.c.bf16 %v242_v25, %v242_v25  ;;  %v178_v49 = vmul.f32 %v1656_v33, %v1402_v2  ;;  %v1405_v13 = vunpack.c.l.bf16 %v1485_v29 }
  0x7b   :  { %1120 = vst.msk [vmem:[%s2319_s4 + $0x14] sm:$0xf] %vm1114_vm1, %v991_v52  ;;  %v550_v31 = vpack.c.b16 %v1868_v8, %v1866_v7  ;;  %v1008_v42 = vpack.c.b16 %v944_v15, %v944_v15  ;;  %v1009_v43 = vpack.c.b16 %v945_v16, %v945_v16  ;;  %v245_v55 = vadd.f32 %v1668_v39, %v177_v22 }
  0x7c   :  { %1115 = vst.msk [vmem:[%s2319_s4] sm:$0xf] %vm1114_vm1, %v986_v53  ;;  %v736_v12 = vpop.permute.xlu1 %735  ;;  %v732_v14 = vpop.permute.xlu0 %731  ;;  %v1905_v48 = vunpack.c.l.b16 %v305_v28  ;;  %v1406_v17 = vunpack.c.h.bf16 %v1485_v29  ;;  %v1919_v51 = vunpack.c.l.b16 %v306_v47  ;;  %v246_v52 = vadd.f32 %v1668_v39, %v178_v49 }
  0x7d   :  { %1116 = vst.msk [vmem:[%s2319_s4 + $0x4] sm:$0xf] %vm1114_vm1, %v987_v54  ;;  %v805_v24 = vsel %vm793_vm0, %v540_v38, %v736_v12  ;;  %v799_v26 = vsel %vm793_vm0, %v538_v40, %v732_v14  ;;  %v309_v53 = vpack.c.bf16 %v245_v55, %v245_v55  ;;  %v1413_v54 = vunpack.c.l.bf16 %v1899_v46  ;;  %v758_v22 = vpop.permute.xlu2 %757 }
  0x7e   :  { %v928_v34 = vunpack.c.l.b16 %v805_v24  ;;  %v929_v35 = vunpack.c.h.b16 %v805_v24  ;;  %v924_v36 = vunpack.c.l.b16 %v799_v26  ;;  %v925_v37 = vunpack.c.h.b16 %v799_v26  ;;  %1137 = vst.msk [vmem:[%s2319_s4 + $0x58] sm:$0xf] %vm1114_vm1, %v1008_v42 }
  0x7f   :  { %v182_v58 = vmul.f32 %v1656_v33, %v1410_v63  ;;  %v179_v61 = vmul.f32 %v1656_v33, %v1405_v13  ;;  %v180_v62 = vmul.f32 %v1656_v33, %v1406_v17  ;;  %v549_v2 = vpack.c.b16 %v1919_v51, %v1905_v48  ;;  %1138 = vst.msk [vmem:[%s2319_s4 + $0x5c] sm:$0xf] %vm1114_vm1, %v1009_v43 }
  0x80   :  { %v992_v30 = vpack.c.b16 %v928_v34, %v928_v34  ;;  %v993_v38 = vpack.c.b16 %v929_v35, %v929_v35  ;;  %v988_v40 = vpack.c.b16 %v924_v36, %v924_v36  ;;  %v989_v45 = vpack.c.b16 %v925_v37, %v925_v37 }
  0x81   :  { %v310_v5 = vpack.c.bf16 %v246_v52, %v246_v52  ;;  %v501_v9 = vunpack.c.l.b16 %v309_v53  ;;  %v1953_v32 = vunpack.c.l.b16 %v313_v21  ;;  %v247_v34 = vadd.f32 %v1668_v39, %v179_v61 }
  0x82   :  { %1121 = vst.msk [vmem:[%s2319_s4 + $0x18] sm:$0xf] %vm1114_vm1, %v992_v30  ;;  %v248_v35 = vadd.f32 %v1668_v39, %v180_v62  ;;  %v1414_v36 = vunpack.c.h.bf16 %v1899_v46  ;;  %v183_v37 = vmul.f32 %v1656_v33, %v1413_v54  ;;  %v1421_v42 = vunpack.c.l.bf16 %v1489_v27 }
  0x83   :  { %1122 = vst.msk [vmem:[%s2319_s4 + $0x1c] sm:$0xf] %vm1114_vm1, %v993_v38  ;;  %v502_v10 = vunpack.c.l.b16 %v310_v5  ;;  %v311_v28 = vpack.c.bf16 %v247_v34, %v247_v34  ;;  %v1422_v29 = vunpack.c.h.bf16 %v1489_v27  ;;  %v1417_v5 = vunpack.c.l.bf16 %v1488_v4 }
  0x84   :  { %1117 = vst.msk [vmem:[%s2319_s4 + $0x8] sm:$0xf] %vm1114_vm1, %v988_v40  ;;  %v744_v50 = vpop.permute.xlu1 %743  ;;  %v742_v56 = vpop.permute.xlu0 %741  ;;  %v312_v46 = vpack.c.bf16 %v248_v35, %v248_v35  ;;  %v184_v47 = vmul.f32 %v1656_v33, %v1414_v36  ;;  %v251_v57 = vadd.f32 %v1668_v39, %v183_v37 }
  0x85   :  { %1118 = vst.msk [vmem:[%s2319_s4 + $0xc] sm:$0xf] %vm1114_vm1, %v989_v45  ;;  %v817_v0 = vsel %vm793_vm0, %v544_v20, %v744_v50  ;;  %v814_v1 = vsel %vm793_vm0, %v543_v41, %v742_v56  ;;  %v250_v20 = vadd.f32 %v1668_v39, %v182_v58  ;;  %v551_v24 = vpack.c.b16 %v502_v10, %v501_v9 }
  0x86   :  { %v936_v6 = vunpack.c.l.b16 %v817_v0  ;;  %v937_v11 = vunpack.c.h.b16 %v817_v0  ;;  %v934_v12 = vunpack.c.l.b16 %v814_v1  ;;  %v935_v14 = vunpack.c.h.b16 %v814_v1 }
  0x87   :  { %v314_v26 = vpack.c.bf16 %v250_v20, %v250_v20  ;;  %v838_v43 = vsel %vm793_vm0, %v551_v24, %v758_v22  ;;  %v1989_v3 = vunpack.c.l.b16 %v311_v28  ;;  %v1991_v56 = vunpack.c.l.b16 %v312_v46 }
  0x88   :  { %v1000_v41 = vpack.c.b16 %v936_v6, %v936_v6  ;;  %v1001_v15 = vpack.c.b16 %v937_v11, %v937_v11  ;;  %v998_v16 = vpack.c.b16 %v934_v12, %v934_v12  ;;  %v999_v19 = vpack.c.b16 %v935_v14, %v935_v14 }
  0x89   :  { %v1968_v25 = vunpack.c.l.b16 %v314_v26  ;;  %v950_v40 = vunpack.c.l.b16 %v838_v43  ;;  %v951_v45 = vunpack.c.h.b16 %v838_v43  ;;  %v552_v60 = vpack.c.b16 %v1991_v56, %v1989_v3 }
  0x8a   :  { %1129 = vst.msk [vmem:[%s2319_s4 + $0x38] sm:$0xf] %vm1114_vm1, %v1000_v41  ;;  %v252_v61 = vadd.f32 %v1668_v39, %v184_v47  ;;  %v315_v62 = vpack.c.bf16 %v251_v57, %v251_v57  ;;  %v187_v0 = vmul.f32 %v1656_v33, %v1421_v42  ;;  %v188_v1 = vmul.f32 %v1656_v33, %v1422_v29  ;;  %v764_v42 = vpop.permute.xlu2 %763  ;;  %v1492_v29 = vld [vmem:[%s2318_s0 + $0xb0] sm:$0xff]  }
  0x8b   :  { %1130 = vst.msk [vmem:[%s2319_s4 + $0x3c] sm:$0xf] %vm1114_vm1, %v1001_v15  ;;  %v553_v63 = vpack.c.b16 %v1968_v25, %v1953_v32  ;;  %v1014_v54 = vpack.c.b16 %v950_v40, %v950_v40  ;;  %v1015_v50 = vpack.c.b16 %v951_v45, %v951_v45  ;;  %v1418_v6 = vunpack.c.h.bf16 %v1488_v4  ;;  %v1491_v32 = vld [vmem:[%s2318_s0 + $0xa8] sm:$0xff]  }
  0x8c   :  { %1127 = vst.msk [vmem:[%s2319_s4 + $0x30] sm:$0xf] %vm1114_vm1, %v998_v16  ;;  %v750_v30 = vpop.permute.xlu1 %749  ;;  %v748_v38 = vpop.permute.xlu0 %747  ;;  %v316_v12 = vpack.c.bf16 %v252_v61, %v252_v61  ;;  %v507_v14 = vunpack.c.l.b16 %v315_v62  ;;  %v255_v9 = vadd.f32 %v1668_v39, %v187_v0  ;;  %v256_v27 = vadd.f32 %v1668_v39, %v188_v1 }
  0x8d   :  { %1128 = vst.msk [vmem:[%s2319_s4 + $0x34] sm:$0xf] %vm1114_vm1, %v999_v19  ;;  %v826_v49 = vsel %vm793_vm0, %v547_v18, %v750_v30  ;;  %v823_v55 = vsel %vm793_vm0, %v546_v59, %v748_v38  ;;  %v1490_v18 = vld [vmem:[%s2318_s0 + $0xa0] sm:$0xff]   ;;  %v185_v41 = vmul.f32 %v1656_v33, %v1417_v5  ;;  %v186_v15 = vmul.f32 %v1656_v33, %v1418_v6  ;;  %v1495_v6 = vld [vmem:[%s2318_s0 + $0xc8] sm:$0xff]  }
  0x8e   :  { %v942_v13 = vunpack.c.l.b16 %v826_v49  ;;  %v943_v17 = vunpack.c.h.b16 %v826_v49  ;;  %v940_v52 = vunpack.c.l.b16 %v823_v55  ;;  %v941_v53 = vunpack.c.h.b16 %v823_v55  ;;  %1143 = vst.msk [vmem:[%s2319_s4 + $0x70] sm:$0xf] %vm1114_vm1, %v1014_v54 }
  0x8f   :  { %v1425_v11 = vunpack.c.l.bf16 %v1490_v18  ;;  %v1426_v10 = vunpack.c.h.bf16 %v1490_v18  ;;  %v508_v24 = vunpack.c.l.b16 %v316_v12  ;;  %v319_v26 = vpack.c.bf16 %v255_v9, %v255_v9  ;;  %1144 = vst.msk [vmem:[%s2319_s4 + $0x74] sm:$0xf] %vm1114_vm1, %v1015_v50 }
  0x90   :  { %v1006_v23 = vpack.c.b16 %v942_v13, %v942_v13  ;;  %v1007_v44 = vpack.c.b16 %v943_v17, %v943_v17  ;;  %v1004_v59 = vpack.c.b16 %v940_v52, %v940_v52  ;;  %v1005_v58 = vpack.c.b16 %v941_v53, %v941_v53 }
  0x91   :  { %v189_v16 = vmul.f32 %v1656_v33, %v1425_v11  ;;  %v554_v7 = vpack.c.b16 %v508_v24, %v507_v14  ;;  %v320_v8 = vpack.c.bf16 %v256_v27, %v256_v27  ;;  %v253_v48 = vadd.f32 %v1668_v39, %v185_v41 }
  0x92   :  { %1135 = vst.msk [vmem:[%s2319_s4 + $0x50] sm:$0xf] %vm1114_vm1, %v1006_v23  ;;  %v254_v40 = vadd.f32 %v1668_v39, %v186_v15  ;;  %v190_v49 = vmul.f32 %v1656_v33, %v1426_v10  ;;  %v1433_v53 = vunpack.c.l.bf16 %v1492_v29  ;;  %v1434_v61 = vunpack.c.h.bf16 %v1492_v29  ;;  %v770_v41 = vpop.permute.xlu2 %769 }
  0x93   :  { %1136 = vst.msk [vmem:[%s2319_s4 + $0x54] sm:$0xf] %vm1114_vm1, %v1007_v44  ;;  %v847_v30 = vsel %vm793_vm0, %v554_v7, %v764_v42  ;;  %v2049_v38 = vunpack.c.l.b16 %v320_v8  ;;  %v317_v45 = vpack.c.bf16 %v253_v48, %v253_v48  ;;  %v257_v55 = vadd.f32 %v1668_v39, %v189_v16 }
  0x94   :  { %1133 = vst.msk [vmem:[%s2319_s4 + $0x48] sm:$0xf] %vm1114_vm1, %v1004_v59  ;;  %v756_v20 = vpop.permute.xlu1 %755  ;;  %v754_v21 = vpop.permute.xlu0 %753  ;;  %v956_v46 = vunpack.c.l.b16 %v847_v30  ;;  %v957_v47 = vunpack.c.h.b16 %v847_v30  ;;  %v318_v17 = vpack.c.bf16 %v254_v40, %v254_v40  ;;  %v258_v18 = vadd.f32 %v1668_v39, %v190_v49 }
  0x95   :  { %1134 = vst.msk [vmem:[%s2319_s4 + $0x4c] sm:$0xf] %vm1114_vm1, %v1005_v58  ;;  %v835_v19 = vsel %vm793_vm0, %v550_v31, %v756_v20  ;;  %v832_v22 = vsel %vm793_vm0, %v549_v2, %v754_v21  ;;  %v2042_v31 = vunpack.c.l.b16 %v319_v26  ;;  %v509_v52 = vunpack.c.l.b16 %v317_v45 }
  0x96   :  { %v948_v34 = vunpack.c.l.b16 %v835_v19  ;;  %v949_v35 = vunpack.c.h.b16 %v835_v19  ;;  %v946_v36 = vunpack.c.l.b16 %v832_v22  ;;  %v947_v37 = vunpack.c.h.b16 %v832_v22 }
  0x97   :  { %v556_v13 = vpack.c.b16 %v2049_v38, %v2042_v31  ;;  %v1020_v57 = vpack.c.b16 %v956_v46, %v956_v46  ;;  %v1021_v4 = vpack.c.b16 %v957_v47, %v957_v47  ;;  %v321_v23 = vpack.c.bf16 %v257_v55, %v257_v55 }
  0x98   :  { %v1012_v51 = vpack.c.b16 %v948_v34, %v948_v34  ;;  %v1013_v2 = vpack.c.b16 %v949_v35, %v949_v35  ;;  %v1010_v43 = vpack.c.b16 %v946_v36, %v946_v36  ;;  %v1011_v28 = vpack.c.b16 %v947_v37, %v947_v37 }
  0x99   :  { %v510_v58 = vunpack.c.l.b16 %v318_v17  ;;  %1149 = vst.msk [vmem:[%s2319_s4 + $0x88] sm:$0xf] %vm1114_vm1, %v1020_v57  ;;  %v513_v3 = vunpack.c.l.b16 %v321_v23  ;;  %v193_v56 = vmul.f32 %v1656_v33, %v1433_v53  ;;  %v194_v20 = vmul.f32 %v1656_v33, %v1434_v61 }
  0x9a   :  { %1141 = vst.msk [vmem:[%s2319_s4 + $0x68] sm:$0xf] %vm1114_vm1, %v1012_v51  ;;  %v1429_v27 = vunpack.c.l.bf16 %v1491_v32  ;;  %v1430_v15 = vunpack.c.h.bf16 %v1491_v32  ;;  %v1445_v22 = vunpack.c.l.bf16 %v1495_v6  ;;  %v1446_v31 = vunpack.c.h.bf16 %v1495_v6 }
  0x9b   :  { %1142 = vst.msk [vmem:[%s2319_s4 + $0x6c] sm:$0xf] %vm1114_vm1, %v1013_v2  ;;  %v555_v25 = vpack.c.b16 %v510_v58, %v509_v52  ;;  %v261_v21 = vadd.f32 %v1668_v39, %v193_v56  ;;  %v262_v26 = vadd.f32 %v1668_v39, %v194_v20 }
  0x9c   :  { %1139 = vst.msk [vmem:[%s2319_s4 + $0x60] sm:$0xf] %vm1114_vm1, %v1010_v43  ;;  %v762_v54 = vpop.permute.xlu1 %761  ;;  %v760_v50 = vpop.permute.xlu0 %759  ;;  %v191_v35 = vmul.f32 %v1656_v33, %v1429_v27  ;;  %v192_v42 = vmul.f32 %v1656_v33, %v1430_v15  ;;  %v200_v58 = vmul.f32 %v1656_v33, %v1446_v31 }
  0x9d   :  { %1140 = vst.msk [vmem:[%s2319_s4 + $0x64] sm:$0xf] %vm1114_vm1, %v1011_v28  ;;  %v844_v44 = vsel %vm793_vm0, %v553_v63, %v762_v54  ;;  %v841_v59 = vsel %vm793_vm0, %v552_v60, %v760_v50  ;;  %v322_v63 = vpack.c.bf16 %v258_v18, %v258_v18  ;;  %v1493_v60 = vld [vmem:[%s2318_s0 + $0xb8] sm:$0xff]   ;;  %v325_v34 = vpack.c.bf16 %v261_v21, %v261_v21 }
  0x9e   :  { %v954_v62 = vunpack.c.l.b16 %v844_v44  ;;  %v955_v0 = vunpack.c.h.b16 %v844_v44  ;;  %v952_v1 = vunpack.c.l.b16 %v841_v59  ;;  %v953_v5 = vunpack.c.h.b16 %v841_v59  ;;  %1150 = vst.msk [vmem:[%s2319_s4 + $0x8c] sm:$0xf] %vm1114_vm1, %v1021_v4 }
  0x9f   :  { %v514_v10 = vunpack.c.l.b16 %v322_v63  ;;  %v1437_v16 = vunpack.c.l.bf16 %v1493_v60  ;;  %v1438_v19 = vunpack.c.h.bf16 %v1493_v60  ;;  %v326_v43 = vpack.c.bf16 %v262_v26, %v262_v26 }
  0xa0   :  { %v1018_v11 = vpack.c.b16 %v954_v62, %v954_v62  ;;  %v1019_v12 = vpack.c.b16 %v955_v0, %v955_v0  ;;  %v1016_v14 = vpack.c.b16 %v952_v1, %v952_v1  ;;  %v1017_v9 = vpack.c.b16 %v953_v5, %v953_v5 }
  0xa1   :  { %v557_v24 = vpack.c.b16 %v514_v10, %v513_v3  ;;  %v195_v7 = vmul.f32 %v1656_v33, %v1437_v16  ;;  %v196_v8 = vmul.f32 %v1656_v33, %v1438_v19  ;;  %v517_v46 = vunpack.c.l.b16 %v325_v34 }
  0xa2   :  { %1147 = vst.msk [vmem:[%s2319_s4 + $0x80] sm:$0xf] %vm1114_vm1, %v1018_v11  ;;  %v518_v47 = vunpack.c.l.b16 %v326_v43  ;;  %v259_v57 = vadd.f32 %v1668_v39, %v191_v35  ;;  %v260_v4 = vadd.f32 %v1668_v39, %v192_v42  ;;  %v199_v44 = vmul.f32 %v1656_v33, %v1445_v22  ;;  %v776_v22 = vpop.permute.xlu2 %775 }
  0xa3   :  { %1148 = vst.msk [vmem:[%s2319_s4 + $0x84] sm:$0xf] %vm1114_vm1, %v1019_v12  ;;  %v856_v2 = vsel %vm793_vm0, %v557_v24, %v770_v41  ;;  %v263_v18 = vadd.f32 %v1668_v39, %v195_v7  ;;  %v264_v23 = vadd.f32 %v1668_v39, %v196_v8  ;;  %v268_v56 = vadd.f32 %v1668_v39, %v200_v58  ;;  %v1496_v41 = vld [vmem:[%s2318_s0 + $0xd0] sm:$0xff]  }
  0xa4   :  { %1145 = vst.msk [vmem:[%s2319_s4 + $0x78] sm:$0xf] %vm1114_vm1, %v1016_v14  ;;  %v768_v36 = vpop.permute.xlu1 %767  ;;  %v766_v37 = vpop.permute.xlu0 %765  ;;  %v962_v40 = vunpack.c.l.b16 %v856_v2  ;;  %v963_v45 = vunpack.c.h.b16 %v856_v2  ;;  %v559_v50 = vpack.c.b16 %v518_v47, %v517_v46  ;;  %v323_v59 = vpack.c.bf16 %v259_v57, %v259_v57 }
  0xa5   :  { %1146 = vst.msk [vmem:[%s2319_s4 + $0x7c] sm:$0xf] %vm1114_vm1, %v1017_v9  ;;  %v853_v48 = vsel %vm793_vm0, %v556_v13, %v768_v36  ;;  %v850_v51 = vsel %vm793_vm0, %v555_v25, %v766_v37  ;;  %v1494_v13 = vld [vmem:[%s2318_s0 + $0xc0] sm:$0xff]   ;;  %v324_v1 = vpack.c.bf16 %v260_v4, %v260_v4  ;;  %v327_v5 = vpack.c.bf16 %v263_v18, %v263_v18  ;;  %v1499_v18 = vld [vmem:[%s2318_s0 + $0xe8] sm:$0xff]  }
  0xa6   :  { %v960_v28 = vunpack.c.l.b16 %v853_v48  ;;  %v961_v29 = vunpack.c.h.b16 %v853_v48  ;;  %v958_v30 = vunpack.c.l.b16 %v850_v51  ;;  %v959_v38 = vunpack.c.h.b16 %v850_v51 }
  0xa7   :  { %v1026_v53 = vpack.c.b16 %v962_v40, %v962_v40  ;;  %v1027_v54 = vpack.c.b16 %v963_v45, %v963_v45  ;;  %v1441_v61 = vunpack.c.l.bf16 %v1494_v13  ;;  %v1442_v62 = vunpack.c.h.bf16 %v1494_v13 }
  0xa8   :  { %v1024_v49 = vpack.c.b16 %v960_v28, %v960_v28  ;;  %v1025_v55 = vpack.c.b16 %v961_v29, %v961_v29  ;;  %v1022_v17 = vpack.c.b16 %v958_v30, %v958_v30  ;;  %v1023_v52 = vpack.c.b16 %v959_v38, %v959_v38  ;;  %v1498_v38 = vld [vmem:[%s2318_s0 + $0xe0] sm:$0xff]  }
  0xa9   :  { %v328_v32 = vpack.c.bf16 %v264_v23, %v264_v23  ;;  %v267_v25 = vadd.f32 %v1668_v39, %v199_v44  ;;  %v515_v3 = vunpack.c.l.b16 %v323_v59  ;;  %v197_v60 = vmul.f32 %v1656_v33, %v1441_v61  ;;  %1155 = vst.msk [vmem:[%s2319_s4 + $0xa0] sm:$0xf] %vm1114_vm1, %v1026_v53 }
  0xaa   :  { %1153 = vst.msk [vmem:[%s2319_s4 + $0x98] sm:$0xf] %vm1114_vm1, %v1024_v49  ;;  %v516_v14 = vunpack.c.l.b16 %v324_v1  ;;  %v519_v9 = vunpack.c.l.b16 %v327_v5  ;;  %v332_v21 = vpack.c.bf16 %v268_v56, %v268_v56  ;;  %v198_v27 = vmul.f32 %v1656_v33, %v1442_v62  ;;  %v1497_v49 = vld [vmem:[%s2318_s0 + $0xd8] sm:$0xff]  }
  0xab   :  { %1154 = vst.msk [vmem:[%s2319_s4 + $0x9c] sm:$0xf] %vm1114_vm1, %v1025_v55  ;;  %v520_v10 = vunpack.c.l.b16 %v328_v32  ;;  %v331_v20 = vpack.c.bf16 %v267_v25, %v267_v25  ;;  %v265_v24 = vadd.f32 %v1668_v39, %v197_v60  ;;  %v1449_v7 = vunpack.c.l.bf16 %v1496_v41 }
  0xac   :  { %1151 = vst.msk [vmem:[%s2319_s4 + $0x90] sm:$0xf] %vm1114_vm1, %v1022_v17  ;;  %v774_v0 = vpop.permute.xlu1 %773  ;;  %v772_v12 = vpop.permute.xlu0 %771  ;;  %v558_v19 = vpack.c.b16 %v516_v14, %v515_v3  ;;  %v524_v35 = vunpack.c.l.b16 %v332_v21  ;;  %v266_v36 = vadd.f32 %v1668_v39, %v198_v27  ;;  %v1450_v8 = vunpack.c.h.bf16 %v1496_v41 }
  0xad   :  { %1152 = vst.msk [vmem:[%s2319_s4 + $0x94] sm:$0xf] %vm1114_vm1, %v1023_v52  ;;  %v862_v63 = vsel %vm793_vm0, %v559_v50, %v774_v0  ;;  %v560_v26 = vpack.c.b16 %v520_v10, %v519_v9  ;;  %v523_v34 = vunpack.c.l.b16 %v331_v20  ;;  %v329_v42 = vpack.c.bf16 %v265_v24, %v265_v24  ;;  %v2199_v50 = vld [vmem:[%s2317_s2] ss:$0 sm:$0xff] }
  0xae   :  { %v966_v6 = vunpack.c.l.b16 %v862_v63  ;;  %v967_v11 = vunpack.c.h.b16 %v862_v63  ;;  %1156 = vst.msk [vmem:[%s2319_s4 + $0xa4] sm:$0xf] %vm1114_vm1, %v1027_v54  ;;  %v859_v37 = vsel %vm793_vm0, %v558_v19, %v772_v12  ;;  %v330_v29 = vpack.c.bf16 %v266_v36, %v266_v36  ;;  %v2193_v54 = vld [vmem:[%s2316_s1] ss:$0 sm:$0xff] }
  0xaf   :  { %v964_v31 = vunpack.c.l.b16 %v859_v37  ;;  %v965_v48 = vunpack.c.h.b16 %v859_v37  ;;  %v865_v51 = vsel %vm793_vm0, %v560_v26, %v776_v22  ;;  %v562_v39 = vpack.c.b16 %v524_v35, %v523_v34  ;;  %v782_v22 = vpop.permute.xlu2 %781 }
  0xb0   :  { %v1030_v15 = vpack.c.b16 %v966_v6, %v966_v6  ;;  %v1031_v16 = vpack.c.b16 %v967_v11, %v967_v11  ;;  %v968_v2 = vunpack.c.l.b16 %v865_v51  ;;  %v969_v43 = vunpack.c.h.b16 %v865_v51 }
  0xb1   :  { %v521_v30 = vunpack.c.l.b16 %v329_v42  ;;  %v1028_v40 = vpack.c.b16 %v964_v31, %v964_v31  ;;  %v1029_v45 = vpack.c.b16 %v965_v48, %v965_v48  ;;  %v201_v47 = vmul.f32 %v1656_v33, %v1449_v7 }
  0xb2   :  { %1159 = vst.msk [vmem:[%s2319_s4 + $0xb0] sm:$0xf] %vm1114_vm1, %v1030_v15  ;;  %v1032_v55 = vpack.c.b16 %v968_v2, %v968_v2  ;;  %v1033_v17 = vpack.c.b16 %v969_v43, %v969_v43  ;;  %v522_v53 = vunpack.c.l.b16 %v330_v29  ;;  %v202_v33 = vmul.f32 %v2193_v54, %v1450_v8  ;;  %v1501_v15 = vld [vmem:[%s2318_s0 + $0xf8] sm:$0xff]  }
  0xb3   :  { %1160 = vst.msk [vmem:[%s2319_s4 + $0xb4] sm:$0xf] %vm1114_vm1, %v1031_v16  ;;  %v269_v57 = vadd.f32 %v2199_v50, %v201_v47  ;;  %v1457_v4 = vunpack.c.l.bf16 %v1498_v38  ;;  %v1458_v58 = vunpack.c.h.bf16 %v1498_v38  ;;  %v1453_v61 = vunpack.c.l.bf16 %v1497_v49 }
  0xb4   :  { %v780_v28 = vpop.permute.xlu1 %779  ;;  %1157 = vst.msk [vmem:[%s2319_s4 + $0xa8] sm:$0xf] %vm1114_vm1, %v1028_v40  ;;  %v778_v59 = vpop.permute.xlu0 %777  ;;  %v561_v62 = vpack.c.b16 %v522_v53, %v521_v30  ;;  %v270_v0 = vadd.f32 %v2199_v50, %v202_v33  ;;  %v1454_v25 = vunpack.c.h.bf16 %v1497_v49  ;;  %v1461_v3 = vunpack.c.l.bf16 %v1499_v18 }
  0xb5   :  { %v871_v46 = vsel %vm793_vm0, %v562_v39, %v780_v28  ;;  %1158 = vst.msk [vmem:[%s2319_s4 + $0xac] sm:$0xf] %vm1114_vm1, %v1029_v45  ;;  %v333_v1 = vpack.c.bf16 %v269_v57, %v269_v57  ;;  %v205_v5 = vmul.f32 %v2193_v54, %v1457_v4  ;;  %v206_v32 = vmul.f32 %v2193_v54, %v1458_v58 }
  0xb6   :  { %v972_v52 = vunpack.c.l.b16 %v871_v46  ;;  %v973_v13 = vunpack.c.h.b16 %v871_v46  ;;  %1161 = vst.msk [vmem:[%s2319_s4 + $0xb8] sm:$0xf] %vm1114_vm1, %v1032_v55  ;;  %v203_v63 = vmul.f32 %v2193_v54, %v1453_v61  ;;  %v868_v56 = vsel %vm793_vm0, %v561_v62, %v778_v59  ;;  %v1500_v55 = vld [vmem:[%s2318_s0 + $0xf0] sm:$0xff]  }
  0xb7   :  { %1162 = vst.msk [vmem:[%s2319_s4 + $0xbc] sm:$0xf] %vm1114_vm1, %v1033_v17  ;;  %v334_v60 = vpack.c.bf16 %v270_v0, %v270_v0  ;;  %v525_v6 = vunpack.c.l.b16 %v333_v1  ;;  %v273_v11 = vadd.f32 %v2199_v50, %v205_v5  ;;  %v970_v12 = vunpack.c.l.b16 %v868_v56 }
  0xb8   :  { %v1036_v23 = vpack.c.b16 %v972_v52, %v972_v52  ;;  %v1037_v44 = vpack.c.b16 %v973_v13, %v973_v13  ;;  %v971_v14 = vunpack.c.h.b16 %v868_v56  ;;  %v274_v9 = vadd.f32 %v2199_v50, %v206_v32 }
  0xb9   :  { %v204_v10 = vmul.f32 %v2193_v54, %v1454_v25  ;;  %v526_v20 = vunpack.c.l.b16 %v334_v60  ;;  %v337_v21 = vpack.c.bf16 %v273_v11, %v273_v11  ;;  %v271_v27 = vadd.f32 %v2199_v50, %v203_v63  ;;  %v788_v60 = vpop.permute.xlu2 %787 }
  0xba   :  { %1165 = vst.msk [vmem:[%s2319_s4 + $0xc8] sm:$0xf] %vm1114_vm1, %v1036_v23  ;;  %v1462_v41 = vunpack.c.h.bf16 %v1499_v18  ;;  %v1034_v16 = vpack.c.b16 %v970_v12, %v970_v12  ;;  %v1035_v19 = vpack.c.b16 %v971_v14, %v971_v14  ;;  %v338_v24 = vpack.c.bf16 %v274_v9, %v274_v9 }
  0xbb   :  { %1166 = vst.msk [vmem:[%s2319_s4 + $0xcc] sm:$0xf] %vm1114_vm1, %v1037_v44  ;;  %v272_v26 = vadd.f32 %v2199_v50, %v204_v10  ;;  %v563_v34 = vpack.c.b16 %v526_v20, %v525_v6  ;;  %v529_v35 = vunpack.c.l.b16 %v337_v21  ;;  %v335_v36 = vpack.c.bf16 %v271_v27, %v271_v27 }
  0xbc   :  { %v207_v37 = vmul.f32 %v2193_v54, %v1461_v3  ;;  %1163 = vst.msk [vmem:[%s2319_s4 + $0xc0] sm:$0xf] %vm1114_vm1, %v1034_v16  ;;  %v530_v42 = vunpack.c.l.b16 %v338_v24  ;;  %v208_v8 = vmul.f32 %v2193_v54, %v1462_v41  ;;  %v1469_v31 = vunpack.c.l.bf16 %v1501_v15  ;;  %v786_v51 = vpop.permute.xlu1 %785  ;;  %v784_v40 = vpop.permute.xlu0 %783 }
  0xbd   :  { %v336_v7 = vpack.c.bf16 %v272_v26, %v272_v26  ;;  %1164 = vst.msk [vmem:[%s2319_s4 + $0xc4] sm:$0xf] %vm1114_vm1, %v1035_v19  ;;  %v874_v48 = vsel %vm793_vm0, %v563_v34, %v782_v22  ;;  %v527_v39 = vunpack.c.l.b16 %v335_v36  ;;  %v1470_v43 = vunpack.c.h.bf16 %v1501_v15 }
  0xbe   :  { %v275_v2 = vadd.f32 %v2199_v50, %v207_v37  ;;  %v974_v28 = vunpack.c.l.b16 %v874_v48  ;;  %v975_v29 = vunpack.c.h.b16 %v874_v48  ;;  %v565_v30 = vpack.c.b16 %v530_v42, %v529_v35 }
  0xbf   :  { %v528_v38 = vunpack.c.l.b16 %v336_v7  ;;  %v276_v45 = vadd.f32 %v2199_v50, %v208_v8  ;;  %v211_v47 = vmul.f32 %v2193_v54, %v1469_v31  ;;  %v212_v49 = vmul.f32 %v2193_v54, %v1470_v43 }
  0xc0   :  { %v339_v46 = vpack.c.bf16 %v275_v2, %v275_v2  ;;  %v1038_v17 = vpack.c.b16 %v974_v28, %v974_v28  ;;  %v1039_v52 = vpack.c.b16 %v975_v29, %v975_v29  ;;  %v880_v13 = vsel %vm793_vm0, %v565_v30, %v786_v51 }
  0xc1   :  { %v564_v53 = vpack.c.b16 %v528_v38, %v527_v39  ;;  %v978_v33 = vunpack.c.l.b16 %v880_v13  ;;  %v979_v57 = vunpack.c.h.b16 %v880_v13  ;;  %v340_v4 = vpack.c.bf16 %v276_v45, %v276_v45 }
  0xc2   :  { %v531_v18 = vunpack.c.l.b16 %v339_v46  ;;  %1167 = vst.msk [vmem:[%s2319_s4 + $0xd0] sm:$0xf] %vm1114_vm1, %v1038_v17  ;;  %v279_v44 = vadd.f32 %v2199_v50, %v211_v47  ;;  %v280_v59 = vadd.f32 %v2199_v50, %v212_v49  ;;  %v1465_v58 = vunpack.c.l.bf16 %v1500_v55 }
  0xc3   :  { %v877_v23 = vsel %vm793_vm0, %v564_v53, %v784_v40  ;;  %1168 = vst.msk [vmem:[%s2319_s4 + $0xd4] sm:$0xf] %vm1114_vm1, %v1039_v52  ;;  %v1042_v61 = vpack.c.b16 %v978_v33, %v978_v33  ;;  %v1043_v62 = vpack.c.b16 %v979_v57, %v979_v57  ;;  %v532_v5 = vunpack.c.l.b16 %v340_v4 }
  0xc4   :  { %v976_v0 = vunpack.c.l.b16 %v877_v23  ;;  %v977_v1 = vunpack.c.h.b16 %v877_v23  ;;  %v343_v32 = vpack.c.bf16 %v279_v44, %v279_v44  ;;  %v344_v25 = vpack.c.bf16 %v280_v59, %v280_v59  ;;  %v792_v10 = vpop.permute.xlu1 %791 }
  0xc5   :  { %v1466_v63 = vunpack.c.h.bf16 %v1500_v55  ;;  %1171 = vst.msk [vmem:[%s2319_s4 + $0xe0] sm:$0xf] %vm1114_vm1, %v1042_v61  ;;  %v209_v6 = vmul.f32 %v2193_v54, %v1465_v58  ;;  %v566_v11 = vpack.c.b16 %v532_v5, %v531_v18 }
  0xc6   :  { %v1040_v3 = vpack.c.b16 %v976_v0, %v976_v0  ;;  %v1041_v56 = vpack.c.b16 %v977_v1, %v977_v1  ;;  %1172 = vst.msk [vmem:[%s2319_s4 + $0xe4] sm:$0xf] %vm1114_vm1, %v1043_v62  ;;  %v535_v12 = vunpack.c.l.b16 %v343_v32  ;;  %v536_v14 = vunpack.c.l.b16 %v344_v25 }
  0xc7   :  { %v210_v9 = vmul.f32 %v2193_v54, %v1466_v63  ;;  %v277_v20 = vadd.f32 %v2199_v50, %v209_v6  ;;  %v883_v21 = vsel %vm793_vm0, %v566_v11, %v788_v60 }
  0xc8   :  { %1169 = vst.msk [vmem:[%s2319_s4 + $0xd8] sm:$0xf] %vm1114_vm1, %v1040_v3  ;;  %v568_v27 = vpack.c.b16 %v536_v14, %v535_v12  ;;  %v980_v15 = vunpack.c.l.b16 %v883_v21  ;;  %v981_v54 = vunpack.c.h.b16 %v883_v21 }
  0xc9   :  { %1170 = vst.msk [vmem:[%s2319_s4 + $0xdc] sm:$0xf] %vm1114_vm1, %v1041_v56  ;;  %v278_v41 = vadd.f32 %v2199_v50, %v210_v9  ;;  %v341_v16 = vpack.c.bf16 %v277_v20, %v277_v20  ;;  %v790_v50 = vpop.permute.xlu0 %789 }
  0xca   :  { %v889_v19 = vsel %vm793_vm0, %v568_v27, %v792_v10  ;;  %v1044_v24 = vpack.c.b16 %v980_v15, %v980_v15  ;;  %v1045_v26 = vpack.c.b16 %v981_v54, %v981_v54 }
  0xcb   :  { %v342_v22 = vpack.c.bf16 %v278_v41, %v278_v41  ;;  %v984_v34 = vunpack.c.l.b16 %v889_v19  ;;  %v985_v35 = vunpack.c.h.b16 %v889_v19  ;;  %v533_v36 = vunpack.c.l.b16 %v341_v16 }
  0xcc   :  { %1173 = vst.msk [vmem:[%s2319_s4 + $0xe8] sm:$0xf] %vm1114_vm1, %v1044_v24 }
  0xcd   :  { %v534_v37 = vunpack.c.l.b16 %v342_v22  ;;  %v1048_v42 = vpack.c.b16 %v984_v34, %v984_v34  ;;  %v1049_v7 = vpack.c.b16 %v985_v35, %v985_v35  ;;  %1174 = vst.msk [vmem:[%s2319_s4 + $0xec] sm:$0xf] %vm1114_vm1, %v1045_v26 }
  0xcf   :  { %v567_v8 = vpack.c.b16 %v534_v37, %v533_v36  ;;  %1177 = vst.msk [vmem:[%s2319_s4 + $0xf8] sm:$0xf] %vm1114_vm1, %v1048_v42 }
  0xd0   :  { %1178 = vst.msk [vmem:[%s2319_s4 + $0xfc] sm:$0xf] %vm1114_vm1, %v1049_v7 }
  0xd1   :  { %v886_v31 = vsel %vm793_vm0, %v567_v8, %v790_v50 }
  0xd2   :  { %v982_v48 = vunpack.c.l.b16 %v886_v31  ;;  %v983_v51 = vunpack.c.h.b16 %v886_v31 }
  0xd4   :  { %v1046_v39 = vpack.c.b16 %v982_v48, %v982_v48  ;;  %v1047_v2 = vpack.c.b16 %v983_v51, %v983_v51 }
  0xd6   :  { %1175 = vst.msk [vmem:[%s2319_s4 + $0xf0] sm:$0xf] %vm1114_vm1, %v1046_v39 }
  0xd7   :  { %1176 = vst.msk [vmem:[%s2319_s4 + $0xf4] sm:$0xf] %vm1114_vm1, %v1047_v2 }

// kernel: _lambda_.47
= control target key start
LH: loop header
LB: loop body
LE: loop exit
PB: predicated region body
PF: predicated region fallthrough
CT: control target
= control target key end

     0   :  { %s2314_s12 = smov 0   ;;  %s2316_s13 = smov 0   ;;  %s2726_s0 = inlined_call_operand.vmem [shape: bf16[578,64], index: 0, kind: input, shape index: {}]   ;;  %s2727_s1 = inlined_call_operand.vmem [shape: bf16[64,128], index: 1, kind: input, shape index: {}]   ;;  %s2728_s2 = inlined_call_operand.vmem [shape: f32[1,128], index: 2, kind: input, shape index: {}]   ;;  %s2729_s3 = inlined_call_operand.vmem [shape: f32[578,128], index: 3, kind: output, shape index: {}]  }
   0x1   :  { %s2318_s14 = smov 0   ;;  %s2320_s15 = smov 0  }
   0x2   :  { %s2322_s16 = smov 0  }
   0x3 LB: > { %s1704_s17 = sadd.s32 4294967295, %s2260_s16   ;;  %s32_s18 = sadd.s32 1, %s2256_s15  ;;  %s2260_s16 = sphi %s2322_s16, %s13_s16   ;;  %s2256_s15 = sphi %s2320_s15, %s2739_s15   ;;  %s2252_s14 = sphi %s2318_s14, %s2738_s14   ;;  %s2248_s13 = sphi %s2316_s13, %s2737_s13   ;;  %s2244_s12 = sphi %s2314_s12, %s2736_s12  }
   0x4   : > { %p34_p0 = scmp.ge.s32.totalorder %s32_s18, 2  ;;  %s123_s19 = sadd.s32 1, %s2248_s13 }
   0x5   : > { %p133_p1 = scmp.ne.s32.totalorder %s2248_s13, %s2244_s12  ;;  %p134_p2 = scmp.eq.s32.totalorder %s1704_s17, 1 }
   0x6   : > { %s2741_s18 = smov (%p34_p0, %s32_s18), 0  ;;  %p1710_p4 = scmp.ge.s32.totalorder %s2260_s16, 1 }
   0x7   : > { %p2346_p3 = por %p134_p2, %p133_p1  ;;  %s118_s21 = ssub.s32 %s2256_s15, %s2741_s18 }
   0x8   : > { %p196_p5 = scmp.lt.s32.totalorder %s2260_s16, 3  ;;  %p121_p6 = scmp.eq.s32.totalorder %s118_s21, 0 }
   0xa   : > { %p197_p7 = pnand %p1710_p4, %p196_p5 }
   0xb   : > { %s2355_s22 = scalar_select %p121_p6, %s2248_s13, %s123_s19  }
   0xc   : > { %200 = sbr.rel (%p197_p7) target bundleno = 361 (0x169), region = 32  ;;  %s2361_s25 = sshll.u32 (!%p197_p7), %s2252_s14, 6 }
   0xd   : > { %p242_p8 = scmp.lt.s32.totalorder (!%p197_p7), %s2361_s25, 72  ;;  %s234_s17 = sand.u32 (!%p197_p7), 1, %s2244_s12  }
   0xe   : > { %s1711_s19 = sshll.u32 (!%p197_p7), %s234_s17, 9 }
   0xf   : > { %s2455_s12 = scalar_lea.vmem (!%p197_p7), [#allocation3], %s1711_s19  }
  0x11   : > { %v1782_v0 = vld [vmem:[%s2727_s1 + $0x18] sm:$0xff]  ;;  %v1781_v1 = vld [vmem:[%s2727_s1 + $0x10] sm:$0xff]  ;;  %s243_s28 = scalar_select %p242_p8, %s2361_s25, 72  ;;  %v1780_v2 = vld [vmem:[%s2727_s1 + $0x8] sm:$0xff]  ;;  %vm660_vm0 = vcmask 523264  }
  0x12   : > { %761 = vmatpush.bf16.msra.mxu0 %v1782_v0  ;;  %1945 = vmatpush.bf16.msra.mxu1 %v1782_v0  ;;  %v1779_v15 = vld [vmem:[%s2727_s1] sm:$0xff]  ;;  %s1325_s21 = ssub.s32 (%p2346_p3), 73, %s2361_s25  ;;  %s1783_s23 = sshll.u32 (%p2346_p3), %s2252_s14, 9 }
  0x13   : > { %1946 = vmatpush.bf16.msra.mxu2 %v1782_v0  ;;  %1947 = vmatpush.bf16.msra.mxu3 %v1782_v0  ;;  %s1713_s29 = sshll.u32 %s243_s28, 2  ;;  %p1326_p9 = scmp.lt.s32.totalorder (%p2346_p3), %s1325_s21, 64 }
  0x14   : > { %s2374_s7 = scalar_lea.vmem %s2726_s0, %s1713_s29  ;;  %s2586_s27 = scalar_lea.vmem (%p2346_p3), %s2729_s3, %s1783_s23  }
  0x15   : > { %v1787_v3 = vld [vmem:[%s2374_s7] sm:$0xff]   ;;  %v1914_v28 = vld [vmem:[%s2374_s7 + $0x8] sm:$0xff]   ;;  %v1915_v52 = vld [vmem:[%s2374_s7 + $0x10] sm:$0xff]  }
  0x16   : > { %762 = vmatpush.bf16.msra.mxu0 %v1781_v1  ;;  %1948 = vmatpush.bf16.msra.mxu1 %v1781_v1  ;;  %v1921_v4 = vld [vmem:[%s2374_s7 + $0x40] sm:$0xff]   ;;  %v1788_v6 = vunpack.c.l.bf16 %v1787_v3  ;;  %v1789_v7 = vunpack.c.h.bf16 %v1787_v3  ;;  %v1922_v29 = vld [vmem:[%s2374_s7 + $0x48] sm:$0xff]   ;;  %v1792_v32 = vunpack.c.l.bf16 %v1914_v28  ;;  %v1793_v33 = vunpack.c.h.bf16 %v1914_v28  ;;  %v1923_v53 = vld [vmem:[%s2374_s7 + $0x50] sm:$0xff]  }
  0x17   : > { %1949 = vmatpush.bf16.msra.mxu2 %v1781_v1  ;;  %1950 = vmatpush.bf16.msra.mxu3 %v1781_v1  ;;  %v1929_v5 = vld [vmem:[%s2374_s7 + $0x80] sm:$0xff]   ;;  %v1820_v8 = vunpack.c.l.bf16 %v1921_v4  ;;  %v1821_v9 = vunpack.c.h.bf16 %v1921_v4  ;;  %v1930_v30 = vld [vmem:[%s2374_s7 + $0x88] sm:$0xff]   ;;  %v1824_v34 = vunpack.c.l.bf16 %v1922_v29  ;;  %v1825_v35 = vunpack.c.h.bf16 %v1922_v29  ;;  %v1931_v54 = vld [vmem:[%s2374_s7 + $0x90] sm:$0xff]  }
  0x18   : > { %v1937_v10 = vld [vmem:[%s2374_s7 + $0xc0] sm:$0xff]   ;;  %v1852_v11 = vunpack.c.l.bf16 %v1929_v5  ;;  %v1853_v12 = vunpack.c.h.bf16 %v1929_v5  ;;  %v468_v16 = vmax.f32 %v1788_v6, 0.0  ;;  %v469_v17 = vmax.f32 %v1789_v7, 0.0  ;;  %v1938_v31 = vld [vmem:[%s2374_s7 + $0xc8] sm:$0xff]   ;;  %v1939_v55 = vld [vmem:[%s2374_s7 + $0xd0] sm:$0xff]  }
  0x19   : > { %v1884_v13 = vunpack.c.l.bf16 %v1937_v10  ;;  %v1885_v14 = vunpack.c.h.bf16 %v1937_v10  ;;  %v484_v18 = vmax.f32 %v1820_v8, 0.0  ;;  %v485_v19 = vmax.f32 %v1821_v9, 0.0 }
  0x1a   : > { %763 = vmatpush.bf16.msra.mxu0 %v1780_v2  ;;  %1951 = vmatpush.bf16.msra.mxu1 %v1780_v2  ;;  %v500_v20 = vmax.f32 %v1852_v11, 0.0  ;;  %v501_v21 = vmax.f32 %v1853_v12, 0.0  ;;  %v532_v24 = vpack.c.bf16 %v469_v17, %v468_v16  ;;  %v1856_v36 = vunpack.c.l.bf16 %v1930_v30  ;;  %v1916_v12 = vld [vmem:[%s2374_s7 + $0x18] sm:$0xff]  }
  0x1b   : > { %1952 = vmatpush.bf16.msra.mxu2 %v1780_v2  ;;  %1953 = vmatpush.bf16.msra.mxu3 %v1780_v2  ;;  %v516_v22 = vmax.f32 %v1884_v13, 0.0  ;;  %v517_v23 = vmax.f32 %v1885_v14, 0.0  ;;  %v540_v25 = vpack.c.bf16 %v485_v19, %v484_v18  ;;  %v1857_v37 = vunpack.c.h.bf16 %v1930_v30  ;;  %v1924_v13 = vld [vmem:[%s2374_s7 + $0x58] sm:$0xff]  }
  0x1c   : > { %v548_v26 = vpack.c.bf16 %v501_v21, %v500_v20  ;;  %v1888_v38 = vunpack.c.l.bf16 %v1938_v31  ;;  %v1889_v39 = vunpack.c.h.bf16 %v1938_v31  ;;  %v470_v40 = vmax.f32 %v1792_v32, 0.0  ;;  %v1932_v14 = vld [vmem:[%s2374_s7 + $0x98] sm:$0xff]  }
  0x1d   : > { %v556_v27 = vpack.c.bf16 %v517_v23, %v516_v22  ;;  %v471_v41 = vmax.f32 %v1793_v33, 0.0  ;;  %v486_v42 = vmax.f32 %v1824_v34, 0.0  ;;  %v487_v43 = vmax.f32 %v1825_v35, 0.0 }
  0x1e   : > { %764 = vmatpush.bf16.msra.mxu0 %v1779_v15  ;;  %1954 = vmatpush.bf16.msra.mxu1 %v1779_v15  ;;  %v502_v44 = vmax.f32 %v1856_v36, 0.0  ;;  %v503_v45 = vmax.f32 %v1857_v37, 0.0  ;;  %v518_v46 = vmax.f32 %v1888_v38, 0.0  ;;  %v519_v47 = vmax.f32 %v1889_v39, 0.0  ;;  %v1917_v36 = vld [vmem:[%s2374_s7 + $0x20] sm:$0xff]  }
  0x1f   : > { %1955 = vmatpush.bf16.msra.mxu2 %v1779_v15  ;;  %1956 = vmatpush.bf16.msra.mxu3 %v1779_v15  ;;  %v533_v48 = vpack.c.bf16 %v471_v41, %v470_v40  ;;  %v541_v49 = vpack.c.bf16 %v487_v43, %v486_v42  ;;  %v1796_v56 = vunpack.c.l.bf16 %v1915_v52  ;;  %v1797_v57 = vunpack.c.h.bf16 %v1915_v52  ;;  %v1940_v15 = vld [vmem:[%s2374_s7 + $0xd8] sm:$0xff]   ;;  %v1925_v37 = vld [vmem:[%s2374_s7 + $0x60] sm:$0xff]  }
  0x20   : > { %v549_v50 = vpack.c.bf16 %v503_v45, %v502_v44  ;;  %v557_v51 = vpack.c.bf16 %v519_v47, %v518_v46  ;;  %v1828_v58 = vunpack.c.l.bf16 %v1923_v53  ;;  %v1829_v59 = vunpack.c.h.bf16 %v1923_v53  ;;  %v1933_v38 = vld [vmem:[%s2374_s7 + $0xa0] sm:$0xff]  }
  0x21   : > { %1730 = vmatmul.msk.bf16.vlgmr.msra.gmra.mxu0 %vm660_vm0, %v532_v24  ;;  %1738 = vmatmul.msk.bf16.vlgmr.msra.gmra.mxu1 %vm660_vm0, %v540_v25  ;;  %v1860_v60 = vunpack.c.l.bf16 %v1931_v54  ;;  %v1861_v61 = vunpack.c.h.bf16 %v1931_v54  ;;  %v1892_v62 = vunpack.c.l.bf16 %v1939_v55  ;;  %v1893_v63 = vunpack.c.h.bf16 %v1939_v55  ;;  %v1941_v39 = vld [vmem:[%s2374_s7 + $0xe0] sm:$0xff]  }
  0x22   : > { %1746 = vmatmul.msk.bf16.vlgmr.msra.gmra.mxu2 %vm660_vm0, %v548_v26  ;;  %1754 = vmatmul.msk.bf16.vlgmr.msra.gmra.mxu3 %vm660_vm0, %v556_v27  ;;  %v472_v0 = vmax.f32 %v1796_v56, 0.0  ;;  %v473_v1 = vmax.f32 %v1797_v57, 0.0  ;;  %v488_v2 = vmax.f32 %v1828_v58, 0.0  ;;  %v489_v3 = vmax.f32 %v1829_v59, 0.0 }
  0x23   : > { %v504_v4 = vmax.f32 %v1860_v60, 0.0  ;;  %v505_v5 = vmax.f32 %v1861_v61, 0.0  ;;  %v520_v6 = vmax.f32 %v1892_v62, 0.0  ;;  %v521_v7 = vmax.f32 %v1893_v63, 0.0  ;;  %v1918_v60 = vld [vmem:[%s2374_s7 + $0x28] sm:$0xff]  }
  0x24   : > { %v534_v8 = vpack.c.bf16 %v473_v1, %v472_v0  ;;  %v542_v9 = vpack.c.bf16 %v489_v3, %v488_v2  ;;  %v1800_v16 = vunpack.c.l.bf16 %v1916_v12  ;;  %v1801_v17 = vunpack.c.h.bf16 %v1916_v12  ;;  %v1926_v61 = vld [vmem:[%s2374_s7 + $0x68] sm:$0xff]  }
  0x25   : > { %v550_v10 = vpack.c.bf16 %v505_v5, %v504_v4  ;;  %v558_v11 = vpack.c.bf16 %v521_v7, %v520_v6  ;;  %v1832_v18 = vunpack.c.l.bf16 %v1924_v13  ;;  %v1833_v19 = vunpack.c.h.bf16 %v1924_v13  ;;  %v1934_v62 = vld [vmem:[%s2374_s7 + $0xa8] sm:$0xff]  }
  0x26   : > { %v1864_v20 = vunpack.c.l.bf16 %v1932_v14  ;;  %v1865_v21 = vunpack.c.h.bf16 %v1932_v14  ;;  %v1896_v22 = vunpack.c.l.bf16 %v1940_v15  ;;  %v1897_v23 = vunpack.c.h.bf16 %v1940_v15  ;;  %v1942_v63 = vld [vmem:[%s2374_s7 + $0xe8] sm:$0xff]  }
  0x27   : > { %v474_v24 = vmax.f32 %v1800_v16, 0.0  ;;  %v475_v25 = vmax.f32 %v1801_v17, 0.0  ;;  %v490_v26 = vmax.f32 %v1832_v18, 0.0  ;;  %v491_v27 = vmax.f32 %v1833_v19, 0.0 }
  0x28   : > { %v506_v28 = vmax.f32 %v1864_v20, 0.0  ;;  %v507_v29 = vmax.f32 %v1865_v21, 0.0  ;;  %v522_v30 = vmax.f32 %v1896_v22, 0.0  ;;  %v523_v31 = vmax.f32 %v1897_v23, 0.0  ;;  %v1919_v20 = vld [vmem:[%s2374_s7 + $0x30] sm:$0xff]  }
  0x29   : > { %v535_v32 = vpack.c.bf16 %v475_v25, %v474_v24  ;;  %v543_v33 = vpack.c.bf16 %v491_v27, %v490_v26  ;;  %v1804_v40 = vunpack.c.l.bf16 %v1917_v36  ;;  %v1805_v41 = vunpack.c.h.bf16 %v1917_v36  ;;  %v1927_v21 = vld [vmem:[%s2374_s7 + $0x70] sm:$0xff]  }
  0x2a   : > { %v551_v34 = vpack.c.bf16 %v507_v29, %v506_v28  ;;  %v559_v35 = vpack.c.bf16 %v523_v31, %v522_v30  ;;  %v1836_v42 = vunpack.c.l.bf16 %v1925_v37  ;;  %v1837_v43 = vunpack.c.h.bf16 %v1925_v37  ;;  %v1935_v22 = vld [vmem:[%s2374_s7 + $0xb0] sm:$0xff]  }
  0x2b   : > { %v1868_v44 = vunpack.c.l.bf16 %v1933_v38  ;;  %v1869_v45 = vunpack.c.h.bf16 %v1933_v38  ;;  %v1900_v46 = vunpack.c.l.bf16 %v1941_v39  ;;  %v1901_v47 = vunpack.c.h.bf16 %v1941_v39  ;;  %v1943_v23 = vld [vmem:[%s2374_s7 + $0xf0] sm:$0xff]  }
  0x2c   : > { %v1808_v0 = vunpack.c.l.bf16 %v1918_v60  ;;  %v1809_v1 = vunpack.c.h.bf16 %v1918_v60  ;;  %v1840_v2 = vunpack.c.l.bf16 %v1926_v61  ;;  %v1841_v3 = vunpack.c.h.bf16 %v1926_v61 }
  0x2d   : > { %v508_v52 = vmax.f32 %v1868_v44, 0.0  ;;  %v509_v53 = vmax.f32 %v1869_v45, 0.0  ;;  %v524_v54 = vmax.f32 %v1900_v46, 0.0  ;;  %v525_v55 = vmax.f32 %v1901_v47, 0.0  ;;  %v1920_v44 = vld [vmem:[%s2374_s7 + $0x38] sm:$0xff]  }
  0x2e   : > { %v1872_v4 = vunpack.c.l.bf16 %v1934_v62  ;;  %v1873_v5 = vunpack.c.h.bf16 %v1934_v62  ;;  %v1904_v6 = vunpack.c.l.bf16 %v1942_v63  ;;  %v1905_v7 = vunpack.c.h.bf16 %v1942_v63  ;;  %v1928_v45 = vld [vmem:[%s2374_s7 + $0x78] sm:$0xff]  }
  0x2f   : > { %v552_v58 = vpack.c.bf16 %v509_v53, %v508_v52  ;;  %v560_v59 = vpack.c.bf16 %v525_v55, %v524_v54  ;;  %v1812_v24 = vunpack.c.l.bf16 %v1919_v20  ;;  %v1813_v25 = vunpack.c.h.bf16 %v1919_v20  ;;  %v1936_v46 = vld [vmem:[%s2374_s7 + $0xb8] sm:$0xff]  }
  0x30   : > { %v510_v12 = vmax.f32 %v1872_v4, 0.0  ;;  %v511_v13 = vmax.f32 %v1873_v5, 0.0  ;;  %v526_v14 = vmax.f32 %v1904_v6, 0.0  ;;  %v527_v15 = vmax.f32 %v1905_v7, 0.0  ;;  %v1944_v47 = vld [vmem:[%s2374_s7 + $0xf8] sm:$0xff]  }
  0x31   : > { %1731 = vmatmul.msk.bf16.gmra.mxu0 %vm660_vm0, %v533_v48  ;;  %1739 = vmatmul.msk.bf16.gmra.mxu1 %vm660_vm0, %v541_v49  ;;  %v476_v48 = vmax.f32 %v1804_v40, 0.0  ;;  %v477_v49 = vmax.f32 %v1805_v41, 0.0  ;;  %v1844_v26 = vunpack.c.l.bf16 %v1927_v21  ;;  %v1845_v27 = vunpack.c.h.bf16 %v1927_v21  ;;  %v2446_v4 = vld [vmem:[%s2728_s2] ss:$0 sm:$0xff] }
  0x32   : > { %1747 = vmatmul.msk.bf16.gmra.mxu2 %vm660_vm0, %v549_v50  ;;  %1755 = vmatmul.msk.bf16.gmra.mxu3 %vm660_vm0, %v557_v51  ;;  %v492_v50 = vmax.f32 %v1836_v42, 0.0  ;;  %v493_v51 = vmax.f32 %v1837_v43, 0.0  ;;  %v553_v18 = vpack.c.bf16 %v511_v13, %v510_v12  ;;  %v561_v19 = vpack.c.bf16 %v527_v15, %v526_v14 }
  0x33   : > { %v536_v56 = vpack.c.bf16 %v477_v49, %v476_v48  ;;  %v1876_v28 = vunpack.c.l.bf16 %v1935_v22  ;;  %v1877_v29 = vunpack.c.h.bf16 %v1935_v22  ;;  %v1908_v30 = vunpack.c.l.bf16 %v1943_v23 }
  0x34   : > { %v544_v57 = vpack.c.bf16 %v493_v51, %v492_v50  ;;  %v1909_v31 = vunpack.c.h.bf16 %v1943_v23  ;;  %v1816_v48 = vunpack.c.l.bf16 %v1920_v44  ;;  %v1817_v49 = vunpack.c.h.bf16 %v1920_v44 }
  0x35   : > { %v512_v36 = vmax.f32 %v1876_v28, 0.0  ;;  %v513_v37 = vmax.f32 %v1877_v29, 0.0  ;;  %v528_v38 = vmax.f32 %v1908_v30, 0.0  ;;  %v1848_v50 = vunpack.c.l.bf16 %v1928_v45 }
  0x36   : > { %v529_v39 = vmax.f32 %v1909_v31, 0.0  ;;  %v1849_v51 = vunpack.c.h.bf16 %v1928_v45  ;;  %v1880_v52 = vunpack.c.l.bf16 %v1936_v46  ;;  %v1881_v53 = vunpack.c.h.bf16 %v1936_v46 }
  0x37   : > { %v554_v42 = vpack.c.bf16 %v513_v37, %v512_v36  ;;  %v1912_v54 = vunpack.c.l.bf16 %v1944_v47  ;;  %v1913_v55 = vunpack.c.h.bf16 %v1944_v47 }
  0x38   : > { %v562_v43 = vpack.c.bf16 %v529_v39, %v528_v38  ;;  %v514_v60 = vmax.f32 %v1880_v52, 0.0  ;;  %v515_v61 = vmax.f32 %v1881_v53, 0.0 }
  0x39   : > { %v530_v62 = vmax.f32 %v1912_v54, 0.0  ;;  %v531_v63 = vmax.f32 %v1913_v55, 0.0 }
  0x41   : > { %1732 = vmatmul.msk.bf16.gmra.mxu0 %vm660_vm0, %v534_v8  ;;  %1740 = vmatmul.msk.bf16.gmra.mxu1 %vm660_vm0, %v542_v9  ;;  %v478_v8 = vmax.f32 %v1808_v0, 0.0  ;;  %v479_v9 = vmax.f32 %v1809_v1, 0.0 }
  0x42   : > { %1748 = vmatmul.msk.bf16.gmra.mxu2 %vm660_vm0, %v550_v10  ;;  %1756 = vmatmul.msk.bf16.gmra.mxu3 %vm660_vm0, %v558_v11  ;;  %v494_v10 = vmax.f32 %v1840_v2, 0.0  ;;  %v495_v11 = vmax.f32 %v1841_v3, 0.0  ;;  %v555_v2 = vpack.c.bf16 %v515_v61, %v514_v60  ;;  %v563_v3 = vpack.c.bf16 %v531_v63, %v530_v62 }
  0x43   : > { %v537_v16 = vpack.c.bf16 %v479_v9, %v478_v8 }
  0x44   : > { %v545_v17 = vpack.c.bf16 %v495_v11, %v494_v10 }
  0x51   : > { %1733 = vmatmul.msk.bf16.gmra.mxu0 %vm660_vm0, %v535_v32  ;;  %1741 = vmatmul.msk.bf16.gmra.mxu1 %vm660_vm0, %v543_v33  ;;  %v480_v32 = vmax.f32 %v1812_v24, 0.0  ;;  %v481_v33 = vmax.f32 %v1813_v25, 0.0 }
  0x52   : > { %1749 = vmatmul.msk.bf16.gmra.mxu2 %vm660_vm0, %v551_v34  ;;  %1757 = vmatmul.msk.bf16.gmra.mxu3 %vm660_vm0, %v559_v35  ;;  %v496_v34 = vmax.f32 %v1844_v26, 0.0  ;;  %v497_v35 = vmax.f32 %v1845_v27, 0.0 }
  0x53   : > { %v538_v40 = vpack.c.bf16 %v481_v33, %v480_v32 }
  0x54   : > { %v546_v41 = vpack.c.bf16 %v497_v35, %v496_v34 }
  0x61   : > { %1734 = vmatmul.msk.bf16.gmra.mxu0 %vm660_vm0, %v536_v56  ;;  %1742 = vmatmul.msk.bf16.gmra.mxu1 %vm660_vm0, %v544_v57  ;;  %v482_v56 = vmax.f32 %v1816_v48, 0.0  ;;  %v483_v57 = vmax.f32 %v1817_v49, 0.0 }
  0x62   : > { %1750 = vmatmul.msk.bf16.gmra.mxu2 %vm660_vm0, %v552_v58  ;;  %1758 = vmatmul.msk.bf16.gmra.mxu3 %vm660_vm0, %v560_v59  ;;  %v498_v58 = vmax.f32 %v1848_v50, 0.0  ;;  %v499_v59 = vmax.f32 %v1849_v51, 0.0 }
  0x63   : > { %v539_v0 = vpack.c.bf16 %v483_v57, %v482_v56 }
  0x64   : > { %v547_v1 = vpack.c.bf16 %v499_v59, %v498_v58 }
  0x71   : > { %1735 = vmatmul.msk.bf16.gmra.mxu0 %vm660_vm0, %v537_v16  ;;  %1743 = vmatmul.msk.bf16.gmra.mxu1 %vm660_vm0, %v545_v17 }
  0x72   : > { %1751 = vmatmul.msk.bf16.gmra.mxu2 %vm660_vm0, %v553_v18  ;;  %1759 = vmatmul.msk.bf16.gmra.mxu3 %vm660_vm0, %v561_v19 }
  0x81   : > { %1736 = vmatmul.msk.bf16.gmra.mxu0 %vm660_vm0, %v538_v40  ;;  %1744 = vmatmul.msk.bf16.gmra.mxu1 %vm660_vm0, %v546_v41 }
  0x82   : > { %1752 = vmatmul.msk.bf16.gmra.mxu2 %vm660_vm0, %v554_v42  ;;  %1760 = vmatmul.msk.bf16.gmra.mxu3 %vm660_vm0, %v562_v43 }
  0x91   : > { %1737 = vmatmul.msk.bf16.gmra.mxu0 %vm660_vm0, %v539_v0  ;;  %1745 = vmatmul.msk.bf16.gmra.mxu1 %vm660_vm0, %v547_v1 }
  0x92   : > { %1753 = vmatmul.msk.bf16.gmra.mxu2 %vm660_vm0, %v555_v2  ;;  %1761 = vmatmul.msk.bf16.gmra.mxu3 %vm660_vm0, %v563_v3 }
  0x9e   : > { %v766_v5 = vpop.f32.mrf.mxu0  ;;  %v806_v6 = vpop.f32.mrf.mxu1 }
  0x9f   : > { %v1125_v7 = vadd.f32 %v2446_v4, %v766_v5  ;;  %v1141_v8 = vadd.f32 %v2446_v4, %v806_v6 }
  0xa1   : > { %2062 = vtanh.f32 %v1125_v7 }
  0xa2   : > { %2064 = vtanh.f32 %v1141_v8 }
  0xa5   : > { %v846_v9 = vpop.f32.mrf.mxu2  ;;  %v886_v10 = vpop.f32.mrf.mxu3 }
  0xa6   : > { %v1157_v11 = vadd.f32 %v2446_v4, %v846_v9  ;;  %v1173_v12 = vadd.f32 %v2446_v4, %v886_v10  ;;  %v768_v13 = vpop.f32.mrf.mxu0  ;;  %v808_v14 = vpop.f32.mrf.mxu1 }
  0xa7   : > { %v2063_v15 = vpop.eup %2062  ;;  %v1126_v16 = vadd.f32 %v2446_v4, %v768_v13  ;;  %v1142_v17 = vadd.f32 %v2446_v4, %v808_v14 }
  0xa8   : > { %v2065_v18 = vpop.eup %2064  ;;  %1253 = vst [vmem:[%s2455_s12] sm:$0xff] %v2063_v15  ;;  %2066 = vtanh.f32 %v1157_v11 }
  0xa9   : > { %1269 = vst [vmem:[%s2455_s12 + $0x80] sm:$0xff] %v2065_v18  ;;  %2068 = vtanh.f32 %v1173_v12 }
  0xaa   : > { %2070 = vtanh.f32 %v1126_v16 }
  0xab   : > { %2072 = vtanh.f32 %v1142_v17 }
  0xad   : > { %v848_v19 = vpop.f32.mrf.mxu2  ;;  %v888_v20 = vpop.f32.mrf.mxu3 }
  0xae   : > { %v2067_v21 = vpop.eup %2066  ;;  %v1158_v22 = vadd.f32 %v2446_v4, %v848_v19  ;;  %v1174_v23 = vadd.f32 %v2446_v4, %v888_v20  ;;  %v771_v24 = vpop.f32.mrf.mxu0 }
  0xaf   : > { %v811_v25 = vpop.f32.mrf.mxu1  ;;  %v2069_v26 = vpop.eup %2068  ;;  %1285 = vst [vmem:[%s2455_s12 + $0x100] sm:$0xff] %v2067_v21  ;;  %v1127_v27 = vadd.f32 %v2446_v4, %v771_v24 }
  0xb0   : > { %v1143_v28 = vadd.f32 %v2446_v4, %v811_v25  ;;  %v2071_v29 = vpop.eup %2070  ;;  %1301 = vst [vmem:[%s2455_s12 + $0x180] sm:$0xff] %v2069_v26  ;;  %2074 = vtanh.f32 %v1158_v22 }
  0xb1   : > { %v2073_v30 = vpop.eup %2072  ;;  %1254 = vst [vmem:[%s2455_s12 + $0x8] sm:$0xff] %v2071_v29  ;;  %2076 = vtanh.f32 %v1174_v23 }
  0xb2   : > { %1270 = vst [vmem:[%s2455_s12 + $0x88] sm:$0xff] %v2073_v30  ;;  %2078 = vtanh.f32 %v1127_v27 }
  0xb3   : > { %2080 = vtanh.f32 %v1143_v28 }
  0xb5   : > { %v851_v31 = vpop.f32.mrf.mxu2  ;;  %v891_v32 = vpop.f32.mrf.mxu3 }
  0xb6   : > { %v2075_v33 = vpop.eup %2074  ;;  %v1159_v34 = vadd.f32 %v2446_v4, %v851_v31  ;;  %v1175_v35 = vadd.f32 %v2446_v4, %v891_v32  ;;  %v773_v36 = vpop.f32.mrf.mxu0 }
  0xb7   : > { %v813_v37 = vpop.f32.mrf.mxu1  ;;  %v2077_v38 = vpop.eup %2076  ;;  %1286 = vst [vmem:[%s2455_s12 + $0x108] sm:$0xff] %v2075_v33  ;;  %v1128_v39 = vadd.f32 %v2446_v4, %v773_v36 }
  0xb8   : > { %v1144_v40 = vadd.f32 %v2446_v4, %v813_v37  ;;  %v2079_v41 = vpop.eup %2078  ;;  %1302 = vst [vmem:[%s2455_s12 + $0x188] sm:$0xff] %v2077_v38  ;;  %2082 = vtanh.f32 %v1159_v34 }
  0xb9   : > { %v2081_v42 = vpop.eup %2080  ;;  %1255 = vst [vmem:[%s2455_s12 + $0x10] sm:$0xff] %v2079_v41  ;;  %2084 = vtanh.f32 %v1175_v35 }
  0xba   : > { %1271 = vst [vmem:[%s2455_s12 + $0x90] sm:$0xff] %v2081_v42  ;;  %2086 = vtanh.f32 %v1128_v39 }
  0xbb   : > { %2088 = vtanh.f32 %v1144_v40 }
  0xbd   : > { %v853_v43 = vpop.f32.mrf.mxu2  ;;  %v893_v44 = vpop.f32.mrf.mxu3 }
  0xbe   : > { %v2083_v45 = vpop.eup %2082  ;;  %v1160_v46 = vadd.f32 %v2446_v4, %v853_v43  ;;  %v1176_v47 = vadd.f32 %v2446_v4, %v893_v44  ;;  %v776_v48 = vpop.f32.mrf.mxu0 }
  0xbf   : > { %v816_v49 = vpop.f32.mrf.mxu1  ;;  %v2085_v50 = vpop.eup %2084  ;;  %1287 = vst [vmem:[%s2455_s12 + $0x110] sm:$0xff] %v2083_v45  ;;  %v1129_v51 = vadd.f32 %v2446_v4, %v776_v48 }
  0xc0   : > { %v1145_v52 = vadd.f32 %v2446_v4, %v816_v49  ;;  %v2087_v53 = vpop.eup %2086  ;;  %1303 = vst [vmem:[%s2455_s12 + $0x190] sm:$0xff] %v2085_v50  ;;  %2090 = vtanh.f32 %v1160_v46 }
  0xc1   : > { %v2089_v54 = vpop.eup %2088  ;;  %1256 = vst [vmem:[%s2455_s12 + $0x18] sm:$0xff] %v2087_v53  ;;  %2092 = vtanh.f32 %v1176_v47 }
  0xc2   : > { %1272 = vst [vmem:[%s2455_s12 + $0x98] sm:$0xff] %v2089_v54  ;;  %2094 = vtanh.f32 %v1129_v51 }
  0xc3   : > { %2096 = vtanh.f32 %v1145_v52 }
  0xc5   : > { %v856_v55 = vpop.f32.mrf.mxu2  ;;  %v896_v56 = vpop.f32.mrf.mxu3 }
  0xc6   : > { %v2091_v57 = vpop.eup %2090  ;;  %v1161_v58 = vadd.f32 %v2446_v4, %v856_v55  ;;  %v1177_v59 = vadd.f32 %v2446_v4, %v896_v56  ;;  %v778_v60 = vpop.f32.mrf.mxu0 }
  0xc7   : > { %v818_v61 = vpop.f32.mrf.mxu1  ;;  %v2093_v62 = vpop.eup %2092  ;;  %1288 = vst [vmem:[%s2455_s12 + $0x118] sm:$0xff] %v2091_v57  ;;  %v1130_v63 = vadd.f32 %v2446_v4, %v778_v60 }
  0xc8   : > { %v1146_v0 = vadd.f32 %v2446_v4, %v818_v61  ;;  %v2095_v1 = vpop.eup %2094  ;;  %1304 = vst [vmem:[%s2455_s12 + $0x198] sm:$0xff] %v2093_v62  ;;  %2098 = vtanh.f32 %v1161_v58 }
  0xc9   : > { %v2097_v2 = vpop.eup %2096  ;;  %1257 = vst [vmem:[%s2455_s12 + $0x20] sm:$0xff] %v2095_v1  ;;  %2100 = vtanh.f32 %v1177_v59 }
  0xca   : > { %1273 = vst [vmem:[%s2455_s12 + $0xa0] sm:$0xff] %v2097_v2  ;;  %2102 = vtanh.f32 %v1130_v63 }
  0xcb   : > { %2104 = vtanh.f32 %v1146_v0 }
  0xcd   : > { %v858_v3 = vpop.f32.mrf.mxu2  ;;  %v898_v5 = vpop.f32.mrf.mxu3 }
  0xce   : > { %v2099_v6 = vpop.eup %2098  ;;  %v1162_v7 = vadd.f32 %v2446_v4, %v858_v3  ;;  %v1178_v8 = vadd.f32 %v2446_v4, %v898_v5  ;;  %v781_v9 = vpop.f32.mrf.mxu0 }
  0xcf   : > { %v821_v10 = vpop.f32.mrf.mxu1  ;;  %v2101_v11 = vpop.eup %2100  ;;  %1289 = vst [vmem:[%s2455_s12 + $0x120] sm:$0xff] %v2099_v6  ;;  %v1131_v12 = vadd.f32 %v2446_v4, %v781_v9 }
  0xd0   : > { %v1147_v13 = vadd.f32 %v2446_v4, %v821_v10  ;;  %v2103_v14 = vpop.eup %2102  ;;  %1305 = vst [vmem:[%s2455_s12 + $0x1a0] sm:$0xff] %v2101_v11  ;;  %2106 = vtanh.f32 %v1162_v7 }
  0xd1   : > { %v2105_v15 = vpop.eup %2104  ;;  %1258 = vst [vmem:[%s2455_s12 + $0x28] sm:$0xff] %v2103_v14  ;;  %2108 = vtanh.f32 %v1178_v8 }
  0xd2   : > { %1274 = vst [vmem:[%s2455_s12 + $0xa8] sm:$0xff] %v2105_v15  ;;  %2110 = vtanh.f32 %v1131_v12 }
  0xd3   : > { %2112 = vtanh.f32 %v1147_v13 }
  0xd5   : > { %v861_v16 = vpop.f32.mrf.mxu2  ;;  %v901_v17 = vpop.f32.mrf.mxu3 }
  0xd6   : > { %v2107_v18 = vpop.eup %2106  ;;  %v1163_v19 = vadd.f32 %v2446_v4, %v861_v16  ;;  %v1179_v20 = vadd.f32 %v2446_v4, %v901_v17  ;;  %v783_v21 = vpop.f32.mrf.mxu0 }
  0xd7   : > { %v823_v22 = vpop.f32.mrf.mxu1  ;;  %v2109_v23 = vpop.eup %2108  ;;  %1290 = vst [vmem:[%s2455_s12 + $0x128] sm:$0xff] %v2107_v18  ;;  %v1132_v24 = vadd.f32 %v2446_v4, %v783_v21 }
  0xd8   : > { %v1148_v25 = vadd.f32 %v2446_v4, %v823_v22  ;;  %v2111_v26 = vpop.eup %2110  ;;  %1306 = vst [vmem:[%s2455_s12 + $0x1a8] sm:$0xff] %v2109_v23  ;;  %2114 = vtanh.f32 %v1163_v19 }
  0xd9   : > { %v2113_v27 = vpop.eup %2112  ;;  %1259 = vst [vmem:[%s2455_s12 + $0x30] sm:$0xff] %v2111_v26  ;;  %2116 = vtanh.f32 %v1179_v20 }
  0xda   : > { %1275 = vst [vmem:[%s2455_s12 + $0xb0] sm:$0xff] %v2113_v27  ;;  %2118 = vtanh.f32 %v1132_v24 }
  0xdb   : > { %2120 = vtanh.f32 %v1148_v25 }
  0xdd   : > { %v863_v28 = vpop.f32.mrf.mxu2  ;;  %v903_v29 = vpop.f32.mrf.mxu3 }
  0xde   : > { %v2115_v30 = vpop.eup %2114  ;;  %v1164_v31 = vadd.f32 %v2446_v4, %v863_v28  ;;  %v1180_v32 = vadd.f32 %v2446_v4, %v903_v29  ;;  %v786_v33 = vpop.f32.mrf.mxu0 }
  0xdf   : > { %v826_v34 = vpop.f32.mrf.mxu1  ;;  %v2117_v35 = vpop.eup %2116  ;;  %1291 = vst [vmem:[%s2455_s12 + $0x130] sm:$0xff] %v2115_v30  ;;  %v1133_v36 = vadd.f32 %v2446_v4, %v786_v33 }
  0xe0   : > { %v1149_v37 = vadd.f32 %v2446_v4, %v826_v34  ;;  %v2119_v38 = vpop.eup %2118  ;;  %1307 = vst [vmem:[%s2455_s12 + $0x1b0] sm:$0xff] %v2117_v35  ;;  %2122 = vtanh.f32 %v1164_v31 }
  0xe1   : > { %v2121_v39 = vpop.eup %2120  ;;  %1260 = vst [vmem:[%s2455_s12 + $0x38] sm:$0xff] %v2119_v38  ;;  %2124 = vtanh.f32 %v1180_v32 }
  0xe2   : > { %1276 = vst [vmem:[%s2455_s12 + $0xb8] sm:$0xff] %v2121_v39  ;;  %2126 = vtanh.f32 %v1133_v36 }
  0xe3   : > { %2128 = vtanh.f32 %v1149_v37 }
  0xe5   : > { %v866_v40 = vpop.f32.mrf.mxu2  ;;  %v906_v41 = vpop.f32.mrf.mxu3 }
  0xe6   : > { %v2123_v42 = vpop.eup %2122  ;;  %v1165_v43 = vadd.f32 %v2446_v4, %v866_v40  ;;  %v1181_v44 = vadd.f32 %v2446_v4, %v906_v41  ;;  %v788_v45 = vpop.f32.mrf.mxu0 }
  0xe7   : > { %v828_v46 = vpop.f32.mrf.mxu1  ;;  %v2125_v47 = vpop.eup %2124  ;;  %1292 = vst [vmem:[%s2455_s12 + $0x138] sm:$0xff] %v2123_v42  ;;  %v1134_v48 = vadd.f32 %v2446_v4, %v788_v45 }
  0xe8   : > { %v1150_v49 = vadd.f32 %v2446_v4, %v828_v46  ;;  %v2127_v50 = vpop.eup %2126  ;;  %1308 = vst [vmem:[%s2455_s12 + $0x1b8] sm:$0xff] %v2125_v47  ;;  %2130 = vtanh.f32 %v1165_v43 }
  0xe9   : > { %v2129_v51 = vpop.eup %2128  ;;  %1261 = vst [vmem:[%s2455_s12 + $0x40] sm:$0xff] %v2127_v50  ;;  %2132 = vtanh.f32 %v1181_v44 }
  0xea   : > { %1277 = vst [vmem:[%s2455_s12 + $0xc0] sm:$0xff] %v2129_v51  ;;  %2134 = vtanh.f32 %v1134_v48 }
  0xeb   : > { %2136 = vtanh.f32 %v1150_v49 }
  0xed   : > { %v868_v52 = vpop.f32.mrf.mxu2  ;;  %v908_v53 = vpop.f32.mrf.mxu3 }
  0xee   : > { %v2131_v54 = vpop.eup %2130  ;;  %v1166_v55 = vadd.f32 %v2446_v4, %v868_v52  ;;  %v1182_v56 = vadd.f32 %v2446_v4, %v908_v53  ;;  %v791_v57 = vpop.f32.mrf.mxu0 }
  0xef   : > { %v831_v58 = vpop.f32.mrf.mxu1  ;;  %v2133_v59 = vpop.eup %2132  ;;  %1293 = vst [vmem:[%s2455_s12 + $0x140] sm:$0xff] %v2131_v54  ;;  %v1135_v60 = vadd.f32 %v2446_v4, %v791_v57 }
  0xf0   : > { %v1151_v61 = vadd.f32 %v2446_v4, %v831_v58  ;;  %v2135_v62 = vpop.eup %2134  ;;  %1309 = vst [vmem:[%s2455_s12 + $0x1c0] sm:$0xff] %v2133_v59  ;;  %2138 = vtanh.f32 %v1166_v55 }
  0xf1   : > { %v2137_v63 = vpop.eup %2136  ;;  %1262 = vst [vmem:[%s2455_s12 + $0x48] sm:$0xff] %v2135_v62  ;;  %2140 = vtanh.f32 %v1182_v56 }
  0xf2   : > { %1278 = vst [vmem:[%s2455_s12 + $0xc8] sm:$0xff] %v2137_v63  ;;  %2142 = vtanh.f32 %v1135_v60 }
  0xf3   : > { %2144 = vtanh.f32 %v1151_v61 }
  0xf5   : > { %v871_v0 = vpop.f32.mrf.mxu2  ;;  %v911_v1 = vpop.f32.mrf.mxu3 }
  0xf6   : > { %v2139_v2 = vpop.eup %2138  ;;  %v1167_v3 = vadd.f32 %v2446_v4, %v871_v0  ;;  %v1183_v5 = vadd.f32 %v2446_v4, %v911_v1  ;;  %v793_v6 = vpop.f32.mrf.mxu0 }
  0xf7   : > { %v833_v7 = vpop.f32.mrf.mxu1  ;;  %v2141_v8 = vpop.eup %2140  ;;  %1294 = vst [vmem:[%s2455_s12 + $0x148] sm:$0xff] %v2139_v2  ;;  %v1136_v9 = vadd.f32 %v2446_v4, %v793_v6 }
  0xf8   : > { %v1152_v10 = vadd.f32 %v2446_v4, %v833_v7  ;;  %v2143_v11 = vpop.eup %2142  ;;  %1310 = vst [vmem:[%s2455_s12 + $0x1c8] sm:$0xff] %v2141_v8  ;;  %2146 = vtanh.f32 %v1167_v3 }
  0xf9   : > { %v2145_v12 = vpop.eup %2144  ;;  %1263 = vst [vmem:[%s2455_s12 + $0x50] sm:$0xff] %v2143_v11  ;;  %2148 = vtanh.f32 %v1183_v5 }
  0xfa   : > { %1279 = vst [vmem:[%s2455_s12 + $0xd0] sm:$0xff] %v2145_v12  ;;  %2150 = vtanh.f32 %v1136_v9 }
  0xfb   : > { %2152 = vtanh.f32 %v1152_v10 }
  0xfd   : > { %v873_v13 = vpop.f32.mrf.mxu2  ;;  %v913_v14 = vpop.f32.mrf.mxu3 }
  0xfe   : > { %v2147_v15 = vpop.eup %2146  ;;  %v1168_v16 = vadd.f32 %v2446_v4, %v873_v13  ;;  %v1184_v17 = vadd.f32 %v2446_v4, %v913_v14  ;;  %v796_v18 = vpop.f32.mrf.mxu0 }
  0xff   : > { %v836_v19 = vpop.f32.mrf.mxu1  ;;  %v2149_v20 = vpop.eup %2148  ;;  %1295 = vst [vmem:[%s2455_s12 + $0x150] sm:$0xff] %v2147_v15  ;;  %v1137_v21 = vadd.f32 %v2446_v4, %v796_v18 }
 0x100   : > { %v1153_v22 = vadd.f32 %v2446_v4, %v836_v19  ;;  %v2151_v23 = vpop.eup %2150  ;;  %1311 = vst [vmem:[%s2455_s12 + $0x1d0] sm:$0xff] %v2149_v20  ;;  %2154 = vtanh.f32 %v1168_v16 }
 0x101   : > { %v2153_v24 = vpop.eup %2152  ;;  %1264 = vst [vmem:[%s2455_s12 + $0x58] sm:$0xff] %v2151_v23  ;;  %2156 = vtanh.f32 %v1184_v17 }
 0x102   : > { %1280 = vst [vmem:[%s2455_s12 + $0xd8] sm:$0xff] %v2153_v24  ;;  %2158 = vtanh.f32 %v1137_v21 }
 0x103   : > { %2160 = vtanh.f32 %v1153_v22 }
 0x105   : > { %v876_v25 = vpop.f32.mrf.mxu2  ;;  %v916_v26 = vpop.f32.mrf.mxu3 }
 0x106   : > { %v2155_v27 = vpop.eup %2154  ;;  %v1169_v28 = vadd.f32 %v2446_v4, %v876_v25  ;;  %v1185_v29 = vadd.f32 %v2446_v4, %v916_v26  ;;  %v798_v30 = vpop.f32.mrf.mxu0 }
 0x107   : > { %v838_v31 = vpop.f32.mrf.mxu1  ;;  %v2157_v32 = vpop.eup %2156  ;;  %1296 = vst [vmem:[%s2455_s12 + $0x158] sm:$0xff] %v2155_v27  ;;  %v1138_v33 = vadd.f32 %v2446_v4, %v798_v30 }
 0x108   : > { %v1154_v34 = vadd.f32 %v2446_v4, %v838_v31  ;;  %v2159_v35 = vpop.eup %2158  ;;  %1312 = vst [vmem:[%s2455_s12 + $0x1d8] sm:$0xff] %v2157_v32  ;;  %2162 = vtanh.f32 %v1169_v28 }
 0x109   : > { %v2161_v36 = vpop.eup %2160  ;;  %1265 = vst [vmem:[%s2455_s12 + $0x60] sm:$0xff] %v2159_v35  ;;  %2164 = vtanh.f32 %v1185_v29 }
 0x10a   : > { %1281 = vst [vmem:[%s2455_s12 + $0xe0] sm:$0xff] %v2161_v36  ;;  %2166 = vtanh.f32 %v1138_v33 }
 0x10b   : > { %2168 = vtanh.f32 %v1154_v34 }
 0x10d   : > { %v878_v37 = vpop.f32.mrf.mxu2  ;;  %v918_v38 = vpop.f32.mrf.mxu3 }
 0x10e   : > { %v2163_v39 = vpop.eup %2162  ;;  %v1170_v40 = vadd.f32 %v2446_v4, %v878_v37  ;;  %v1186_v41 = vadd.f32 %v2446_v4, %v918_v38  ;;  %v801_v42 = vpop.f32.mrf.mxu0 }
 0x10f   : > { %v841_v43 = vpop.f32.mrf.mxu1  ;;  %v2165_v44 = vpop.eup %2164  ;;  %1297 = vst [vmem:[%s2455_s12 + $0x160] sm:$0xff] %v2163_v39  ;;  %v1139_v45 = vadd.f32 %v2446_v4, %v801_v42 }
 0x110   : > { %v1155_v46 = vadd.f32 %v2446_v4, %v841_v43  ;;  %v2167_v47 = vpop.eup %2166  ;;  %1313 = vst [vmem:[%s2455_s12 + $0x1e0] sm:$0xff] %v2165_v44  ;;  %2170 = vtanh.f32 %v1170_v40 }
 0x111   : > { %v2169_v48 = vpop.eup %2168  ;;  %1266 = vst [vmem:[%s2455_s12 + $0x68] sm:$0xff] %v2167_v47  ;;  %2172 = vtanh.f32 %v1186_v41 }
 0x112   : > { %1282 = vst [vmem:[%s2455_s12 + $0xe8] sm:$0xff] %v2169_v48  ;;  %2174 = vtanh.f32 %v1139_v45 }
 0x113   : > { %2176 = vtanh.f32 %v1155_v46 }
 0x115   : > { %v881_v49 = vpop.f32.mrf.mxu2  ;;  %v921_v50 = vpop.f32.mrf.mxu3 }
 0x116   : > { %v2171_v51 = vpop.eup %2170  ;;  %v1171_v52 = vadd.f32 %v2446_v4, %v881_v49  ;;  %v1187_v53 = vadd.f32 %v2446_v4, %v921_v50  ;;  %v803_v54 = vpop.f32.mrf.mxu0 }
 0x117   : > { %v843_v55 = vpop.f32.mrf.mxu1  ;;  %v2173_v56 = vpop.eup %2172  ;;  %1298 = vst [vmem:[%s2455_s12 + $0x168] sm:$0xff] %v2171_v51  ;;  %v1140_v57 = vadd.f32 %v2446_v4, %v803_v54 }
 0x118   : > { %v1156_v58 = vadd.f32 %v2446_v4, %v843_v55  ;;  %v2175_v59 = vpop.eup %2174  ;;  %1314 = vst [vmem:[%s2455_s12 + $0x1e8] sm:$0xff] %v2173_v56  ;;  %2178 = vtanh.f32 %v1171_v52 }
 0x119   : > { %v2177_v60 = vpop.eup %2176  ;;  %1267 = vst [vmem:[%s2455_s12 + $0x70] sm:$0xff] %v2175_v59  ;;  %2180 = vtanh.f32 %v1187_v53 }
 0x11a   : > { %1283 = vst [vmem:[%s2455_s12 + $0xf0] sm:$0xff] %v2177_v60  ;;  %2182 = vtanh.f32 %v1140_v57 }
 0x11b   : > { %2184 = vtanh.f32 %v1156_v58 }
 0x11d   : > { %v883_v61 = vpop.f32.mrf.mxu2  ;;  %v923_v62 = vpop.f32.mrf.mxu3 }
 0x11e   : > { %v2179_v63 = vpop.eup %2178  ;;  %v1172_v0 = vadd.f32 %v2446_v4, %v883_v61  ;;  %v1188_v1 = vadd.f32 %v2446_v4, %v923_v62 }
 0x11f   : > { %v2181_v2 = vpop.eup %2180  ;;  %1299 = vst [vmem:[%s2455_s12 + $0x170] sm:$0xff] %v2179_v63 }
 0x120   : > { %v2183_v3 = vpop.eup %2182  ;;  %1315 = vst [vmem:[%s2455_s12 + $0x1f0] sm:$0xff] %v2181_v2  ;;  %2186 = vtanh.f32 %v1172_v0 }
 0x121   : > { %v2185_v5 = vpop.eup %2184  ;;  %1268 = vst [vmem:[%s2455_s12 + $0x78] sm:$0xff] %v2183_v3  ;;  %2188 = vtanh.f32 %v1188_v1 }
 0x122   : > { %1284 = vst [vmem:[%s2455_s12 + $0xf8] sm:$0xff] %v2185_v5 }
 0x124   : > { %1323 = sbr.rel (!%p2346_p3) target bundleno = 361 (0x169), region = 44 }
 0x126   : > { %v2187_v6 = vpop.eup %2186 }
 0x127   : > { %v2189_v7 = vpop.eup %2188  ;;  %1300 = vst [vmem:[%s2455_s12 + $0x178] sm:$0xff] %v2187_v6 }
 0x128   : > { %1316 = vst [vmem:[%s2455_s12 + $0x1f8] sm:$0xff] %v2189_v7 }
 0x129   : > { %s2743_s21 = smov (!%p1326_p9, %s1325_s21), 64 }
 0x12a   : > { %s1764_s28 = sshll.u32 %s2743_s21, 3 }
 0x12b   : > { %p1767_p10 = scmp.eq.s32.totalorder %s1764_s28, 0 }
 0x12c   : > { %s2592_s29 = sshrl.u32 (!%p1767_p10), %s2743_s21, 5 }
 0x12d   : > { %1335 = sbr.rel (%p1767_p10) target bundleno = 361 (0x169), region = 48  ;;  %p1768_p11 = scmp.le.s32.totalorder (!%p1767_p10), %s2592_s29, 0 }
 0x132   : > { %1631 = sbr.rel (%p1768_p11) target bundleno = 344 (0x158), region = 130  ;;  %s2731_s14 = smov (!%p1768_p11), %s2586_s27 }
 0x133   : > { %s2732_s20 = smov (!%p1768_p11), %s2455_s12  ;;  %s2601_s25 = smov (!%p1768_p11), 0  }
 0x134   : > { %s2603_s30 = smov (!%p1768_p11), 0  }
 0x137 LB: >> { %v1460_v4 = vld [vmem:[%s2268_s20] sm:$0xff]  ;;  %v1462_v8 = vld [vmem:[%s2268_s20 + $0x8] sm:$0xff]  ;;  %v1464_v9 = vld [vmem:[%s2268_s20 + $0x10] sm:$0xff]  ;;  %s1524_s4 = sadd.s32 1, %s2272_s25  ;;  %s1454_s30 = sadd.s32 1, %s2276_s30   ;;  %s2276_s30 = sphi %s2603_s30, %s1454_s30   ;;  %s2272_s25 = sphi %s2601_s25, %s2735_s25   ;;  %s2268_s20 = sphi %s2732_s20, %s2734_s20   ;;  %s2264_s14 = sphi %s2731_s14, %s2733_s14  }
 0x138   : >> { %1461 = vst [vmem:[%s2264_s14] sm:$0xff] %v1460_v4  ;;  %v1466_v10 = vld [vmem:[%s2268_s20 + $0x18] sm:$0xff]  ;;  %p1525_p12 = scmp.ge.s32.totalorder %s1524_s4, %s2592_s29  ;;  %v1468_v11 = vld [vmem:[%s2268_s20 + $0x20] sm:$0xff]  ;;  %v1470_v12 = vld [vmem:[%s2268_s20 + $0x28] sm:$0xff]  ;;  %p1453_p13 = scmp.ge.s32.totalorder %s1454_s30, %s2592_s29 }
 0x139   : >> { %1463 = vst [vmem:[%s2264_s14 + $0x8] sm:$0xff] %v1462_v8  ;;  %v1472_v13 = vld [vmem:[%s2268_s20 + $0x30] sm:$0xff]  ;;  %v1474_v14 = vld [vmem:[%s2268_s20 + $0x38] sm:$0xff]  ;;  %v1476_v15 = vld [vmem:[%s2268_s20 + $0x40] sm:$0xff] }
 0x13a   : >> { %1465 = vst [vmem:[%s2264_s14 + $0x10] sm:$0xff] %v1464_v9  ;;  %s2745_s4 = smov (%p1525_p12, %s1524_s4), 0  ;;  %v1478_v16 = vld [vmem:[%s2268_s20 + $0x48] sm:$0xff]  ;;  %v1480_v17 = vld [vmem:[%s2268_s20 + $0x50] sm:$0xff]  ;;  %v1482_v18 = vld [vmem:[%s2268_s20 + $0x58] sm:$0xff] }
 0x13b   : >> { %1467 = vst [vmem:[%s2264_s14 + $0x18] sm:$0xff] %v1466_v10  ;;  %s1769_s5 = sshll.u32 %s2745_s4, 8  ;;  %v1484_v19 = vld [vmem:[%s2268_s20 + $0x60] sm:$0xff]  ;;  %v1486_v20 = vld [vmem:[%s2268_s20 + $0x68] sm:$0xff]  ;;  %v1488_v21 = vld [vmem:[%s2268_s20 + $0x70] sm:$0xff]  ;;  %s2735_s25 = smov %s2745_s4 }
 0x13c   : >> { %1469 = vst [vmem:[%s2264_s14 + $0x20] sm:$0xff] %v1468_v11  ;;  %s2635_s6 = scalar_lea.vmem %s2455_s12, %s1769_s5 [#allocation3]   ;;  %s2638_s7 = scalar_lea.vmem %s2586_s27, %s1769_s5   ;;  %v1490_v22 = vld [vmem:[%s2268_s20 + $0x78] sm:$0xff]  ;;  %v1492_v23 = vld [vmem:[%s2268_s20 + $0x80] sm:$0xff]  ;;  %v1494_v24 = vld [vmem:[%s2268_s20 + $0x88] sm:$0xff] }
 0x13d   : >> { %1471 = vst [vmem:[%s2264_s14 + $0x28] sm:$0xff] %v1470_v12  ;;  %v1496_v25 = vld [vmem:[%s2268_s20 + $0x90] sm:$0xff]  ;;  %v1498_v26 = vld [vmem:[%s2268_s20 + $0x98] sm:$0xff]  ;;  %v1500_v27 = vld [vmem:[%s2268_s20 + $0xa0] sm:$0xff] }
 0x13e   : >> { %1473 = vst [vmem:[%s2264_s14 + $0x30] sm:$0xff] %v1472_v13  ;;  %v1502_v28 = vld [vmem:[%s2268_s20 + $0xa8] sm:$0xff]  ;;  %v1504_v29 = vld [vmem:[%s2268_s20 + $0xb0] sm:$0xff]  ;;  %v1506_v30 = vld [vmem:[%s2268_s20 + $0xb8] sm:$0xff] }
 0x13f   : >> { %1475 = vst [vmem:[%s2264_s14 + $0x38] sm:$0xff] %v1474_v14  ;;  %v1508_v31 = vld [vmem:[%s2268_s20 + $0xc0] sm:$0xff]  ;;  %v1510_v32 = vld [vmem:[%s2268_s20 + $0xc8] sm:$0xff]  ;;  %v1512_v33 = vld [vmem:[%s2268_s20 + $0xd0] sm:$0xff] }
 0x140   : >> { %1477 = vst [vmem:[%s2264_s14 + $0x40] sm:$0xff] %v1476_v15  ;;  %v1514_v34 = vld [vmem:[%s2268_s20 + $0xd8] sm:$0xff]  ;;  %v1516_v35 = vld [vmem:[%s2268_s20 + $0xe0] sm:$0xff]  ;;  %v1518_v36 = vld [vmem:[%s2268_s20 + $0xe8] sm:$0xff] }
 0x141   : >> { %1479 = vst [vmem:[%s2264_s14 + $0x48] sm:$0xff] %v1478_v16  ;;  %v1520_v37 = vld [vmem:[%s2268_s20 + $0xf0] sm:$0xff]  ;;  %v1522_v38 = vld [vmem:[%s2268_s20 + $0xf8] sm:$0xff]  ;;  %s2734_s20 = smov %s2635_s6 }
 0x142   : >> { %1481 = vst [vmem:[%s2264_s14 + $0x50] sm:$0xff] %v1480_v17 }
 0x143   : >> { %1483 = vst [vmem:[%s2264_s14 + $0x58] sm:$0xff] %v1482_v18 }
 0x144   : >> { %1485 = vst [vmem:[%s2264_s14 + $0x60] sm:$0xff] %v1484_v19 }
 0x145   : >> { %1487 = vst [vmem:[%s2264_s14 + $0x68] sm:$0xff] %v1486_v20 }
 0x146   : >> { %1489 = vst [vmem:[%s2264_s14 + $0x70] sm:$0xff] %v1488_v21 }
 0x147   : >> { %1491 = vst [vmem:[%s2264_s14 + $0x78] sm:$0xff] %v1490_v22 }
 0x148   : >> { %1493 = vst [vmem:[%s2264_s14 + $0x80] sm:$0xff] %v1492_v23 }
 0x149   : >> { %1495 = vst [vmem:[%s2264_s14 + $0x88] sm:$0xff] %v1494_v24 }
 0x14a   : >> { %1497 = vst [vmem:[%s2264_s14 + $0x90] sm:$0xff] %v1496_v25 }
 0x14b   : >> { %1499 = vst [vmem:[%s2264_s14 + $0x98] sm:$0xff] %v1498_v26 }
 0x14c   : >> { %1501 = vst [vmem:[%s2264_s14 + $0xa0] sm:$0xff] %v1500_v27 }
 0x14d   : >> { %1503 = vst [vmem:[%s2264_s14 + $0xa8] sm:$0xff] %v1502_v28 }
 0x14e   : >> { %1505 = vst [vmem:[%s2264_s14 + $0xb0] sm:$0xff] %v1504_v29 }
 0x14f   : >> { %1507 = vst [vmem:[%s2264_s14 + $0xb8] sm:$0xff] %v1506_v30 }
 0x150   : >> { %1509 = vst [vmem:[%s2264_s14 + $0xc0] sm:$0xff] %v1508_v31 }
 0x151   : >> { %1511 = vst [vmem:[%s2264_s14 + $0xc8] sm:$0xff] %v1510_v32 }
 0x152   : >> { %1513 = vst [vmem:[%s2264_s14 + $0xd0] sm:$0xff] %v1512_v33 }
 0x153   : >> { %1515 = vst [vmem:[%s2264_s14 + $0xd8] sm:$0xff] %v1514_v34  ;;  %1456 = sbr.rel (!%p1453_p13) target bundleno = 311 (0x137), region = 136 }
 0x154   : >> { %1517 = vst [vmem:[%s2264_s14 + $0xe0] sm:$0xff] %v1516_v35 }
 0x155   : >> { %1519 = vst [vmem:[%s2264_s14 + $0xe8] sm:$0xff] %v1518_v36 }
 0x156   : >> { %1521 = vst [vmem:[%s2264_s14 + $0xf0] sm:$0xff] %v1520_v37 }
 0x157   : >> { %1523 = vst [vmem:[%s2264_s14 + $0xf8] sm:$0xff] %v1522_v38  ;;  %s2733_s14 = smov %s2638_s7 }
 0x158 PF: > { %s2703_s8 = sand.u32 31, %s2743_s21   ;;  %s1784_s9 = sshll.u32 %s2592_s29, 8 }
 0x159   : > { %s1535_s10 = scalar_lea.vmem %s2455_s12, %s1784_s9 [#allocation3]   ;;  %s1537_s11 = scalar_lea.vmem %s2586_s27, %s1784_s9  }
 0x15a   : > { %p1774_p0 = scmp.le.s32.totalorder %s2703_s8, 0 }
 0x15b   : > { %s2278_s17 = smov (!%p1774_p0), %s1537_s11   ;;  %s2282_s19 = smov (!%p1774_p0), %s1535_s10  }
 0x15c   : > { %1645 = sbr.rel (%p1774_p0) target bundleno = 361 (0x169), region = 141  ;;  %s2286_s23 = smov (!%p1774_p0), 0  }
 0x15d   : > { %s2290_s24 = smov (!%p1774_p0), 0  }
 0x161 LB: >> { %v1547_v39 = vld [vmem:[%s2284_s19] sm:$0xff]  ;;  %s1549_s21 = sadd.s32 1, %s2288_s23  ;;  %s1541_s24 = sadd.s32 1, %s2292_s24   ;;  %s2292_s24 = sphi %s2290_s24, %s1541_s24   ;;  %s2288_s23 = sphi %s2286_s23, %s2287_s23   ;;  %s2284_s19 = sphi %s2282_s19, %s1554_s19   ;;  %s2280_s17 = sphi %s2278_s17, %s1555_s17  }
 0x162   : >> { %1548 = vst [vmem:[%s2280_s17] sm:$0xff] %v1547_v39  ;;  %p1550_p1 = scmp.ge.s32.totalorder %s1549_s21, %s2703_s8  ;;  %p1540_p2 = scmp.ge.s32.totalorder %s1541_s24, %s2703_s8 }
 0x164   : >> { %s2747_s21 = smov (%p1550_p1, %s1549_s21), 0  ;;  %1543 = sbr.rel (!%p1540_p2) target bundleno = 353 (0x161), region = 147 }
 0x165   : >> { %s1775_s12 = sshll.u32 %s2747_s21, 3  ;;  %s2287_s23 = smov %s2747_s21  }
 0x166   : >> { %s1554_s19 = scalar_lea.vmem %s1535_s10, %s1775_s12 [#allocation3]   ;;  %s1555_s17 = scalar_lea.vmem %s1537_s11, %s1775_s12  }
 0x169 PF: > { %s13_s16 = sadd.s32 1, %s2260_s16   ;;  %s2736_s12 = smov %s2248_s13 }
 0x16a   : > { %p10_p3 = scmp.ge.s32.totalorder %s13_s16, 4   ;;  %s2737_s13 = smov %s2355_s22 }
 0x16b   : > { %s2738_s14 = smov %s2256_s15  ;;  %s2739_s15 = smov %s2741_s18 }
 0x16c   :  { %12 = sbr.rel (!%p10_p3) target bundleno = 3 (0x3), region = 158 }

</bundles_post_ra>
